<compile_context>
chip_gen: v5e
topology: v5e:2x2
jax: 0.10.0
libtpu: 0.0.40
codegen_flags: <defaults>
</compile_context>

<pallas_src>
import jax
import jax.numpy as jnp
from jax.experimental import pallas as pl
from jax.experimental.pallas import tpu as pltpu

NHID = 128
INPUT_DIM = 512
KSIZE = 3
CLASS_PAD = 128   # lane-dense padded logits width (real classes = 2)


def _full_block(shape):
    """Whole-array VMEM block (no grid)."""
    return pl.BlockSpec(shape, lambda *_: (0,) * len(shape))


# ------------------------------- fused forward kernel -------------------------------
def _make_fused_kernel(layer_cfgs, B, T, n_w_per_mod):
    """layer_cfgs: tuple of (dilation, has_downsample).  Kernel arg order:
    x_v, x_a, *weights_v, *weights_a, fc_w, fc_b, out."""
    BT = B * T

    def kernel(*refs):
        x_v_ref, x_a_ref = refs[0], refs[1]
        wv = refs[2:2 + n_w_per_mod]
        wa = refs[2 + n_w_per_mod:2 + 2 * n_w_per_mod]
        fc_w_ref = refs[2 + 2 * n_w_per_mod]
        fc_b_ref = refs[3 + 2 * n_w_per_mod]
        o_ref = refs[4 + 2 * n_w_per_mod]

        # Causal masks: row r holds time t = r % T; a shift by s invalidates t < s.
        # Traced once, reused across modalities / levels / convs.
        t_ids = jax.lax.broadcasted_iota(jnp.int32, (BT, NHID), 0) % T
        mask_cache = {}

        def shift_mask(s):
            if s not in mask_cache:
                mask_cache[s] = t_ids >= s
            return mask_cache[s]

        def causal_conv(x_bf, wcat_ref, b_ref, d):
            # y[t] = x[t] @ W2 + x[t-d] @ W1 + x[t-2d] @ W0 + b   (zero-padded past).
            # One fused MXU matmul for all 3 taps; causal shifts on the narrow f32
            # outputs via XLU roll + VPU mask (off the MXU critical chain).
            ycat = jnp.dot(x_bf, wcat_ref[...], preferred_element_type=jnp.float32)
            acc = ycat[:, 0:NHID]
            for j, s in ((1, d), (2, 2 * d)):
                piece = ycat[:, j * NHID:(j + 1) * NHID]
                rolled = pltpu.roll(piece, shift=s, axis=0)      # row r <- row r-s
                acc = acc + jnp.where(shift_mask(s), rolled, 0.0)
            return acc + b_ref[...]

        def tcn(x_ref, wrefs):
            h_bf = x_ref[...]                     # (BT, C_in) bf16; consumed only as bf16
            h = None                              # f32 activations of the previous level
            idx = 0
            for d, has_down in layer_cfgs:        # static unroll over levels
                wcat1, b1, wcat2, b2 = wrefs[idx:idx + 4]
                idx += 4
                out = jnp.maximum(causal_conv(h_bf, wcat1, b1, d), 0.0)
                out = jnp.maximum(
                    causal_conv(out.astype(jnp.bfloat16), wcat2, b2, d), 0.0)
                if has_down:
                    dw, db = wrefs[idx:idx + 2]
                    idx += 2
                    res = (jnp.dot(h_bf, dw[...],
                                   preferred_element_type=jnp.float32) + db[...])
                else:
                    res = h if h is not None else h_bf.astype(jnp.float32)
                h = jnp.maximum(out + res, 0.0)   # (BT, NHID) f32
                h_bf = h.astype(jnp.bfloat16)
            return h_bf                           # (BT, NHID) bf16

        h_v = tcn(x_v_ref, wv)
        h_a = tcn(x_a_ref, wa)

        # x[:, :, -1]: pick row b*T + (T-1) per batch element -> tiny bf16 MXU pass.
        b_ids = jax.lax.broadcasted_iota(jnp.int32, (B, BT), 0)
        r_ids = jax.lax.broadcasted_iota(jnp.int32, (B, BT), 1)
        sel = (r_ids == b_ids * T + (T - 1)).astype(jnp.bfloat16)
        f_v = jnp.dot(sel, h_v, preferred_element_type=jnp.float32).astype(jnp.bfloat16)
        f_a = jnp.dot(sel, h_a, preferred_element_type=jnp.float32).astype(jnp.bfloat16)

        # fc + log_softmax over the lane-dense padded class axis (padded bias = -1e30,
        # so padded lanes contribute exp() == 0; wrapper slices the 2 real classes).
        logits = (jnp.dot(f_v, fc_w_ref[0:NHID, :], preferred_element_type=jnp.float32)
                  + jnp.dot(f_a, fc_w_ref[NHID:2 * NHID, :],
                            preferred_element_type=jnp.float32)
                  + fc_b_ref[...])
        m = jnp.max(logits, axis=-1, keepdims=True)
        lse = jnp.log(jnp.sum(jnp.exp(logits - m), axis=-1, keepdims=True)) + m
        o_ref[...] = (logits - lse).astype(o_ref.dtype)

    return kernel


# ---------------------------------- full forward ------------------------------------
def model_tcn_forward(x_v, x_a, flat_v, flat_a, fc_w, fc_b, layer_cfgs):
    B, C, T = x_v.shape

    def to_rows(x):                               # (B, C, T) -> (B*T, C), bf16 operand
        return jnp.transpose(x, (0, 2, 1)).reshape(B * T, C).astype(jnp.bfloat16)

    inputs = [to_rows(x_v), to_rows(x_a), *flat_v, *flat_a, fc_w, fc_b]
    out_pad = pl.pallas_call(
        _make_fused_kernel(layer_cfgs, B, T, len(flat_v)),
        out_shape=jax.ShapeDtypeStruct((B, CLASS_PAD), jnp.float32),
        in_specs=[_full_block(a.shape) for a in inputs],
        out_specs=_full_block((B, CLASS_PAD)),
    )(*inputs)
    return out_pad[:, :2]                          # real classes


# ---------------------------------- parameter init ----------------------------------
def init_tcn_params(key, num_layers, input_dim, hidden, ksize=KSIZE):
    """One modality.  Conv weights stored as (C_in, 3*hidden) bf16, where column block
    j in {0,1,2} corresponds to time offsets {0, d, 2d} (= PyTorch taps {2, 1, 0});
    biases are (1, hidden) f32."""
    layer_cfgs = []
    flat = []
    for layer in range(num_layers):
        d = 2 ** layer
        c_in = input_dim if layer == 0 else hidden
        has_down = c_in != hidden
        layer_cfgs.append((d, has_down))
        b1 = 1.0 / (c_in * ksize) ** 0.5
        b2 = 1.0 / (hidden * ksize) ** 0.5
        key, k1, k2, k3, k4 = jax.random.split(key, 5)
        flat += [
            jax.random.uniform(k1, (c_in, ksize * hidden), jnp.float32, -b1, b1
                               ).astype(jnp.bfloat16),                  # conv1 fused taps
            jax.random.uniform(k2, (1, hidden), jnp.float32, -b1, b1),  # conv1 bias
            jax.random.uniform(k3, (hidden, ksize * hidden), jnp.float32, -b2, b2
                               ).astype(jnp.bfloat16),                  # conv2 fused taps
            jax.random.uniform(k4, (1, hidden), jnp.float32, -b2, b2),  # conv2 bias
        ]
        if has_down:
            bd = 1.0 / c_in ** 0.5
            key, k5, k6 = jax.random.split(key, 3)
            flat += [
                jax.random.uniform(k5, (c_in, hidden), jnp.float32, -bd, bd
                                   ).astype(jnp.bfloat16),              # 1x1 downsample W
                jax.random.uniform(k6, (1, hidden), jnp.float32, -bd, bd),
            ]
    return key, tuple(layer_cfgs), flat


def init_fc_params(key, in_features, num_classes, pad_to=CLASS_PAD):
    bound = 1.0 / in_features ** 0.5
    key, k1, k2 = jax.random.split(key, 3)
    w = jax.random.uniform(k1, (num_classes, in_features), jnp.float32, -bound, bound)
    b = jax.random.uniform(k2, (num_classes,), jnp.float32, -bound, bound)
    w_pad = (jnp.zeros((in_features, pad_to), jnp.float32)
             .at[:, :num_classes].set(w.T).astype(jnp.bfloat16))
    # padded classes get -1e30 bias -> exp() == 0 in log_softmax, sliced away in wrapper
    b_pad = jnp.full((1, pad_to), -1e30, jnp.float32).at[0, :num_classes].set(b)
    return key, w_pad, b_pad


# ------------------------------ pure-JAX reference ----------------------------------
def reference_forward(x_v, x_a, flat_v, flat_a, fc_w, fc_b, layer_cfgs):
    """Same math (bf16 operands / f32 accumulation, zero-padded causal shifts)."""
    B, C, T = x_v.shape

    def conv(zb, wcat, b, d):                      # zb: (B, T, C_in) bf16
        y = jnp.einsum("btc,cn->btn", zb, wcat, preferred_element_type=jnp.float32)
        out = y[..., 0:NHID]
        for j, s in ((1, d), (2, 2 * d)):
            piece = y[..., j * NHID:(j + 1) * NHID]
            shifted = jnp.pad(piece, ((0, 0), (s, 0), (0, 0)))[:, :T, :]
            out = out + shifted
        return out + b

    def tcn(x, flat):
        hb = jnp.transpose(x, (0, 2, 1)).astype(jnp.bfloat16)   # (B, T, C)
        h = None
        idx = 0
        for d, has_down in layer_cfgs:
            wcat1, b1, wcat2, b2 = flat[idx:idx + 4]
            idx += 4
            o = jnp.maximum(conv(hb, wcat1, b1, d), 0.0)
            o = jnp.maximum(conv(o.astype(jnp.bfloat16), wcat2, b2, d), 0.0)
            if has_down:
                dw, db = flat[idx:idx + 2]
                idx += 2
                res = jnp.einsum("btc,cn->btn", hb, dw,
                                 preferred_element_type=jnp.float32) + db
            else:
                res = h if h is not None else hb.astype(jnp.float32)
            h = jnp.maximum(o + res, 0.0)
            hb = h.astype(jnp.bfloat16)
        return hb[:, T - 1, :]                     # (B, NHID) bf16

    f_v = tcn(x_v, flat_v)
    f_a = tcn(x_a, flat_a)
    logits = (jnp.dot(f_v, fc_w[0:NHID, :2], preferred_element_type=jnp.float32)
              + jnp.dot(f_a, fc_w[NHID:2 * NHID, :2],
                        preferred_element_type=jnp.float32)
              + fc_b[0, :2])
    return jax.nn.log_softmax(logits, axis=1)


if __name__ == "__main__":
    num_layers = 2
    B, T = 8, 16          # B*T = 128 rows (sublane aligned); channels 512/128 lane aligned

    key = jax.random.PRNGKey(0)
    key, kv, ka = jax.random.split(key, 3)
    x_v = jax.random.normal(kv, (B, INPUT_DIM, T), jnp.float32)   # PyTorch Conv1d layout (B, C, T)
    x_a = jax.random.normal(ka, (B, INPUT_DIM, T), jnp.float32)

    key, layer_cfgs, flat_v = init_tcn_params(key, num_layers, INPUT_DIM, NHID)
    key, _, flat_a = init_tcn_params(key, num_layers, INPUT_DIM, NHID)
    key, fc_w, fc_b = init_fc_params(key, 2 * NHID, 2)

    fwd = jax.jit(lambda xv, xa, fv, fa, w, b:
                  model_tcn_forward(xv, xa, fv, fa, w, b, layer_cfgs))
    out = fwd(x_v, x_a, flat_v, flat_a, fc_w, fc_b)
    jax.block_until_ready(out)
    assert out.shape == (B, 2), out.shape

    ref = reference_forward(x_v, x_a, flat_v, flat_a, fc_w, fc_b, layer_cfgs)
    assert jnp.allclose(out, ref, atol=2e-2, rtol=2e-2), \
        float(jnp.max(jnp.abs(out - ref)))

    print("KERNEL_OK")
</pallas_src>

<mosaic_0001>
module attributes {stable_mosaic.version = 11 : i64} {
  func.func @kernel(%arg0: memref<128x512xbf16, #tpu.memory_space<vmem>>, %arg1: memref<128x512xbf16, #tpu.memory_space<vmem>>, %arg2: memref<512x384xbf16, #tpu.memory_space<vmem>>, %arg3: memref<1x128xf32, #tpu.memory_space<vmem>>, %arg4: memref<128x384xbf16, #tpu.memory_space<vmem>>, %arg5: memref<1x128xf32, #tpu.memory_space<vmem>>, %arg6: memref<512x128xbf16, #tpu.memory_space<vmem>>, %arg7: memref<1x128xf32, #tpu.memory_space<vmem>>, %arg8: memref<128x384xbf16, #tpu.memory_space<vmem>>, %arg9: memref<1x128xf32, #tpu.memory_space<vmem>>, %arg10: memref<128x384xbf16, #tpu.memory_space<vmem>>, %arg11: memref<1x128xf32, #tpu.memory_space<vmem>>, %arg12: memref<512x384xbf16, #tpu.memory_space<vmem>>, %arg13: memref<1x128xf32, #tpu.memory_space<vmem>>, %arg14: memref<128x384xbf16, #tpu.memory_space<vmem>>, %arg15: memref<1x128xf32, #tpu.memory_space<vmem>>, %arg16: memref<512x128xbf16, #tpu.memory_space<vmem>>, %arg17: memref<1x128xf32, #tpu.memory_space<vmem>>, %arg18: memref<128x384xbf16, #tpu.memory_space<vmem>>, %arg19: memref<1x128xf32, #tpu.memory_space<vmem>>, %arg20: memref<128x384xbf16, #tpu.memory_space<vmem>>, %arg21: memref<1x128xf32, #tpu.memory_space<vmem>>, %arg22: memref<256x128xbf16, #tpu.memory_space<vmem>>, %arg23: memref<1x128xf32, #tpu.memory_space<vmem>>, %arg24: memref<8x128xf32, #tpu.memory_space<vmem>>) attributes {dimension_semantics = [], scalar_prefetch = 0 : i64, scratch_operands = 0 : i64, tpu.core_type = #tpu.core_type<tc>} {
    %0 = tpu.iota {dimensions = array<i32: 0>} : vector<128x128xi32>
    %c16_i32 = arith.constant 16 : i32
    %c0_i32 = arith.constant 0 : i32
    %1 = arith.cmpi eq, %c16_i32, %c0_i32 : i32
    %c1_i32 = arith.constant 1 : i32
    %2 = arith.select %1, %c1_i32, %c16_i32 : i32
    %3 = vector.broadcast %2 : i32 to vector<128x128xi32>
    %4 = arith.remsi %0, %3 : vector<128x128xi32>
    %c0_i32_0 = arith.constant 0 : i32
    %5 = vector.broadcast %c0_i32_0 : i32 to vector<128x128xi32>
    %6 = arith.cmpi ne, %4, %5 : vector<128x128xi32>
    %c0_i32_1 = arith.constant 0 : i32
    %7 = vector.broadcast %c0_i32_1 : i32 to vector<128x128xi32>
    %8 = arith.cmpi slt, %4, %7 : vector<128x128xi32>
    %c0_i32_2 = arith.constant 0 : i32
    %9 = arith.cmpi slt, %2, %c0_i32_2 : i32
    %10 = vector.broadcast %9 : i1 to vector<128x128xi1>
    %11 = vector.broadcast %10 : vector<128x128xi1> to vector<128x128xi1>
    %12 = arith.xori %8, %11 : vector<128x128xi1>
    %13 = arith.andi %12, %6 : vector<128x128xi1>
    %14 = vector.broadcast %2 : i32 to vector<128x128xi32>
    %15 = arith.addi %4, %14 : vector<128x128xi32>
    %16 = arith.select %13, %15, %4 : vector<128x128xi1>, vector<128x128xi32>
    %c0 = arith.constant 0 : index
    %c0_3 = arith.constant 0 : index
    %17 = vector.load %arg0[%c0, %c0_3] : memref<128x512xbf16, #tpu.memory_space<vmem>>, vector<128x512xbf16>
    %c0_4 = arith.constant 0 : index
    %c0_5 = arith.constant 0 : index
    %18 = vector.load %arg2[%c0_4, %c0_5] : memref<512x384xbf16, #tpu.memory_space<vmem>>, vector<512x384xbf16>
    %cst = arith.constant dense<0.000000e+00> : vector<128x384xf32>
    %19 = tpu.matmul %17, %18, %cst {dimension_numbers = #tpu.dot_dimension_numbers<[1], [0], [0], [1], [0, 0, 1, 1], [], []>} : vector<128x512xbf16>, vector<512x384xbf16>, vector<128x384xf32> -> vector<128x384xf32>
    %20 = vector.extract_strided_slice %19 {offsets = [0, 0], sizes = [128, 128], strides = [1, 1]} : vector<128x384xf32> to vector<128x128xf32>
    %21 = vector.extract_strided_slice %19 {offsets = [0, 128], sizes = [128, 128], strides = [1, 1]} : vector<128x384xf32> to vector<128x128xf32>
    %c1_i32_6 = arith.constant 1 : i32
    %22 = tpu.dynamic_rotate %21 by %c1_i32_6 dim 0 : vector<128x128xf32>, i32 -> vector<128x128xf32>
    %c1_i32_7 = arith.constant 1 : i32
    %23 = vector.broadcast %c1_i32_7 : i32 to vector<128x128xi32>
    %24 = arith.cmpi sge, %16, %23 : vector<128x128xi32>
    %cst_8 = arith.constant 0.000000e+00 : f32
    %25 = vector.broadcast %cst_8 : f32 to vector<128x128xf32>
    %26 = arith.select %24, %22, %25 : vector<128x128xi1>, vector<128x128xf32>
    %27 = arith.addf %20, %26 : vector<128x128xf32>
    %28 = vector.extract_strided_slice %19 {offsets = [0, 256], sizes = [128, 128], strides = [1, 1]} : vector<128x384xf32> to vector<128x128xf32>
    %c2_i32 = arith.constant 2 : i32
    %29 = tpu.dynamic_rotate %28 by %c2_i32 dim 0 : vector<128x128xf32>, i32 -> vector<128x128xf32>
    %c2_i32_9 = arith.constant 2 : i32
    %30 = vector.broadcast %c2_i32_9 : i32 to vector<128x128xi32>
    %31 = arith.cmpi sge, %16, %30 : vector<128x128xi32>
    %cst_10 = arith.constant 0.000000e+00 : f32
    %32 = vector.broadcast %cst_10 : f32 to vector<128x128xf32>
    %33 = arith.select %31, %29, %32 : vector<128x128xi1>, vector<128x128xf32>
    %34 = arith.addf %27, %33 : vector<128x128xf32>
    %c0_11 = arith.constant 0 : index
    %c0_12 = arith.constant 0 : index
    %35 = vector.load %arg3[%c0_11, %c0_12] : memref<1x128xf32, #tpu.memory_space<vmem>>, vector<1x128xf32>
    %36 = vector.broadcast %35 : vector<1x128xf32> to vector<128x128xf32>
    %37 = arith.addf %34, %36 : vector<128x128xf32>
    %cst_13 = arith.constant 0.000000e+00 : f32
    %38 = vector.broadcast %cst_13 : f32 to vector<128x128xf32>
    %39 = arith.maximumf %37, %38 : vector<128x128xf32>
    %40 = arith.truncf %39 : vector<128x128xf32> to vector<128x128xbf16>
    %c0_14 = arith.constant 0 : index
    %c0_15 = arith.constant 0 : index
    %41 = vector.load %arg4[%c0_14, %c0_15] : memref<128x384xbf16, #tpu.memory_space<vmem>>, vector<128x384xbf16>
    %cst_16 = arith.constant dense<0.000000e+00> : vector<128x384xf32>
    %42 = tpu.matmul %40, %41, %cst_16 {dimension_numbers = #tpu.dot_dimension_numbers<[1], [0], [0], [1], [0, 0, 1, 1], [], []>} : vector<128x128xbf16>, vector<128x384xbf16>, vector<128x384xf32> -> vector<128x384xf32>
    %43 = vector.extract_strided_slice %42 {offsets = [0, 0], sizes = [128, 128], strides = [1, 1]} : vector<128x384xf32> to vector<128x128xf32>
    %44 = vector.extract_strided_slice %42 {offsets = [0, 128], sizes = [128, 128], strides = [1, 1]} : vector<128x384xf32> to vector<128x128xf32>
    %c1_i32_17 = arith.constant 1 : i32
    %45 = tpu.dynamic_rotate %44 by %c1_i32_17 dim 0 : vector<128x128xf32>, i32 -> vector<128x128xf32>
    %cst_18 = arith.constant 0.000000e+00 : f32
    %46 = vector.broadcast %cst_18 : f32 to vector<128x128xf32>
    %47 = arith.select %24, %45, %46 : vector<128x128xi1>, vector<128x128xf32>
    %48 = arith.addf %43, %47 : vector<128x128xf32>
    %49 = vector.extract_strided_slice %42 {offsets = [0, 256], sizes = [128, 128], strides = [1, 1]} : vector<128x384xf32> to vector<128x128xf32>
    %c2_i32_19 = arith.constant 2 : i32
    %50 = tpu.dynamic_rotate %49 by %c2_i32_19 dim 0 : vector<128x128xf32>, i32 -> vector<128x128xf32>
    %cst_20 = arith.constant 0.000000e+00 : f32
    %51 = vector.broadcast %cst_20 : f32 to vector<128x128xf32>
    %52 = arith.select %31, %50, %51 : vector<128x128xi1>, vector<128x128xf32>
    %53 = arith.addf %48, %52 : vector<128x128xf32>
    %c0_21 = arith.constant 0 : index
    %c0_22 = arith.constant 0 : index
    %54 = vector.load %arg5[%c0_21, %c0_22] : memref<1x128xf32, #tpu.memory_space<vmem>>, vector<1x128xf32>
    %55 = vector.broadcast %54 : vector<1x128xf32> to vector<128x128xf32>
    %56 = arith.addf %53, %55 : vector<128x128xf32>
    %cst_23 = arith.constant 0.000000e+00 : f32
    %57 = vector.broadcast %cst_23 : f32 to vector<128x128xf32>
    %58 = arith.maximumf %56, %57 : vector<128x128xf32>
    %c0_24 = arith.constant 0 : index
    %c0_25 = arith.constant 0 : index
    %59 = vector.load %arg6[%c0_24, %c0_25] : memref<512x128xbf16, #tpu.memory_space<vmem>>, vector<512x128xbf16>
    %cst_26 = arith.constant dense<0.000000e+00> : vector<128x128xf32>
    %60 = tpu.matmul %17, %59, %cst_26 {dimension_numbers = #tpu.dot_dimension_numbers<[1], [0], [0], [1], [0, 0, 1, 1], [], []>} : vector<128x512xbf16>, vector<512x128xbf16>, vector<128x128xf32> -> vector<128x128xf32>
    %c0_27 = arith.constant 0 : index
    %c0_28 = arith.constant 0 : index
    %61 = vector.load %arg7[%c0_27, %c0_28] : memref<1x128xf32, #tpu.memory_space<vmem>>, vector<1x128xf32>
    %62 = vector.broadcast %61 : vector<1x128xf32> to vector<128x128xf32>
    %63 = arith.addf %60, %62 : vector<128x128xf32>
    %64 = arith.addf %58, %63 : vector<128x128xf32>
    %cst_29 = arith.constant 0.000000e+00 : f32
    %65 = vector.broadcast %cst_29 : f32 to vector<128x128xf32>
    %66 = arith.maximumf %64, %65 : vector<128x128xf32>
    %67 = arith.truncf %66 : vector<128x128xf32> to vector<128x128xbf16>
    %c0_30 = arith.constant 0 : index
    %c0_31 = arith.constant 0 : index
    %68 = vector.load %arg8[%c0_30, %c0_31] : memref<128x384xbf16, #tpu.memory_space<vmem>>, vector<128x384xbf16>
    %cst_32 = arith.constant dense<0.000000e+00> : vector<128x384xf32>
    %69 = tpu.matmul %67, %68, %cst_32 {dimension_numbers = #tpu.dot_dimension_numbers<[1], [0], [0], [1], [0, 0, 1, 1], [], []>} : vector<128x128xbf16>, vector<128x384xbf16>, vector<128x384xf32> -> vector<128x384xf32>
    %70 = vector.extract_strided_slice %69 {offsets = [0, 0], sizes = [128, 128], strides = [1, 1]} : vector<128x384xf32> to vector<128x128xf32>
    %71 = vector.extract_strided_slice %69 {offsets = [0, 128], sizes = [128, 128], strides = [1, 1]} : vector<128x384xf32> to vector<128x128xf32>
    %c2_i32_33 = arith.constant 2 : i32
    %72 = tpu.dynamic_rotate %71 by %c2_i32_33 dim 0 : vector<128x128xf32>, i32 -> vector<128x128xf32>
    %cst_34 = arith.constant 0.000000e+00 : f32
    %73 = vector.broadcast %cst_34 : f32 to vector<128x128xf32>
    %74 = arith.select %31, %72, %73 : vector<128x128xi1>, vector<128x128xf32>
    %75 = arith.addf %70, %74 : vector<128x128xf32>
    %76 = vector.extract_strided_slice %69 {offsets = [0, 256], sizes = [128, 128], strides = [1, 1]} : vector<128x384xf32> to vector<128x128xf32>
    %c4_i32 = arith.constant 4 : i32
    %77 = tpu.dynamic_rotate %76 by %c4_i32 dim 0 : vector<128x128xf32>, i32 -> vector<128x128xf32>
    %c4_i32_35 = arith.constant 4 : i32
    %78 = vector.broadcast %c4_i32_35 : i32 to vector<128x128xi32>
    %79 = arith.cmpi sge, %16, %78 : vector<128x128xi32>
    %cst_36 = arith.constant 0.000000e+00 : f32
    %80 = vector.broadcast %cst_36 : f32 to vector<128x128xf32>
    %81 = arith.select %79, %77, %80 : vector<128x128xi1>, vector<128x128xf32>
    %82 = arith.addf %75, %81 : vector<128x128xf32>
    %c0_37 = arith.constant 0 : index
    %c0_38 = arith.constant 0 : index
    %83 = vector.load %arg9[%c0_37, %c0_38] : memref<1x128xf32, #tpu.memory_space<vmem>>, vector<1x128xf32>
    %84 = vector.broadcast %83 : vector<1x128xf32> to vector<128x128xf32>
    %85 = arith.addf %82, %84 : vector<128x128xf32>
    %cst_39 = arith.constant 0.000000e+00 : f32
    %86 = vector.broadcast %cst_39 : f32 to vector<128x128xf32>
    %87 = arith.maximumf %85, %86 : vector<128x128xf32>
    %88 = arith.truncf %87 : vector<128x128xf32> to vector<128x128xbf16>
    %c0_40 = arith.constant 0 : index
    %c0_41 = arith.constant 0 : index
    %89 = vector.load %arg10[%c0_40, %c0_41] : memref<128x384xbf16, #tpu.memory_space<vmem>>, vector<128x384xbf16>
    %cst_42 = arith.constant dense<0.000000e+00> : vector<128x384xf32>
    %90 = tpu.matmul %88, %89, %cst_42 {dimension_numbers = #tpu.dot_dimension_numbers<[1], [0], [0], [1], [0, 0, 1, 1], [], []>} : vector<128x128xbf16>, vector<128x384xbf16>, vector<128x384xf32> -> vector<128x384xf32>
    %91 = vector.extract_strided_slice %90 {offsets = [0, 0], sizes = [128, 128], strides = [1, 1]} : vector<128x384xf32> to vector<128x128xf32>
    %92 = vector.extract_strided_slice %90 {offsets = [0, 128], sizes = [128, 128], strides = [1, 1]} : vector<128x384xf32> to vector<128x128xf32>
    %c2_i32_43 = arith.constant 2 : i32
    %93 = tpu.dynamic_rotate %92 by %c2_i32_43 dim 0 : vector<128x128xf32>, i32 -> vector<128x128xf32>
    %cst_44 = arith.constant 0.000000e+00 : f32
    %94 = vector.broadcast %cst_44 : f32 to vector<128x128xf32>
    %95 = arith.select %31, %93, %94 : vector<128x128xi1>, vector<128x128xf32>
    %96 = arith.addf %91, %95 : vector<128x128xf32>
    %97 = vector.extract_strided_slice %90 {offsets = [0, 256], sizes = [128, 128], strides = [1, 1]} : vector<128x384xf32> to vector<128x128xf32>
    %c4_i32_45 = arith.constant 4 : i32
    %98 = tpu.dynamic_rotate %97 by %c4_i32_45 dim 0 : vector<128x128xf32>, i32 -> vector<128x128xf32>
    %cst_46 = arith.constant 0.000000e+00 : f32
    %99 = vector.broadcast %cst_46 : f32 to vector<128x128xf32>
    %100 = arith.select %79, %98, %99 : vector<128x128xi1>, vector<128x128xf32>
    %101 = arith.addf %96, %100 : vector<128x128xf32>
    %c0_47 = arith.constant 0 : index
    %c0_48 = arith.constant 0 : index
    %102 = vector.load %arg11[%c0_47, %c0_48] : memref<1x128xf32, #tpu.memory_space<vmem>>, vector<1x128xf32>
    %103 = vector.broadcast %102 : vector<1x128xf32> to vector<128x128xf32>
    %104 = arith.addf %101, %103 : vector<128x128xf32>
    %cst_49 = arith.constant 0.000000e+00 : f32
    %105 = vector.broadcast %cst_49 : f32 to vector<128x128xf32>
    %106 = arith.maximumf %104, %105 : vector<128x128xf32>
    %107 = arith.addf %106, %66 : vector<128x128xf32>
    %cst_50 = arith.constant 0.000000e+00 : f32
    %108 = vector.broadcast %cst_50 : f32 to vector<128x128xf32>
    %109 = arith.maximumf %107, %108 : vector<128x128xf32>
    %110 = arith.truncf %109 : vector<128x128xf32> to vector<128x128xbf16>
    %c0_51 = arith.constant 0 : index
    %c0_52 = arith.constant 0 : index
    %111 = vector.load %arg1[%c0_51, %c0_52] : memref<128x512xbf16, #tpu.memory_space<vmem>>, vector<128x512xbf16>
    %c0_53 = arith.constant 0 : index
    %c0_54 = arith.constant 0 : index
    %112 = vector.load %arg12[%c0_53, %c0_54] : memref<512x384xbf16, #tpu.memory_space<vmem>>, vector<512x384xbf16>
    %cst_55 = arith.constant dense<0.000000e+00> : vector<128x384xf32>
    %113 = tpu.matmul %111, %112, %cst_55 {dimension_numbers = #tpu.dot_dimension_numbers<[1], [0], [0], [1], [0, 0, 1, 1], [], []>} : vector<128x512xbf16>, vector<512x384xbf16>, vector<128x384xf32> -> vector<128x384xf32>
    %114 = vector.extract_strided_slice %113 {offsets = [0, 0], sizes = [128, 128], strides = [1, 1]} : vector<128x384xf32> to vector<128x128xf32>
    %115 = vector.extract_strided_slice %113 {offsets = [0, 128], sizes = [128, 128], strides = [1, 1]} : vector<128x384xf32> to vector<128x128xf32>
    %c1_i32_56 = arith.constant 1 : i32
    %116 = tpu.dynamic_rotate %115 by %c1_i32_56 dim 0 : vector<128x128xf32>, i32 -> vector<128x128xf32>
    %cst_57 = arith.constant 0.000000e+00 : f32
    %117 = vector.broadcast %cst_57 : f32 to vector<128x128xf32>
    %118 = arith.select %24, %116, %117 : vector<128x128xi1>, vector<128x128xf32>
    %119 = arith.addf %114, %118 : vector<128x128xf32>
    %120 = vector.extract_strided_slice %113 {offsets = [0, 256], sizes = [128, 128], strides = [1, 1]} : vector<128x384xf32> to vector<128x128xf32>
    %c2_i32_58 = arith.constant 2 : i32
    %121 = tpu.dynamic_rotate %120 by %c2_i32_58 dim 0 : vector<128x128xf32>, i32 -> vector<128x128xf32>
    %cst_59 = arith.constant 0.000000e+00 : f32
    %122 = vector.broadcast %cst_59 : f32 to vector<128x128xf32>
    %123 = arith.select %31, %121, %122 : vector<128x128xi1>, vector<128x128xf32>
    %124 = arith.addf %119, %123 : vector<128x128xf32>
    %c0_60 = arith.constant 0 : index
    %c0_61 = arith.constant 0 : index
    %125 = vector.load %arg13[%c0_60, %c0_61] : memref<1x128xf32, #tpu.memory_space<vmem>>, vector<1x128xf32>
    %126 = vector.broadcast %125 : vector<1x128xf32> to vector<128x128xf32>
    %127 = arith.addf %124, %126 : vector<128x128xf32>
    %cst_62 = arith.constant 0.000000e+00 : f32
    %128 = vector.broadcast %cst_62 : f32 to vector<128x128xf32>
    %129 = arith.maximumf %127, %128 : vector<128x128xf32>
    %130 = arith.truncf %129 : vector<128x128xf32> to vector<128x128xbf16>
    %c0_63 = arith.constant 0 : index
    %c0_64 = arith.constant 0 : index
    %131 = vector.load %arg14[%c0_63, %c0_64] : memref<128x384xbf16, #tpu.memory_space<vmem>>, vector<128x384xbf16>
    %cst_65 = arith.constant dense<0.000000e+00> : vector<128x384xf32>
    %132 = tpu.matmul %130, %131, %cst_65 {dimension_numbers = #tpu.dot_dimension_numbers<[1], [0], [0], [1], [0, 0, 1, 1], [], []>} : vector<128x128xbf16>, vector<128x384xbf16>, vector<128x384xf32> -> vector<128x384xf32>
    %133 = vector.extract_strided_slice %132 {offsets = [0, 0], sizes = [128, 128], strides = [1, 1]} : vector<128x384xf32> to vector<128x128xf32>
    %134 = vector.extract_strided_slice %132 {offsets = [0, 128], sizes = [128, 128], strides = [1, 1]} : vector<128x384xf32> to vector<128x128xf32>
    %c1_i32_66 = arith.constant 1 : i32
    %135 = tpu.dynamic_rotate %134 by %c1_i32_66 dim 0 : vector<128x128xf32>, i32 -> vector<128x128xf32>
    %cst_67 = arith.constant 0.000000e+00 : f32
    %136 = vector.broadcast %cst_67 : f32 to vector<128x128xf32>
    %137 = arith.select %24, %135, %136 : vector<128x128xi1>, vector<128x128xf32>
    %138 = arith.addf %133, %137 : vector<128x128xf32>
    %139 = vector.extract_strided_slice %132 {offsets = [0, 256], sizes = [128, 128], strides = [1, 1]} : vector<128x384xf32> to vector<128x128xf32>
    %c2_i32_68 = arith.constant 2 : i32
    %140 = tpu.dynamic_rotate %139 by %c2_i32_68 dim 0 : vector<128x128xf32>, i32 -> vector<128x128xf32>
    %cst_69 = arith.constant 0.000000e+00 : f32
    %141 = vector.broadcast %cst_69 : f32 to vector<128x128xf32>
    %142 = arith.select %31, %140, %141 : vector<128x128xi1>, vector<128x128xf32>
    %143 = arith.addf %138, %142 : vector<128x128xf32>
    %c0_70 = arith.constant 0 : index
    %c0_71 = arith.constant 0 : index
    %144 = vector.load %arg15[%c0_70, %c0_71] : memref<1x128xf32, #tpu.memory_space<vmem>>, vector<1x128xf32>
    %145 = vector.broadcast %144 : vector<1x128xf32> to vector<128x128xf32>
    %146 = arith.addf %143, %145 : vector<128x128xf32>
    %cst_72 = arith.constant 0.000000e+00 : f32
    %147 = vector.broadcast %cst_72 : f32 to vector<128x128xf32>
    %148 = arith.maximumf %146, %147 : vector<128x128xf32>
    %c0_73 = arith.constant 0 : index
    %c0_74 = arith.constant 0 : index
    %149 = vector.load %arg16[%c0_73, %c0_74] : memref<512x128xbf16, #tpu.memory_space<vmem>>, vector<512x128xbf16>
    %cst_75 = arith.constant dense<0.000000e+00> : vector<128x128xf32>
    %150 = tpu.matmul %111, %149, %cst_75 {dimension_numbers = #tpu.dot_dimension_numbers<[1], [0], [0], [1], [0, 0, 1, 1], [], []>} : vector<128x512xbf16>, vector<512x128xbf16>, vector<128x128xf32> -> vector<128x128xf32>
    %c0_76 = arith.constant 0 : index
    %c0_77 = arith.constant 0 : index
    %151 = vector.load %arg17[%c0_76, %c0_77] : memref<1x128xf32, #tpu.memory_space<vmem>>, vector<1x128xf32>
    %152 = vector.broadcast %151 : vector<1x128xf32> to vector<128x128xf32>
    %153 = arith.addf %150, %152 : vector<128x128xf32>
    %154 = arith.addf %148, %153 : vector<128x128xf32>
    %cst_78 = arith.constant 0.000000e+00 : f32
    %155 = vector.broadcast %cst_78 : f32 to vector<128x128xf32>
    %156 = arith.maximumf %154, %155 : vector<128x128xf32>
    %157 = arith.truncf %156 : vector<128x128xf32> to vector<128x128xbf16>
    %c0_79 = arith.constant 0 : index
    %c0_80 = arith.constant 0 : index
    %158 = vector.load %arg18[%c0_79, %c0_80] : memref<128x384xbf16, #tpu.memory_space<vmem>>, vector<128x384xbf16>
    %cst_81 = arith.constant dense<0.000000e+00> : vector<128x384xf32>
    %159 = tpu.matmul %157, %158, %cst_81 {dimension_numbers = #tpu.dot_dimension_numbers<[1], [0], [0], [1], [0, 0, 1, 1], [], []>} : vector<128x128xbf16>, vector<128x384xbf16>, vector<128x384xf32> -> vector<128x384xf32>
    %160 = vector.extract_strided_slice %159 {offsets = [0, 0], sizes = [128, 128], strides = [1, 1]} : vector<128x384xf32> to vector<128x128xf32>
    %161 = vector.extract_strided_slice %159 {offsets = [0, 128], sizes = [128, 128], strides = [1, 1]} : vector<128x384xf32> to vector<128x128xf32>
    %c2_i32_82 = arith.constant 2 : i32
    %162 = tpu.dynamic_rotate %161 by %c2_i32_82 dim 0 : vector<128x128xf32>, i32 -> vector<128x128xf32>
    %cst_83 = arith.constant 0.000000e+00 : f32
    %163 = vector.broadcast %cst_83 : f32 to vector<128x128xf32>
    %164 = arith.select %31, %162, %163 : vector<128x128xi1>, vector<128x128xf32>
    %165 = arith.addf %160, %164 : vector<128x128xf32>
    %166 = vector.extract_strided_slice %159 {offsets = [0, 256], sizes = [128, 128], strides = [1, 1]} : vector<128x384xf32> to vector<128x128xf32>
    %c4_i32_84 = arith.constant 4 : i32
    %167 = tpu.dynamic_rotate %166 by %c4_i32_84 dim 0 : vector<128x128xf32>, i32 -> vector<128x128xf32>
    %cst_85 = arith.constant 0.000000e+00 : f32
    %168 = vector.broadcast %cst_85 : f32 to vector<128x128xf32>
    %169 = arith.select %79, %167, %168 : vector<128x128xi1>, vector<128x128xf32>
    %170 = arith.addf %165, %169 : vector<128x128xf32>
    %c0_86 = arith.constant 0 : index
    %c0_87 = arith.constant 0 : index
    %171 = vector.load %arg19[%c0_86, %c0_87] : memref<1x128xf32, #tpu.memory_space<vmem>>, vector<1x128xf32>
    %172 = vector.broadcast %171 : vector<1x128xf32> to vector<128x128xf32>
    %173 = arith.addf %170, %172 : vector<128x128xf32>
    %cst_88 = arith.constant 0.000000e+00 : f32
    %174 = vector.broadcast %cst_88 : f32 to vector<128x128xf32>
    %175 = arith.maximumf %173, %174 : vector<128x128xf32>
    %176 = arith.truncf %175 : vector<128x128xf32> to vector<128x128xbf16>
    %c0_89 = arith.constant 0 : index
    %c0_90 = arith.constant 0 : index
    %177 = vector.load %arg20[%c0_89, %c0_90] : memref<128x384xbf16, #tpu.memory_space<vmem>>, vector<128x384xbf16>
    %cst_91 = arith.constant dense<0.000000e+00> : vector<128x384xf32>
    %178 = tpu.matmul %176, %177, %cst_91 {dimension_numbers = #tpu.dot_dimension_numbers<[1], [0], [0], [1], [0, 0, 1, 1], [], []>} : vector<128x128xbf16>, vector<128x384xbf16>, vector<128x384xf32> -> vector<128x384xf32>
    %179 = vector.extract_strided_slice %178 {offsets = [0, 0], sizes = [128, 128], strides = [1, 1]} : vector<128x384xf32> to vector<128x128xf32>
    %180 = vector.extract_strided_slice %178 {offsets = [0, 128], sizes = [128, 128], strides = [1, 1]} : vector<128x384xf32> to vector<128x128xf32>
    %c2_i32_92 = arith.constant 2 : i32
    %181 = tpu.dynamic_rotate %180 by %c2_i32_92 dim 0 : vector<128x128xf32>, i32 -> vector<128x128xf32>
    %cst_93 = arith.constant 0.000000e+00 : f32
    %182 = vector.broadcast %cst_93 : f32 to vector<128x128xf32>
    %183 = arith.select %31, %181, %182 : vector<128x128xi1>, vector<128x128xf32>
    %184 = arith.addf %179, %183 : vector<128x128xf32>
    %185 = vector.extract_strided_slice %178 {offsets = [0, 256], sizes = [128, 128], strides = [1, 1]} : vector<128x384xf32> to vector<128x128xf32>
    %c4_i32_94 = arith.constant 4 : i32
    %186 = tpu.dynamic_rotate %185 by %c4_i32_94 dim 0 : vector<128x128xf32>, i32 -> vector<128x128xf32>
    %cst_95 = arith.constant 0.000000e+00 : f32
    %187 = vector.broadcast %cst_95 : f32 to vector<128x128xf32>
    %188 = arith.select %79, %186, %187 : vector<128x128xi1>, vector<128x128xf32>
    %189 = arith.addf %184, %188 : vector<128x128xf32>
    %c0_96 = arith.constant 0 : index
    %c0_97 = arith.constant 0 : index
    %190 = vector.load %arg21[%c0_96, %c0_97] : memref<1x128xf32, #tpu.memory_space<vmem>>, vector<1x128xf32>
    %191 = vector.broadcast %190 : vector<1x128xf32> to vector<128x128xf32>
    %192 = arith.addf %189, %191 : vector<128x128xf32>
    %cst_98 = arith.constant 0.000000e+00 : f32
    %193 = vector.broadcast %cst_98 : f32 to vector<128x128xf32>
    %194 = arith.maximumf %192, %193 : vector<128x128xf32>
    %195 = arith.addf %194, %156 : vector<128x128xf32>
    %cst_99 = arith.constant 0.000000e+00 : f32
    %196 = vector.broadcast %cst_99 : f32 to vector<128x128xf32>
    %197 = arith.maximumf %195, %196 : vector<128x128xf32>
    %198 = arith.truncf %197 : vector<128x128xf32> to vector<128x128xbf16>
    %199 = tpu.iota {dimensions = array<i32: 0>} : vector<8x128xi32>
    %200 = tpu.iota {dimensions = array<i32: 1>} : vector<8x128xi32>
    %c16_i32_100 = arith.constant 16 : i32
    %201 = vector.broadcast %c16_i32_100 : i32 to vector<8x128xi32>
    %202 = arith.muli %199, %201 : vector<8x128xi32>
    %c15_i32 = arith.constant 15 : i32
    %203 = vector.broadcast %c15_i32 : i32 to vector<8x128xi32>
    %204 = arith.addi %202, %203 : vector<8x128xi32>
    %205 = arith.cmpi eq, %200, %204 : vector<8x128xi32>
    %206 = arith.extui %205 : vector<8x128xi1> to vector<8x128xi32>
    %207 = arith.sitofp %206 : vector<8x128xi32> to vector<8x128xf32>
    %208 = arith.truncf %207 : vector<8x128xf32> to vector<8x128xbf16>
    %cst_101 = arith.constant dense<0.000000e+00> : vector<8x128xf32>
    %209 = tpu.matmul %208, %110, %cst_101 {dimension_numbers = #tpu.dot_dimension_numbers<[1], [0], [0], [1], [0, 0, 1, 1], [], []>} : vector<8x128xbf16>, vector<128x128xbf16>, vector<8x128xf32> -> vector<8x128xf32>
    %210 = arith.truncf %209 : vector<8x128xf32> to vector<8x128xbf16>
    %cst_102 = arith.constant dense<0.000000e+00> : vector<8x128xf32>
    %211 = tpu.matmul %208, %198, %cst_102 {dimension_numbers = #tpu.dot_dimension_numbers<[1], [0], [0], [1], [0, 0, 1, 1], [], []>} : vector<8x128xbf16>, vector<128x128xbf16>, vector<8x128xf32> -> vector<8x128xf32>
    %212 = arith.truncf %211 : vector<8x128xf32> to vector<8x128xbf16>
    %c0_103 = arith.constant 0 : index
    %c0_104 = arith.constant 0 : index
    %213 = vector.load %arg22[%c0_103, %c0_104] : memref<256x128xbf16, #tpu.memory_space<vmem>>, vector<128x128xbf16>
    %cst_105 = arith.constant dense<0.000000e+00> : vector<8x128xf32>
    %214 = tpu.matmul %210, %213, %cst_105 {dimension_numbers = #tpu.dot_dimension_numbers<[1], [0], [0], [1], [0, 0, 1, 1], [], []>} : vector<8x128xbf16>, vector<128x128xbf16>, vector<8x128xf32> -> vector<8x128xf32>
    %c128 = arith.constant 128 : index
    %c0_106 = arith.constant 0 : index
    %215 = vector.load %arg22[%c128, %c0_106] : memref<256x128xbf16, #tpu.memory_space<vmem>>, vector<128x128xbf16>
    %cst_107 = arith.constant dense<0.000000e+00> : vector<8x128xf32>
    %216 = tpu.matmul %212, %215, %cst_107 {dimension_numbers = #tpu.dot_dimension_numbers<[1], [0], [0], [1], [0, 0, 1, 1], [], []>} : vector<8x128xbf16>, vector<128x128xbf16>, vector<8x128xf32> -> vector<8x128xf32>
    %217 = arith.addf %214, %216 : vector<8x128xf32>
    %c0_108 = arith.constant 0 : index
    %c0_109 = arith.constant 0 : index
    %218 = vector.load %arg23[%c0_108, %c0_109] : memref<1x128xf32, #tpu.memory_space<vmem>>, vector<1x128xf32>
    %219 = vector.broadcast %218 : vector<1x128xf32> to vector<8x128xf32>
    %220 = arith.addf %217, %219 : vector<8x128xf32>
    %cst_110 = arith.constant dense<0xFF800000> : vector<8xf32>
    %221 = vector.multi_reduction <maximumf>, %220, %cst_110 [1] : vector<8x128xf32> to vector<8xf32>
    %222 = vector.shape_cast %221 : vector<8xf32> to vector<8x1xf32>
    %223 = vector.broadcast %222 : vector<8x1xf32> to vector<8x128xf32>
    %224 = arith.subf %220, %223 : vector<8x128xf32>
    %225 = math.exp %224 : vector<8x128xf32>
    %cst_111 = arith.constant dense<0.000000e+00> : vector<8xf32>
    %226 = vector.multi_reduction <add>, %225, %cst_111 [1] : vector<8x128xf32> to vector<8xf32>
    %227 = vector.shape_cast %226 : vector<8xf32> to vector<8x1xf32>
    %228 = math.log %227 : vector<8x1xf32>
    %229 = arith.addf %228, %222 : vector<8x1xf32>
    %230 = vector.broadcast %229 : vector<8x1xf32> to vector<8x128xf32>
    %231 = arith.subf %220, %230 : vector<8x128xf32>
    %c0_112 = arith.constant 0 : index
    %c0_113 = arith.constant 0 : index
    %232 = vector.load %arg24[%c0_112, %c0_113] : memref<8x128xf32, #tpu.memory_space<vmem>>, vector<8x128xf32>
    tpu.vector_store %arg24[%c0_112, %c0_113], %231 {strides = array<i32>} : memref<8x128xf32, #tpu.memory_space<vmem>>, vector<8x128xf32>,
    return
  }
}

</mosaic_0001>

<bundles_post_ra>
// kernel: _lambda_.1
= control target key start
LH: loop header
LB: loop body
LE: loop exit
PB: predicated region body
PF: predicated region fallthrough
CT: control target
= control target key end

     0   :  { %s14370_s0 = inlined_call_operand.vmem [shape: bf16[128,512], index: 0, kind: input, shape index: {}]   ;;  %s14371_s1 = inlined_call_operand.vmem [shape: bf16[128,512], index: 1, kind: input, shape index: {}]   ;;  %s14372_s2 = inlined_call_operand.vmem [shape: bf16[512,384], index: 2, kind: input, shape index: {}]   ;;  %s14373_s3 = inlined_call_operand.vmem [shape: f32[1,128], index: 3, kind: input, shape index: {}]   ;;  %s14374_s4 = inlined_call_operand.hbm [shape: bf16[128,384], index: 4, kind: input, shape index: {}]   ;;  %s14375_s5 = inlined_call_operand.vmem [shape: f32[1,128], index: 5, kind: input, shape index: {}]   ;;  %s14376_s6 = inlined_call_operand.vmem [shape: bf16[512,128], index: 6, kind: input, shape index: {}]   ;;  %s14377_s7 = inlined_call_operand.hbm [shape: f32[1,128], index: 7, kind: input, shape index: {}]   ;;  %s14378_s8 = inlined_call_operand.hbm [shape: bf16[128,384], index: 8, kind: input, shape index: {}]   ;;  %s14379_s9 = inlined_call_operand.hbm [shape: f32[1,128], index: 9, kind: input, shape index: {}]   ;;  %s14380_s10 = inlined_call_operand.hbm [shape: bf16[128,384], index: 10, kind: input, shape index: {}]   ;;  %s14381_s11 = inlined_call_operand.hbm [shape: f32[1,128], index: 11, kind: input, shape index: {}]   ;;  %s14382_s12 = inlined_call_operand.hbm [shape: bf16[512,384], index: 12, kind: input, shape index: {}]   ;;  %s14383_s13 = inlined_call_operand.hbm [shape: f32[1,128], index: 13, kind: input, shape index: {}]   ;;  %s14384_s14 = inlined_call_operand.hbm [shape: bf16[128,384], index: 14, kind: input, shape index: {}]   ;;  %s14385_s15 = inlined_call_operand.hbm [shape: f32[1,128], index: 15, kind: input, shape index: {}]   ;;  %s14386_s16 = inlined_call_operand.hbm [shape: bf16[512,128], index: 16, kind: input, shape index: {}]   ;;  %s14387_s17 = inlined_call_operand.vmem [shape: f32[1,128], index: 17, kind: input, shape index: {}]   ;;  %s14388_s18 = inlined_call_operand.hbm [shape: bf16[128,384], index: 18, kind: input, shape index: {}]   ;;  %s14389_s19 = inlined_call_operand.vmem [shape: f32[1,128], index: 19, kind: input, shape index: {}]   ;;  %s14390_s20 = inlined_call_operand.hbm [shape: bf16[128,384], index: 20, kind: input, shape index: {}]   ;;  %s14391_s21 = inlined_call_operand.vmem [shape: f32[1,128], index: 21, kind: input, shape index: {}]   ;;  %s14392_s22 = inlined_call_operand.hbm [shape: bf16[256,128], index: 22, kind: input, shape index: {}]   ;;  %s14393_s23 = inlined_call_operand.vmem [shape: f32[1,128], index: 23, kind: input, shape index: {}]   ;;  %s14394_s24 = inlined_call_operand.vmem [shape: f32[8,128], index: 24, kind: output, shape index: {}]  }
   0x1   :  { %14535 = sst [smem:[#allocation73_spill]] %s14370_s0 }
   0x2   :  { %14536 = sst [smem:[#allocation74_spill]] %s14371_s1 }
   0x3   :  { %14537 = sst [smem:[#allocation75_spill]] %s14372_s2 }
   0x4   :  { %14538 = sst [smem:[#allocation76_spill]] %s14373_s3 }
   0x5   :  { %14539 = sst [smem:[#allocation77_spill]] %s14374_s4 }
   0x6   :  { %14540 = sst [smem:[#allocation78_spill]] %s14375_s5 }
   0x7   :  { %14541 = sst [smem:[#allocation79_spill]] %s14376_s6 }
   0x8   :  { %14542 = sst [smem:[#allocation80_spill]] %s14377_s7 }
   0x9   :  { %14543 = sst [smem:[#allocation81_spill]] %s14378_s8 }
   0xa   :  { %29 = vsyncpa [#allocation3], 0 }
   0xb   :  { %30 = vsyncpa [#allocation5], 0 }
   0xc   :  { %31 = vsyncpa [#allocation8], 0 }
   0xd   :  { %32 = vsyncpa [#allocation11], 0 }
   0xe   :  { %33 = vsyncpa [#allocation14], 0 }
   0xf   :  { %34 = vsyncpa [#allocation17], 0 }
  0x10   :  { %35 = vsyncpa [#allocation20], 0  ;;  %s14544_s27 = sld [smem:[#allocation80_spill]] }
  0x16   :  { %s67_s28 = sshll.u32 %s14544_s27, 4  ;;  %s68_s28 = int_to_ptr.hbm [resolvable:$true] %s67_s28 }
  0x17   :  { %36 = vsyncpa [#allocation23], 0  ;;  %s10669_s6 = smov [#allocation4]   ;;  %s91_s7 = sshll.u32 %s14379_s9, 4  ;;  %s92_s7 = int_to_ptr.hbm [resolvable:$true] %s91_s7 }
  0x18   :  { %s69_s2 = sshll.u32 %s10669_s6, 4  ;;  %s10670_s30 = smov [#allocation7]   ;;  %s70_s2 = int_to_ptr.vmem [resolvable:$true] %s69_s2 }
  0x19   :  { %72 = dma.hbm_to_vmem [thread:$0]  %s68_s28, 16, %s70_s2, [#allocation5]  }
  0x1a   :  { %s93_s3 = sshll.u32 %s10670_s30, 4  ;;  %s115_s4 = sshll.u32 %s14381_s11, 4  ;;  %s94_s3 = int_to_ptr.vmem [resolvable:$true] %s93_s3  ;;  %s116_s4 = int_to_ptr.hbm [resolvable:$true] %s115_s4 }
  0x1b   :  { %96 = dma.hbm_to_vmem [thread:$0]  %s92_s7, 16, %s94_s3, [#allocation8]  }
  0x1c   :  { %s139_s26 = sshll.u32 %s14383_s13, 4  ;;  %s10671_s27 = smov [#allocation10]   ;;  %s140_s26 = int_to_ptr.hbm [resolvable:$true] %s139_s26 }
  0x1d   :  { %s117_s6 = sshll.u32 %s10671_s27, 4  ;;  %s10672_s9 = smov [#allocation13]   ;;  %s118_s6 = int_to_ptr.vmem [resolvable:$true] %s117_s6 }
  0x1e   :  { %120 = dma.hbm_to_vmem [thread:$0]  %s116_s4, 16, %s118_s6, [#allocation11]  }
  0x1f   :  { %s141_s28 = sshll.u32 %s10672_s9, 4  ;;  %s163_s0 = sshll.u32 %s14385_s15, 4  ;;  %s142_s28 = int_to_ptr.vmem [resolvable:$true] %s141_s28  ;;  %s164_s0 = int_to_ptr.hbm [resolvable:$true] %s163_s0 }
  0x20   :  { %144 = dma.hbm_to_vmem [thread:$0]  %s140_s26, 16, %s142_s28, [#allocation14]  }
  0x21   :  { %s10673_s11 = smov [#allocation16]   ;;  %s188_s13 = sshll.u32 %s14388_s18, 4  ;;  %s189_s13 = int_to_ptr.hbm [resolvable:$true] %s188_s13 }
  0x22   :  { %s165_s7 = sshll.u32 %s10673_s11, 4  ;;  %s10674_s25 = smov [#allocation19]   ;;  %s166_s7 = int_to_ptr.vmem [resolvable:$true] %s165_s7 }
  0x23   :  { %168 = dma.hbm_to_vmem [thread:$0]  %s164_s0, 16, %s166_s7, [#allocation17]  }
  0x24   :  { %s190_s8 = sshll.u32 %s10674_s25, 4  ;;  %s14545_s5 = sld [smem:[#allocation77_spill]]  ;;  %s191_s8 = int_to_ptr.vmem [resolvable:$true] %s190_s8 }
  0x25   :  { %s10675_s15 = smov 192   ;;  %s10676_s6 = smov 12  }
  0x26   :  { %196 = dma.hbm_to_vmem [thread:$0]  %s189_s13, 3072, %s191_s8, [#allocation20], %s10675_s15, %s10675_s15, %s10676_s6  }
  0x27   :  { %s14546_s28 = sld [smem:[#allocation81_spill]]  ;;  %s10677_s2 = smov [#allocation2]  }
  0x28   :  { %s51_s29 = sshll.u32 %s10677_s2, 4  ;;  %s10678_s0 = smov [#allocation6]   ;;  %s52_s29 = int_to_ptr.vmem [resolvable:$true] %s51_s29 }
  0x29   :  { %s79_s11 = sshll.u32 %s10678_s0, 4  ;;  %s101_s3 = sshll.u32 %s14380_s10, 4  ;;  %s80_s11 = int_to_ptr.vmem [resolvable:$true] %s79_s11  ;;  %s102_s3 = int_to_ptr.hbm [resolvable:$true] %s101_s3 }
  0x2a   :  { %s49_s27 = sshll.u32 %s14545_s5, 4  ;;  %s125_s8 = sshll.u32 %s14382_s12, 4  ;;  %s50_s27 = int_to_ptr.hbm [resolvable:$true] %s49_s27  ;;  %s126_s8 = int_to_ptr.hbm [resolvable:$true] %s125_s8 }
  0x2b   :  { %57 = dma.hbm_to_vmem [thread:$0]  %s50_s27, 3072, %s52_s29, [#allocation3], %s10675_s15, %s10675_s15, %s10676_s6  }
  0x2c   :  { %s10679_s4 = smov [#allocation9]   ;;  %s10680_s5 = smov [#allocation12]  }
  0x2d   :  { %s77_s18 = sshll.u32 %s14546_s28, 4  ;;  %s103_s1 = sshll.u32 %s10679_s4, 4  ;;  %s78_s18 = int_to_ptr.hbm [resolvable:$true] %s77_s18  ;;  %s104_s1 = int_to_ptr.vmem [resolvable:$true] %s103_s1 }
  0x2e   :  { %85 = dma.hbm_to_vmem [thread:$0]  %s78_s18, 3072, %s80_s11, [#allocation5], %s10675_s15, %s10675_s15, %s10676_s6  }
  0x2f   :  { %109 = dma.hbm_to_vmem [thread:$0]  %s102_s3, 3072, %s104_s1, [#allocation8], %s10675_s15, %s10675_s15, %s10676_s6  }
  0x30   :  { %s127_s10 = sshll.u32 %s10680_s5, 4  ;;  %s149_s9 = sshll.u32 %s14384_s14, 4  ;;  %s128_s10 = int_to_ptr.vmem [resolvable:$true] %s127_s10  ;;  %s150_s9 = int_to_ptr.hbm [resolvable:$true] %s149_s9 }
  0x31   :  { %133 = dma.hbm_to_vmem [thread:$0]  %s126_s8, 12288, %s128_s10, [#allocation11], %s10675_s15, %s10675_s15, %s10676_s6  }
  0x32   :  { %s173_s18 = sshll.u32 %s14386_s16, 4  ;;  %s10681_s2 = smov [#allocation15]   ;;  %s174_s18 = int_to_ptr.hbm [resolvable:$true] %s173_s18 }
  0x33   :  { %s151_s29 = sshll.u32 %s10681_s2, 4  ;;  %s10682_s0 = smov [#allocation18]   ;;  %s152_s29 = int_to_ptr.vmem [resolvable:$true] %s151_s29 }
  0x34   :  { %157 = dma.hbm_to_vmem [thread:$0]  %s150_s9, 3072, %s152_s29, [#allocation14], %s10675_s15, %s10675_s15, %s10676_s6  }
  0x35   :  { %s175_s14 = sshll.u32 %s10682_s0, 4  ;;  %s10683_s11 = smov 64   ;;  %s176_s14 = int_to_ptr.vmem [resolvable:$true] %s175_s14 }
  0x36   :  { %s10684_s7 = smov 4   ;;  %s203_s13 = sshll.u32 %s14390_s20, 4  ;;  %s204_s13 = int_to_ptr.hbm [resolvable:$true] %s203_s13 }
  0x37   :  { %181 = dma.hbm_to_vmem [thread:$0]  %s174_s18, 4096, %s176_s14, [#allocation17], %s10683_s11, %s10683_s11, %s10684_s7  }
  0x38   :  { %s10685_s16 = smov [#allocation21]   ;;  %s218_s1 = sshll.u32 %s14392_s22, 4  ;;  %s219_s1 = int_to_ptr.hbm [resolvable:$true] %s218_s1 }
  0x39   :  { %s205_s25 = sshll.u32 %s10685_s16, 4  ;;  %s10686_s5 = smov [#allocation22]   ;;  %s206_s25 = int_to_ptr.vmem [resolvable:$true] %s205_s25 }
  0x3a   :  { %211 = dma.hbm_to_vmem [thread:$0]  %s204_s13, 3072, %s206_s25, [#allocation20], %s10675_s15, %s10675_s15, %s10676_s6  }
  0x3b   :  { %s220_s10 = sshll.u32 %s10686_s5, 4  ;;  %s221_s10 = int_to_ptr.vmem [resolvable:$true] %s220_s10 }
  0x3c   :  { %226 = dma.hbm_to_vmem [thread:$0]  %s219_s1, 2048, %s221_s10, [#allocation23], %s10683_s11, %s10683_s11, %s10684_s7  }
  0x3d   :  { %10653 = dma.done.wait [#allocation3], 3072  }
  0x3e   :  { %10654 = vsyncadd [#allocation3], 4294964224 }
  0x3f   :  { %10655 = dma.done.wait [#allocation5], 3088  }
  0x40   :  { %10656 = vsyncadd [#allocation5], 4294964208 }
  0x41   :  { %10657 = dma.done.wait [#allocation8], 3088  }
  0x42   :  { %10658 = vsyncadd [#allocation8], 4294964208 }
  0x43   :  { %10659 = dma.done.wait [#allocation11], 12304  }
  0x44   :  { %10660 = vsyncadd [#allocation11], 4294954992 }
  0x45   :  { %10661 = dma.done.wait [#allocation14], 3088  }
  0x46   :  { %10662 = vsyncadd [#allocation14], 4294964208 }
  0x47   :  { %10663 = dma.done.wait [#allocation17], 4112  }
  0x48   :  { %10664 = vsyncadd [#allocation17], 4294963184 }
  0x49   :  { %10665 = dma.done.wait [#allocation20], 6144  }
  0x4a   :  { %10666 = vsyncadd [#allocation20], 4294961152 }
  0x4b   :  { %10667 = dma.done.wait [#allocation23], 2048  }
  0x4c   :  { %10668 = vsyncadd [#allocation23], 4294965248  ;;  %s14547_s15 = sld [smem:[#allocation75_spill]] }
  0x4d   :  { %s14548_s10 = sld [smem:[#allocation73_spill]] }
  0x4e   :  { %s14579_s22 = sld [smem:[#allocation76_spill]] }
  0x4f   :  { %s14581_s26 = sld [smem:[#allocation79_spill]] }
  0x50   :  { %s14606_s16 = sld [smem:[#allocation78_spill]] }
  0x51   :  { %s14607_s4 = sld [smem:[#allocation74_spill]] }
  0x52   :  { %v8076_v0 = vld [vmem:[%s14547_s15 + $0xa8] sm:$0xf]  ;;  %v9841_v1 = vld [vmem:[%s14547_s15 + $0xb0] sm:$0xf0]  ;;  %v8064_v5 = vld [vmem:[%s14547_s15 + $0x90] sm:$0xf] }
  0x53   :  { %v8172_v2 = vld [vmem:[%s14547_s15 + $0x168] sm:$0xf]  ;;  %v8077_v3 = vor.u32 %v9841_v1, %v8076_v0  ;;  %v9865_v4 = vld [vmem:[%s14547_s15 + $0x170] sm:$0xf0]  ;;  %v9838_v6 = vld [vmem:[%s14547_s15 + $0x98] sm:$0xf0] }
  0x54   :  { %v8173_v7 = vor.u32 %v9865_v4, %v8172_v2  ;;  %v8160_v8 = vld [vmem:[%s14547_s15 + $0x150] sm:$0xf]  ;;  %v9862_v9 = vld [vmem:[%s14547_s15 + $0x158] sm:$0xf0]  ;;  %v8065_v10 = vor.u32 %v9838_v6, %v8064_v5  ;;  %v8052_v12 = vld [vmem:[%s14547_s15 + $0x78] sm:$0xf] }
  0x55   :  { %10267 = vmatpush.bf16.msra.mxu2 %v8077_v3  ;;  %1326 = vmatpush.bf16.msra.mxu0 %v8077_v3  ;;  %v8161_v11 = vor.u32 %v9862_v9, %v8160_v8  ;;  %v9835_v13 = vld [vmem:[%s14547_s15 + $0x80] sm:$0xf0]  ;;  %v8148_v14 = vld [vmem:[%s14547_s15 + $0x138] sm:$0xf]  ;;  %v8040_v18 = vld [vmem:[%s14547_s15 + $0x60] sm:$0xf] }
  0x56   :  { %10275 = vmatpush.bf16.msra.mxu3 %v8173_v7  ;;  %1375 = vmatpush.bf16.msra.mxu1 %v8173_v7  ;;  %v9859_v15 = vld [vmem:[%s14547_s15 + $0x140] sm:$0xf0]  ;;  %v8053_v16 = vor.u32 %v9835_v13, %v8052_v12  ;;  %v9832_v19 = vld [vmem:[%s14547_s15 + $0x68] sm:$0xf0]  ;;  %v8136_v20 = vld [vmem:[%s14547_s15 + $0x120] sm:$0xf] }
  0x57   :  { %v8149_v17 = vor.u32 %v9859_v15, %v8148_v14  ;;  %v9856_v21 = vld [vmem:[%s14547_s15 + $0x128] sm:$0xf0]  ;;  %v8041_v22 = vor.u32 %v9832_v19, %v8040_v18  ;;  %v8028_v24 = vld [vmem:[%s14547_s15 + $0x48] sm:$0xf]  ;;  %v9829_v25 = vld [vmem:[%s14547_s15 + $0x50] sm:$0xf0] }
  0x58   :  { %v8137_v23 = vor.u32 %v9856_v21, %v8136_v20  ;;  %v8124_v26 = vld [vmem:[%s14547_s15 + $0x108] sm:$0xf]  ;;  %v9853_v27 = vld [vmem:[%s14547_s15 + $0x110] sm:$0xf0]  ;;  %v8029_v28 = vor.u32 %v9829_v25, %v8028_v24  ;;  %v8016_v30 = vld [vmem:[%s14547_s15 + $0x30] sm:$0xf] }
  0x59   :  { %10268 = vmatpush.bf16.msra.mxu2 %v8065_v10  ;;  %1327 = vmatpush.bf16.msra.mxu0 %v8065_v10  ;;  %v8125_v29 = vor.u32 %v9853_v27, %v8124_v26  ;;  %v9826_v31 = vld [vmem:[%s14547_s15 + $0x38] sm:$0xf0]  ;;  %v8112_v32 = vld [vmem:[%s14547_s15 + $0xf0] sm:$0xf]  ;;  %v8004_v36 = vld [vmem:[%s14547_s15 + $0x18] sm:$0xf] }
  0x5a   :  { %10276 = vmatpush.bf16.msra.mxu3 %v8161_v11  ;;  %1376 = vmatpush.bf16.msra.mxu1 %v8161_v11  ;;  %v9850_v33 = vld [vmem:[%s14547_s15 + $0xf8] sm:$0xf0]  ;;  %v8017_v34 = vor.u32 %v9826_v31, %v8016_v30  ;;  %v9823_v37 = vld [vmem:[%s14547_s15 + $0x20] sm:$0xf0]  ;;  %v8100_v38 = vld [vmem:[%s14547_s15 + $0xd8] sm:$0xf] }
  0x5b   :  { %v8113_v35 = vor.u32 %v9850_v33, %v8112_v32  ;;  %v9847_v39 = vld [vmem:[%s14547_s15 + $0xe0] sm:$0xf0]  ;;  %v7992_v40 = vld [vmem:[%s14547_s15] sm:$0xf]  ;;  %v9820_v41 = vld [vmem:[%s14547_s15 + $0x8] sm:$0xf0]  ;;  %v8005_v42 = vor.u32 %v9823_v37, %v8004_v36 }
  0x5c   :  { %v8088_v43 = vld [vmem:[%s14547_s15 + $0xc0] sm:$0xf]  ;;  %v9844_v44 = vld [vmem:[%s14547_s15 + $0xc8] sm:$0xf0]  ;;  %v8101_v45 = vor.u32 %v9847_v39, %v8100_v38  ;;  %v8268_v46 = vld [vmem:[%s14547_s15 + $0x228] sm:$0xf]  ;;  %v7993_v50 = vor.u32 %v9820_v41, %v7992_v40 }
  0x5d   :  { %10269 = vmatpush.bf16.msra.mxu2 %v8053_v16  ;;  %1328 = vmatpush.bf16.msra.mxu0 %v8053_v16  ;;  %v9889_v47 = vld [vmem:[%s14547_s15 + $0x230] sm:$0xf0]  ;;  %v8364_v48 = vld [vmem:[%s14547_s15 + $0x2e8] sm:$0xf]  ;;  %v7960_v51 = vld [vmem:[%s14548_s10 + $0xc0] sm:$0xf]  ;;  %v8089_v53 = vor.u32 %v9844_v44, %v8088_v43 }
  0x5e   :  { %10277 = vmatpush.bf16.msra.mxu3 %v8149_v17  ;;  %1377 = vmatpush.bf16.msra.mxu1 %v8149_v17  ;;  %v9913_v49 = vld [vmem:[%s14547_s15 + $0x2f0] sm:$0xf0]  ;;  %v9813_v52 = vld [vmem:[%s14548_s10 + $0xcc] sm:$0xf0]  ;;  %v9811_v54 = vld [vmem:[%s14548_s10 + $0xc4] sm:$0xf]  ;;  %v8269_v56 = vor.u32 %v9889_v47, %v8268_v46 }
  0x5f   :  { %v7962_v55 = vld [vmem:[%s14548_s10 + $0xd0] sm:$0xf0]  ;;  %v8365_v57 = vor.u32 %v9913_v49, %v8364_v48  ;;  %v8256_v58 = vld [vmem:[%s14547_s15 + $0x210] sm:$0xf]  ;;  %v9886_v59 = vld [vmem:[%s14547_s15 + $0x218] sm:$0xf0]  ;;  %v11002_v60 = vor.u32 %v9813_v52, %v7960_v51 }
  0x60   :  { %v8352_v61 = vld [vmem:[%s14547_s15 + $0x2d0] sm:$0xf]  ;;  %v9910_v62 = vld [vmem:[%s14547_s15 + $0x2d8] sm:$0xf0]  ;;  %v11010_v63 = vor.u32 %v9811_v54, %v7962_v55  ;;  %v8257_v0 = vor.u32 %v9886_v59, %v8256_v58  ;;  %v8244_v2 = vld [vmem:[%s14547_s15 + $0x1f8] sm:$0xf] }
  0x61   :  { %10270 = vmatpush.bf16.msra.mxu2 %v8041_v22  ;;  %1329 = vmatpush.bf16.msra.mxu0 %v8041_v22  ;;  %v8353_v1 = vor.u32 %v9910_v62, %v8352_v61  ;;  %v9883_v3 = vld [vmem:[%s14547_s15 + $0x200] sm:$0xf0]  ;;  %v8340_v4 = vld [vmem:[%s14547_s15 + $0x2b8] sm:$0xf]  ;;  %v7864_v6 = vld [vmem:[%s14548_s10] sm:$0xf] }
  0x62   :  { %10278 = vmatpush.bf16.msra.mxu3 %v8137_v23  ;;  %1378 = vmatpush.bf16.msra.mxu1 %v8137_v23  ;;  %14549 = vst [vmem:[#allocation32_spill] sm:$0xff] %v11010_v63  ;;  %v9907_v5 = vld [vmem:[%s14547_s15 + $0x2c0] sm:$0xf0]  ;;  %v9789_v7 = vld [vmem:[%s14548_s10 + $0xc] sm:$0xf0]  ;;  %v8245_v9 = vor.u32 %v9883_v3, %v8244_v2 }
  0x63   :  { %v9787_v8 = vld [vmem:[%s14548_s10 + $0x4] sm:$0xf]  ;;  %v11035_v10 = vor.u32 %v9789_v7, %v7864_v6  ;;  %v7866_v11 = vld [vmem:[%s14548_s10 + $0x10] sm:$0xf0]  ;;  %v8341_v12 = vor.u32 %v9907_v5, %v8340_v4  ;;  %v8232_v13 = vld [vmem:[%s14547_s15 + $0x1e0] sm:$0xf] }
  0x64   :  { %v9880_v14 = vld [vmem:[%s14547_s15 + $0x1e8] sm:$0xf0]  ;;  %v11046_v15 = vor.u32 %v9787_v8, %v7866_v11  ;;  %v8328_v16 = vld [vmem:[%s14547_s15 + $0x2a0] sm:$0xf]  ;;  %v8220_v20 = vld [vmem:[%s14547_s15 + $0x1c8] sm:$0xf] }
  0x65   :  { %10271 = vmatpush.bf16.msra.mxu2 %v8029_v28  ;;  %1330 = vmatpush.bf16.msra.mxu0 %v8029_v28  ;;  %v9904_v17 = vld [vmem:[%s14547_s15 + $0x2a8] sm:$0xf0]  ;;  %v8233_v18 = vor.u32 %v9880_v14, %v8232_v13  ;;  %v9877_v21 = vld [vmem:[%s14547_s15 + $0x1d0] sm:$0xf0]  ;;  %v8316_v22 = vld [vmem:[%s14547_s15 + $0x288] sm:$0xf] }
  0x66   :  { %10279 = vmatpush.bf16.msra.mxu3 %v8125_v29  ;;  %1379 = vmatpush.bf16.msra.mxu1 %v8125_v29  ;;  %14550 = vst [vmem:[#allocation33_spill] sm:$0xff] %v11046_v15  ;;  %v8329_v19 = vor.u32 %v9904_v17, %v8328_v16  ;;  %v9901_v23 = vld [vmem:[%s14547_s15 + $0x290] sm:$0xf0]  ;;  %v7976_v24 = vld [vmem:[%s14548_s10 + $0xe0] sm:$0xf]  ;;  %v8221_v28 = vor.u32 %v9877_v21, %v8220_v20 }
  0x67   :  { %v9817_v25 = vld [vmem:[%s14548_s10 + $0xec] sm:$0xf0]  ;;  %v9815_v26 = vld [vmem:[%s14548_s10 + $0xe4] sm:$0xf]  ;;  %v7978_v27 = vld [vmem:[%s14548_s10 + $0xf0] sm:$0xf0]  ;;  %v8317_v29 = vor.u32 %v9901_v23, %v8316_v22 }
  0x68   :  { %v8208_v30 = vld [vmem:[%s14547_s15 + $0x1b0] sm:$0xf]  ;;  %v9874_v31 = vld [vmem:[%s14547_s15 + $0x1b8] sm:$0xf0]  ;;  %v11086_v32 = vor.u32 %v9817_v25, %v7976_v24  ;;  %v8196_v38 = vld [vmem:[%s14547_s15 + $0x198] sm:$0xf] }
  0x69   :  { %10272 = vmatpush.bf16.msra.mxu2 %v8017_v34  ;;  %1331 = vmatpush.bf16.msra.mxu0 %v8017_v34  ;;  %v8304_v33 = vld [vmem:[%s14547_s15 + $0x270] sm:$0xf]  ;;  %v9898_v34 = vld [vmem:[%s14547_s15 + $0x278] sm:$0xf0]  ;;  %v8209_v36 = vor.u32 %v9874_v31, %v8208_v30  ;;  %v9871_v39 = vld [vmem:[%s14547_s15 + $0x1a0] sm:$0xf0] }
  0x6a   :  { %10280 = vmatpush.bf16.msra.mxu3 %v8113_v35  ;;  %1380 = vmatpush.bf16.msra.mxu1 %v8113_v35  ;;  %14551 = vst [vmem:[#allocation34_spill] sm:$0xff] %v11086_v32  ;;  %v11094_v35 = vor.u32 %v9815_v26, %v7978_v27  ;;  %v8305_v37 = vor.u32 %v9898_v34, %v8304_v33  ;;  %v8292_v40 = vld [vmem:[%s14547_s15 + $0x258] sm:$0xf]  ;;  %v9895_v41 = vld [vmem:[%s14547_s15 + $0x260] sm:$0xf0] }
  0x6b   :  { %v9793_v43 = vld [vmem:[%s14548_s10 + $0x2c] sm:$0xf0]  ;;  %v9791_v44 = vld [vmem:[%s14548_s10 + $0x24] sm:$0xf]  ;;  %v7882_v47 = vld [vmem:[%s14548_s10 + $0x30] sm:$0xf0]  ;;  %v8293_v48 = vor.u32 %v9895_v41, %v8292_v40 }
  0x6c   :  { %14552 = vst [vmem:[#allocation35_spill] sm:$0xff] %v11094_v35  ;;  %v8184_v49 = vld [vmem:[%s14547_s15 + $0x180] sm:$0xf]  ;;  %v11130_v51 = vor.u32 %v9791_v44, %v7882_v47  ;;  %v9788_v58 = vld [vmem:[%s14548_s10 + $0xc] sm:$0xf] }
  0x6d   :  { %10273 = vmatpush.bf16.msra.mxu2 %v8005_v42  ;;  %1332 = vmatpush.bf16.msra.mxu0 %v8005_v42  ;;  %v7880_v42 = vld [vmem:[%s14548_s10 + $0x20] sm:$0xf]  ;;  %v7874_v59 = vld [vmem:[%s14548_s10 + $0x18] sm:$0xf0]  ;;  %v9795_v2 = vld [vmem:[%s14548_s10 + $0x44] sm:$0xf] }
  0x6e   :  { %10281 = vmatpush.bf16.msra.mxu3 %v8101_v45  ;;  %1381 = vmatpush.bf16.msra.mxu1 %v8101_v45  ;;  %v8197_v45 = vor.u32 %v9871_v39, %v8196_v38  ;;  %v11119_v46 = vor.u32 %v9793_v43, %v7880_v42  ;;  %14553 = vst [vmem:[#allocation36_spill] sm:$0xff] %v11130_v51  ;;  %v8280_v52 = vld [vmem:[%s14547_s15 + $0x240] sm:$0xf]  ;;  %v7898_v4 = vld [vmem:[%s14548_s10 + $0x50] sm:$0xf0] }
  0x6f   :  { %v11154_v62 = vor.u32 %v9788_v58, %v7874_v59  ;;  %v11172_v5 = vor.u32 %v9795_v2, %v7898_v4  ;;  %v7888_v6 = vld [vmem:[%s14548_s10 + $0x28] sm:$0xf]  ;;  %v9794_v7 = vld [vmem:[%s14548_s10 + $0x34] sm:$0xf0]  ;;  %v9792_v8 = vld [vmem:[%s14548_s10 + $0x2c] sm:$0xf] }
  0x70   :  { %v11188_v11 = vor.u32 %v9794_v7, %v7888_v6  ;;  %v7912_v13 = vld [vmem:[%s14548_s10 + $0x60] sm:$0xf]  ;;  %v9801_v14 = vld [vmem:[%s14548_s10 + $0x6c] sm:$0xf0]  ;;  %v9799_v16 = vld [vmem:[%s14548_s10 + $0x64] sm:$0xf] }
  0x71   :  { %10274 = vmatpush.bf16.msra.mxu2 %v7993_v50  ;;  %1333 = vmatpush.bf16.msra.mxu0 %v7993_v50  ;;  %v9868_v50 = vld [vmem:[%s14547_s15 + $0x188] sm:$0xf0]  ;;  %14555 = vst [vmem:[#allocation38_spill] sm:$0xff] %v11154_v62  ;;  %v11203_v17 = vor.u32 %v9801_v14, %v7912_v13  ;;  %v7904_v20 = vld [vmem:[%s14548_s10 + $0x48] sm:$0xf] }
  0x72   :  { %10282 = vmatpush.bf16.msra.mxu3 %v8089_v53  ;;  %1382 = vmatpush.bf16.msra.mxu1 %v8089_v53  ;;  %v9892_v53 = vld [vmem:[%s14547_s15 + $0x248] sm:$0xf0]  ;;  %v8185_v54 = vor.u32 %v9868_v50, %v8184_v49  ;;  %14556 = vst [vmem:[#allocation39_spill] sm:$0xff] %v11172_v5  ;;  %v9798_v21 = vld [vmem:[%s14548_s10 + $0x54] sm:$0xf0] }
  0x73   :  { %v8281_v55 = vor.u32 %v9892_v53, %v8280_v52  ;;  %v9796_v22 = vld [vmem:[%s14548_s10 + $0x4c] sm:$0xf]  ;;  %v7906_v23 = vld [vmem:[%s14548_s10 + $0x58] sm:$0xf0]  ;;  %v11224_v24 = vor.u32 %v9798_v21, %v7904_v20  ;;  %v7928_v26 = vld [vmem:[%s14548_s10 + $0x80] sm:$0xf] }
  0x74   :  { %1364 = vmatmul.bf16.vlgmr.msra.gmra.mxu2 %v11002_v60  ;;  %1334 = vmatmul.bf16.vlgmr.msra.gmra.mxu0 %v11035_v10  ;;  %v11226_v25 = vor.u32 %v9796_v22, %v7906_v23  ;;  %v9805_v27 = vld [vmem:[%s14548_s10 + $0x8c] sm:$0xf0]  ;;  %v7930_v30 = vld [vmem:[%s14548_s10 + $0x90] sm:$0xf0]  ;;  %v7920_v33 = vld [vmem:[%s14548_s10 + $0x68] sm:$0xf] }
  0x75   :  { %1424 = vmatpush.bf16.msrb.mxu2 %v8269_v56  ;;  %1413 = vmatmul.bf16.vlgmr.msra.gmra.mxu3 %v11010_v63  ;;  %v7872_v56 = vld [vmem:[%s14548_s10 + $0x8] sm:$0xf]  ;;  %v9802_v34 = vld [vmem:[%s14548_s10 + $0x74] sm:$0xf0]  ;;  %v7944_v40 = vld [vmem:[%s14548_s10 + $0xa0] sm:$0xf] }
  0x76   :  { %1473 = vmatpush.bf16.msrb.mxu3 %v8365_v57  ;;  %1383 = vmatmul.bf16.vlgmr.msra.gmra.mxu1 %v11046_v15  ;;  %v9790_v57 = vld [vmem:[%s14548_s10 + $0x14] sm:$0xf0]  ;;  %v11260_v38 = vor.u32 %v9802_v34, %v7920_v33  ;;  %v9809_v41 = vld [vmem:[%s14548_s10 + $0xac] sm:$0xf0]  ;;  %v9807_v42 = vld [vmem:[%s14548_s10 + $0xa4] sm:$0xf] }
  0x77   :  { %v11152_v61 = vor.u32 %v9790_v57, %v7872_v56  ;;  %v11275_v43 = vor.u32 %v9809_v41, %v7944_v40  ;;  %v7946_v44 = vld [vmem:[%s14548_s10 + $0xb0] sm:$0xf0]  ;;  %v8078_v47 = vld [vmem:[%s14547_s15 + $0xb4] sm:$0xf0]  ;;  %v9864_v50 = vld [vmem:[%s14547_s15 + $0x16c] sm:$0xf] }
  0x78   :  { %v8174_v52 = vld [vmem:[%s14547_s15 + $0x174] sm:$0xf0]  ;;  %v9804_v56 = vld [vmem:[%s14548_s10 + $0x8c] sm:$0xf]  ;;  %v7938_v57 = vld [vmem:[%s14548_s10 + $0x98] sm:$0xf0] }
  0x79   :  { %1425 = vmatpush.bf16.msrb.mxu2 %v8257_v0  ;;  %14554 = vst [vmem:[#allocation37_spill] sm:$0xff] %v11152_v61  ;;  %v7896_v0 = vld [vmem:[%s14548_s10 + $0x40] sm:$0xf]  ;;  %v8177_v53 = vor.u32 %v9864_v50, %v8174_v52  ;;  %v11310_v59 = vor.u32 %v9804_v56, %v7938_v57  ;;  %v9861_v2 = vld [vmem:[%s14547_s15 + $0x154] sm:$0xf] }
  0x7a   :  { %1474 = vmatpush.bf16.msrb.mxu3 %v8353_v1  ;;  %v9797_v1 = vld [vmem:[%s14548_s10 + $0x4c] sm:$0xf0]  ;;  %v8162_v6 = vld [vmem:[%s14547_s15 + $0x15c] sm:$0xf0]  ;;  %v9888_v7 = vld [vmem:[%s14547_s15 + $0x22c] sm:$0xf] }
  0x7b   :  { %v11167_v3 = vor.u32 %v9797_v1, %v7896_v0  ;;  %1571 = vmatpush.bf16.msrb.mxu1 %v8177_v53  ;;  %14563 = vst [vmem:[#allocation46_spill] sm:$0xff] %v11310_v59  ;;  %v9837_v0 = vld [vmem:[%s14547_s15 + $0x94] sm:$0xf]  ;;  %v8066_v1 = vld [vmem:[%s14547_s15 + $0x9c] sm:$0xf0] }
  0x7c   :  { %v8069_v4 = vor.u32 %v9837_v0, %v8066_v1  ;;  %v9912_v14 = vld [vmem:[%s14547_s15 + $0x2ec] sm:$0xf]  ;;  %v9834_v20 = vld [vmem:[%s14547_s15 + $0x7c] sm:$0xf]  ;;  %v8054_v21 = vld [vmem:[%s14547_s15 + $0x84] sm:$0xf0] }
  0x7d   :  { %1426 = vmatpush.bf16.msrb.mxu2 %v8245_v9  ;;  %v7890_v9 = vld [vmem:[%s14548_s10 + $0x38] sm:$0xf0]  ;;  %v8057_v23 = vor.u32 %v9834_v20, %v8054_v21  ;;  %v9909_v34 = vld [vmem:[%s14547_s15 + $0x2d4] sm:$0xf]  ;;  %v8042_v41 = vld [vmem:[%s14547_s15 + $0x6c] sm:$0xf0] }
  0x7e   :  { %1475 = vmatpush.bf16.msrb.mxu3 %v8341_v12  ;;  %v11190_v12 = vor.u32 %v9792_v8, %v7890_v9  ;;  %v8270_v8 = vld [vmem:[%s14547_s15 + $0x234] sm:$0xf0]  ;;  %v8165_v9 = vor.u32 %v9861_v2, %v8162_v6  ;;  %v9858_v22 = vld [vmem:[%s14547_s15 + $0x13c] sm:$0xf]  ;;  %v8246_v50 = vld [vmem:[%s14547_s15 + $0x204] sm:$0xf0] }
  0x7f   :  { %v8273_v13 = vor.u32 %v9888_v7, %v8270_v8  ;;  %v9906_v52 = vld [vmem:[%s14547_s15 + $0x2bc] sm:$0xf]  ;;  %v9810_v56 = vld [vmem:[%s14548_s10 + $0xb4] sm:$0xf0]  ;;  %v9808_v0 = vld [vmem:[%s14548_s10 + $0xac] sm:$0xf] }
  0x80   :  { %14557 = vst [vmem:[#allocation40_spill] sm:$0xff] %v11190_v12  ;;  %1572 = vmatpush.bf16.msrb.mxu1 %v8165_v9  ;;  %v7954_v1 = vld [vmem:[%s14548_s10 + $0xb8] sm:$0xf0]  ;;  %v9828_v2 = vld [vmem:[%s14547_s15 + $0x4c] sm:$0xf] }
  0x81   :  { %1427 = vmatpush.bf16.msrb.mxu2 %v8233_v18  ;;  %v7914_v18 = vld [vmem:[%s14548_s10 + $0x70] sm:$0xf0]  ;;  %v9852_v6 = vld [vmem:[%s14547_s15 + $0x10c] sm:$0xf]  ;;  %v8126_v9 = vld [vmem:[%s14547_s15 + $0x114] sm:$0xf0] }
  0x82   :  { %1476 = vmatpush.bf16.msrb.mxu3 %v8329_v19  ;;  %v11208_v19 = vor.u32 %v9799_v16, %v7914_v18  ;;  %v8366_v16 = vld [vmem:[%s14547_s15 + $0x2f4] sm:$0xf0]  ;;  %v9903_v21 = vld [vmem:[%s14547_s15 + $0x2a4] sm:$0xf] }
  0x83   :  { %v8369_v18 = vor.u32 %v9912_v14, %v8366_v16  ;;  %v8234_v14 = vld [vmem:[%s14547_s15 + $0x1ec] sm:$0xf0]  ;;  %v11418_v16 = vor.u32 %v9808_v0, %v7954_v1  ;;  %v8306_v0 = vld [vmem:[%s14547_s15 + $0x27c] sm:$0xf0]  ;;  %v9819_v1 = vld [vmem:[%s14547_s15 + $0x4] sm:$0xf] }
  0x84   :  { %1369 = vmatmul.bf16.gmra.mxu2 %v11086_v32  ;;  %1339 = vmatmul.bf16.gmra.mxu0 %v11119_v46  ;;  %14558 = vst [vmem:[#allocation41_spill] sm:$0xff] %v11208_v19 }
  0x85   :  { %1428 = vmatpush.bf16.msrb.mxu2 %v8221_v28  ;;  %1418 = vmatmul.bf16.gmra.mxu3 %v11094_v35  ;;  %v9803_v28 = vld [vmem:[%s14548_s10 + $0x84] sm:$0xf]  ;;  %14565 = vst [vmem:[#allocation48_spill] sm:$0xff] %v11418_v16 }
  0x86   :  { %1477 = vmatpush.bf16.msrb.mxu3 %v8317_v29  ;;  %1388 = vmatmul.bf16.gmra.mxu1 %v11130_v51  ;;  %v11239_v29 = vor.u32 %v9805_v27, %v7928_v26  ;;  %v11244_v31 = vor.u32 %v9803_v28, %v7930_v30  ;;  %v8150_v26 = vld [vmem:[%s14547_s15 + $0x144] sm:$0xf0]  ;;  %v9885_v27 = vld [vmem:[%s14547_s15 + $0x214] sm:$0xf]  ;;  %v8258_v28 = vld [vmem:[%s14547_s15 + $0x21c] sm:$0xf0] }
  0x87   :  { %v8153_v30 = vor.u32 %v9858_v22, %v8150_v26  ;;  %v8261_v33 = vor.u32 %v9885_v27, %v8258_v28  ;;  %v8330_v22 = vld [vmem:[%s14547_s15 + $0x2ac] sm:$0xf0]  ;;  %v9825_v26 = vld [vmem:[%s14547_s15 + $0x34] sm:$0xf]  ;;  %v8018_v27 = vld [vmem:[%s14547_s15 + $0x3c] sm:$0xf0] }
  0x88   :  { %14559 = vst [vmem:[#allocation42_spill] sm:$0xff] %v11244_v31  ;;  %v9849_v28 = vld [vmem:[%s14547_s15 + $0xf4] sm:$0xf] }
  0x89   :  { %1429 = vmatpush.bf16.msrb.mxu2 %v8209_v36  ;;  %v9800_v36 = vld [vmem:[%s14548_s10 + $0x6c] sm:$0xf]  ;;  %1573 = vmatpush.bf16.msrb.mxu1 %v8153_v30  ;;  %v8021_v30 = vor.u32 %v9825_v26, %v8018_v27  ;;  %v9814_v26 = vld [vmem:[%s14548_s10 + $0xd4] sm:$0xf0] }
  0x8a   :  { %1478 = vmatpush.bf16.msrb.mxu3 %v8305_v37  ;;  %v7922_v37 = vld [vmem:[%s14548_s10 + $0x78] sm:$0xf0] }
  0x8b   :  { %v11262_v39 = vor.u32 %v9800_v36, %v7922_v37  ;;  %v8354_v36 = vld [vmem:[%s14547_s15 + $0x2dc] sm:$0xf0]  ;;  %v9831_v37 = vld [vmem:[%s14547_s15 + $0x64] sm:$0xf] }
  0x8c   :  { %v8357_v40 = vor.u32 %v9909_v34, %v8354_v36  ;;  %v9876_v34 = vld [vmem:[%s14547_s15 + $0x1cc] sm:$0xf]  ;;  %v8222_v36 = vld [vmem:[%s14547_s15 + $0x1d4] sm:$0xf0] }
  0x8d   :  { %1430 = vmatpush.bf16.msrb.mxu2 %v8197_v45  ;;  %14560 = vst [vmem:[#allocation43_spill] sm:$0xff] %v11262_v39  ;;  %v9840_v45 = vld [vmem:[%s14547_s15 + $0xac] sm:$0xf] }
  0x8e   :  { %1479 = vmatpush.bf16.msrb.mxu3 %v8293_v48  ;;  %v11286_v48 = vor.u32 %v9807_v42, %v7946_v44  ;;  %v8081_v49 = vor.u32 %v9840_v45, %v8078_v47  ;;  %v9855_v42 = vld [vmem:[%s14547_s15 + $0x124] sm:$0xf]  ;;  %v8138_v44 = vld [vmem:[%s14547_s15 + $0x12c] sm:$0xf0]  ;;  %v8045_v45 = vor.u32 %v9831_v37, %v8042_v41  ;;  %v9900_v41 = vld [vmem:[%s14547_s15 + $0x28c] sm:$0xf] }
  0x8f   :  { %v8141_v47 = vor.u32 %v9855_v42, %v8138_v44  ;;  %v8318_v42 = vld [vmem:[%s14547_s15 + $0x294] sm:$0xf0] }
  0x90   :  { %14561 = vst [vmem:[#allocation44_spill] sm:$0xff] %v11286_v48  ;;  %1522 = vmatpush.bf16.msrb.mxu0 %v8081_v49  ;;  %v9882_v49 = vld [vmem:[%s14547_s15 + $0x1fc] sm:$0xf]  ;;  %v8321_v44 = vor.u32 %v9900_v41, %v8318_v42  ;;  %v8282_v41 = vld [vmem:[%s14547_s15 + $0x24c] sm:$0xf0] }
  0x91   :  { %1431 = vmatpush.bf16.msrb.mxu2 %v8185_v54  ;;  %v7936_v54 = vld [vmem:[%s14548_s10 + $0x88] sm:$0xf]  ;;  %v8249_v53 = vor.u32 %v9882_v49, %v8246_v50  ;;  %1574 = vmatpush.bf16.msrb.mxu1 %v8141_v47  ;;  %v9846_v49 = vld [vmem:[%s14547_s15 + $0xdc] sm:$0xf] }
  0x92   :  { %1480 = vmatpush.bf16.msrb.mxu3 %v8281_v55  ;;  %v9806_v55 = vld [vmem:[%s14548_s10 + $0x94] sm:$0xf0]  ;;  %v8006_v47 = vld [vmem:[%s14547_s15 + $0x24] sm:$0xf0] }
  0x93   :  { %v11308_v58 = vor.u32 %v9806_v55, %v7936_v54  ;;  %v8342_v54 = vld [vmem:[%s14547_s15 + $0x2c4] sm:$0xf0] }
  0x94   :  { %1432 = vmatmul.bf16.vlgmr.msrb.gmra.mxu2 %v11152_v61  ;;  %1344 = vmatmul.bf16.gmra.mxu0 %v11167_v3  ;;  %v7952_v55 = vld [vmem:[%s14548_s10 + $0xa8] sm:$0xf]  ;;  %v8345_v57 = vor.u32 %v9906_v52, %v8342_v54  ;;  %v8210_v54 = vld [vmem:[%s14547_s15 + $0x1bc] sm:$0xf0] }
  0x95   :  { %1481 = vmatmul.bf16.vlgmr.msrb.gmra.mxu3 %v11154_v62  ;;  %14562 = vst [vmem:[#allocation45_spill] sm:$0xff] %v11308_v58  ;;  %1523 = vmatpush.bf16.msrb.mxu0 %v8069_v4  ;;  %v8030_v4 = vld [vmem:[%s14547_s15 + $0x54] sm:$0xf0]  ;;  %v11407_v7 = vor.u32 %v9810_v56, %v7952_v55  ;;  %v8102_v52 = vld [vmem:[%s14547_s15 + $0xe4] sm:$0xf0] }
  0x96   :  { %1393 = vmatmul.bf16.gmra.mxu1 %v11172_v5  ;;  %1620 = vmatpush.bf16.msra.mxu2 %v8273_v13  ;;  %v8033_v8 = vor.u32 %v9828_v2, %v8030_v4  ;;  %v9879_v13 = vld [vmem:[%s14547_s15 + $0x1e4] sm:$0xf]  ;;  %v8105_v55 = vor.u32 %v9846_v49, %v8102_v52  ;;  %v7994_v4 = vld [vmem:[%s14547_s15 + $0xc] sm:$0xf0] }
  0x97   :  { %1669 = vmatpush.bf16.msra.mxu3 %v8369_v18  ;;  %14564 = vst [vmem:[#allocation47_spill] sm:$0xff] %v11407_v7  ;;  %v8129_v18 = vor.u32 %v9852_v6, %v8126_v9  ;;  %v8237_v20 = vor.u32 %v9879_v13, %v8234_v14  ;;  %v9843_v6 = vld [vmem:[%s14547_s15 + $0xc4] sm:$0xf]  ;;  %v7997_v9 = vor.u32 %v9819_v1, %v7994_v4  ;;  %v9870_v14 = vld [vmem:[%s14547_s15 + $0x19c] sm:$0xf] }
  0x99   :  { %1524 = vmatpush.bf16.msrb.mxu0 %v8057_v23  ;;  %v8333_v23 = vor.u32 %v9903_v21, %v8330_v22  ;;  %1575 = vmatpush.bf16.msrb.mxu1 %v8129_v18  ;;  %v8198_v18 = vld [vmem:[%s14547_s15 + $0x1a4] sm:$0xf0] }
  0x9a   :  { %1621 = vmatpush.bf16.msra.mxu2 %v8261_v33  ;;  %v8114_v33 = vld [vmem:[%s14547_s15 + $0xfc] sm:$0xf0]  ;;  %v8201_v21 = vor.u32 %v9870_v14, %v8198_v18  ;;  %v8294_v22 = vld [vmem:[%s14547_s15 + $0x264] sm:$0xf0] }
  0x9b   :  { %1670 = vmatpush.bf16.msra.mxu3 %v8357_v40  ;;  %v8117_v37 = vor.u32 %v9849_v28, %v8114_v33  ;;  %v8225_v40 = vor.u32 %v9876_v34, %v8222_v36  ;;  %v9812_v28 = vld [vmem:[%s14548_s10 + $0xcc] sm:$0xf]  ;;  %v9867_v33 = vld [vmem:[%s14547_s15 + $0x184] sm:$0xf]  ;;  %v8186_v34 = vld [vmem:[%s14547_s15 + $0x18c] sm:$0xf0] }
  0x9c   :  { %v9891_v36 = vld [vmem:[%s14547_s15 + $0x244] sm:$0xf] }
  0x9d   :  { %1525 = vmatpush.bf16.msrb.mxu0 %v8045_v45  ;;  %1576 = vmatpush.bf16.msrb.mxu1 %v8117_v37  ;;  %v9822_v45 = vld [vmem:[%s14547_s15 + $0x1c] sm:$0xf] }
  0x9e   :  { %1622 = vmatpush.bf16.msra.mxu2 %v8249_v53  ;;  %v8009_v50 = vor.u32 %v9822_v45, %v8006_v47  ;;  %v9873_v53 = vld [vmem:[%s14547_s15 + $0x1b4] sm:$0xf] }
  0x9f   :  { %1671 = vmatpush.bf16.msra.mxu3 %v8345_v57  ;;  %v8213_v56 = vor.u32 %v9873_v53, %v8210_v54  ;;  %v9897_v57 = vld [vmem:[%s14547_s15 + $0x274] sm:$0xf]  ;;  %v7984_v54 = vld [vmem:[%s14548_s10 + $0xe8] sm:$0xf] }
  0xa0   :  { %v8309_v2 = vor.u32 %v9897_v57, %v8306_v0  ;;  %v9816_v57 = vld [vmem:[%s14548_s10 + $0xec] sm:$0xf]  ;;  %v7986_v0 = vld [vmem:[%s14548_s10 + $0xf8] sm:$0xf0] }
  0xa1   :  { %1526 = vmatpush.bf16.msrb.mxu0 %v8033_v8  ;;  %v8090_v8 = vld [vmem:[%s14547_s15 + $0xcc] sm:$0xf0]  ;;  %1577 = vmatpush.bf16.msrb.mxu1 %v8105_v55  ;;  %v9818_v55 = vld [vmem:[%s14548_s10 + $0xf4] sm:$0xf0] }
  0xa2   :  { %1623 = vmatpush.bf16.msra.mxu2 %v8237_v20  ;;  %v8093_v13 = vor.u32 %v9843_v6, %v8090_v8  ;;  %v9894_v20 = vld [vmem:[%s14547_s15 + $0x25c] sm:$0xf]  ;;  %v11546_v6 = vor.u32 %v9818_v55, %v7984_v54 }
  0xa3   :  { %1672 = vmatpush.bf16.msra.mxu3 %v8333_v23  ;;  %v7968_v23 = vld [vmem:[%s14548_s10 + $0xc8] sm:$0xf]  ;;  %v8297_v27 = vor.u32 %v9894_v20, %v8294_v22 }
  0xa4   :  { %1437 = vmatmul.bf16.gmra.mxu2 %v11188_v11  ;;  %1349 = vmatmul.bf16.gmra.mxu0 %v11203_v17  ;;  %v11521_v37 = vor.u32 %v9814_v26, %v7968_v23  ;;  %14568 = vst [vmem:[#allocation51_spill] sm:$0xff] %v11546_v6 }
  0xa5   :  { %1486 = vmatmul.bf16.gmra.mxu3 %v11190_v12  ;;  %1527 = vmatpush.bf16.msrb.mxu0 %v8021_v30  ;;  %v7970_v30 = vld [vmem:[%s14548_s10 + $0xd8] sm:$0xf0] }
  0xa6   :  { %1398 = vmatmul.bf16.gmra.mxu1 %v11208_v19  ;;  %1624 = vmatpush.bf16.msra.mxu2 %v8225_v40  ;;  %14566 = vst [vmem:[#allocation49_spill] sm:$0xff] %v11521_v37  ;;  %v8189_v40 = vor.u32 %v9867_v33, %v8186_v34  ;;  %v11526_v42 = vor.u32 %v9812_v28, %v7970_v30 }
  0xa7   :  { %1673 = vmatpush.bf16.msra.mxu3 %v8321_v44  ;;  %1578 = vmatpush.bf16.msrb.mxu1 %v8093_v13  ;;  %v8285_v44 = vor.u32 %v9891_v36, %v8282_v41 }
  0xa8   :  { %14567 = vst [vmem:[#allocation50_spill] sm:$0xff] %v11526_v42 }
  0xa9   :  { %1528 = vmatpush.bf16.msrb.mxu0 %v8009_v50 }
  0xaa   :  { %1625 = vmatpush.bf16.msra.mxu2 %v8213_v56 }
  0xab   :  { %1674 = vmatpush.bf16.msra.mxu3 %v8309_v2 }
  0xad   :  { %1529 = vmatpush.bf16.msrb.mxu0 %v7997_v9  ;;  %v11550_v9 = vor.u32 %v9816_v57, %v7986_v0 }
  0xae   :  { %1626 = vmatpush.bf16.msra.mxu2 %v8201_v21 }
  0xaf   :  { %1675 = vmatpush.bf16.msra.mxu3 %v8297_v27  ;;  %14569 = vst [vmem:[#allocation52_spill] sm:$0xff] %v11550_v9 }
  0xb2   :  { %1627 = vmatpush.bf16.msra.mxu2 %v8189_v40 }
  0xb3   :  { %1676 = vmatpush.bf16.msra.mxu3 %v8285_v44 }
  0xb4   :  { %1442 = vmatmul.bf16.gmra.mxu2 %v11224_v24  ;;  %1354 = vmatmul.bf16.gmra.mxu0 %v11239_v29 }
  0xb5   :  { %1491 = vmatmul.bf16.gmra.mxu3 %v11226_v25 }
  0xb6   :  { %1403 = vmatmul.bf16.gmra.mxu1 %v11244_v31 }
  0xc4   :  { %1447 = vmatmul.bf16.gmra.mxu2 %v11260_v38  ;;  %1359 = vmatmul.bf16.gmra.mxu0 %v11275_v43 }
  0xc5   :  { %1496 = vmatmul.bf16.gmra.mxu3 %v11262_v39 }
  0xc6   :  { %1408 = vmatmul.bf16.gmra.mxu1 %v11286_v48 }
  0xd4   :  { %1452 = vmatmul.bf16.gmra.mxu2 %v11308_v58  ;;  %1530 = vmatmul.bf16.vlgmr.msrb.gmra.mxu0 %v11035_v10 }
  0xd5   :  { %1501 = vmatmul.bf16.gmra.mxu3 %v11310_v59 }
  0xd6   :  { %1579 = vmatmul.bf16.vlgmr.msrb.gmra.mxu1 %v11046_v15 }
  0xe4   :  { %1457 = vmatmul.bf16.gmra.mxu2 %v11407_v7  ;;  %1535 = vmatmul.bf16.gmra.mxu0 %v11119_v46 }
  0xe5   :  { %1506 = vmatmul.bf16.gmra.mxu3 %v11418_v16 }
  0xe6   :  { %1584 = vmatmul.bf16.gmra.mxu1 %v11130_v51 }
  0xf1   :  { %v1335_v45 = vpop.f32.mrf.mxu0 }
  0xf3   :  { %v1384_v47 = vpop.f32.mrf.mxu1 }
  0xf4   :  { %1462 = vmatmul.bf16.gmra.mxu2 %v11521_v37  ;;  %v1385_v50 = vadd.f32 %v1384_v47, %v1335_v45  ;;  %1540 = vmatmul.bf16.gmra.mxu0 %v11167_v3 }
  0xf5   :  { %1511 = vmatmul.bf16.gmra.mxu3 %v11526_v42 }
  0xf6   :  { %1589 = vmatmul.bf16.gmra.mxu1 %v11172_v5 }
  0xf7   :  { %v1365_v49 = vpop.f32.mrf.mxu2 }
  0xf8   :  { %v1414_v52 = vpop.f32.mrf.mxu3 }
  0xf9   :  { %v11532_v53 = vadd.f32 %v1414_v52, %v1365_v49  ;;  %v1337_v56 = vpop.f32.mrf.mxu0 }
  0xfb   :  { %v1386_v1 = vpop.f32.mrf.mxu1 }
  0xfc   :  { %v1387_v47 = vadd.f32 %v1386_v1, %v1337_v56 }
  0xff   :  { %v1367_v2 = vpop.f32.mrf.mxu2 }
 0x100   :  { %v1416_v4 = vpop.f32.mrf.mxu3 }
 0x101   :  { %v11548_v8 = vadd.f32 %v1416_v4, %v1367_v2  ;;  %v1340_v13 = vpop.f32.mrf.mxu0 }
 0x103   :  { %v1389_v14 = vpop.f32.mrf.mxu1 }
 0x104   :  { %1467 = vmatmul.bf16.gmra.mxu2 %v11546_v6  ;;  %v1390_v20 = vadd.f32 %v1389_v14, %v1340_v13  ;;  %1545 = vmatmul.bf16.gmra.mxu0 %v11203_v17 }
 0x105   :  { %1516 = vmatmul.bf16.gmra.mxu3 %v11550_v9 }
 0x106   :  { %1594 = vmatmul.bf16.gmra.mxu1 %v11208_v19 }
 0x107   :  { %v1370_v18 = vpop.f32.mrf.mxu2 }
 0x108   :  { %v1419_v21 = vpop.f32.mrf.mxu3 }
 0x109   :  { %v11556_v22 = vadd.f32 %v1419_v21, %v1370_v18  ;;  %v1342_v23 = vpop.f32.mrf.mxu0 }
 0x10b   :  { %v1391_v26 = vpop.f32.mrf.mxu1 }
 0x10c   :  { %v1392_v18 = vadd.f32 %v1391_v26, %v1342_v23 }
 0x10f   :  { %v1372_v27 = vpop.f32.mrf.mxu2 }
 0x110   :  { %v1421_v28 = vpop.f32.mrf.mxu3 }
 0x111   :  { %v11558_v30 = vadd.f32 %v1421_v28, %v1372_v27  ;;  %v1345_v33 = vpop.f32.mrf.mxu0 }
 0x113   :  { %v1394_v34 = vpop.f32.mrf.mxu1 }
 0x114   :  { %1628 = vmatmul.bf16.vlgmr.msra.gmra.mxu2 %v11152_v61  ;;  %v1395_v40 = vadd.f32 %v1394_v34, %v1345_v33  ;;  %1550 = vmatmul.bf16.gmra.mxu0 %v11239_v29 }
 0x115   :  { %1677 = vmatmul.bf16.vlgmr.msra.gmra.mxu3 %v11154_v62 }
 0x116   :  { %1599 = vmatmul.bf16.gmra.mxu1 %v11244_v31 }
 0x117   :  { %v1433_v36 = vpop.f32.mrf.mxu2 }
 0x118   :  { %v1434_v41 = vadd.f32 %v1433_v36, %v1385_v50  ;;  %v1482_v44 = vpop.f32.mrf.mxu3 }
 0x119   :  { %v1347_v49 = vpop.f32.mrf.mxu0 }
 0x11a   :  { %v11564_v45 = vadd.f32 %v1482_v44, %v1434_v41 }
 0x11b   :  { %v1396_v52 = vpop.f32.mrf.mxu1 }
 0x11f   :  { %v1435_v54 = vpop.f32.mrf.mxu2 }
 0x120   :  { %v1436_v55 = vadd.f32 %v1435_v54, %v1387_v47  ;;  %v1484_v57 = vpop.f32.mrf.mxu3 }
 0x121   :  { %v1350_v50 = vpop.f32.mrf.mxu0 }
 0x122   :  { %v11567_v0 = vadd.f32 %v1484_v57, %v1436_v55  ;;  %v1397_v55 = vadd.f32 %v1396_v52, %v1347_v49 }
 0x123   :  { %v1399_v2 = vpop.f32.mrf.mxu1 }
 0x124   :  { %1633 = vmatmul.bf16.gmra.mxu2 %v11188_v11  ;;  %v1400_v13 = vadd.f32 %v1399_v2, %v1350_v50  ;;  %1555 = vmatmul.bf16.gmra.mxu0 %v11275_v43 }
 0x125   :  { %1682 = vmatmul.bf16.gmra.mxu3 %v11190_v12 }
 0x126   :  { %1604 = vmatmul.bf16.gmra.mxu1 %v11286_v48 }
 0x127   :  { %v1438_v4 = vpop.f32.mrf.mxu2 }
 0x128   :  { %v1439_v56 = vadd.f32 %v1438_v4, %v1390_v20  ;;  %v1487_v1 = vpop.f32.mrf.mxu3 }
 0x129   :  { %v1352_v21 = vpop.f32.mrf.mxu0 }
 0x12a   :  { %v11572_v14 = vadd.f32 %v1487_v1, %v1439_v56 }
 0x12b   :  { %v1401_v27 = vpop.f32.mrf.mxu1 }
 0x12f   :  { %v1440_v28 = vpop.f32.mrf.mxu2 }
 0x130   :  { %v1441_v33 = vadd.f32 %v1440_v28, %v1392_v18  ;;  %v1489_v34 = vpop.f32.mrf.mxu3 }
 0x131   :  { %v1355_v20 = vpop.f32.mrf.mxu0 }
 0x132   :  { %v11575_v36 = vadd.f32 %v1489_v34, %v1441_v33 }
 0x133   :  { %v1404_v41 = vpop.f32.mrf.mxu1 }
 0x134   :  { %1638 = vmatmul.bf16.gmra.mxu2 %v11224_v24  ;;  %v1405_v47 = vadd.f32 %v1404_v41, %v1355_v20  ;;  %v1402_v20 = vadd.f32 %v1401_v27, %v1352_v21  ;;  %v9866_v21 = vld [vmem:[%s14547_s15 + $0x178] sm:$0xf0]  ;;  %1560 = vmatmul.bf16.gmra.mxu0 %v11002_v60 }
 0x135   :  { %1687 = vmatmul.bf16.gmra.mxu3 %v11226_v25 }
 0x136   :  { %1609 = vmatmul.bf16.gmra.mxu1 %v11010_v63 }
 0x137   :  { %v1443_v44 = vpop.f32.mrf.mxu2 }
 0x138   :  { %v1444_v23 = vadd.f32 %v1443_v44, %v1395_v40  ;;  %v1492_v26 = vpop.f32.mrf.mxu3  ;;  %v8084_v44 = vld [vmem:[%s14547_s15 + $0xb0] sm:$0xf] }
 0x139   :  { %v11582_v57 = vpop.f32.mrf.mxu0 }
 0x13a   :  { %v11580_v54 = vadd.f32 %v1492_v26, %v1444_v23  ;;  %v9842_v23 = vld [vmem:[%s14547_s15 + $0xb8] sm:$0xf0]  ;;  %v8180_v26 = vld [vmem:[%s14547_s15 + $0x170] sm:$0xf] }
 0x13b   :  { %v11584_v50 = vpop.f32.mrf.mxu1  ;;  %v8181_v27 = vor.u32 %v9866_v21, %v8180_v26  ;;  %v9914_v26 = vld [vmem:[%s14547_s15 + $0x2f8] sm:$0xf0]  ;;  %v9836_v21 = vld [vmem:[%s14547_s15 + $0x88] sm:$0xf0] }
 0x13d   :  { %1767 = vmatpush.bf16.msra.mxu1 %v8181_v27  ;;  %v8156_v27 = vld [vmem:[%s14547_s15 + $0x140] sm:$0xf] }
 0x13f   :  { %v1445_v2 = vpop.f32.mrf.mxu2 }
 0x140   :  { %v1446_v4 = vadd.f32 %v1445_v2, %v1397_v55  ;;  %v1494_v56 = vpop.f32.mrf.mxu3 }
 0x141   :  { %v1360_v40 = vpop.f32.mrf.mxu0 }
 0x142   :  { %v11587_v1 = vadd.f32 %v1494_v56, %v1446_v4  ;;  %v8072_v56 = vld [vmem:[%s14547_s15 + $0x98] sm:$0xf] }
 0x143   :  { %v1409_v18 = vpop.f32.mrf.mxu1 }
 0x144   :  { %1643 = vmatmul.bf16.gmra.mxu2 %v11260_v38  ;;  %v11592_v52 = vadd.f32 %v1409_v18, %v1360_v40  ;;  %v9839_v40 = vld [vmem:[%s14547_s15 + $0xa0] sm:$0xf0]  ;;  %v8168_v18 = vld [vmem:[%s14547_s15 + $0x158] sm:$0xf]  ;;  %1565 = vmatmul.bf16.gmra.mxu0 %v11086_v32 }
 0x145   :  { %1692 = vmatmul.bf16.gmra.mxu3 %v11262_v39 }
 0x146   :  { %1614 = vmatmul.bf16.gmra.mxu1 %v11094_v35 }
 0x147   :  { %v1448_v49 = vpop.f32.mrf.mxu2 }
 0x148   :  { %v1449_v28 = vadd.f32 %v1448_v49, %v1400_v13  ;;  %v1497_v33 = vpop.f32.mrf.mxu3  ;;  %v8085_v13 = vor.u32 %v9842_v23, %v8084_v44  ;;  %v8073_v49 = vor.u32 %v9839_v40, %v8072_v56  ;;  %v8372_v23 = vld [vmem:[%s14547_s15 + $0x2f0] sm:$0xf] }
 0x14a   :  { %v11594_v34 = vadd.f32 %v1497_v33, %v1449_v28  ;;  %1718 = vmatpush.bf16.msra.mxu0 %v8085_v13  ;;  %v9863_v28 = vld [vmem:[%s14547_s15 + $0x160] sm:$0xf0]  ;;  %v8276_v33 = vld [vmem:[%s14547_s15 + $0x230] sm:$0xf]  ;;  %v8060_v13 = vld [vmem:[%s14547_s15 + $0x80] sm:$0xf] }
 0x14e   :  { %1719 = vmatpush.bf16.msra.mxu0 %v8073_v49  ;;  %v9860_v49 = vld [vmem:[%s14547_s15 + $0x148] sm:$0xf0] }
 0x14f   :  { %v1450_v41 = vpop.f32.mrf.mxu2 }
 0x150   :  { %v1451_v55 = vadd.f32 %v1450_v41, %v1402_v20  ;;  %v1499_v2 = vpop.f32.mrf.mxu3  ;;  %v9890_v20 = vld [vmem:[%s14547_s15 + $0x238] sm:$0xf0]  ;;  %v8169_v41 = vor.u32 %v9863_v28, %v8168_v18  ;;  %v8061_v18 = vor.u32 %v9836_v21, %v8060_v13  ;;  %v8264_v28 = vld [vmem:[%s14547_s15 + $0x218] sm:$0xf]  ;;  %v8144_v13 = vld [vmem:[%s14547_s15 + $0x128] sm:$0xf] }
 0x151   :  { %v8277_v44 = vor.u32 %v9890_v20, %v8276_v33  ;;  %v9887_v33 = vld [vmem:[%s14547_s15 + $0x220] sm:$0xf0]  ;;  %v8157_v20 = vor.u32 %v9860_v49, %v8156_v27  ;;  %v9857_v27 = vld [vmem:[%s14547_s15 + $0x130] sm:$0xf0] }
 0x152   :  { %v11609_v4 = vadd.f32 %v1499_v2, %v1451_v55  ;;  %v8373_v55 = vor.u32 %v9914_v26, %v8372_v23  ;;  %1768 = vmatpush.bf16.msra.mxu1 %v8169_v41  ;;  %v8265_v41 = vor.u32 %v9887_v33, %v8264_v28  ;;  %1720 = vmatpush.bf16.msra.mxu0 %v8061_v18  ;;  %v8348_v33 = vld [vmem:[%s14547_s15 + $0x2c0] sm:$0xf] }
 0x153   :  { %1816 = vmatpush.bf16.msrb.mxu2 %v8277_v44  ;;  %v9911_v44 = vld [vmem:[%s14547_s15 + $0x2e0] sm:$0xf0]  ;;  %v1407_v18 = vadd.f32 %v11584_v50, %v11582_v57  ;;  %v8145_v49 = vor.u32 %v9857_v27, %v8144_v13  ;;  %v8036_v57 = vld [vmem:[%s14547_s15 + $0x50] sm:$0xf]  ;;  %v9830_v50 = vld [vmem:[%s14547_s15 + $0x58] sm:$0xf0] }
 0x154   :  { %1648 = vmatmul.bf16.gmra.mxu2 %v11308_v58  ;;  %1865 = vmatpush.bf16.msrb.mxu3 %v8373_v55  ;;  %v8048_v55 = vld [vmem:[%s14547_s15 + $0x68] sm:$0xf]  ;;  %v9854_v13 = vld [vmem:[%s14547_s15 + $0x118] sm:$0xf0]  ;;  %v9881_v27 = vld [vmem:[%s14547_s15 + $0x1f0] sm:$0xf0] }
 0x155   :  { %1697 = vmatmul.bf16.gmra.mxu3 %v11310_v59 }
 0x156   :  { %1769 = vmatpush.bf16.msra.mxu1 %v8157_v20  ;;  %v9908_v20 = vld [vmem:[%s14547_s15 + $0x2c8] sm:$0xf0] }
 0x157   :  { %v1453_v2 = vpop.f32.mrf.mxu2  ;;  %1817 = vmatpush.bf16.msrb.mxu2 %v8265_v41  ;;  %v8349_v41 = vor.u32 %v9908_v20, %v8348_v33  ;;  %v8024_v20 = vld [vmem:[%s14547_s15 + $0x38] sm:$0xf] }
 0x158   :  { %v1454_v56 = vadd.f32 %v1453_v2, %v1405_v47  ;;  %v1502_v40 = vpop.f32.mrf.mxu3  ;;  %v8360_v47 = vld [vmem:[%s14547_s15 + $0x2d8] sm:$0xf]  ;;  %v9833_v2 = vld [vmem:[%s14547_s15 + $0x70] sm:$0xf0] }
 0x159   :  { %v8361_v26 = vor.u32 %v9911_v44, %v8360_v47  ;;  %v8049_v21 = vor.u32 %v9833_v2, %v8048_v55  ;;  %v8132_v44 = vld [vmem:[%s14547_s15 + $0x110] sm:$0xf]  ;;  %v8037_v2 = vor.u32 %v9830_v50, %v8036_v57  ;;  %v9851_v50 = vld [vmem:[%s14547_s15 + $0x100] sm:$0xf0] }
 0x15a   :  { %v11662_v23 = vadd.f32 %v1502_v40, %v1454_v56  ;;  %v8252_v56 = vld [vmem:[%s14547_s15 + $0x200] sm:$0xf]  ;;  %v9884_v40 = vld [vmem:[%s14547_s15 + $0x208] sm:$0xf0]  ;;  %1770 = vmatpush.bf16.msra.mxu1 %v8145_v49  ;;  %v9905_v49 = vld [vmem:[%s14547_s15 + $0x2b0] sm:$0xf0] }
 0x15b   :  { %1866 = vmatpush.bf16.msrb.mxu3 %v8361_v26  ;;  %v8253_v28 = vor.u32 %v9884_v40, %v8252_v56  ;;  %1721 = vmatpush.bf16.msra.mxu0 %v8049_v21  ;;  %v8240_v21 = vld [vmem:[%s14547_s15 + $0x1e8] sm:$0xf]  ;;  %v8133_v56 = vor.u32 %v9854_v13, %v8132_v44  ;;  %v8228_v44 = vld [vmem:[%s14547_s15 + $0x1d0] sm:$0xf] }
 0x15c   :  { %v8241_v40 = vor.u32 %v9881_v27, %v8240_v21  ;;  %v8324_v13 = vld [vmem:[%s14547_s15 + $0x290] sm:$0xf]  ;;  %v9902_v21 = vld [vmem:[%s14547_s15 + $0x298] sm:$0xf0]  ;;  %v1362_v27 = vpop.f32.mrf.mxu0 }
 0x15d   :  { %1818 = vmatpush.bf16.msrb.mxu2 %v8253_v28 }
 0x15e   :  { %1771 = vmatpush.bf16.msra.mxu1 %v8133_v56  ;;  %v8325_v56 = vor.u32 %v9902_v21, %v8324_v13  ;;  %v9899_v13 = vld [vmem:[%s14547_s15 + $0x280] sm:$0xf0] }
 0x15f   :  { %v1455_v47 = vpop.f32.mrf.mxu2  ;;  %1867 = vmatpush.bf16.msrb.mxu3 %v8349_v41  ;;  %1722 = vmatpush.bf16.msra.mxu0 %v8037_v2  ;;  %v9827_v41 = vld [vmem:[%s14547_s15 + $0x40] sm:$0xf0] }
 0x160   :  { %v1456_v26 = vadd.f32 %v1455_v47, %v1407_v18  ;;  %v1504_v55 = vpop.f32.mrf.mxu3  ;;  %v8336_v18 = vld [vmem:[%s14547_s15 + $0x2a8] sm:$0xf]  ;;  %v8120_v47 = vld [vmem:[%s14547_s15 + $0xf8] sm:$0xf]  ;;  %v8025_v57 = vor.u32 %v9827_v41, %v8024_v20  ;;  %v8108_v20 = vld [vmem:[%s14547_s15 + $0xe0] sm:$0xf] }
 0x161   :  { %v8337_v33 = vor.u32 %v9905_v49, %v8336_v18  ;;  %1819 = vmatpush.bf16.msrb.mxu2 %v8241_v40  ;;  %v1411_v18 = vpop.f32.mrf.mxu1  ;;  %v8012_v49 = vld [vmem:[%s14547_s15 + $0x20] sm:$0xf] }
 0x162   :  { %v11715_v28 = vadd.f32 %v1504_v55, %v1456_v26  ;;  %v9878_v26 = vld [vmem:[%s14547_s15 + $0x1d8] sm:$0xf0]  ;;  %v8121_v55 = vor.u32 %v9851_v50, %v8120_v47  ;;  %v9848_v50 = vld [vmem:[%s14547_s15 + $0xe8] sm:$0xf0] }
 0x163   :  { %1868 = vmatpush.bf16.msrb.mxu3 %v8337_v33  ;;  %v8229_v2 = vor.u32 %v9878_v26, %v8228_v44  ;;  %1723 = vmatpush.bf16.msra.mxu0 %v8025_v57  ;;  %v9824_v33 = vld [vmem:[%s14547_s15 + $0x28] sm:$0xf0]  ;;  %v8216_v44 = vld [vmem:[%s14547_s15 + $0x1b8] sm:$0xf]  ;;  %v9875_v26 = vld [vmem:[%s14547_s15 + $0x1c0] sm:$0xf0] }
 0x164   :  { %1653 = vmatmul.bf16.gmra.mxu2 %v11407_v7  ;;  %1772 = vmatpush.bf16.msra.mxu1 %v8121_v55  ;;  %v8013_v57 = vor.u32 %v9824_v33, %v8012_v49  ;;  %v8109_v55 = vor.u32 %v9848_v50, %v8108_v20  ;;  %v9821_v49 = vld [vmem:[%s14547_s15 + $0x10] sm:$0xf0]  ;;  %v8096_v33 = vld [vmem:[%s14547_s15 + $0xc8] sm:$0xf]  ;;  %v1412_v50 = vadd.f32 %v1411_v18, %v1362_v27 }
 0x165   :  { %1702 = vmatmul.bf16.gmra.mxu3 %v11418_v16  ;;  %1820 = vmatpush.bf16.msrb.mxu2 %v8229_v2  ;;  %v8217_v2 = vor.u32 %v9875_v26, %v8216_v44  ;;  %v8192_v27 = vld [vmem:[%s14547_s15 + $0x188] sm:$0xf]  ;;  %v9869_v18 = vld [vmem:[%s14547_s15 + $0x190] sm:$0xf0] }
 0x167   :  { %v1458_v40 = vpop.f32.mrf.mxu2  ;;  %1869 = vmatpush.bf16.msrb.mxu3 %v8325_v56  ;;  %1724 = vmatpush.bf16.msra.mxu0 %v8013_v57  ;;  %v9872_v57 = vld [vmem:[%s14547_s15 + $0x1a8] sm:$0xf0] }
 0x168   :  { %v1459_v41 = vadd.f32 %v1458_v40, %v11592_v52  ;;  %v1507_v47 = vpop.f32.mrf.mxu3  ;;  %v8312_v52 = vld [vmem:[%s14547_s15 + $0x278] sm:$0xf]  ;;  %v8000_v40 = vld [vmem:[%s14547_s15 + $0x8] sm:$0xf]  ;;  %1773 = vmatpush.bf16.msra.mxu1 %v8109_v55  ;;  %v8300_v55 = vld [vmem:[%s14547_s15 + $0x260] sm:$0xf] }
 0x169   :  { %v8313_v56 = vor.u32 %v9899_v13, %v8312_v52  ;;  %1821 = vmatpush.bf16.msrb.mxu2 %v8217_v2  ;;  %v8001_v20 = vor.u32 %v9821_v49, %v8000_v40  ;;  %v9896_v2 = vld [vmem:[%s14547_s15 + $0x268] sm:$0xf0]  ;;  %v1531_v13 = vpop.f32.mrf.mxu0  ;;  %v1580_v49 = vpop.f32.mrf.mxu1 }
 0x16a   :  { %v11769_v21 = vadd.f32 %v1507_v47, %v1459_v41  ;;  %v9845_v41 = vld [vmem:[%s14547_s15 + $0xd0] sm:$0xf0]  ;;  %v8204_v47 = vld [vmem:[%s14547_s15 + $0x1a0] sm:$0xf]  ;;  %v8301_v52 = vor.u32 %v9896_v2, %v8300_v55 }
 0x16b   :  { %1870 = vmatpush.bf16.msrb.mxu3 %v8313_v56  ;;  %v8097_v44 = vor.u32 %v9845_v41, %v8096_v33  ;;  %v8205_v26 = vor.u32 %v9872_v57, %v8204_v47  ;;  %1725 = vmatpush.bf16.msra.mxu0 %v8001_v20  ;;  %v8288_v56 = vld [vmem:[%s14547_s15 + $0x248] sm:$0xf]  ;;  %v1581_v47 = vadd.f32 %v1580_v49, %v1531_v13  ;;  %v9893_v57 = vld [vmem:[%s14547_s15 + $0x250] sm:$0xf0] }
 0x16c   :  { %v8193_v20 = vor.u32 %v9869_v18, %v8192_v27 }
 0x16d   :  { %1774 = vmatpush.bf16.msra.mxu1 %v8097_v44  ;;  %1822 = vmatpush.bf16.msrb.mxu2 %v8205_v26  ;;  %v8289_v44 = vor.u32 %v9893_v57, %v8288_v56 }
 0x16e   :  { %1726 = vmatmul.bf16.vlgmr.msra.gmra.mxu0 %v11035_v10 }
 0x16f   :  { %v1460_v40 = vpop.f32.mrf.mxu2  ;;  %1871 = vmatpush.bf16.msrb.mxu3 %v8301_v52 }
 0x170   :  { %v1461_v33 = vadd.f32 %v1460_v40, %v1412_v50  ;;  %v1509_v41 = vpop.f32.mrf.mxu3  ;;  %1775 = vmatmul.bf16.vlgmr.msra.gmra.mxu1 %v11046_v15 }
 0x171   :  { %1823 = vmatpush.bf16.msrb.mxu2 %v8193_v20  ;;  %v1533_v50 = vpop.f32.mrf.mxu0  ;;  %v1582_v2 = vpop.f32.mrf.mxu1 }
 0x172   :  { %v11808_v26 = vadd.f32 %v1509_v41, %v1461_v33  ;;  %v1583_v40 = vadd.f32 %v1582_v2, %v1533_v50 }
 0x173   :  { %1872 = vmatpush.bf16.msrb.mxu3 %v8289_v44 }
 0x174   :  { %1658 = vmatmul.bf16.gmra.mxu2 %v11521_v37 }
 0x175   :  { %1707 = vmatmul.bf16.gmra.mxu3 %v11526_v42 }
 0x177   :  { %v1463_v55 = vpop.f32.mrf.mxu2 }
 0x178   :  { %v1464_v52 = vadd.f32 %v1463_v55, %v11532_v53  ;;  %v1512_v13 = vpop.f32.mrf.mxu3 }
 0x179   :  { %v1536_v27 = vpop.f32.mrf.mxu0  ;;  %v1585_v56 = vpop.f32.mrf.mxu1 }
 0x17a   :  { %v11814_v49 = vadd.f32 %v1512_v13, %v1464_v52  ;;  %v1586_v20 = vadd.f32 %v1585_v56, %v1536_v27 }
 0x17e   :  { %1731 = vmatmul.bf16.gmra.mxu0 %v11119_v46 }
 0x17f   :  { %v1465_v18 = vpop.f32.mrf.mxu2 }
 0x180   :  { %v1466_v33 = vadd.f32 %v1465_v18, %v11548_v8  ;;  %v1514_v41 = vpop.f32.mrf.mxu3  ;;  %1780 = vmatmul.bf16.gmra.mxu1 %v11130_v51 }
 0x181   :  { %v1538_v53 = vpop.f32.mrf.mxu0  ;;  %v1587_v50 = vpop.f32.mrf.mxu1 }
 0x182   :  { %v11818_v57 = vadd.f32 %v1514_v41, %v1466_v33  ;;  %v1588_v52 = vadd.f32 %v1587_v50, %v1538_v53 }
 0x184   :  { %1663 = vmatmul.bf16.gmra.mxu2 %v11546_v6 }
 0x185   :  { %1712 = vmatmul.bf16.gmra.mxu3 %v11550_v9 }
 0x187   :  { %v1468_v44 = vpop.f32.mrf.mxu2 }
 0x188   :  { %v1469_v55 = vadd.f32 %v1468_v44, %v11556_v22  ;;  %v1517_v2 = vpop.f32.mrf.mxu3 }
 0x189   :  { %v1541_v13 = vpop.f32.mrf.mxu0  ;;  %v1590_v18 = vpop.f32.mrf.mxu1 }
 0x18a   :  { %v11824_v8 = vadd.f32 %v1517_v2, %v1469_v55  ;;  %v11827_v41 = vadd.f32 %v1590_v18, %v1541_v13  ;;  %v14404_v13 = vlaneseq }
 0x18e   :  { %1736 = vmatmul.bf16.gmra.mxu0 %v11167_v3 }
 0x18f   :  { %v1470_v27 = vpop.f32.mrf.mxu2 }
 0x190   :  { %v1471_v56 = vadd.f32 %v1470_v27, %v11558_v30  ;;  %v1519_v33 = vpop.f32.mrf.mxu3  ;;  %1785 = vmatmul.bf16.gmra.mxu1 %v11172_v5 }
 0x191   :  { %v1543_v22 = vpop.f32.mrf.mxu0  ;;  %v1592_v44 = vpop.f32.mrf.mxu1 }
 0x192   :  { %v11830_v51 = vadd.f32 %v1519_v33, %v1471_v56  ;;  %v11835_v2 = vadd.f32 %v1592_v44, %v1543_v22  ;;  %v11840_v56 = vshrl.u32 %v14404_v13, 7 }
 0x194   :  { %1824 = vmatmul.bf16.vlgmr.msrb.gmra.mxu2 %v11152_v61  ;;  %vm14448_vm0 = vcmp.lt.s32.totalorder %v11840_v56, 1  ;;  %vm2011_vm9 = vcmp.lt.s32.totalorder %v11840_v56, 2 }
 0x195   :  { %1873 = vmatmul.bf16.vlgmr.msrb.gmra.mxu3 %v11154_v62 }
 0x197   :  { %v1629_v53 = vpop.f32.mrf.mxu2 }
 0x198   :  { %v1630_v50 = vadd.f32 %v1629_v53, %v1581_v47  ;;  %v1678_v55 = vpop.f32.mrf.mxu3  ;;  %v288_v53 = vadd.s32 16, %v11840_v56 }
 0x199   :  { %v1546_v27 = vpop.f32.mrf.mxu0  ;;  %v1595_v33 = vpop.f32.mrf.mxu1 }
 0x19a   :  { %v11837_v30 = vadd.f32 %v1678_v55, %v1630_v50  ;;  %v11842_v15 = vadd.f32 %v1595_v33, %v1546_v27  ;;  %v11858_v27 = vand.u32 15, %v288_v53 }
 0x19c   :  { %v14406_v47 = vrot.slane %v11837_v30, 7  ;;  %14570 = vst [vmem:[#allocation53_spill] sm:$0xff] %v11858_v27  ;;  %vm14445_vm1 = vcmp.ge.s32.totalorder %v11858_v27, 1  ;;  %vm2030_vm10 = vcmp.ge.s32.totalorder %v11858_v27, 2 }
 0x19e   :  { %1741 = vmatmul.bf16.gmra.mxu0 %v11203_v17 }
 0x19f   :  { %v1631_v18 = vpop.f32.mrf.mxu2 }
 0x1a0   :  { %v1632_v5 = vadd.f32 %v1631_v18, %v1583_v40  ;;  %v1680_v61 = vpop.f32.mrf.mxu3  ;;  %1790 = vmatmul.bf16.gmra.mxu1 %v11208_v19 }
 0x1a1   :  { %v1548_v44 = vpop.f32.mrf.mxu0  ;;  %v1597_v50 = vpop.f32.mrf.mxu1 }
 0x1a2   :  { %v1681_v62 = vadd.f32 %v1680_v61, %v1632_v5  ;;  %v11860_v18 = vadd.f32 %v1597_v50, %v1548_v44 }
 0x1a4   :  { %v1915_v22 = vrot.slane %v1681_v62, 7  ;;  %1829 = vmatmul.bf16.gmra.mxu2 %v11188_v11 }
 0x1a5   :  { %1878 = vmatmul.bf16.gmra.mxu3 %v11190_v12 }
 0x1a6   :  { %v1945_v40 = vsel %vm14448_vm0, %v14406_v47, %v1915_v22 }
 0x1a7   :  { %v11856_v61 = vadd.f32 %v1945_v40, %v11567_v0  ;;  %v1634_v5 = vpop.f32.mrf.mxu2 }
 0x1a8   :  { %v1635_v55 = vadd.f32 %v1634_v5, %v1586_v20  ;;  %v1683_v62 = vpop.f32.mrf.mxu3 }
 0x1a9   :  { %v1551_v47 = vpop.f32.mrf.mxu0  ;;  %v1600_v12 = vpop.f32.mrf.mxu1 }
 0x1aa   :  { %v1684_v33 = vadd.f32 %v1683_v62, %v1635_v55  ;;  %v11870_v44 = vadd.f32 %v1600_v12, %v1551_v47 }
 0x1ac   :  { %v1916_v13 = vrot.slane %v1684_v33, 7 }
 0x1ae   :  { %v1944_v19 = vsel %vm14448_vm0, %v1915_v22, %v1916_v13  ;;  %1746 = vmatmul.bf16.gmra.mxu0 %v11239_v29  ;;  %v290_v22 = vadd.s32 32, %v11840_v56 }
 0x1af   :  { %v1965_v0 = vsel %vm14445_vm1, %v1944_v19, 0.0  ;;  %v1636_v40 = vpop.f32.mrf.mxu2 }
 0x1b0   :  { %v11868_v20 = vadd.f32 %v1965_v0, %v11572_v14  ;;  %v1637_v53 = vadd.f32 %v1636_v40, %v1588_v52  ;;  %v1685_v5 = vpop.f32.mrf.mxu3  ;;  %1795 = vmatmul.bf16.gmra.mxu1 %v11244_v31  ;;  %v11885_v33 = vand.u32 15, %v290_v22 }
 0x1b1   :  { %v11879_v14 = vpop.f32.mrf.mxu0  ;;  %v1602_v47 = vpop.f32.mrf.mxu1 }
 0x1b2   :  { %v1686_v50 = vadd.f32 %v1685_v5, %v1637_v53  ;;  %14571 = vst [vmem:[#allocation54_spill] sm:$0xff] %v11885_v33  ;;  %vm14436_vm2 = vcmp.ge.s32.totalorder %v11885_v33, 1  ;;  %vm2032_vm11 = vcmp.ge.s32.totalorder %v11885_v33, 2 }
 0x1b4   :  { %v1917_v55 = vrot.slane %v1686_v50, 7  ;;  %1834 = vmatmul.bf16.gmra.mxu2 %v11224_v24 }
 0x1b5   :  { %1883 = vmatmul.bf16.gmra.mxu3 %v11226_v25 }
 0x1b6   :  { %v1943_v19 = vsel %vm14448_vm0, %v1916_v13, %v1917_v55 }
 0x1b7   :  { %v11882_v12 = vadd.f32 %v1943_v19, %v11575_v36  ;;  %v1639_v52 = vpop.f32.mrf.mxu2 }
 0x1b8   :  { %v1640_v62 = vadd.f32 %v1639_v52, %v11827_v41  ;;  %v1688_v0 = vpop.f32.mrf.mxu3 }
 0x1b9   :  { %v1556_v13 = vpop.f32.mrf.mxu0  ;;  %v1605_v19 = vpop.f32.mrf.mxu1 }
 0x1ba   :  { %v1689_v40 = vadd.f32 %v1688_v0, %v1640_v62  ;;  %v11896_v52 = vadd.f32 %v1605_v19, %v1556_v13  ;;  %v292_v0 = vadd.s32 48, %v11840_v56 }
 0x1bc   :  { %v1918_v53 = vrot.slane %v1689_v40, 7 }
 0x1be   :  { %v1942_v5 = vsel %vm14448_vm0, %v1917_v55, %v1918_v53  ;;  %1751 = vmatmul.bf16.gmra.mxu0 %v11275_v43 }
 0x1bf   :  { %v1967_v50 = vsel %vm14436_vm2, %v1942_v5, 0.0  ;;  %v1641_v36 = vpop.f32.mrf.mxu2 }
 0x1c0   :  { %v11893_v31 = vadd.f32 %v1967_v50, %v11580_v54  ;;  %v1642_v41 = vadd.f32 %v1641_v36, %v11835_v2  ;;  %v1690_v22 = vpop.f32.mrf.mxu3  ;;  %1800 = vmatmul.bf16.gmra.mxu1 %v11286_v48  ;;  %v11911_v36 = vand.u32 15, %v292_v0 }
 0x1c1   :  { %v11905_v40 = vpop.f32.mrf.mxu0  ;;  %v1607_v13 = vpop.f32.mrf.mxu1 }
 0x1c2   :  { %v1691_v62 = vadd.f32 %v1690_v22, %v1642_v41  ;;  %14572 = vst [vmem:[#allocation55_spill] sm:$0xff] %v11911_v36  ;;  %vm14434_vm3 = vcmp.ge.s32.totalorder %v11911_v36, 1  ;;  %vm2034_vm12 = vcmp.ge.s32.totalorder %v11911_v36, 2 }
 0x1c4   :  { %v1919_v55 = vrot.slane %v1691_v62, 7  ;;  %1839 = vmatmul.bf16.gmra.mxu2 %v11260_v38 }
 0x1c5   :  { %1888 = vmatmul.bf16.gmra.mxu3 %v11262_v39 }
 0x1c6   :  { %v1941_v54 = vsel %vm14448_vm0, %v1918_v53, %v1919_v55 }
 0x1c7   :  { %v11908_v2 = vadd.f32 %v1941_v54, %v11587_v1  ;;  %v1644_v5 = vpop.f32.mrf.mxu2 }
 0x1c8   :  { %v1645_v50 = vadd.f32 %v1644_v5, %v11842_v15  ;;  %v1693_v19 = vpop.f32.mrf.mxu3 }
 0x1c9   :  { %v1561_v53 = vpop.f32.mrf.mxu0  ;;  %v1610_v54 = vpop.f32.mrf.mxu1 }
 0x1ca   :  { %v1694_v41 = vadd.f32 %v1693_v19, %v1645_v50  ;;  %v11922_v5 = vadd.f32 %v1610_v54, %v1561_v53  ;;  %v294_v19 = vadd.s32 64, %v11840_v56 }
 0x1cc   :  { %v1920_v22 = vrot.slane %v1694_v41, 7 }
 0x1ce   :  { %v1940_v62 = vsel %vm14448_vm0, %v1919_v55, %v1920_v22  ;;  %1756 = vmatmul.bf16.gmra.mxu0 %v11002_v60 }
 0x1cf   :  { %v1969_v48 = vsel %vm14434_vm3, %v1940_v62, 0.0  ;;  %v1646_v1 = vpop.f32.mrf.mxu2 }
 0x1d0   :  { %v11919_v39 = vadd.f32 %v1969_v48, %v11594_v34  ;;  %v1647_v15 = vadd.f32 %v1646_v1, %v11860_v18  ;;  %v1695_v0 = vpop.f32.mrf.mxu3  ;;  %1805 = vmatmul.bf16.gmra.mxu1 %v11010_v63  ;;  %v11937_v1 = vand.u32 15, %v294_v19 }
 0x1d1   :  { %v11931_v34 = vpop.f32.mrf.mxu0  ;;  %v1612_v62 = vpop.f32.mrf.mxu1 }
 0x1d2   :  { %v1696_v50 = vadd.f32 %v1695_v0, %v1647_v15  ;;  %14573 = vst [vmem:[#allocation56_spill] sm:$0xff] %v11937_v1  ;;  %vm14431_vm4 = vcmp.ge.s32.totalorder %v11937_v1, 1  ;;  %vm2036_vm13 = vcmp.ge.s32.totalorder %v11937_v1, 2  ;;  %v9933_v1 = vld [vmem:[#allocation2 + $0x94] sm:$0xf] }
 0x1d4   :  { %v1921_v55 = vrot.slane %v1696_v50, 7  ;;  %1844 = vmatmul.bf16.gmra.mxu2 %v11308_v58  ;;  %v1603_v50 = vadd.f32 %v1602_v47, %v11879_v14  ;;  %v296_v47 = vadd.s32 80, %v11840_v56 }
 0x1d5   :  { %1893 = vmatmul.bf16.gmra.mxu3 %v11310_v59 }
 0x1d6   :  { %v1939_v48 = vsel %vm14448_vm0, %v1920_v22, %v1921_v55 }
 0x1d7   :  { %v11934_v18 = vadd.f32 %v1939_v48, %v11609_v4  ;;  %v1649_v41 = vpop.f32.mrf.mxu2 }
 0x1d8   :  { %v1650_v53 = vadd.f32 %v1649_v41, %v11870_v44  ;;  %v1698_v54 = vpop.f32.mrf.mxu3 }
 0x1d9   :  { %v1566_v63 = vpop.f32.mrf.mxu0  ;;  %v1615_v59 = vpop.f32.mrf.mxu1 }
 0x1da   :  { %v1699_v15 = vadd.f32 %v1698_v54, %v1650_v53  ;;  %v11948_v53 = vadd.f32 %v1615_v59, %v1566_v63 }
 0x1dc   :  { %v1922_v0 = vrot.slane %v1699_v15, 7 }
 0x1de   :  { %v1938_v22 = vsel %vm14448_vm0, %v1921_v55, %v1922_v0  ;;  %1761 = vmatmul.bf16.gmra.mxu0 %v11086_v32  ;;  %v9934_v32 = vld [vmem:[#allocation2 + $0x98] sm:$0xf0] }
 0x1df   :  { %v1971_v4 = vsel %vm14431_vm4, %v1938_v22, 0.0  ;;  %v1651_v48 = vpop.f32.mrf.mxu2  ;;  %v11961_v22 = vand.u32 15, %v296_v47 }
 0x1e0   :  { %v11946_v44 = vadd.f32 %v1971_v4, %v11662_v23  ;;  %v1652_v19 = vadd.f32 %v1651_v48, %v1603_v50  ;;  %v1700_v41 = vpop.f32.mrf.mxu3  ;;  %1810 = vmatmul.bf16.gmra.mxu1 %v11094_v35 }
 0x1e1   :  { %v1568_v55 = vpop.f32.mrf.mxu0  ;;  %v1617_v59 = vpop.f32.mrf.mxu1  ;;  %14574 = vst [vmem:[#allocation57_spill] sm:$0xff] %v11961_v22  ;;  %vm14428_vm5 = vcmp.ge.s32.totalorder %v11961_v22, 1  ;;  %vm2038_vm14 = vcmp.ge.s32.totalorder %v11961_v22, 2 }
 0x1e2   :  { %v1701_v54 = vadd.f32 %v1700_v41, %v1652_v19  ;;  %v1608_v41 = vadd.f32 %v1607_v13, %v11905_v40  ;;  %v298_v40 = vadd.s32 96, %v11840_v56 }
 0x1e4   :  { %v1923_v14 = vrot.slane %v1701_v54, 7  ;;  %1849 = vmatmul.bf16.gmra.mxu2 %v11407_v7 }
 0x1e5   :  { %1898 = vmatmul.bf16.gmra.mxu3 %v11418_v16 }
 0x1e6   :  { %v1937_v23 = vsel %vm14448_vm0, %v1922_v0, %v1923_v14 }
 0x1e7   :  { %v11958_v15 = vadd.f32 %v1937_v23, %v11715_v28  ;;  %v1654_v63 = vpop.f32.mrf.mxu2 }
 0x1e8   :  { %v1655_v50 = vadd.f32 %v1654_v63, %v11896_v52  ;;  %v1703_v4 = vpop.f32.mrf.mxu3 }
 0x1ea   :  { %v1704_v48 = vadd.f32 %v1703_v4, %v1655_v50 }
 0x1eb   :  { %v1727_v54 = vpop.f32.mrf.mxu0 }
 0x1ec   :  { %v1924_v19 = vrot.slane %v1704_v48, 7 }
 0x1ed   :  { %v1776_v35 = vpop.f32.mrf.mxu1 }
 0x1ee   :  { %v1936_v0 = vsel %vm14448_vm0, %v1923_v14, %v1924_v19  ;;  %v11972_v50 = vadd.f32 %v1776_v35, %v1727_v54  ;;  %v11983_v54 = vand.u32 15, %v298_v40 }
 0x1ef   :  { %v1973_v28 = vsel %vm14428_vm5, %v1936_v0, 0.0  ;;  %v1656_v23 = vpop.f32.mrf.mxu2 }
 0x1f0   :  { %v11970_v52 = vadd.f32 %v1973_v28, %v11769_v21  ;;  %v1657_v47 = vadd.f32 %v1656_v23, %v1608_v41  ;;  %v1705_v63 = vpop.f32.mrf.mxu3  ;;  %14575 = vst [vmem:[#allocation58_spill] sm:$0xff] %v11983_v54  ;;  %vm14427_vm6 = vcmp.ge.s32.totalorder %v11983_v54, 1  ;;  %vm14450_vm15 = vcmp.ge.s32.totalorder %v11983_v54, 2 }
 0x1f2   :  { %v1706_v4 = vadd.f32 %v1705_v63, %v1657_v47  ;;  %v1613_v63 = vadd.f32 %v1612_v62, %v11931_v34  ;;  %v300_v34 = vadd.s32 112, %v11840_v56 }
 0x1f3   :  { %v1729_v14 = vpop.f32.mrf.mxu0 }
 0x1f4   :  { %v1925_v48 = vrot.slane %v1706_v4, 7  ;;  %1854 = vmatmul.bf16.gmra.mxu2 %v11521_v37 }
 0x1f5   :  { %1903 = vmatmul.bf16.gmra.mxu3 %v11526_v42  ;;  %v1778_v41 = vpop.f32.mrf.mxu1 }
 0x1f6   :  { %v1935_v13 = vsel %vm14448_vm0, %v1924_v19, %v1925_v48 }
 0x1f7   :  { %v11980_v0 = vadd.f32 %v1935_v13, %v11808_v26  ;;  %v1659_v21 = vpop.f32.mrf.mxu2 }
 0x1f8   :  { %v1660_v35 = vadd.f32 %v1659_v21, %v11922_v5  ;;  %v1708_v28 = vpop.f32.mrf.mxu3 }
 0x1fa   :  { %v1709_v23 = vadd.f32 %v1708_v28, %v1660_v35 }
 0x1fb   :  { %v1732_v4 = vpop.f32.mrf.mxu0 }
 0x1fc   :  { %v1926_v47 = vrot.slane %v1709_v23, 7 }
 0x1fd   :  { %v1781_v42 = vpop.f32.mrf.mxu1 }
 0x1fe   :  { %v1934_v19 = vsel %vm14448_vm0, %v1925_v48, %v1926_v47  ;;  %v1782_v35 = vadd.f32 %v1781_v42, %v1732_v4  ;;  %v12003_v42 = vand.u32 15, %v300_v34  ;;  %v12014_v34 = vand.u32 15, %v11840_v56 }
 0x1ff   :  { %v1975_v26 = vsel %vm14427_vm6, %v1934_v19, 0.0  ;;  %v1661_v13 = vpop.f32.mrf.mxu2 }
 0x200   :  { %v11992_v5 = vadd.f32 %v1975_v26, %v11814_v49  ;;  %v1662_v40 = vadd.f32 %v1661_v13, %v1613_v63  ;;  %v1710_v21 = vpop.f32.mrf.mxu3  ;;  %14576 = vst [vmem:[#allocation59_spill] sm:$0xff] %v12003_v42  ;;  %vm14426_vm7 = vcmp.ge.s32.totalorder %v12003_v42, 1  ;;  %vm14425_vm8 = vcmp.ge.s32.totalorder %v12014_v34, 1 }
 0x201   :  { %14577 = vst [vmem:[#allocation60_spill] sm:$0xff] %v12014_v34 }
 0x202   :  { %v1711_v28 = vadd.f32 %v1710_v21, %v1662_v40  ;;  %v1618_v21 = vadd.f32 %v1617_v59, %v1568_v55 }
 0x203   :  { %v1734_v48 = vpop.f32.mrf.mxu0 }
 0x204   :  { %v1927_v23 = vrot.slane %v1711_v28, 7  ;;  %1859 = vmatmul.bf16.gmra.mxu2 %v11546_v6 }
 0x205   :  { %1908 = vmatmul.bf16.gmra.mxu3 %v11550_v9  ;;  %v1783_v26 = vpop.f32.mrf.mxu1 }
 0x206   :  { %v1933_v62 = vsel %vm14448_vm0, %v1926_v47, %v1927_v23 }
 0x207   :  { %v12000_v19 = vadd.f32 %v1933_v62, %v11818_v57  ;;  %v1664_v49 = vpop.f32.mrf.mxu2 }
 0x208   :  { %v1665_v63 = vadd.f32 %v1664_v49, %v11948_v53  ;;  %v1713_v4 = vpop.f32.mrf.mxu3 }
 0x20a   :  { %v1714_v13 = vadd.f32 %v1713_v4, %v1665_v63 }
 0x20b   :  { %v1737_v47 = vpop.f32.mrf.mxu0 }
 0x20c   :  { %v1928_v40 = vrot.slane %v1714_v13, 7 }
 0x20d   :  { %v1786_v9 = vpop.f32.mrf.mxu1 }
 0x20e   :  { %v1932_v28 = vsel %vm14448_vm0, %v1927_v23, %v1928_v40  ;;  %v1787_v63 = vadd.f32 %v1786_v9, %v1737_v47  ;;  %v14578_v23 = vrot.slane %v11837_v30, 7  ;;  %v1779_v30 = vadd.f32 %v1778_v41, %v1729_v14 }
 0x20f   :  { %v1977_v57 = vsel %vm14426_vm7, %v1932_v28, 0.0  ;;  %v1666_v62 = vpop.f32.mrf.mxu2  ;;  %vm2028_vm7 = vcmp.ge.s32.totalorder %v12014_v34, 2 }
 0x210   :  { %v12011_v6 = vadd.f32 %v1977_v57, %v11824_v8  ;;  %v1667_v53 = vadd.f32 %v1666_v62, %v1618_v21  ;;  %v1715_v49 = vpop.f32.mrf.mxu3 }
 0x212   :  { %v1716_v4 = vadd.f32 %v1715_v49, %v1667_v53 }
 0x213   :  { %v1739_v8 = vpop.f32.mrf.mxu0 }
 0x214   :  { %v1929_v55 = vrot.slane %v1716_v4, 7 }
 0x215   :  { %v1788_v47 = vpop.f32.mrf.mxu1 }
 0x216   :  { %v1931_v59 = vsel %vm14448_vm0, %v1928_v40, %v1929_v55  ;;  %v1946_v13 = vsel %vm14448_vm0, %v1929_v55, %v14578_v23 }
 0x217   :  { %v1963_v21 = vsel %vm14425_vm8, %v1946_v13, 0.0  ;;  %v12026_v28 = vadd.f32 %v1931_v59, %v11830_v51  ;;  %v1825_v9 = vpop.f32.mrf.mxu2  ;;  %vm2042_vm8 = vcmp.ge.s32.totalorder %v12003_v42, 2 }
 0x218   :  { %v12029_v57 = vadd.f32 %v1963_v21, %v11564_v45  ;;  %v1826_v62 = vadd.f32 %v1825_v9, %v11972_v50  ;;  %v1874_v40 = vpop.f32.mrf.mxu3 }
 0x21a   :  { %v12032_v53 = vadd.f32 %v1874_v40, %v1826_v62 }
 0x21b   :  { %v1742_v49 = vpop.f32.mrf.mxu0 }
 0x21c   :  { %v14419_v51 = vrot.slane %v12032_v53, 6 }
 0x21d   :  { %v1791_v55 = vpop.f32.mrf.mxu1 }
 0x21e   :  { %v1792_v13 = vadd.f32 %v1791_v55, %v1742_v49 }
 0x21f   :  { %v1827_v4 = vpop.f32.mrf.mxu2 }
 0x220   :  { %v1828_v23 = vadd.f32 %v1827_v4, %v1779_v30  ;;  %v1876_v37 = vpop.f32.mrf.mxu3  ;;  %v1784_v30 = vadd.f32 %v1783_v26, %v1734_v48  ;;  %v12056_v48 = vld [vmem:[%s14579_s22] ss:$0 sm:$0xff] }
 0x222   :  { %v1877_v16 = vadd.f32 %v1876_v37, %v1828_v23 }
 0x223   :  { %v12040_v50 = vpop.f32.mrf.mxu0 }
 0x224   :  { %v1996_v59 = vrot.slane %v1877_v16, 6 }
 0x225   :  { %v1793_v21 = vpop.f32.mrf.mxu1 }
 0x226   :  { %v2026_v45 = vsel %vm2011_vm9, %v14419_v51, %v1996_v59 }
 0x227   :  { %v12043_v14 = vadd.f32 %v2026_v45, %v11856_v61  ;;  %v1830_v41 = vpop.f32.mrf.mxu2 }
 0x228   :  { %v1831_v9 = vadd.f32 %v1830_v41, %v1782_v35  ;;  %v1879_v62 = vpop.f32.mrf.mxu3 }
 0x22a   :  { %v1880_v37 = vadd.f32 %v1879_v62, %v1831_v9 }
 0x22b   :  { %v1747_v49 = vpop.f32.mrf.mxu0 }
 0x22c   :  { %v1997_v40 = vrot.slane %v1880_v37, 6 }
 0x22d   :  { %v1796_v23 = vpop.f32.mrf.mxu1 }
 0x22e   :  { %v2025_v16 = vsel %vm2011_vm9, %v1996_v59, %v1997_v40  ;;  %v12051_v35 = vadd.f32 %v1796_v23, %v1747_v49 }
 0x22f   :  { %v2046_v4 = vsel %vm2030_vm10, %v2025_v16, 0.0  ;;  %v1832_v55 = vpop.f32.mrf.mxu2 }
 0x230   :  { %v2062_v61 = vadd.f32 %v2046_v4, %v11868_v20  ;;  %v1833_v45 = vadd.f32 %v1832_v55, %v1784_v30  ;;  %v1881_v51 = vpop.f32.mrf.mxu3 }
 0x232   :  { %v1882_v41 = vadd.f32 %v1881_v51, %v1833_v45  ;;  %v2082_v30 = vadd.f32 %v12056_v48, %v2062_v61 }
 0x233   :  { %v12060_v59 = vpop.f32.mrf.mxu0 }
 0x234   :  { %v1998_v9 = vrot.slane %v1882_v41, 6  ;;  %v2098_v55 = vmax.f32 %v2082_v30, 0.0  ;;  %v1789_v41 = vadd.f32 %v1788_v47, %v1739_v8 }
 0x235   :  { %v12063_v20 = vpop.f32.mrf.mxu1 }
 0x236   :  { %v2024_v26 = vsel %vm2011_vm9, %v1997_v40, %v1998_v9 }
 0x237   :  { %v2063_v62 = vadd.f32 %v2024_v26, %v11882_v12  ;;  %v1835_v37 = vpop.f32.mrf.mxu2 }
 0x238   :  { %v1836_v16 = vadd.f32 %v1835_v37, %v1787_v63  ;;  %v1884_v51 = vpop.f32.mrf.mxu3 }
 0x239   :  { %v2083_v49 = vadd.f32 %v12056_v48, %v2063_v62 }
 0x23a   :  { %v1885_v4 = vadd.f32 %v1884_v51, %v1836_v16 }
 0x23b   :  { %v2099_v23 = vmax.f32 %v2083_v49, 0.0  ;;  %v1752_v26 = vpop.f32.mrf.mxu0 }
 0x23c   :  { %v1999_v45 = vrot.slane %v1885_v4, 6 }
 0x23d   :  { %v12068_v40 = vpack.c.bf16 %v2099_v23, %v2098_v55  ;;  %v1801_v37 = vpop.f32.mrf.mxu1 }
 0x23e   :  { %v2023_v12 = vsel %vm2011_vm9, %v1998_v9, %v1999_v45  ;;  %v12075_v51 = vadd.f32 %v1801_v37, %v1752_v26 }
 0x23f   :  { %v2048_v61 = vsel %vm2032_vm11, %v2023_v12, 0.0  ;;  %v1837_v63 = vpop.f32.mrf.mxu2 }
 0x240   :  { %v2064_v62 = vadd.f32 %v2048_v61, %v11893_v31  ;;  %v1838_v16 = vadd.f32 %v1837_v63, %v1789_v41  ;;  %v1886_v30 = vpop.f32.mrf.mxu3 }
 0x242   :  { %v1887_v49 = vadd.f32 %v1886_v30, %v1838_v16  ;;  %v2084_v12 = vadd.f32 %v12056_v48, %v2064_v62  ;;  %v1794_v16 = vadd.f32 %v1793_v21, %v12040_v50 }
 0x243   :  { %v12079_v47 = vpop.f32.mrf.mxu0 }
 0x244   :  { %v2000_v4 = vrot.slane %v1887_v49, 6  ;;  %v2100_v61 = vmax.f32 %v2084_v12, 0.0 }
 0x245   :  { %v12082_v23 = vpop.f32.mrf.mxu1 }
 0x246   :  { %v2022_v8 = vsel %vm2011_vm9, %v1999_v45, %v2000_v4 }
 0x247   :  { %v2065_v9 = vadd.f32 %v2022_v8, %v11908_v2  ;;  %v1840_v55 = vpop.f32.mrf.mxu2 }
 0x248   :  { %v1841_v7 = vadd.f32 %v1840_v55, %v1792_v13  ;;  %v1889_v31 = vpop.f32.mrf.mxu3 }
 0x249   :  { %v2085_v41 = vadd.f32 %v12056_v48, %v2065_v9 }
 0x24a   :  { %v1890_v26 = vadd.f32 %v1889_v31, %v1841_v7 }
 0x24b   :  { %v2101_v63 = vmax.f32 %v2085_v41, 0.0  ;;  %v1757_v30 = vpop.f32.mrf.mxu0 }
 0x24c   :  { %v2001_v37 = vrot.slane %v1890_v26, 6 }
 0x24d   :  { %v12087_v45 = vpack.c.bf16 %v2101_v63, %v2100_v61  ;;  %v1806_v49 = vpop.f32.mrf.mxu1 }
 0x24e   :  { %v2021_v2 = vsel %vm2011_vm9, %v2000_v4, %v2001_v37  ;;  %v12095_v55 = vadd.f32 %v1806_v49, %v1757_v30 }
 0x24f   :  { %v2050_v13 = vsel %vm2034_vm12, %v2021_v2, 0.0  ;;  %v1842_v62 = vpop.f32.mrf.mxu2 }
 0x250   :  { %v2066_v7 = vadd.f32 %v2050_v13, %v11919_v39  ;;  %v1843_v8 = vadd.f32 %v1842_v62, %v1794_v16  ;;  %v1891_v9 = vpop.f32.mrf.mxu3 }
 0x252   :  { %v1892_v12 = vadd.f32 %v1891_v9, %v1843_v8  ;;  %v2086_v61 = vadd.f32 %v12056_v48, %v2066_v7 }
 0x253   :  { %v12099_v21 = vpop.f32.mrf.mxu0 }
 0x254   :  { %v2002_v31 = vrot.slane %v1892_v12, 6  ;;  %v2102_v30 = vmax.f32 %v2086_v61, 0.0  ;;  %v8460_v12 = vld [vmem:[#allocation2 + $0xa8] sm:$0xf] }
 0x255   :  { %v12102_v26 = vpop.f32.mrf.mxu1 }
 0x256   :  { %v2020_v50 = vsel %vm2011_vm9, %v2001_v37, %v2002_v31 }
 0x257   :  { %v2067_v4 = vadd.f32 %v2020_v50, %v11934_v18  ;;  %v1845_v41 = vpop.f32.mrf.mxu2  ;;  %v1799_v18 = vadd.f32 %v12063_v20, %v12060_v59  ;;  %v9937_v50 = vld [vmem:[#allocation2 + $0xb0] sm:$0xf0]  ;;  %v8462_v59 = vld [vmem:[#allocation2 + $0xb4] sm:$0xf0]  ;;  %v8468_v20 = vld [vmem:[#allocation2 + $0xb0] sm:$0xf] }
 0x258   :  { %v1846_v39 = vadd.f32 %v1845_v41, %v12051_v35  ;;  %v1894_v63 = vpop.f32.mrf.mxu3 }
 0x259   :  { %v2087_v16 = vadd.f32 %v12056_v48, %v2067_v4 }
 0x25a   :  { %v1895_v2 = vadd.f32 %v1894_v63, %v1846_v39  ;;  %v8461_v63 = vor.u32 %v9937_v50, %v8460_v12 }
 0x25b   :  { %v2103_v13 = vmax.f32 %v2087_v16, 0.0  ;;  %v1762_v7 = vpop.f32.mrf.mxu0  ;;  %v9936_v16 = vld [vmem:[#allocation2 + $0xac] sm:$0xf] }
 0x25c   :  { %v2003_v37 = vrot.slane %v1895_v2, 6  ;;  %v8465_v2 = vor.u32 %v9936_v16, %v8462_v59  ;;  %2280 = vmatpush.bf16.msrb.mxu0 %v8461_v63  ;;  %v8436_v63 = vld [vmem:[#allocation2 + $0x78] sm:$0xf]  ;;  %v9931_v16 = vld [vmem:[#allocation2 + $0x80] sm:$0xf0] }
 0x25d   :  { %v12108_v62 = vpack.c.bf16 %v2103_v13, %v2102_v30  ;;  %v1811_v9 = vpop.f32.mrf.mxu1  ;;  %v9930_v59 = vld [vmem:[#allocation2 + $0x7c] sm:$0xf] }
 0x25e   :  { %v2019_v49 = vsel %vm2011_vm9, %v2002_v31, %v2003_v37  ;;  %v12117_v39 = vadd.f32 %v1811_v9, %v1762_v7  ;;  %v9938_v31 = vld [vmem:[#allocation2 + $0xb8] sm:$0xf0]  ;;  %2329 = vmatpush.bf16.msrb.mxu1 %v8465_v2  ;;  %v8438_v2 = vld [vmem:[#allocation2 + $0x84] sm:$0xf0] }
 0x25f   :  { %v2052_v35 = vsel %vm2036_vm13, %v2019_v49, 0.0  ;;  %v1847_v8 = vpop.f32.mrf.mxu2  ;;  %v8469_v13 = vor.u32 %v9938_v31, %v8468_v20  ;;  %v8448_v49 = vld [vmem:[#allocation2 + $0x90] sm:$0xf]  ;;  %v8444_v31 = vld [vmem:[#allocation2 + $0x80] sm:$0xf] }
 0x260   :  { %v2068_v4 = vadd.f32 %v2052_v35, %v11946_v44  ;;  %v1848_v41 = vadd.f32 %v1847_v8, %v1799_v18  ;;  %v1896_v61 = vpop.f32.mrf.mxu3  ;;  %v8449_v44 = vor.u32 %v9934_v32, %v8448_v49  ;;  %v8450_v18 = vld [vmem:[#allocation2 + $0x9c] sm:$0xf0]  ;;  %v8456_v35 = vld [vmem:[#allocation2 + $0x98] sm:$0xf]  ;;  %v9935_v8 = vld [vmem:[#allocation2 + $0xa0] sm:$0xf0] }
 0x261   :  { %2378 = vmatpush.bf16.msra.mxu2 %v8469_v13  ;;  %v8453_v7 = vor.u32 %v9933_v1, %v8450_v18  ;;  %v8457_v12 = vor.u32 %v9935_v8, %v8456_v35  ;;  %v8437_v1 = vor.u32 %v9931_v16, %v8436_v63  ;;  %v9928_v18 = vld [vmem:[#allocation2 + $0x68] sm:$0xf0]  ;;  %v9927_v35 = vld [vmem:[#allocation2 + $0x64] sm:$0xf]  ;;  %v8426_v8 = vld [vmem:[#allocation2 + $0x6c] sm:$0xf0] }
 0x262   :  { %v1897_v30 = vadd.f32 %v1896_v61, %v1848_v41  ;;  %2281 = vmatpush.bf16.msrb.mxu0 %v8449_v44  ;;  %v2088_v50 = vadd.f32 %v12056_v48, %v2068_v4  ;;  %v8424_v44 = vld [vmem:[#allocation2 + $0x60] sm:$0xf]  ;;  %v9929_v63 = vld [vmem:[#allocation2 + $0x70] sm:$0xf0] }
 0x263   :  { %2330 = vmatpush.bf16.msrb.mxu1 %v8453_v7  ;;  %v8425_v7 = vor.u32 %v9928_v18, %v8424_v44  ;;  %v8400_v18 = vld [vmem:[#allocation2 + $0x30] sm:$0xf] }
 0x264   :  { %v2004_v58 = vrot.slane %v1897_v30, 6  ;;  %v9932_v30 = vld [vmem:[#allocation2 + $0x88] sm:$0xf0]  ;;  %v2104_v4 = vmax.f32 %v2088_v50, 0.0 }
 0x265   :  { %2379 = vmatpush.bf16.msra.mxu2 %v8457_v12  ;;  %v8445_v13 = vor.u32 %v9932_v30, %v8444_v31 }
 0x266   :  { %v2018_v9 = vsel %vm2011_vm9, %v2003_v37, %v2004_v58  ;;  %v8441_v37 = vor.u32 %v9930_v59, %v8438_v2  ;;  %2282 = vmatpush.bf16.msrb.mxu0 %v8437_v1  ;;  %v8412_v1 = vld [vmem:[#allocation2 + $0x48] sm:$0xf]  ;;  %v9925_v2 = vld [vmem:[#allocation2 + $0x50] sm:$0xf0] }
 0x267   :  { %v2069_v41 = vadd.f32 %v2018_v9, %v11958_v15  ;;  %v1850_v61 = vpop.f32.mrf.mxu2  ;;  %v8432_v9 = vld [vmem:[#allocation2 + $0x68] sm:$0xf] }
 0x268   :  { %v1851_v32 = vadd.f32 %v1850_v61, %v12075_v51  ;;  %v1899_v20 = vpop.f32.mrf.mxu3  ;;  %2331 = vmatpush.bf16.msrb.mxu1 %v8441_v37  ;;  %v8429_v61 = vor.u32 %v9927_v35, %v8426_v8  ;;  %v8433_v50 = vor.u32 %v9929_v63, %v8432_v9  ;;  %v9922_v35 = vld [vmem:[#allocation2 + $0x38] sm:$0xf0]  ;;  %v9923_v63 = vld [vmem:[#allocation2 + $0x40] sm:$0xf0] }
 0x269   :  { %v2089_v49 = vadd.f32 %v12056_v48, %v2069_v41  ;;  %2380 = vmatpush.bf16.msra.mxu2 %v8445_v13  ;;  %v1804_v41 = vadd.f32 %v12082_v23, %v12079_v47  ;;  %v8413_v47 = vor.u32 %v9925_v2, %v8412_v1  ;;  %v9924_v23 = vld [vmem:[#allocation2 + $0x4c] sm:$0xf]  ;;  %v8414_v13 = vld [vmem:[#allocation2 + $0x54] sm:$0xf0]  ;;  %v8401_v9 = vor.u32 %v9922_v35, %v8400_v18  ;;  %v9919_v2 = vld [vmem:[#allocation2 + $0x20] sm:$0xf0] }
 0x26a   :  { %v1900_v15 = vadd.f32 %v1899_v20, %v1851_v32  ;;  %2283 = vmatpush.bf16.msrb.mxu0 %v8425_v7  ;;  %v9921_v7 = vld [vmem:[#allocation2 + $0x34] sm:$0xf]  ;;  %v8388_v1 = vld [vmem:[#allocation2 + $0x18] sm:$0xf]  ;;  %v9916_v18 = vld [vmem:[#allocation2 + $0x8] sm:$0xf0] }
 0x26b   :  { %v2105_v12 = vmax.f32 %v2089_v49, 0.0  ;;  %v8417_v49 = vor.u32 %v9924_v23, %v8414_v13  ;;  %v8389_v23 = vor.u32 %v9919_v2, %v8388_v1  ;;  %v8390_v13 = vld [vmem:[#allocation2 + $0x24] sm:$0xf0]  ;;  %v9915_v35 = vld [vmem:[#allocation2 + $0x4] sm:$0xf] }
 0x26c   :  { %v2005_v51 = vrot.slane %v1900_v15, 6  ;;  %2332 = vmatpush.bf16.msrb.mxu1 %v8429_v61  ;;  %v9926_v15 = vld [vmem:[#allocation2 + $0x58] sm:$0xf0] }
 0x26d   :  { %v12130_v59 = vpack.c.bf16 %v2105_v12, %v2104_v4  ;;  %2381 = vmatpush.bf16.msra.mxu2 %v8433_v50  ;;  %v8408_v12 = vld [vmem:[#allocation2 + $0x38] sm:$0xf] }
 0x26e   :  { %v2017_v16 = vsel %vm2011_vm9, %v2004_v58, %v2005_v51  ;;  %v8420_v58 = vld [vmem:[#allocation2 + $0x50] sm:$0xf]  ;;  %2284 = vmatpush.bf16.msrb.mxu0 %v8413_v47 }
 0x26f   :  { %v2054_v32 = vsel %vm2038_vm14, %v2017_v16, 0.0  ;;  %v1852_v20 = vpop.f32.mrf.mxu2  ;;  %v8421_v44 = vor.u32 %v9926_v15, %v8420_v58  ;;  %v8409_v16 = vor.u32 %v9923_v63, %v8408_v12  ;;  %v8396_v58 = vld [vmem:[#allocation2 + $0x20] sm:$0xf]  ;;  %v9917_v63 = vld [vmem:[#allocation2 + $0x10] sm:$0xf0] }
 0x270   :  { %v2070_v31 = vadd.f32 %v2054_v32, %v11970_v52  ;;  %v1853_v30 = vadd.f32 %v1852_v20, %v1804_v41  ;;  %v1901_v37 = vpop.f32.mrf.mxu3  ;;  %2333 = vmatpush.bf16.msrb.mxu1 %v8417_v49  ;;  %v8402_v52 = vld [vmem:[#allocation2 + $0x3c] sm:$0xf0]  ;;  %v9920_v49 = vld [vmem:[#allocation2 + $0x28] sm:$0xf0] }
 0x271   :  { %2382 = vmatpush.bf16.msra.mxu2 %v8421_v44  ;;  %v8405_v61 = vor.u32 %v9921_v7, %v8402_v52  ;;  %v8397_v15 = vor.u32 %v9920_v49, %v8396_v58  ;;  %v8376_v44 = vld [vmem:[#allocation2] sm:$0xf]  ;;  %v8384_v52 = vld [vmem:[#allocation2 + $0x8] sm:$0xf] }
 0x272   :  { %v1902_v4 = vadd.f32 %v1901_v37, %v1853_v30  ;;  %2285 = vmatpush.bf16.msrb.mxu0 %v8401_v9  ;;  %v2090_v50 = vadd.f32 %v12056_v48, %v2070_v31  ;;  %v9918_v30 = vld [vmem:[#allocation2 + $0x1c] sm:$0xf]  ;;  %v8377_v7 = vor.u32 %v9916_v18, %v8376_v44  ;;  %v8378_v9 = vld [vmem:[#allocation2 + $0xc] sm:$0xf0] }
 0x274   :  { %v2006_v8 = vrot.slane %v1902_v4, 6  ;;  %2334 = vmatpush.bf16.msrb.mxu1 %v8405_v61  ;;  %v2106_v31 = vmax.f32 %v2090_v50, 0.0  ;;  %v8381_v61 = vor.u32 %v9915_v35, %v8378_v9  ;;  %v8385_v50 = vor.u32 %v9917_v63, %v8384_v52 }
 0x275   :  { %2383 = vmatpush.bf16.msra.mxu2 %v8409_v16 }
 0x276   :  { %v2016_v41 = vsel %vm2011_vm9, %v2005_v51, %v2006_v8  ;;  %v8393_v51 = vor.u32 %v9918_v30, %v8390_v13  ;;  %2286 = vmatpush.bf16.msrb.mxu0 %v8389_v23 }
 0x277   :  { %v2071_v32 = vadd.f32 %v2016_v41, %v11980_v0  ;;  %v1855_v20 = vpop.f32.mrf.mxu2  ;;  %v1809_v41 = vadd.f32 %v12102_v26, %v12099_v21 }
 0x278   :  { %v1856_v37 = vadd.f32 %v1855_v20, %v12095_v55  ;;  %v1904_v47 = vpop.f32.mrf.mxu3  ;;  %2335 = vmatpush.bf16.msrb.mxu1 %v8393_v51 }
 0x279   :  { %v2091_v4 = vadd.f32 %v12056_v48, %v2071_v32  ;;  %2384 = vmatpush.bf16.msra.mxu2 %v8397_v15 }
 0x27a   :  { %v1905_v0 = vadd.f32 %v1904_v47, %v1856_v37  ;;  %2287 = vmatpush.bf16.msrb.mxu0 %v8377_v7 }
 0x27b   :  { %v2107_v12 = vmax.f32 %v2091_v4, 0.0  ;;  %v1813_v4 = vpop.f32.mrf.mxu1 }
 0x27c   :  { %v2007_v55 = vrot.slane %v1905_v0, 6  ;;  %2336 = vmatpush.bf16.msrb.mxu1 %v8381_v61 }
 0x27d   :  { %v12146_v32 = vpack.c.bf16 %v2107_v12, %v2106_v31  ;;  %2385 = vmatpush.bf16.msra.mxu2 %v8385_v50 }
 0x27e   :  { %v2015_v16 = vsel %vm2011_vm9, %v2006_v8, %v2007_v55 }
 0x27f   :  { %v2056_v20 = vsel %vm14450_vm15, %v2015_v16, 0.0  ;;  %v1857_v1 = vpop.f32.mrf.mxu2 }
 0x280   :  { %v2072_v2 = vadd.f32 %v2056_v20, %v11992_v5  ;;  %v1858_v30 = vadd.f32 %v1857_v1, %v1809_v41  ;;  %v1906_v37 = vpop.f32.mrf.mxu3  ;;  %v1764_v5 = vpop.f32.mrf.mxu0  ;;  %v14580_v41 = vrot.slane %v12032_v53, 6  ;;  %v2081_v1 = vadd.f32 %v12056_v48, %v12043_v14  ;;  %v9944_v14 = vld [vmem:[%s14581_s26 + $0x28] sm:$0xff] }
 0x281   :  { %v1814_v35 = vadd.f32 %v1813_v4, %v1764_v5  ;;  %v9960_v5 = vld [vmem:[%s14581_s26 + $0xa8] sm:$0xff] }
 0x282   :  { %v1907_v47 = vadd.f32 %v1906_v37, %v1858_v30  ;;  %v2092_v13 = vadd.f32 %v12056_v48, %v2072_v2  ;;  %v9968_v4 = vld [vmem:[%s14581_s26 + $0xe8] sm:$0xff] }
 0x284   :  { %v2008_v23 = vrot.slane %v1907_v47, 6  ;;  %v2108_v0 = vmax.f32 %v2092_v13, 0.0  ;;  %v9942_v13 = vld [vmem:[%s14581_s26 + $0x18] sm:$0xff] }
 0x286   :  { %v2014_v21 = vsel %vm2011_vm9, %v2007_v55, %v2008_v23 }
 0x287   :  { %v2073_v26 = vadd.f32 %v2014_v21, %v12000_v19  ;;  %v1860_v8 = vpop.f32.mrf.mxu2 }
 0x288   :  { %v1861_v58 = vadd.f32 %v1860_v8, %v12117_v39  ;;  %v1909_v49 = vpop.f32.mrf.mxu3 }
 0x289   :  { %v2093_v51 = vadd.f32 %v12056_v48, %v2073_v26 }
 0x28a   :  { %v1910_v15 = vadd.f32 %v1909_v49, %v1861_v58  ;;  %v9953_v58 = vld [vmem:[%s14581_s26 + $0x70] sm:$0xff] }
 0x28b   :  { %v2109_v31 = vmax.f32 %v2093_v51, 0.0  ;;  %v9961_v49 = vld [vmem:[%s14581_s26 + $0xb0] sm:$0xff] }
 0x28c   :  { %v2009_v44 = vrot.slane %v1910_v15, 6  ;;  %v9941_v51 = vld [vmem:[%s14581_s26 + $0x10] sm:$0xff]  ;;  %v9952_v15 = vld [vmem:[%s14581_s26 + $0x68] sm:$0xff] }
 0x28d   :  { %v12158_v18 = vpack.c.bf16 %v2109_v31, %v2108_v0  ;;  %v9940_v0 = vld [vmem:[%s14581_s26 + $0x8] sm:$0xff]  ;;  %v9951_v31 = vld [vmem:[%s14581_s26 + $0x60] sm:$0xff] }
 0x28e   :  { %v2013_v19 = vsel %vm2011_vm9, %v2008_v23, %v2009_v44  ;;  %v2097_v23 = vmax.f32 %v2081_v1, 0.0  ;;  %v14583_v1 = vld [vmem:[#allocation37_spill] sm:$0xff] }
 0x28f   :  { %v2058_v39 = vsel %vm2042_vm8, %v2013_v19, 0.0  ;;  %v1862_v55 = vpop.f32.mrf.mxu2  ;;  %v9939_v19 = vld [vmem:[%s14581_s26] sm:$0xff] }
 0x290   :  { %v2074_v7 = vadd.f32 %v2058_v39, %v12011_v6  ;;  %v1863_v9 = vadd.f32 %v1862_v55, %v1814_v35  ;;  %v1911_v52 = vpop.f32.mrf.mxu3  ;;  %v9967_v35 = vld [vmem:[%s14581_s26 + $0xe0] sm:$0xff]  ;;  %v9950_v39 = vld [vmem:[%s14581_s26 + $0x58] sm:$0xff] }
 0x291   :  { %v9958_v55 = vld [vmem:[%s14581_s26 + $0x98] sm:$0xff] }
 0x292   :  { %v1912_v12 = vadd.f32 %v1911_v52, %v1863_v9  ;;  %v2094_v6 = vadd.f32 %v12056_v48, %v2074_v7  ;;  %v9966_v7 = vld [vmem:[%s14581_s26 + $0xd8] sm:$0xff]  ;;  %v9949_v9 = vld [vmem:[%s14581_s26 + $0x50] sm:$0xff] }
 0x293   :  { %v9957_v52 = vld [vmem:[%s14581_s26 + $0x90] sm:$0xff] }
 0x294   :  { %v2010_v61 = vrot.slane %v1912_v12, 6  ;;  %v2110_v53 = vmax.f32 %v2094_v6, 0.0  ;;  %v9965_v12 = vld [vmem:[%s14581_s26 + $0xd0] sm:$0xff] }
 0x295   :  { %v14582_v6 = vld [vmem:[#allocation33_spill] sm:$0xff] }
 0x296   :  { %v2012_v63 = vsel %vm2011_vm9, %v2009_v44, %v2010_v61  ;;  %v2027_v16 = vsel %vm2011_vm9, %v2010_v61, %v14580_v41  ;;  %v9959_v44 = vld [vmem:[%s14581_s26 + $0xa0] sm:$0xff]  ;;  %v9956_v61 = vld [vmem:[%s14581_s26 + $0x88] sm:$0xff] }
 0x297   :  { %v2044_v50 = vsel %vm2028_vm7, %v2027_v16, 0.0  ;;  %v2075_v20 = vadd.f32 %v2012_v63, %v12026_v28  ;;  %v9946_v28 = vld [vmem:[%s14581_s26 + $0x38] sm:$0xff]  ;;  %v9964_v63 = vld [vmem:[%s14581_s26 + $0xc8] sm:$0xff]  ;;  %v9955_v41 = vld [vmem:[%s14581_s26 + $0x80] sm:$0xff] }
 0x298   :  { %v2060_v2 = vadd.f32 %v2044_v50, %v12029_v57  ;;  %2851 = vmatpush.bf16.msra.mxu3 %v9946_v28  ;;  %v9945_v57 = vld [vmem:[%s14581_s26 + $0x30] sm:$0xff]  ;;  %v9963_v16 = vld [vmem:[%s14581_s26 + $0xc0] sm:$0xff] }
 0x299   :  { %v2095_v30 = vadd.f32 %v12056_v48, %v2075_v20 }
 0x29a   :  { %v2080_v37 = vadd.f32 %v12056_v48, %v2060_v2  ;;  %v9943_v48 = vld [vmem:[%s14581_s26 + $0x20] sm:$0xff] }
 0x29b   :  { %v2111_v47 = vmax.f32 %v2095_v30, 0.0  ;;  %v14584_v2 = vld [vmem:[#allocation38_spill] sm:$0xff] }
 0x29c   :  { %v2096_v21 = vmax.f32 %v2080_v37, 0.0  ;;  %2852 = vmatpush.bf16.msra.mxu3 %v9945_v57 }
 0x29d   :  { %v12181_v26 = vpack.c.bf16 %v2111_v47, %v2110_v53 }
 0x29e   :  { %v2112_v8 = vpack.c.bf16 %v2097_v23, %v2096_v21 }
 0x2a0   :  { %2288 = vmatmul.bf16.vlgmr.msrb.gmra.mxu0 %v2112_v8  ;;  %2337 = vmatmul.bf16.vlgmr.msrb.gmra.mxu1 %v2112_v8 }
 0x2a1   :  { %2386 = vmatmul.bf16.vlgmr.msra.gmra.mxu2 %v2112_v8  ;;  %2853 = vmatpush.bf16.msra.mxu3 %v9944_v14 }
 0x2a5   :  { %2854 = vmatpush.bf16.msra.mxu3 %v9943_v48 }
 0x2a9   :  { %2855 = vmatpush.bf16.msra.mxu3 %v9942_v13 }
 0x2ad   :  { %2856 = vmatpush.bf16.msra.mxu3 %v9941_v51 }
 0x2b0   :  { %2293 = vmatmul.bf16.gmra.mxu0 %v12068_v40  ;;  %2342 = vmatmul.bf16.gmra.mxu1 %v12068_v40 }
 0x2b1   :  { %2391 = vmatmul.bf16.gmra.mxu2 %v12068_v40  ;;  %v9954_v40 = vld [vmem:[%s14581_s26 + $0x78] sm:$0xff]  ;;  %2857 = vmatpush.bf16.msra.mxu3 %v9940_v0 }
 0x2b2   :  { %2900 = vmatpush.bf16.msra.mxu0 %v9954_v40  ;;  %v14585_v40 = vld [vmem:[#allocation36_spill] sm:$0xff] }
 0x2b5   :  { %2858 = vmatpush.bf16.msra.mxu3 %v9939_v19 }
 0x2b6   :  { %2901 = vmatpush.bf16.msra.mxu0 %v9953_v58 }
 0x2b8   :  { %2859 = vmatmul.bf16.vlgmr.msra.gmra.mxu3 %v11035_v10  ;;  %v9947_v10 = vld [vmem:[%s14581_s26 + $0x40] sm:$0xff] }
 0x2ba   :  { %2902 = vmatpush.bf16.msra.mxu0 %v9952_v15 }
 0x2be   :  { %2903 = vmatpush.bf16.msra.mxu0 %v9951_v31 }
 0x2c0   :  { %2298 = vmatmul.bf16.gmra.mxu0 %v12087_v45  ;;  %2347 = vmatmul.bf16.gmra.mxu1 %v12087_v45 }
 0x2c1   :  { %2396 = vmatmul.bf16.gmra.mxu2 %v12087_v45  ;;  %v9962_v45 = vld [vmem:[%s14581_s26 + $0xb8] sm:$0xff] }
 0x2c2   :  { %2949 = vmatpush.bf16.msra.mxu1 %v9962_v45  ;;  %2904 = vmatpush.bf16.msra.mxu0 %v9950_v39 }
 0x2c6   :  { %2950 = vmatpush.bf16.msra.mxu1 %v9961_v49  ;;  %2905 = vmatpush.bf16.msra.mxu0 %v9949_v9 }
 0x2c8   :  { %2864 = vmatmul.bf16.gmra.mxu3 %v11119_v46 }
 0x2ca   :  { %2951 = vmatpush.bf16.msra.mxu1 %v9960_v5 }
 0x2ce   :  { %2952 = vmatpush.bf16.msra.mxu1 %v9959_v44 }
 0x2d0   :  { %2303 = vmatmul.bf16.gmra.mxu0 %v12108_v62  ;;  %2352 = vmatmul.bf16.gmra.mxu1 %v12108_v62 }
 0x2d1   :  { %2401 = vmatmul.bf16.gmra.mxu2 %v12108_v62  ;;  %v9970_v62 = vld [vmem:[%s14581_s26 + $0xf8] sm:$0xff] }
 0x2d2   :  { %2998 = vmatpush.bf16.msrb.mxu2 %v9970_v62  ;;  %2953 = vmatpush.bf16.msra.mxu1 %v9958_v55  ;;  %v14586_v62 = vld [vmem:[#allocation40_spill] sm:$0xff] }
 0x2d6   :  { %2954 = vmatpush.bf16.msra.mxu1 %v9957_v52  ;;  %v14587_v52 = vld [vmem:[#allocation39_spill] sm:$0xff] }
 0x2d8   :  { %2869 = vmatmul.bf16.gmra.mxu3 %v11167_v3 }
 0x2da   :  { %2955 = vmatpush.bf16.msra.mxu1 %v9956_v61 }
 0x2de   :  { %2956 = vmatpush.bf16.msra.mxu1 %v9955_v41 }
 0x2e0   :  { %2308 = vmatmul.bf16.gmra.mxu0 %v12130_v59  ;;  %2357 = vmatmul.bf16.gmra.mxu1 %v12130_v59 }
 0x2e1   :  { %2406 = vmatmul.bf16.gmra.mxu2 %v12130_v59  ;;  %v9969_v59 = vld [vmem:[%s14581_s26 + $0xf0] sm:$0xff] }
 0x2e2   :  { %2999 = vmatpush.bf16.msrb.mxu2 %v9969_v59 }
 0x2e6   :  { %3000 = vmatpush.bf16.msrb.mxu2 %v9968_v4 }
 0x2e8   :  { %2874 = vmatmul.bf16.gmra.mxu3 %v11203_v17 }
 0x2ea   :  { %3001 = vmatpush.bf16.msrb.mxu2 %v9967_v35 }
 0x2ee   :  { %3002 = vmatpush.bf16.msrb.mxu2 %v9966_v7 }
 0x2f0   :  { %2313 = vmatmul.bf16.gmra.mxu0 %v12146_v32  ;;  %2362 = vmatmul.bf16.gmra.mxu1 %v12146_v32 }
 0x2f1   :  { %2411 = vmatmul.bf16.gmra.mxu2 %v12146_v32  ;;  %v9948_v32 = vld [vmem:[%s14581_s26 + $0x48] sm:$0xff] }
 0x2f2   :  { %3003 = vmatpush.bf16.msrb.mxu2 %v9965_v12  ;;  %2906 = vmatpush.bf16.msra.mxu0 %v9948_v32 }
 0x2f6   :  { %3004 = vmatpush.bf16.msrb.mxu2 %v9964_v63  ;;  %2907 = vmatpush.bf16.msra.mxu0 %v9947_v10 }
 0x2f8   :  { %2879 = vmatmul.bf16.gmra.mxu3 %v11239_v29 }
 0x2fa   :  { %3005 = vmatpush.bf16.msrb.mxu2 %v9963_v16 }
 0x300   :  { %2318 = vmatmul.bf16.gmra.mxu0 %v12158_v18  ;;  %2367 = vmatmul.bf16.gmra.mxu1 %v12158_v18 }
 0x301   :  { %2416 = vmatmul.bf16.gmra.mxu2 %v12158_v18 }
 0x308   :  { %2884 = vmatmul.bf16.gmra.mxu3 %v11275_v43 }
 0x310   :  { %2323 = vmatmul.bf16.gmra.mxu0 %v12181_v26  ;;  %2372 = vmatmul.bf16.gmra.mxu1 %v12181_v26 }
 0x311   :  { %2421 = vmatmul.bf16.gmra.mxu2 %v12181_v26 }
 0x318   :  { %2889 = vmatmul.bf16.gmra.mxu3 %v11002_v60 }
 0x31d   :  { %v12303_v50 = vpop.f32.mrf.mxu0  ;;  %v12305_v20 = vpop.f32.mrf.mxu1 }
 0x31e   :  { %v2427_v37 = vrot.slane %v12305_v20, 7 }
 0x320   :  { %2908 = vmatmul.bf16.vlgmr.msra.gmra.mxu0 %v14582_v6  ;;  %2957 = vmatmul.bf16.vlgmr.msra.gmra.mxu1 %v14583_v1 }
 0x321   :  { %3006 = vmatmul.bf16.vlgmr.msrb.gmra.mxu2 %v14584_v2 }
 0x324   :  { %v12311_v46 = vpop.f32.mrf.mxu2 }
 0x325   :  { %v2291_v18 = vpop.f32.mrf.mxu0  ;;  %v2340_v30 = vpop.f32.mrf.mxu1  ;;  %v2491_v21 = vrot.slane %v12311_v46, 6 }
 0x326   :  { %v2428_v53 = vrot.slane %v2340_v30, 7 }
 0x328   :  { %v2457_v3 = vsel %vm14448_vm0, %v2427_v37, %v2428_v53 }
 0x329   :  { %v2476_v47 = vadd.f32 %v2457_v3, %v2291_v18 }
 0x32c   :  { %v2389_v23 = vpop.f32.mrf.mxu2 }
 0x32d   :  { %v2492_v26 = vrot.slane %v2389_v23, 6  ;;  %v2294_v8 = vpop.f32.mrf.mxu0  ;;  %v2343_v28 = vpop.f32.mrf.mxu1 }
 0x32e   :  { %v2429_v17 = vrot.slane %v2343_v28, 7 }
 0x32f   :  { %v2521_v57 = vsel %vm2011_vm9, %v2491_v21, %v2492_v26 }
 0x330   :  { %v12323_v14 = vadd.f32 %v2521_v57, %v2476_v47  ;;  %v2456_v48 = vsel %vm14448_vm0, %v2428_v53, %v2429_v17  ;;  %2913 = vmatmul.bf16.gmra.mxu0 %v14585_v40  ;;  %2962 = vmatmul.bf16.gmra.mxu1 %v11188_v11 }
 0x331   :  { %v2461_v45 = vsel %vm14445_vm1, %v2456_v48, 0.0  ;;  %3011 = vmatmul.bf16.gmra.mxu2 %v14586_v62  ;;  %vm14496_vm1 = vcmp.ge.s32.totalorder %v11961_v22, 4 }
 0x332   :  { %v2477_v13 = vadd.f32 %v2461_v45, %v2294_v8  ;;  %v14588_v8 = vld [vmem:[#allocation41_spill] sm:$0xff] }
 0x334   :  { %v2392_v58 = vpop.f32.mrf.mxu2 }
 0x335   :  { %v2493_v49 = vrot.slane %v2392_v58, 6  ;;  %v2296_v59 = vpop.f32.mrf.mxu0  ;;  %v2345_v51 = vpop.f32.mrf.mxu1 }
 0x336   :  { %v2430_v15 = vrot.slane %v2345_v51, 7 }
 0x337   :  { %v2520_v5 = vsel %vm2011_vm9, %v2492_v26, %v2493_v49 }
 0x338   :  { %v2525_v4 = vsel %vm2030_vm10, %v2520_v5, 0.0  ;;  %v2455_v11 = vsel %vm14448_vm0, %v2429_v17, %v2430_v15  ;;  %v14589_v17 = vld [vmem:[#allocation43_spill] sm:$0xff] }
 0x339   :  { %v2478_v0 = vadd.f32 %v2455_v11, %v2296_v59  ;;  %v12339_v31 = vadd.f32 %v2525_v4, %v2477_v13 }
 0x33c   :  { %v2394_v44 = vpop.f32.mrf.mxu2 }
 0x33d   :  { %v2494_v35 = vrot.slane %v2394_v44, 6  ;;  %v2299_v29 = vpop.f32.mrf.mxu0  ;;  %v2348_v19 = vpop.f32.mrf.mxu1 }
 0x33e   :  { %v2431_v39 = vrot.slane %v2348_v19, 7  ;;  %v14591_v19 = vld [vmem:[#allocation45_spill] sm:$0xff] }
 0x33f   :  { %v2519_v55 = vsel %vm2011_vm9, %v2493_v49, %v2494_v35 }
 0x340   :  { %v12343_v7 = vadd.f32 %v2519_v55, %v2478_v0  ;;  %v2454_v9 = vsel %vm14448_vm0, %v2430_v15, %v2431_v39  ;;  %2918 = vmatmul.bf16.gmra.mxu0 %v14587_v52  ;;  %2967 = vmatmul.bf16.gmra.mxu1 %v11224_v24 }
 0x341   :  { %v2463_v12 = vsel %vm14436_vm2, %v2454_v9, 0.0  ;;  %3016 = vmatmul.bf16.gmra.mxu2 %v11226_v25  ;;  %v14593_v9 = vld [vmem:[#allocation46_spill] sm:$0xff] }
 0x342   :  { %v2479_v32 = vadd.f32 %v2463_v12, %v2299_v29  ;;  %v14590_v29 = vld [vmem:[#allocation42_spill] sm:$0xff] }
 0x343   :  { %v14594_v12 = vld [vmem:[#allocation34_spill] sm:$0xff] }
 0x344   :  { %v2397_v61 = vpop.f32.mrf.mxu2  ;;  %2894 = vmatmul.bf16.gmra.mxu3 %v14594_v12 }
 0x345   :  { %v2495_v63 = vrot.slane %v2397_v61, 6  ;;  %v2301_v10 = vpop.f32.mrf.mxu0  ;;  %v2350_v41 = vpop.f32.mrf.mxu1 }
 0x346   :  { %v2432_v16 = vrot.slane %v2350_v41, 7 }
 0x347   :  { %v2518_v6 = vsel %vm2011_vm9, %v2494_v35, %v2495_v63 }
 0x348   :  { %v2527_v1 = vsel %vm2032_vm11, %v2518_v6, 0.0  ;;  %v2453_v24 = vsel %vm14448_vm0, %v2431_v39, %v2432_v16  ;;  %v14592_v39 = vld [vmem:[#allocation56_spill] sm:$0xff] }
 0x349   :  { %v2480_v2 = vadd.f32 %v2453_v24, %v2301_v10  ;;  %v12359_v18 = vadd.f32 %v2527_v1, %v2479_v32  ;;  %vm14497_vm2 = vcmp.ge.s32.totalorder %v14592_v39, 4  ;;  %v10138_v39 = vld [vmem:[#allocation12 + $0x2bc] sm:$0xf] }
 0x34c   :  { %v2399_v25 = vpop.f32.mrf.mxu2 }
 0x34d   :  { %v2496_v30 = vrot.slane %v2399_v25, 6  ;;  %v2304_v43 = vpop.f32.mrf.mxu0  ;;  %v2353_v53 = vpop.f32.mrf.mxu1 }
 0x34e   :  { %v2433_v3 = vrot.slane %v2353_v53, 7 }
 0x34f   :  { %v2517_v47 = vsel %vm2011_vm9, %v2495_v63, %v2496_v30 }
 0x350   :  { %v12363_v23 = vadd.f32 %v2517_v47, %v2480_v2  ;;  %v2452_v26 = vsel %vm14448_vm0, %v2432_v16, %v2433_v3  ;;  %2923 = vmatmul.bf16.gmra.mxu0 %v14588_v8  ;;  %2972 = vmatmul.bf16.gmra.mxu1 %v11260_v38 }
 0x351   :  { %v2465_v28 = vsel %vm14434_vm3, %v2452_v26, 0.0  ;;  %3021 = vmatmul.bf16.gmra.mxu2 %v14589_v17  ;;  %v14596_v17 = vld [vmem:[#allocation47_spill] sm:$0xff]  ;;  %vm3497_vm3 = vcmp.ge.s32.totalorder %v11911_v36, 4 }
 0x352   :  { %v2481_v57 = vadd.f32 %v2465_v28, %v2304_v43  ;;  %v14595_v28 = vld [vmem:[#allocation44_spill] sm:$0xff] }
 0x354   :  { %v2402_v48 = vpop.f32.mrf.mxu2 }
 0x355   :  { %v2497_v40 = vrot.slane %v2402_v48, 6  ;;  %v2306_v45 = vpop.f32.mrf.mxu0  ;;  %v2355_v62 = vpop.f32.mrf.mxu1  ;;  %v14597_v48 = vld [vmem:[#allocation48_spill] sm:$0xff] }
 0x356   :  { %v2434_v13 = vrot.slane %v2355_v62, 7  ;;  %v9993_v62 = vld [vmem:[#allocation6 + $0xb0] sm:$0xf0] }
 0x357   :  { %v2516_v58 = vsel %vm2011_vm9, %v2496_v30, %v2497_v40 }
 0x358   :  { %v2529_v49 = vsel %vm2034_vm12, %v2516_v58, 0.0  ;;  %v2451_v38 = vsel %vm14448_vm0, %v2433_v3, %v2434_v13 }
 0x359   :  { %v2482_v59 = vadd.f32 %v2451_v38, %v2306_v45  ;;  %v12379_v51 = vadd.f32 %v2529_v49, %v2481_v57  ;;  %v8684_v45 = vld [vmem:[#allocation6 + $0xa8] sm:$0xf]  ;;  %v8686_v38 = vld [vmem:[#allocation6 + $0xb4] sm:$0xf0] }
 0x35a   :  { %v8685_v49 = vor.u32 %v9993_v62, %v8684_v45 }
 0x35c   :  { %v2404_v15 = vpop.f32.mrf.mxu2  ;;  %3247 = vmatpush.bf16.msrb.mxu3 %v8685_v49  ;;  %v9984_v49 = vld [vmem:[#allocation6 + $0x68] sm:$0xf0] }
 0x35d   :  { %v2498_v5 = vrot.slane %v2404_v15, 6  ;;  %v2309_v60 = vpop.f32.mrf.mxu0  ;;  %v2358_v4 = vpop.f32.mrf.mxu1  ;;  %v9994_v15 = vld [vmem:[#allocation6 + $0xb8] sm:$0xf0] }
 0x35e   :  { %v2435_v11 = vrot.slane %v2358_v4, 7 }
 0x35f   :  { %v2515_v0 = vsel %vm2011_vm9, %v2497_v40, %v2498_v5 }
 0x360   :  { %v12383_v44 = vadd.f32 %v2515_v0, %v2482_v59  ;;  %v2450_v35 = vsel %vm14448_vm0, %v2434_v13, %v2435_v11  ;;  %2928 = vmatmul.bf16.gmra.mxu0 %v14590_v29  ;;  %2977 = vmatmul.bf16.gmra.mxu1 %v14591_v19  ;;  %v9992_v13 = vld [vmem:[#allocation6 + $0xac] sm:$0xf]  ;;  %v8692_v59 = vld [vmem:[#allocation6 + $0xb0] sm:$0xf] }
 0x361   :  { %v2467_v55 = vsel %vm14431_vm4, %v2450_v35, 0.0  ;;  %3026 = vmatmul.bf16.gmra.mxu2 %v14593_v9  ;;  %v8693_v0 = vor.u32 %v9994_v15, %v8692_v59  ;;  %v8672_v19 = vld [vmem:[#allocation6 + $0x90] sm:$0xf]  ;;  %v9989_v9 = vld [vmem:[#allocation6 + $0x94] sm:$0xf]  ;;  %vm3495_vm4 = vcmp.ge.s32.totalorder %v11885_v33, 4 }
 0x362   :  { %v2483_v52 = vadd.f32 %v2467_v55, %v2309_v60  ;;  %v9990_v55 = vld [vmem:[#allocation6 + $0x98] sm:$0xf0] }
 0x363   :  { %3345 = vmatpush.bf16.msrb.mxu1 %v8693_v0  ;;  %v8673_v12 = vor.u32 %v9990_v55, %v8672_v19  ;;  %v9985_v19 = vld [vmem:[#allocation6 + $0x70] sm:$0xf0]  ;;  %v14600_v55 = vld [vmem:[#allocation50_spill] sm:$0xff] }
 0x364   :  { %v2407_v32 = vpop.f32.mrf.mxu2 }
 0x365   :  { %v2499_v61 = vrot.slane %v2407_v32, 6  ;;  %v2311_v63 = vpop.f32.mrf.mxu0  ;;  %v2360_v10 = vpop.f32.mrf.mxu1  ;;  %v8674_v32 = vld [vmem:[#allocation6 + $0x9c] sm:$0xf0]  ;;  %3248 = vmatpush.bf16.msrb.mxu3 %v8673_v12 }
 0x366   :  { %v2436_v16 = vrot.slane %v2360_v10, 7  ;;  %v9991_v10 = vld [vmem:[#allocation6 + $0xa0] sm:$0xf0] }
 0x367   :  { %v2514_v41 = vsel %vm2011_vm9, %v2498_v5, %v2499_v61 }
 0x368   :  { %v2531_v6 = vsel %vm2036_vm13, %v2514_v41, 0.0  ;;  %v2449_v24 = vsel %vm14448_vm0, %v2435_v11, %v2436_v16  ;;  %v8689_v11 = vor.u32 %v9992_v13, %v8686_v38  ;;  %v9983_v38 = vld [vmem:[#allocation6 + $0x64] sm:$0xf] }
 0x369   :  { %v12397_v1 = vadd.f32 %v2531_v6, %v2483_v52  ;;  %v2484_v53 = vadd.f32 %v2449_v24, %v2311_v63  ;;  %v8677_v63 = vor.u32 %v9989_v9, %v8674_v32  ;;  %v8660_v24 = vld [vmem:[#allocation6 + $0x78] sm:$0xf]  ;;  %v9981_v32 = vld [vmem:[#allocation6 + $0x50] sm:$0xf0] }
 0x36a   :  { %3296 = vmatpush.bf16.msrb.mxu0 %v8689_v11  ;;  %v14599_v11 = vld [vmem:[#allocation49_spill] sm:$0xff] }
 0x36c   :  { %v2409_v2 = vpop.f32.mrf.mxu2 }
 0x36d   :  { %v2500_v25 = vrot.slane %v2409_v2, 6  ;;  %v2314_v30 = vpop.f32.mrf.mxu0  ;;  %v2363_v43 = vpop.f32.mrf.mxu1  ;;  %v9987_v2 = vld [vmem:[#allocation6 + $0x80] sm:$0xf0] }
 0x36e   :  { %v2437_v3 = vrot.slane %v2363_v43, 7  ;;  %3297 = vmatpush.bf16.msrb.mxu0 %v8677_v63  ;;  %v12420_v43 = vpop.f32.mrf.mxu3 }
 0x36f   :  { %v2513_v47 = vsel %vm2011_vm9, %v2499_v61, %v2500_v25  ;;  %v8680_v61 = vld [vmem:[#allocation6 + $0x98] sm:$0xf] }
 0x370   :  { %v12403_v26 = vadd.f32 %v2513_v47, %v2484_v53  ;;  %v2448_v8 = vsel %vm14448_vm0, %v2436_v16, %v2437_v3  ;;  %2933 = vmatmul.bf16.gmra.mxu0 %v14595_v28  ;;  %2982 = vmatmul.bf16.gmra.mxu1 %v14596_v17  ;;  %v8681_v16 = vor.u32 %v9991_v10, %v8680_v61  ;;  %v8662_v47 = vld [vmem:[#allocation6 + $0x84] sm:$0xf0]  ;;  %v9988_v28 = vld [vmem:[#allocation6 + $0x88] sm:$0xf0] }
 0x371   :  { %v2469_v57 = vsel %vm14428_vm5, %v2448_v8, 0.0  ;;  %3031 = vmatmul.bf16.gmra.mxu2 %v14597_v48  ;;  %v8661_v53 = vor.u32 %v9987_v2, %v8660_v24  ;;  %v8668_v8 = vld [vmem:[#allocation6 + $0x80] sm:$0xf]  ;;  %v9980_v61 = vld [vmem:[#allocation6 + $0x4c] sm:$0xf]  ;;  %vm3493_vm5 = vcmp.ge.s32.totalorder %v11858_v27, 4 }
 0x372   :  { %v2485_v40 = vadd.f32 %v2469_v57, %v2314_v30  ;;  %3346 = vmatpush.bf16.msrb.mxu1 %v8681_v16  ;;  %v8669_v45 = vor.u32 %v9988_v28, %v8668_v8  ;;  %v8638_v16 = vld [vmem:[#allocation6 + $0x54] sm:$0xf0]  ;;  %v9982_v24 = vld [vmem:[#allocation6 + $0x58] sm:$0xf0]  ;;  %v10072_v27 = vld [vmem:[#allocation12 + $0xac] sm:$0xf] }
 0x373   :  { %3249 = vmatpush.bf16.msrb.mxu3 %v8661_v53  ;;  %v8641_v53 = vor.u32 %v9980_v61, %v8638_v16 }
 0x374   :  { %v2412_v58 = vpop.f32.mrf.mxu2 }
 0x375   :  { %v2501_v5 = vrot.slane %v2412_v58, 6  ;;  %v2316_v60 = vpop.f32.mrf.mxu0  ;;  %v2365_v4 = vpop.f32.mrf.mxu1  ;;  %v8648_v58 = vld [vmem:[#allocation6 + $0x60] sm:$0xf] }
 0x376   :  { %v2438_v35 = vrot.slane %v2365_v4, 7  ;;  %v14598_v4 = vld [vmem:[#allocation32_spill] sm:$0xff]  ;;  %v8649_v0 = vor.u32 %v9984_v49, %v8648_v58  ;;  %3347 = vmatpush.bf16.msrb.mxu1 %v8669_v45  ;;  %v12433_v28 = vpop.f32.mrf.mxu3  ;;  %v9977_v45 = vld [vmem:[#allocation6 + $0x34] sm:$0xf]  ;;  %v8626_v58 = vld [vmem:[#allocation6 + $0x3c] sm:$0xf0] }
 0x377   :  { %v2512_v29 = vsel %vm2011_vm9, %v2500_v25, %v2501_v5  ;;  %v9986_v25 = vld [vmem:[#allocation6 + $0x7c] sm:$0xf]  ;;  %v8632_v49 = vld [vmem:[#allocation6 + $0x38] sm:$0xf] }
 0x378   :  { %v2533_v52 = vsel %vm2038_vm14, %v2512_v29, 0.0  ;;  %v2447_v6 = vsel %vm14448_vm0, %v2437_v3, %v2438_v35  ;;  %v8656_v29 = vld [vmem:[#allocation6 + $0x68] sm:$0xf]  ;;  %3250 = vmatpush.bf16.msrb.mxu3 %v8649_v0  ;;  %v8612_v0 = vld [vmem:[#allocation6 + $0x18] sm:$0xf] }
 0x379   :  { %v12416_v41 = vadd.f32 %v2533_v52, %v2485_v40  ;;  %v8665_v40 = vor.u32 %v9986_v25, %v8662_v47  ;;  %v2486_v62 = vadd.f32 %v2447_v6, %v2316_v60  ;;  %v8650_v60 = vld [vmem:[#allocation6 + $0x6c] sm:$0xf0]  ;;  %v8657_v52 = vor.u32 %v9985_v19, %v8656_v29  ;;  %v9974_v29 = vld [vmem:[#allocation6 + $0x1c] sm:$0xf] }
 0x37a   :  { %v8653_v9 = vor.u32 %v9983_v38, %v8650_v60  ;;  %v8644_v6 = vld [vmem:[#allocation6 + $0x50] sm:$0xf]  ;;  %v8629_v38 = vor.u32 %v9977_v45, %v8626_v58  ;;  %v9975_v60 = vld [vmem:[#allocation6 + $0x20] sm:$0xf0]  ;;  %v14604_v58 = vld [vmem:[#allocation52_spill] sm:$0xff] }
 0x37b   :  { %3298 = vmatpush.bf16.msrb.mxu0 %v8665_v40  ;;  %3348 = vmatpush.bf16.msrb.mxu1 %v8657_v52  ;;  %v8645_v47 = vor.u32 %v9982_v24, %v8644_v6  ;;  %v9978_v40 = vld [vmem:[#allocation6 + $0x38] sm:$0xf0]  ;;  %v9976_v52 = vld [vmem:[#allocation6 + $0x28] sm:$0xf0]  ;;  %v8600_v6 = vld [vmem:[#allocation6] sm:$0xf] }
 0x37c   :  { %v2414_v30 = vpop.f32.mrf.mxu2  ;;  %v9972_v24 = vld [vmem:[#allocation6 + $0x8] sm:$0xf0]  ;;  %v8602_v45 = vld [vmem:[#allocation6 + $0xc] sm:$0xf0] }
 0x37d   :  { %v2502_v17 = vrot.slane %v2414_v30, 6  ;;  %v2319_v57 = vpop.f32.mrf.mxu0  ;;  %v2368_v48 = vpop.f32.mrf.mxu1 }
 0x37e   :  { %v2439_v13 = vrot.slane %v2368_v48, 7  ;;  %v8624_v48 = vld [vmem:[#allocation6 + $0x30] sm:$0xf] }
 0x37f   :  { %v2511_v3 = vsel %vm2011_vm9, %v2501_v5, %v2502_v17  ;;  %3299 = vmatpush.bf16.msrb.mxu0 %v8653_v9  ;;  %3349 = vmatpush.bf16.msrb.mxu1 %v8645_v47  ;;  %v8620_v9 = vld [vmem:[#allocation6 + $0x20] sm:$0xf] }
 0x380   :  { %v12424_v59 = vadd.f32 %v2511_v3, %v2486_v62  ;;  %v2446_v15 = vsel %vm14448_vm0, %v2438_v35, %v2439_v13  ;;  %2938 = vmatmul.bf16.gmra.mxu0 %v14598_v4  ;;  %2987 = vmatmul.bf16.gmra.mxu1 %v14599_v11  ;;  %v8636_v35 = vld [vmem:[#allocation6 + $0x48] sm:$0xf]  ;;  %v8625_v3 = vor.u32 %v9978_v40, %v8624_v48  ;;  %v14602_v48 = vld [vmem:[#allocation51_spill] sm:$0xff]  ;;  %v2865_v40 = vpop.f32.mrf.mxu3 }
 0x381   :  { %v2471_v5 = vsel %vm14427_vm6, %v2446_v15, 0.0  ;;  %3036 = vmatmul.bf16.gmra.mxu2 %v14600_v55  ;;  %v8637_v10 = vor.u32 %v9981_v32, %v8636_v35  ;;  %v9979_v15 = vld [vmem:[#allocation6 + $0x40] sm:$0xf0]  ;;  %v8614_v55 = vld [vmem:[#allocation6 + $0x24] sm:$0xf0]  ;;  %vm14603_vm6 = vcmp.ge.s32.totalorder %v12003_v42, 1 }
 0x382   :  { %v2487_v12 = vadd.f32 %v2471_v5, %v2319_v57  ;;  %v8633_v11 = vor.u32 %v9979_v15, %v8632_v49  ;;  %v8613_v5 = vor.u32 %v9975_v60, %v8612_v0 }
 0x383   :  { %3251 = vmatpush.bf16.msrb.mxu3 %v8637_v10  ;;  %3300 = vmatpush.bf16.msrb.mxu0 %v8641_v53 }
 0x384   :  { %v2417_v63 = vpop.f32.mrf.mxu2  ;;  %3350 = vmatpush.bf16.msrb.mxu1 %v8633_v11 }
 0x385   :  { %v2503_v2 = vrot.slane %v2417_v63, 6  ;;  %v2321_v25 = vpop.f32.mrf.mxu0  ;;  %v2370_v30 = vpop.f32.mrf.mxu1  ;;  %v8621_v63 = vor.u32 %v9976_v52, %v8620_v9  ;;  %v12464_v9 = vld [vmem:[#allocation4] ss:$0 sm:$0xff] }
 0x386   :  { %v2440_v8 = vrot.slane %v2370_v30, 7  ;;  %v9971_v30 = vld [vmem:[#allocation6 + $0x4] sm:$0xf]  ;;  %v2863_v46 = vadd.f32 %v12464_v9, %v12433_v28 }
 0x387   :  { %v2510_v57 = vsel %vm2011_vm9, %v2502_v17, %v2503_v2  ;;  %3252 = vmatpush.bf16.msrb.mxu3 %v8625_v3  ;;  %3301 = vmatpush.bf16.msrb.mxu0 %v8629_v38  ;;  %v9973_v3 = vld [vmem:[#allocation6 + $0x10] sm:$0xf0]  ;;  %v8605_v49 = vor.u32 %v9971_v30, %v8602_v45 }
 0x388   :  { %v2535_v62 = vsel %vm14450_vm15, %v2510_v57, 0.0  ;;  %v2445_v17 = vsel %vm14448_vm0, %v2439_v13, %v2440_v8  ;;  %v14601_v57 = vld [vmem:[#allocation35_spill] sm:$0xff]  ;;  %3351 = vmatpush.bf16.msrb.mxu1 %v8621_v63 }
 0x389   :  { %v12439_v4 = vadd.f32 %v2535_v62, %v2487_v12  ;;  %v8617_v12 = vor.u32 %v9974_v29, %v8614_v55  ;;  %v2488_v10 = vadd.f32 %v2445_v17, %v2321_v25  ;;  %v8601_v25 = vor.u32 %v9972_v24, %v8600_v6  ;;  %v8608_v62 = vld [vmem:[#allocation6 + $0x8] sm:$0xf] }
 0x38a   :  { %v8609_v38 = vor.u32 %v9973_v3, %v8608_v62 }
 0x38b   :  { %3253 = vmatpush.bf16.msrb.mxu3 %v8613_v5  ;;  %3302 = vmatpush.bf16.msrb.mxu0 %v8617_v12  ;;  %v2861_v12 = vadd.f32 %v12464_v9, %v12420_v43 }
 0x38c   :  { %v2419_v19 = vpop.f32.mrf.mxu2  ;;  %3352 = vmatpush.bf16.msrb.mxu1 %v8609_v38 }
 0x38d   :  { %v2504_v35 = vrot.slane %v2419_v19, 6  ;;  %v2324_v32 = vpop.f32.mrf.mxu0  ;;  %v2373_v61 = vpop.f32.mrf.mxu1 }
 0x38e   :  { %v2441_v16 = vrot.slane %v2373_v61, 7 }
 0x38f   :  { %v2509_v13 = vsel %vm2011_vm9, %v2503_v2, %v2504_v35  ;;  %3254 = vmatpush.bf16.msrb.mxu3 %v8601_v25  ;;  %3303 = vmatpush.bf16.msrb.mxu0 %v8605_v49 }
 0x390   :  { %v12445_v53 = vadd.f32 %v2509_v13, %v2488_v10  ;;  %v2444_v47 = vsel %vm14448_vm0, %v2440_v8, %v2441_v16  ;;  %2943 = vmatmul.bf16.gmra.mxu0 %v14601_v57  ;;  %2992 = vmatmul.bf16.gmra.mxu1 %v14602_v48  ;;  %v12486_v57 = vld [vmem:[%s14606_s16] ss:$0 sm:$0xff] }
 0x391   :  { %v2473_v2 = vsel %vm14603_vm6, %v2444_v47, 0.0  ;;  %3041 = vmatmul.bf16.gmra.mxu2 %v14604_v58  ;;  %vm14605_vm6 = vcmp.ge.s32.totalorder %v12014_v34, 1  ;;  %v2560_v49 = vadd.f32 %v12486_v57, %v12323_v14 }
 0x392   :  { %v2489_v15 = vadd.f32 %v2473_v2, %v2324_v32  ;;  %v2867_v32 = vpop.f32.mrf.mxu3 }
 0x394   :  { %v2422_v8 = vpop.f32.mrf.mxu2 }
 0x395   :  { %v2505_v11 = vrot.slane %v2422_v8, 6  ;;  %v2326_v17 = vpop.f32.mrf.mxu0  ;;  %v2375_v0 = vpop.f32.mrf.mxu1 }
 0x396   :  { %v2442_v60 = vrot.slane %v2375_v0, 7 }
 0x397   :  { %v2508_v29 = vsel %vm2011_vm9, %v2504_v35, %v2505_v11 }
 0x398   :  { %v2537_v19 = vsel %vm2042_vm8, %v2508_v29, 0.0  ;;  %v2443_v5 = vsel %vm14448_vm0, %v2441_v16, %v2442_v60  ;;  %v2458_v55 = vsel %vm14448_vm0, %v2442_v60, %v2427_v37  ;;  %vm14449_vm0 = vcmp.ge.s32.totalorder %v11983_v54, 4 }
 0x399   :  { %v12466_v52 = vadd.f32 %v2537_v19, %v2489_v15  ;;  %v2459_v61 = vsel %vm14605_vm6, %v2458_v55, 0.0  ;;  %v2490_v13 = vadd.f32 %v2443_v5, %v2326_v17  ;;  %v2576_v17 = vmax.f32 %v2560_v49, 0.0 }
 0x39a   :  { %v2475_v20 = vadd.f32 %v2459_v61, %v12303_v50  ;;  %v2870_v48 = vpop.f32.mrf.mxu3  ;;  %vm3474_vm6 = vcmp.lt.s32.totalorder %v11840_v56, 4 }
 0x39c   :  { %v2424_v35 = vpop.f32.mrf.mxu2 }
 0x39d   :  { %v2506_v63 = vrot.slane %v2424_v35, 6  ;;  %v2909_v10 = vpop.f32.mrf.mxu0  ;;  %v2958_v16 = vpop.f32.mrf.mxu1 }
 0x39e   :  { %v2910_v43 = vadd.f32 %v2909_v10, %v2861_v12 }
 0x39f   :  { %v2507_v37 = vsel %vm2011_vm9, %v2505_v11, %v2506_v63  ;;  %v2522_v6 = vsel %vm2011_vm9, %v2506_v63, %v2491_v21  ;;  %v2866_v11 = vadd.f32 %v12464_v9, %v2865_v40  ;;  %v2868_v40 = vadd.f32 %v12464_v9, %v2867_v32 }
 0x3a0   :  { %v2523_v24 = vsel %vm2028_vm7, %v2522_v6, 0.0  ;;  %v12481_v30 = vadd.f32 %v2507_v37, %v2490_v13  ;;  %v2959_v25 = vadd.f32 %v2958_v16, %v2910_v43  ;;  %v2561_v16 = vadd.f32 %v12486_v57, %v12339_v31 }
 0x3a1   :  { %v2539_v47 = vadd.f32 %v2523_v24, %v2475_v20  ;;  %v2562_v6 = vadd.f32 %v12486_v57, %v12343_v7  ;;  %v2871_v32 = vadd.f32 %v12464_v9, %v2870_v48 }
 0x3a2   :  { %v2872_v29 = vpop.f32.mrf.mxu3  ;;  %v2577_v24 = vmax.f32 %v2561_v16, 0.0 }
 0x3a3   :  { %v2559_v21 = vadd.f32 %v12486_v57, %v2539_v47  ;;  %v2873_v48 = vadd.f32 %v12464_v9, %v2872_v29 }
 0x3a4   :  { %v3007_v50 = vpop.f32.mrf.mxu2 }
 0x3a5   :  { %v2911_v45 = vpop.f32.mrf.mxu0  ;;  %v2960_v62 = vpop.f32.mrf.mxu1  ;;  %v2575_v2 = vmax.f32 %v2559_v21, 0.0  ;;  %v3008_v58 = vadd.f32 %v3007_v50, %v2959_v25 }
 0x3a6   :  { %v2912_v3 = vadd.f32 %v2911_v45, %v2863_v46  ;;  %v2578_v46 = vmax.f32 %v2562_v6, 0.0 }
 0x3a7   :  { %v12493_v8 = vadd.f32 %v3008_v58, %v2575_v2 }
 0x3a8   :  { %v2961_v38 = vadd.f32 %v2960_v62, %v2912_v3 }
 0x3a9   :  { %v14429_v5 = vmax.f32 %v12493_v8, 0.0 }
 0x3aa   :  { %v2875_v20 = vpop.f32.mrf.mxu3 }
 0x3ab   :  { %v2876_v29 = vadd.f32 %v12464_v9, %v2875_v20 }
 0x3ac   :  { %v3009_v15 = vpop.f32.mrf.mxu2 }
 0x3ad   :  { %v3010_v0 = vadd.f32 %v3009_v15, %v2961_v38  ;;  %v2914_v28 = vpop.f32.mrf.mxu0  ;;  %v2963_v60 = vpop.f32.mrf.mxu1 }
 0x3ae   :  { %v2915_v61 = vadd.f32 %v2914_v28, %v2866_v11 }
 0x3af   :  { %v12496_v19 = vadd.f32 %v3010_v0, %v2576_v17  ;;  %v2563_v17 = vadd.f32 %v12486_v57, %v12359_v18 }
 0x3b0   :  { %v2964_v12 = vadd.f32 %v2963_v60, %v2915_v61  ;;  %v2564_v60 = vadd.f32 %v12486_v57, %v12363_v23 }
 0x3b1   :  { %v14432_v55 = vmax.f32 %v12496_v19, 0.0  ;;  %v2579_v61 = vmax.f32 %v2563_v17, 0.0 }
 0x3b2   :  { %v2877_v58 = vpop.f32.mrf.mxu3 }
 0x3b3   :  { %v3079_v14 = vpack.c.bf16 %v14432_v55, %v14429_v5 }
 0x3b4   :  { %v3012_v35 = vpop.f32.mrf.mxu2 }
 0x3b5   :  { %3255 = vmatmul.bf16.vlgmr.msrb.gmra.mxu3 %v3079_v14  ;;  %3304 = vmatmul.bf16.vlgmr.msrb.gmra.mxu0 %v3079_v14  ;;  %v2916_v63 = vpop.f32.mrf.mxu0  ;;  %v2965_v10 = vpop.f32.mrf.mxu1  ;;  %v3013_v37 = vadd.f32 %v3012_v35, %v2964_v12 }
 0x3b6   :  { %3353 = vmatmul.bf16.vlgmr.msrb.gmra.mxu1 %v3079_v14  ;;  %v2917_v13 = vadd.f32 %v2916_v63, %v2868_v40  ;;  %v2580_v63 = vmax.f32 %v2564_v60, 0.0 }
 0x3b7   :  { %v12509_v50 = vadd.f32 %v3013_v37, %v2577_v24 }
 0x3b8   :  { %v2966_v43 = vadd.f32 %v2965_v10, %v2917_v13 }
 0x3b9   :  { %v3065_v31 = vmax.f32 %v12509_v50, 0.0  ;;  %v8842_v50 = vld [vmem:[%s14607_s4 + $0x70] sm:$0xf0] }
 0x3ba   :  { %v2880_v40 = vpop.f32.mrf.mxu3 }
 0x3bc   :  { %v3014_v47 = vpop.f32.mrf.mxu2 }
 0x3bd   :  { %v3015_v25 = vadd.f32 %v3014_v47, %v2966_v43  ;;  %v2919_v21 = vpop.f32.mrf.mxu0  ;;  %v2968_v45 = vpop.f32.mrf.mxu1  ;;  %v2878_v47 = vadd.f32 %v12464_v9, %v2877_v58  ;;  %v2881_v58 = vadd.f32 %v12464_v9, %v2880_v40 }
 0x3be   :  { %v2920_v2 = vadd.f32 %v2919_v21, %v2871_v32  ;;  %v2565_v21 = vadd.f32 %v12486_v57, %v12379_v51 }
 0x3bf   :  { %v12512_v62 = vadd.f32 %v3015_v25, %v2578_v46 }
 0x3c0   :  { %v2969_v38 = vadd.f32 %v2968_v45, %v2920_v2 }
 0x3c1   :  { %v14447_v3 = vmax.f32 %v12512_v62, 0.0 }
 0x3c2   :  { %v2882_v25 = vpop.f32.mrf.mxu3 }
 0x3c3   :  { %v3080_v7 = vpack.c.bf16 %v14447_v3, %v3065_v31  ;;  %v2883_v40 = vadd.f32 %v12464_v9, %v2882_v25 }
 0x3c4   :  { %v3017_v49 = vpop.f32.mrf.mxu2 }
 0x3c5   :  { %3260 = vmatmul.bf16.gmra.mxu3 %v3080_v7  ;;  %3309 = vmatmul.bf16.gmra.mxu0 %v3080_v7  ;;  %v2921_v15 = vpop.f32.mrf.mxu0  ;;  %v2970_v11 = vpop.f32.mrf.mxu1  ;;  %v3018_v28 = vadd.f32 %v3017_v49, %v2969_v38  ;;  %v2581_v49 = vmax.f32 %v2565_v21, 0.0 }
 0x3c6   :  { %3358 = vmatmul.bf16.gmra.mxu1 %v3080_v7  ;;  %v2922_v0 = vadd.f32 %v2921_v15, %v2873_v48  ;;  %v2566_v7 = vadd.f32 %v12486_v57, %v12383_v44 }
 0x3c7   :  { %v12525_v12 = vadd.f32 %v3018_v28, %v2579_v61 }
 0x3c8   :  { %v2971_v14 = vadd.f32 %v2970_v11, %v2922_v0  ;;  %v2582_v11 = vmax.f32 %v2566_v7, 0.0 }
 0x3c9   :  { %v14446_v18 = vmax.f32 %v12525_v12, 0.0 }
 0x3ca   :  { %v2885_v61 = vpop.f32.mrf.mxu3 }
 0x3cb   :  { %v2886_v25 = vadd.f32 %v12464_v9, %v2885_v61 }
 0x3cc   :  { %v3019_v35 = vpop.f32.mrf.mxu2 }
 0x3cd   :  { %v3020_v10 = vadd.f32 %v3019_v35, %v2971_v14  ;;  %v2924_v16 = vpop.f32.mrf.mxu0  ;;  %v2973_v13 = vpop.f32.mrf.mxu1 }
 0x3ce   :  { %v2925_v24 = vadd.f32 %v2924_v16, %v2876_v29 }
 0x3cf   :  { %v12528_v37 = vadd.f32 %v3020_v10, %v2580_v63 }
 0x3d0   :  { %v2974_v20 = vadd.f32 %v2973_v13, %v2925_v24  ;;  %v2567_v13 = vadd.f32 %v12486_v57, %v12397_v1 }
 0x3d1   :  { %v14444_v6 = vmax.f32 %v12528_v37, 0.0 }
 0x3d3   :  { %v3081_v23 = vpack.c.bf16 %v14444_v6, %v14446_v18  ;;  %v10003_v18 = vld [vmem:[#allocation9 + $0x40] sm:$0xf0] }
 0x3d4   :  { %v3022_v43 = vpop.f32.mrf.mxu2 }
 0x3d5   :  { %3265 = vmatmul.bf16.gmra.mxu3 %v3081_v23  ;;  %3314 = vmatmul.bf16.gmra.mxu0 %v3081_v23  ;;  %v2926_v32 = vpop.f32.mrf.mxu0  ;;  %v2975_v46 = vpop.f32.mrf.mxu1  ;;  %v3023_v2 = vadd.f32 %v3022_v43, %v2974_v20  ;;  %v2568_v43 = vadd.f32 %v12486_v57, %v12403_v26  ;;  %v2583_v20 = vmax.f32 %v2567_v13, 0.0 }
 0x3d6   :  { %3363 = vmatmul.bf16.gmra.mxu1 %v3081_v23  ;;  %v2927_v45 = vadd.f32 %v2926_v32, %v2878_v47  ;;  %v2887_v47 = vpop.f32.mrf.mxu3 }
 0x3d7   :  { %v12541_v15 = vadd.f32 %v3023_v2, %v2581_v49 }
 0x3d8   :  { %v2976_v48 = vadd.f32 %v2975_v46, %v2927_v45  ;;  %v2584_v45 = vmax.f32 %v2568_v43, 0.0 }
 0x3d9   :  { %v14443_v51 = vmax.f32 %v12541_v15, 0.0 }
 0x3dc   :  { %v3024_v38 = vpop.f32.mrf.mxu2 }
 0x3dd   :  { %v3025_v17 = vadd.f32 %v3024_v38, %v2976_v48  ;;  %v2929_v0 = vpop.f32.mrf.mxu0  ;;  %v2978_v28 = vpop.f32.mrf.mxu1 }
 0x3de   :  { %v2930_v35 = vadd.f32 %v2929_v0, %v2881_v58  ;;  %v2888_v0 = vadd.f32 %v12464_v9, %v2887_v47 }
 0x3df   :  { %v12544_v60 = vadd.f32 %v3025_v17, %v2582_v11  ;;  %v2890_v17 = vpop.f32.mrf.mxu3 }
 0x3e0   :  { %v2979_v63 = vadd.f32 %v2978_v28, %v2930_v35 }
 0x3e1   :  { %v14442_v14 = vmax.f32 %v12544_v60, 0.0 }
 0x3e3   :  { %v3082_v44 = vpack.c.bf16 %v14442_v14, %v14443_v51  ;;  %v8776_v14 = vld [vmem:[#allocation9 + $0x98] sm:$0xf]  ;;  %v10015_v51 = vld [vmem:[#allocation9 + $0xa0] sm:$0xf0] }
 0x3e4   :  { %v3027_v29 = vpop.f32.mrf.mxu2 }
 0x3e5   :  { %3270 = vmatmul.bf16.gmra.mxu3 %v3082_v44  ;;  %3319 = vmatmul.bf16.gmra.mxu0 %v3082_v44  ;;  %v2931_v10 = vpop.f32.mrf.mxu0  ;;  %v2980_v16 = vpop.f32.mrf.mxu1  ;;  %v3028_v23 = vadd.f32 %v3027_v29, %v2979_v63  ;;  %v2570_v63 = vadd.f32 %v12486_v57, %v12424_v59 }
 0x3e6   :  { %3368 = vmatmul.bf16.gmra.mxu1 %v3082_v44  ;;  %v2932_v24 = vadd.f32 %v2931_v10, %v2883_v40  ;;  %v2569_v44 = vadd.f32 %v12486_v57, %v12416_v41 }
 0x3e7   :  { %v12557_v21 = vadd.f32 %v3028_v23, %v2583_v20  ;;  %v2891_v23 = vadd.f32 %v12464_v9, %v2890_v17  ;;  %v2586_v43 = vmax.f32 %v2570_v63, 0.0  ;;  %v2571_v17 = vadd.f32 %v12486_v57, %v12439_v4 }
 0x3e8   :  { %v2981_v32 = vadd.f32 %v2980_v16, %v2932_v24  ;;  %v2585_v10 = vmax.f32 %v2569_v44, 0.0 }
 0x3e9   :  { %v14441_v1 = vmax.f32 %v12557_v21, 0.0  ;;  %v2587_v44 = vmax.f32 %v2571_v17, 0.0  ;;  %v2574_v17 = vadd.f32 %v12486_v57, %v12481_v30 }
 0x3ec   :  { %v3029_v46 = vpop.f32.mrf.mxu2 }
 0x3ed   :  { %v3030_v2 = vadd.f32 %v3029_v46, %v2981_v32  ;;  %v2934_v7 = vpop.f32.mrf.mxu0  ;;  %v2983_v49 = vpop.f32.mrf.mxu1 }
 0x3ee   :  { %v2935_v58 = vadd.f32 %v2934_v7, %v2886_v25  ;;  %v2892_v46 = vpop.f32.mrf.mxu3 }
 0x3ef   :  { %v12560_v48 = vadd.f32 %v3030_v2, %v2584_v45 }
 0x3f0   :  { %v2984_v28 = vadd.f32 %v2983_v49, %v2935_v58  ;;  %v2893_v49 = vadd.f32 %v12464_v9, %v2892_v46 }
 0x3f1   :  { %v14440_v38 = vmax.f32 %v12560_v48, 0.0 }
 0x3f3   :  { %v3083_v26 = vpack.c.bf16 %v14440_v38, %v14441_v1  ;;  %v8768_v1 = vld [vmem:[#allocation9 + $0x90] sm:$0xf] }
 0x3f4   :  { %v3032_v11 = vpop.f32.mrf.mxu2 }
 0x3f5   :  { %3275 = vmatmul.bf16.gmra.mxu3 %v3083_v26  ;;  %3324 = vmatmul.bf16.gmra.mxu0 %v3083_v26  ;;  %v2936_v61 = vpop.f32.mrf.mxu0  ;;  %v2985_v35 = vpop.f32.mrf.mxu1  ;;  %v3033_v40 = vadd.f32 %v3032_v11, %v2984_v28 }
 0x3f6   :  { %3373 = vmatmul.bf16.gmra.mxu1 %v3083_v26  ;;  %v2937_v29 = vadd.f32 %v2936_v61, %v2888_v0  ;;  %v2895_v28 = vpop.f32.mrf.mxu3 }
 0x3f7   :  { %v12573_v24 = vadd.f32 %v3033_v40, %v2585_v10  ;;  %v2896_v10 = vadd.f32 %v12464_v9, %v2895_v28 }
 0x3f8   :  { %v2986_v16 = vadd.f32 %v2985_v35, %v2937_v29  ;;  %v2572_v35 = vadd.f32 %v12486_v57, %v12445_v53 }
 0x3f9   :  { %v14439_v41 = vmax.f32 %v12573_v24, 0.0 }
 0x3fc   :  { %v3034_v13 = vpop.f32.mrf.mxu2 }
 0x3fd   :  { %v3035_v47 = vadd.f32 %v3034_v13, %v2986_v16  ;;  %v2939_v20 = vpop.f32.mrf.mxu0  ;;  %v2988_v32 = vpop.f32.mrf.mxu1  ;;  %v2588_v16 = vmax.f32 %v2572_v35, 0.0 }
 0x3fe   :  { %v2940_v2 = vadd.f32 %v2939_v20, %v2891_v23  ;;  %v2897_v46 = vpop.f32.mrf.mxu3 }
 0x3ff   :  { %v12576_v25 = vadd.f32 %v3035_v47, %v2586_v43 }
 0x400   :  { %v2989_v58 = vadd.f32 %v2988_v32, %v2940_v2 }
 0x401   :  { %v14438_v45 = vmax.f32 %v12576_v25, 0.0 }
 0x403   :  { %v3084_v59 = vpack.c.bf16 %v14438_v45, %v14439_v41 }
 0x404   :  { %v3037_v7 = vpop.f32.mrf.mxu2 }
 0x405   :  { %3280 = vmatmul.bf16.gmra.mxu3 %v3084_v59  ;;  %3329 = vmatmul.bf16.gmra.mxu0 %v3084_v59  ;;  %v2941_v26 = vpop.f32.mrf.mxu0  ;;  %v2990_v11 = vpop.f32.mrf.mxu1  ;;  %v3038_v61 = vadd.f32 %v3037_v7, %v2989_v58  ;;  %v2573_v58 = vadd.f32 %v12486_v57, %v12466_v52 }
 0x406   :  { %3378 = vmatmul.bf16.gmra.mxu1 %v3084_v59  ;;  %v2942_v0 = vadd.f32 %v2941_v26, %v2893_v49  ;;  %v2898_v59 = vadd.f32 %v12464_v9, %v2897_v46  ;;  %v2590_v9 = vmax.f32 %v2574_v17, 0.0 }
 0x407   :  { %v12589_v63 = vadd.f32 %v3038_v61, %v2587_v44  ;;  %v2589_v28 = vmax.f32 %v2573_v58, 0.0 }
 0x408   :  { %v2991_v29 = vadd.f32 %v2990_v11, %v2942_v0 }
 0x409   :  { %v14437_v4 = vmax.f32 %v12589_v63, 0.0 }
 0x40c   :  { %v3039_v40 = vpop.f32.mrf.mxu2 }
 0x40d   :  { %v3040_v13 = vadd.f32 %v3039_v40, %v2991_v29  ;;  %v2944_v23 = vpop.f32.mrf.mxu0  ;;  %v2993_v47 = vpop.f32.mrf.mxu1 }
 0x40e   :  { %v2945_v32 = vadd.f32 %v2944_v23, %v2896_v10 }
 0x40f   :  { %v12592_v43 = vadd.f32 %v3040_v13, %v2588_v16 }
 0x410   :  { %v2994_v7 = vadd.f32 %v2993_v47, %v2945_v32 }
 0x411   :  { %v14435_v20 = vmax.f32 %v12592_v43, 0.0 }
 0x413   :  { %v3085_v53 = vpack.c.bf16 %v14435_v20, %v14437_v4  ;;  %v10018_v4 = vld [vmem:[#allocation9 + $0xb8] sm:$0xf0] }
 0x414   :  { %v3042_v2 = vpop.f32.mrf.mxu2 }
 0x415   :  { %3285 = vmatmul.bf16.gmra.mxu3 %v3085_v53  ;;  %3334 = vmatmul.bf16.gmra.mxu0 %v3085_v53  ;;  %v2946_v49 = vpop.f32.mrf.mxu0  ;;  %v3043_v11 = vadd.f32 %v3042_v2, %v2994_v7  ;;  %v2995_v0 = vpop.f32.mrf.mxu1 }
 0x416   :  { %3383 = vmatmul.bf16.gmra.mxu1 %v3085_v53  ;;  %v2947_v26 = vadd.f32 %v2946_v49, %v2898_v59 }
 0x417   :  { %v12605_v44 = vadd.f32 %v3043_v11, %v2589_v28 }
 0x418   :  { %v2996_v61 = vadd.f32 %v2995_v0, %v2947_v26 }
 0x419   :  { %v14433_v10 = vmax.f32 %v12605_v44, 0.0 }
 0x41c   :  { %v3044_v35 = vpop.f32.mrf.mxu2 }
 0x41d   :  { %v3045_v29 = vadd.f32 %v3044_v35, %v2996_v61 }
 0x41f   :  { %v12607_v40 = vadd.f32 %v3045_v29, %v2590_v9 }
 0x421   :  { %v14430_v16 = vmax.f32 %v12607_v40, 0.0 }
 0x423   :  { %v3086_v52 = vpack.c.bf16 %v14430_v16, %v14433_v10 }
 0x425   :  { %3290 = vmatmul.bf16.gmra.mxu3 %v3086_v52  ;;  %3339 = vmatmul.bf16.gmra.mxu0 %v3086_v52 }
 0x426   :  { %3388 = vmatmul.bf16.gmra.mxu1 %v3086_v52 }
 0x432   :  { %v12615_v30 = vpop.f32.mrf.mxu0 }
 0x433   :  { %v12617_v57 = vpop.f32.mrf.mxu1  ;;  %v3394_v46 = vrot.slane %v12615_v30, 6 }
 0x434   :  { %v3458_v2 = vrot.slane %v12617_v57, 4 }
 0x438   :  { %v12619_v13 = vpop.f32.mrf.mxu3 }
 0x43a   :  { %v3307_v23 = vpop.f32.mrf.mxu0 }
 0x43b   :  { %v3356_v47 = vpop.f32.mrf.mxu1  ;;  %v3395_v32 = vrot.slane %v3307_v23, 6 }
 0x43c   :  { %v3459_v53 = vrot.slane %v3356_v47, 4 }
 0x43d   :  { %v3424_v7 = vsel %vm2011_vm9, %v3394_v46, %v3395_v32 }
 0x43e   :  { %v3489_v58 = vsel %vm3474_vm6, %v3458_v2, %v3459_v53 }
 0x440   :  { %v3258_v59 = vpop.f32.mrf.mxu3 }
 0x441   :  { %v3443_v49 = vadd.f32 %v3424_v7, %v3258_v59 }
 0x442   :  { %v3310_v26 = vpop.f32.mrf.mxu0 }
 0x443   :  { %v12632_v11 = vadd.f32 %v3489_v58, %v3443_v49  ;;  %v3396_v17 = vrot.slane %v3310_v26, 6  ;;  %v3359_v0 = vpop.f32.mrf.mxu1 }
 0x444   :  { %v3460_v28 = vrot.slane %v3359_v0, 4 }
 0x445   :  { %v3423_v61 = vsel %vm2011_vm9, %v3395_v32, %v3396_v17 }
 0x446   :  { %v3488_v35 = vsel %vm3474_vm6, %v3459_v53, %v3460_v28  ;;  %v3428_v29 = vsel %vm2030_vm10, %v3423_v61, 0.0  ;;  %v12645_v53 = vld [vmem:[#allocation7] ss:$0 sm:$0xff] }
 0x447   :  { %v3509_v23 = vsel %vm3493_vm5, %v3488_v35, 0.0 }
 0x448   :  { %v3261_v9 = vpop.f32.mrf.mxu3 }
 0x449   :  { %v3444_v52 = vadd.f32 %v3428_v29, %v3261_v9 }
 0x44a   :  { %v3312_v47 = vpop.f32.mrf.mxu0 }
 0x44b   :  { %v3525_v59 = vadd.f32 %v3509_v23, %v3444_v52  ;;  %v3361_v7 = vpop.f32.mrf.mxu1  ;;  %v3397_v49 = vrot.slane %v3312_v47, 6 }
 0x44c   :  { %v3461_v58 = vrot.slane %v3361_v7, 4 }
 0x44d   :  { %v3422_v32 = vsel %vm2011_vm9, %v3396_v17, %v3397_v49  ;;  %v3545_v9 = vadd.f32 %v12645_v53, %v3525_v59 }
 0x44e   :  { %v3487_v5 = vsel %vm3474_vm6, %v3460_v28, %v3461_v58 }
 0x44f   :  { %v3561_v7 = vmax.f32 %v3545_v9, 0.0 }
 0x450   :  { %v3263_v26 = vpop.f32.mrf.mxu3 }
 0x451   :  { %v3445_v0 = vadd.f32 %v3422_v32, %v3263_v26 }
 0x452   :  { %v3315_v61 = vpop.f32.mrf.mxu0 }
 0x453   :  { %v3526_v29 = vadd.f32 %v3487_v5, %v3445_v0  ;;  %v3398_v35 = vrot.slane %v3315_v61, 6  ;;  %v3364_v16 = vpop.f32.mrf.mxu1 }
 0x454   :  { %v3462_v52 = vrot.slane %v3364_v16, 4 }
 0x455   :  { %v3546_v23 = vadd.f32 %v12645_v53, %v3526_v29  ;;  %v3421_v47 = vsel %vm2011_vm9, %v3397_v49, %v3398_v35 }
 0x456   :  { %v3486_v17 = vsel %vm3474_vm6, %v3461_v58, %v3462_v52  ;;  %v3430_v59 = vsel %vm2032_vm11, %v3421_v47, 0.0 }
 0x457   :  { %v3562_v26 = vmax.f32 %v3546_v23, 0.0  ;;  %v3511_v16 = vsel %vm3495_vm4, %v3486_v17, 0.0 }
 0x458   :  { %v3266_v28 = vpop.f32.mrf.mxu3 }
 0x459   :  { %v3446_v5 = vadd.f32 %v3430_v59, %v3266_v28  ;;  %v12658_v32 = vpack.c.bf16 %v3562_v26, %v3561_v7 }
 0x45a   :  { %v3317_v0 = vpop.f32.mrf.mxu0 }
 0x45b   :  { %v3527_v61 = vadd.f32 %v3511_v16, %v3446_v5  ;;  %v3366_v49 = vpop.f32.mrf.mxu1  ;;  %v3399_v9 = vrot.slane %v3317_v0, 6 }
 0x45c   :  { %v3463_v29 = vrot.slane %v3366_v49, 4 }
 0x45d   :  { %v3420_v58 = vsel %vm2011_vm9, %v3398_v35, %v3399_v9  ;;  %v3547_v7 = vadd.f32 %v12645_v53, %v3527_v61 }
 0x45e   :  { %v3485_v10 = vsel %vm3474_vm6, %v3462_v52, %v3463_v29 }
 0x45f   :  { %v3563_v0 = vmax.f32 %v3547_v7, 0.0 }
 0x460   :  { %v3268_v55 = vpop.f32.mrf.mxu3 }
 0x461   :  { %v3447_v23 = vadd.f32 %v3420_v58, %v3268_v55 }
 0x462   :  { %v3320_v47 = vpop.f32.mrf.mxu0 }
 0x463   :  { %v3528_v26 = vadd.f32 %v3485_v10, %v3447_v23  ;;  %v3400_v28 = vrot.slane %v3320_v47, 6  ;;  %v3369_v59 = vpop.f32.mrf.mxu1 }
 0x464   :  { %v3464_v17 = vrot.slane %v3369_v59, 4 }
 0x465   :  { %v3548_v5 = vadd.f32 %v12645_v53, %v3528_v26  ;;  %v3419_v16 = vsel %vm2011_vm9, %v3399_v9, %v3400_v28 }
 0x466   :  { %v3484_v35 = vsel %vm3474_vm6, %v3463_v29, %v3464_v17  ;;  %v3432_v61 = vsel %vm2034_vm12, %v3419_v16, 0.0 }
 0x467   :  { %v3564_v55 = vmax.f32 %v3548_v5, 0.0  ;;  %v3513_v58 = vsel %vm3497_vm3, %v3484_v35, 0.0 }
 0x468   :  { %v3271_v52 = vpop.f32.mrf.mxu3 }
 0x469   :  { %v3448_v10 = vadd.f32 %v3432_v61, %v3271_v52  ;;  %v12675_v49 = vpack.c.bf16 %v3564_v55, %v3563_v0 }
 0x46a   :  { %v3322_v23 = vpop.f32.mrf.mxu0 }
 0x46b   :  { %v3529_v47 = vadd.f32 %v3513_v58, %v3448_v10  ;;  %v3371_v9 = vpop.f32.mrf.mxu1  ;;  %v3401_v7 = vrot.slane %v3322_v23, 6 }
 0x46c   :  { %v3465_v26 = vrot.slane %v3371_v9, 4 }
 0x46d   :  { %v3418_v29 = vsel %vm2011_vm9, %v3400_v28, %v3401_v7  ;;  %v3549_v0 = vadd.f32 %v12645_v53, %v3529_v47 }
 0x46e   :  { %v3483_v20 = vsel %vm3474_vm6, %v3464_v17, %v3465_v26 }
 0x46f   :  { %v3565_v23 = vmax.f32 %v3549_v0, 0.0 }
 0x470   :  { %v3273_v59 = vpop.f32.mrf.mxu3 }
 0x471   :  { %v3449_v5 = vadd.f32 %v3418_v29, %v3273_v59  ;;  %v10017_v59 = vld [vmem:[#allocation9 + $0xb0] sm:$0xf0]  ;;  %v10016_v29 = vld [vmem:[#allocation9 + $0xac] sm:$0xf] }
 0x472   :  { %v3325_v16 = vpop.f32.mrf.mxu0 }
 0x473   :  { %v3530_v55 = vadd.f32 %v3483_v20, %v3449_v5  ;;  %v3402_v52 = vrot.slane %v3325_v16, 6  ;;  %v3374_v61 = vpop.f32.mrf.mxu1  ;;  %v8780_v20 = vld [vmem:[#allocation9 + $0xa8] sm:$0xf] }
 0x474   :  { %v3466_v35 = vrot.slane %v3374_v61, 4  ;;  %v8781_v16 = vor.u32 %v10017_v59, %v8780_v20  ;;  %v8788_v61 = vld [vmem:[#allocation9 + $0xb0] sm:$0xf]  ;;  %v10013_v20 = vld [vmem:[#allocation9 + $0x94] sm:$0xf] }
 0x475   :  { %v3550_v10 = vadd.f32 %v12645_v53, %v3530_v55  ;;  %v3417_v58 = vsel %vm2011_vm9, %v3401_v7, %v3402_v52  ;;  %v8782_v55 = vld [vmem:[#allocation9 + $0xb4] sm:$0xf0]  ;;  %v8789_v41 = vor.u32 %v10018_v4, %v8788_v61  ;;  %v8770_v59 = vld [vmem:[#allocation9 + $0x9c] sm:$0xf0]  ;;  %v10012_v61 = vld [vmem:[#allocation9 + $0x88] sm:$0xf0] }
 0x476   :  { %v3434_v28 = vsel %vm2036_vm13, %v3417_v58, 0.0  ;;  %v3482_v17 = vsel %vm3474_vm6, %v3465_v26, %v3466_v35  ;;  %v8785_v58 = vor.u32 %v10016_v29, %v8782_v55  ;;  %3743 = vmatpush.bf16.msra.mxu2 %v8781_v16  ;;  %v8756_v29 = vld [vmem:[#allocation9 + $0x78] sm:$0xf]  ;;  %v8764_v55 = vld [vmem:[#allocation9 + $0x80] sm:$0xf] }
 0x477   :  { %v3566_v9 = vmax.f32 %v3550_v10, 0.0  ;;  %v3515_v0 = vsel %vm14497_vm2, %v3482_v17, 0.0  ;;  %3841 = vmatpush.bf16.msra.mxu0 %v8789_v41  ;;  %v8777_v17 = vor.u32 %v10015_v51, %v8776_v14 }
 0x478   :  { %v3276_v47 = vpop.f32.mrf.mxu3  ;;  %3792 = vmatpush.bf16.msra.mxu3 %v8785_v58 }
 0x479   :  { %v3450_v5 = vadd.f32 %v3434_v28, %v3276_v47  ;;  %v12692_v7 = vpack.c.bf16 %v3566_v9, %v3565_v23  ;;  %v10014_v28 = vld [vmem:[#allocation9 + $0x98] sm:$0xf0]  ;;  %v8773_v9 = vor.u32 %v10013_v20, %v8770_v59  ;;  %v8744_v20 = vld [vmem:[#allocation9 + $0x60] sm:$0xf]  ;;  %v10008_v59 = vld [vmem:[#allocation9 + $0x68] sm:$0xf0] }
 0x47a   :  { %v3327_v45 = vpop.f32.mrf.mxu0  ;;  %v8769_v47 = vor.u32 %v10014_v28, %v8768_v1  ;;  %v8758_v1 = vld [vmem:[#allocation9 + $0x84] sm:$0xf0] }
 0x47b   :  { %v3531_v38 = vadd.f32 %v3515_v0, %v3450_v5  ;;  %v3376_v26 = vpop.f32.mrf.mxu1  ;;  %v3403_v10 = vrot.slane %v3327_v45, 6  ;;  %v10011_v45 = vld [vmem:[#allocation9 + $0x80] sm:$0xf0]  ;;  %v10010_v5 = vld [vmem:[#allocation9 + $0x7c] sm:$0xf]  ;;  %3842 = vmatpush.bf16.msra.mxu0 %v8777_v17 }
 0x47c   :  { %v3467_v23 = vrot.slane %v3376_v26, 4  ;;  %3744 = vmatpush.bf16.msra.mxu2 %v8769_v47  ;;  %3793 = vmatpush.bf16.msra.mxu3 %v8773_v9  ;;  %v8757_v16 = vor.u32 %v10011_v45, %v8756_v29  ;;  %v8761_v14 = vor.u32 %v10010_v5, %v8758_v1  ;;  %v8765_v26 = vor.u32 %v10012_v61, %v8764_v55  ;;  %v10007_v17 = vld [vmem:[#allocation9 + $0x64] sm:$0xf]  ;;  %v8752_v29 = vld [vmem:[#allocation9 + $0x68] sm:$0xf] }
 0x47d   :  { %v3416_v4 = vsel %vm2011_vm9, %v3402_v52, %v3403_v10  ;;  %v3551_v0 = vadd.f32 %v12645_v53, %v3531_v38  ;;  %v8745_v9 = vor.u32 %v10008_v59, %v8744_v20  ;;  %v8740_v20 = vld [vmem:[#allocation9 + $0x50] sm:$0xf]  ;;  %v10006_v59 = vld [vmem:[#allocation9 + $0x58] sm:$0xf0] }
 0x47e   :  { %v3481_v58 = vsel %vm3474_vm6, %v3466_v35, %v3467_v23 }
 0x47f   :  { %3843 = vmatpush.bf16.msra.mxu0 %v8765_v26  ;;  %v3567_v45 = vmax.f32 %v3551_v0, 0.0  ;;  %v10004_v0 = vld [vmem:[#allocation9 + $0x4c] sm:$0xf] }
 0x480   :  { %v3278_v6 = vpop.f32.mrf.mxu3  ;;  %3745 = vmatpush.bf16.msra.mxu2 %v8757_v16  ;;  %3794 = vmatpush.bf16.msra.mxu3 %v8761_v14 }
 0x481   :  { %v3451_v41 = vadd.f32 %v3416_v4, %v3278_v6  ;;  %v8746_v4 = vld [vmem:[#allocation9 + $0x6c] sm:$0xf0] }
 0x482   :  { %v12701_v51 = vpop.f32.mrf.mxu0  ;;  %v8749_v5 = vor.u32 %v10007_v17, %v8746_v4  ;;  %v8741_v4 = vor.u32 %v10006_v59, %v8740_v20 }
 0x483   :  { %v3532_v52 = vadd.f32 %v3481_v58, %v3451_v41  ;;  %v3404_v28 = vrot.slane %v12701_v51, 6  ;;  %v12704_v47 = vpop.f32.mrf.mxu1  ;;  %v10009_v41 = vld [vmem:[#allocation9 + $0x70] sm:$0xf0]  ;;  %v8732_v58 = vld [vmem:[#allocation9 + $0x48] sm:$0xf] }
 0x484   :  { %v3468_v6 = vrot.slane %v12704_v47, 4  ;;  %3746 = vmatpush.bf16.msra.mxu2 %v8745_v9  ;;  %3795 = vmatpush.bf16.msra.mxu3 %v8749_v5  ;;  %v10005_v51 = vld [vmem:[#allocation9 + $0x50] sm:$0xf0] }
 0x485   :  { %v3552_v38 = vadd.f32 %v12645_v53, %v3532_v52  ;;  %v3415_v35 = vsel %vm2011_vm9, %v3403_v10, %v3404_v28  ;;  %v8753_v10 = vor.u32 %v10009_v41, %v8752_v29  ;;  %v8733_v26 = vor.u32 %v10005_v51, %v8732_v58  ;;  %v8734_v52 = vld [vmem:[#allocation9 + $0x54] sm:$0xf0]  ;;  %v8720_v41 = vld [vmem:[#allocation9 + $0x30] sm:$0xf]  ;;  %v8722_v58 = vld [vmem:[#allocation9 + $0x3c] sm:$0xf0] }
 0x486   :  { %v3436_v16 = vsel %vm2038_vm14, %v3415_v35, 0.0  ;;  %v3480_v1 = vsel %vm3474_vm6, %v3467_v23, %v3468_v6  ;;  %v8737_v9 = vor.u32 %v10004_v0, %v8734_v52  ;;  %v8728_v51 = vld [vmem:[#allocation9 + $0x38] sm:$0xf]  ;;  %v9998_v52 = vld [vmem:[#allocation9 + $0x1c] sm:$0xf] }
 0x487   :  { %v3568_v55 = vmax.f32 %v3552_v38, 0.0  ;;  %3844 = vmatpush.bf16.msra.mxu0 %v8753_v10  ;;  %v3517_v17 = vsel %vm14496_vm1, %v3480_v1, 0.0  ;;  %v8729_v1 = vor.u32 %v10003_v18, %v8728_v51  ;;  %v9996_v51 = vld [vmem:[#allocation9 + $0x8] sm:$0xf0] }
 0x488   :  { %v3281_v61 = vpop.f32.mrf.mxu3  ;;  %3747 = vmatpush.bf16.msra.mxu2 %v8733_v26  ;;  %3796 = vmatpush.bf16.msra.mxu3 %v8737_v9  ;;  %v9999_v26 = vld [vmem:[#allocation9 + $0x20] sm:$0xf0]  ;;  %v10000_v9 = vld [vmem:[#allocation9 + $0x28] sm:$0xf0] }
 0x489   :  { %v3452_v14 = vadd.f32 %v3436_v16, %v3281_v61  ;;  %v12717_v35 = vpack.c.bf16 %v3568_v55, %v3567_v45  ;;  %v10002_v16 = vld [vmem:[#allocation9 + $0x38] sm:$0xf0]  ;;  %v10001_v61 = vld [vmem:[#allocation9 + $0x34] sm:$0xf] }
 0x48a   :  { %v3332_v23 = vpop.f32.mrf.mxu0  ;;  %v8721_v10 = vor.u32 %v10002_v16, %v8720_v41  ;;  %v8725_v55 = vor.u32 %v10001_v61, %v8722_v58  ;;  %v8696_v58 = vld [vmem:[#allocation9] sm:$0xf] }
 0x48b   :  { %v3533_v38 = vadd.f32 %v3517_v17, %v3452_v14  ;;  %v3381_v29 = vpop.f32.mrf.mxu1  ;;  %v3405_v5 = vrot.slane %v3332_v23, 6  ;;  %3845 = vmatpush.bf16.msra.mxu0 %v8741_v4  ;;  %v8708_v14 = vld [vmem:[#allocation9 + $0x18] sm:$0xf]  ;;  %v8710_v17 = vld [vmem:[#allocation9 + $0x24] sm:$0xf0] }
 0x48c   :  { %v3469_v45 = vrot.slane %v3381_v29, 4  ;;  %3748 = vmatpush.bf16.msra.mxu2 %v8721_v10  ;;  %3797 = vmatpush.bf16.msra.mxu3 %v8725_v55  ;;  %v8709_v59 = vor.u32 %v9999_v26, %v8708_v14  ;;  %v8716_v23 = vld [vmem:[#allocation9 + $0x20] sm:$0xf]  ;;  %v8713_v29 = vor.u32 %v9998_v52, %v8710_v17  ;;  %v8704_v14 = vld [vmem:[#allocation9 + $0x8] sm:$0xf] }
 0x48d   :  { %v3414_v0 = vsel %vm2011_vm9, %v3404_v28, %v3405_v5  ;;  %v8717_v41 = vor.u32 %v10000_v9, %v8716_v23  ;;  %v3553_v28 = vadd.f32 %v12645_v53, %v3533_v38  ;;  %v9997_v26 = vld [vmem:[#allocation9 + $0x10] sm:$0xf0] }
 0x48e   :  { %v3479_v4 = vsel %vm3474_vm6, %v3468_v6, %v3469_v45  ;;  %v8697_v6 = vor.u32 %v9996_v51, %v8696_v58 }
 0x48f   :  { %3846 = vmatpush.bf16.msra.mxu0 %v8729_v1  ;;  %v9995_v1 = vld [vmem:[#allocation9 + $0x4] sm:$0xf]  ;;  %v3569_v52 = vmax.f32 %v3553_v28, 0.0 }
 0x490   :  { %v3283_v3 = vpop.f32.mrf.mxu3  ;;  %3749 = vmatpush.bf16.msra.mxu2 %v8709_v59  ;;  %3798 = vmatpush.bf16.msra.mxu3 %v8713_v29  ;;  %v8705_v59 = vor.u32 %v9997_v26, %v8704_v14 }
 0x491   :  { %v3453_v20 = vadd.f32 %v3414_v0, %v3283_v3  ;;  %v8698_v0 = vld [vmem:[#allocation9 + $0xc] sm:$0xf0] }
 0x492   :  { %v3335_v18 = vpop.f32.mrf.mxu0  ;;  %v8701_v38 = vor.u32 %v9995_v1, %v8698_v0 }
 0x493   :  { %v3534_v16 = vadd.f32 %v3479_v4, %v3453_v20  ;;  %v3406_v10 = vrot.slane %v3335_v18, 6  ;;  %v3384_v61 = vpop.f32.mrf.mxu1  ;;  %3847 = vmatpush.bf16.msra.mxu0 %v8717_v41 }
 0x494   :  { %v3470_v3 = vrot.slane %v3384_v61, 4  ;;  %3750 = vmatpush.bf16.msra.mxu2 %v8697_v6  ;;  %3799 = vmatpush.bf16.msra.mxu3 %v8701_v38 }
 0x495   :  { %v3554_v55 = vadd.f32 %v12645_v53, %v3534_v16  ;;  %v3413_v47 = vsel %vm2011_vm9, %v3405_v5, %v3406_v10 }
 0x496   :  { %v3478_v20 = vsel %vm3474_vm6, %v3469_v45, %v3470_v3  ;;  %v3438_v5 = vsel %vm14450_vm15, %v3413_v47, 0.0  ;;  %vm14506_vm15 = vcmp.ge.s32.totalorder %v12014_v34, 4  ;;  %v9288_v34 = vld [vmem:[#allocation12 + $0x2d8] sm:$0xf] }
 0x497   :  { %v3570_v17 = vmax.f32 %v3554_v55, 0.0  ;;  %3848 = vmatpush.bf16.msra.mxu0 %v8705_v59  ;;  %v3519_v18 = vsel %vm14449_vm0, %v3478_v20, 0.0  ;;  %vm3505_vm0 = vcmp.ge.s32.totalorder %v12003_v42, 4  ;;  %v9084_v42 = vld [vmem:[#allocation12 + $0x140] sm:$0xf] }
 0x498   :  { %v3286_v23 = vpop.f32.mrf.mxu3 }
 0x499   :  { %v3454_v9 = vadd.f32 %v3438_v5, %v3286_v23  ;;  %v12736_v4 = vpack.c.bf16 %v3570_v17, %v3569_v52 }
 0x49a   :  { %v3337_v29 = vpop.f32.mrf.mxu0 }
 0x49b   :  { %v3535_v41 = vadd.f32 %v3519_v18, %v3454_v9  ;;  %v3386_v28 = vpop.f32.mrf.mxu1  ;;  %v3407_v16 = vrot.slane %v3337_v29, 6 }
 0x49c   :  { %v3471_v45 = vrot.slane %v3386_v28, 4 }
 0x49d   :  { %v3412_v58 = vsel %vm2011_vm9, %v3406_v10, %v3407_v16  ;;  %v3555_v6 = vadd.f32 %v12645_v53, %v3535_v41 }
 0x49e   :  { %v3477_v55 = vsel %vm3474_vm6, %v3470_v3, %v3471_v45 }
 0x49f   :  { %v3571_v20 = vmax.f32 %v3555_v6, 0.0  ;;  %v3544_v6 = vadd.f32 %v12645_v53, %v12632_v11  ;;  %v9004_v11 = vld [vmem:[#allocation12 + $0xa8] sm:$0xf] }
 0x4a0   :  { %v3288_v61 = vpop.f32.mrf.mxu3 }
 0x4a1   :  { %v3455_v51 = vadd.f32 %v3412_v58, %v3288_v61 }
 0x4a2   :  { %v3340_v47 = vpop.f32.mrf.mxu0 }
 0x4a3   :  { %v3536_v1 = vadd.f32 %v3477_v55, %v3455_v51  ;;  %v3408_v0 = vrot.slane %v3340_v47, 6  ;;  %v3389_v14 = vpop.f32.mrf.mxu1 }
 0x4a4   :  { %v3472_v38 = vrot.slane %v3389_v14, 4 }
 0x4a5   :  { %v3556_v26 = vadd.f32 %v12645_v53, %v3536_v1  ;;  %v3411_v52 = vsel %vm2011_vm9, %v3407_v16, %v3408_v0 }
 0x4a6   :  { %v3476_v10 = vsel %vm3474_vm6, %v3471_v45, %v3472_v38  ;;  %v3440_v17 = vsel %vm2042_vm8, %v3411_v52, 0.0 }
 0x4a7   :  { %v3572_v59 = vmax.f32 %v3556_v26, 0.0  ;;  %v3521_v9 = vsel %vm3505_vm0, %v3476_v10, 0.0 }
 0x4a8   :  { %v3291_v3 = vpop.f32.mrf.mxu3 }
 0x4a9   :  { %v3456_v23 = vadd.f32 %v3440_v17, %v3291_v3  ;;  %v12753_v5 = vpack.c.bf16 %v3572_v59, %v3571_v20  ;;  %v9100_v17 = vld [vmem:[#allocation12 + $0x168] sm:$0xf] }
 0x4aa   :  { %v3342_v18 = vpop.f32.mrf.mxu0 }
 0x4ab   :  { %v3537_v29 = vadd.f32 %v3521_v9, %v3456_v23  ;;  %v3409_v41 = vrot.slane %v3342_v18, 6  ;;  %v3391_v28 = vpop.f32.mrf.mxu1  ;;  %v10097_v23 = vld [vmem:[#allocation12 + $0x170] sm:$0xf0]  ;;  %v9196_v9 = vld [vmem:[#allocation12 + $0x228] sm:$0xf] }
 0x4ac   :  { %v3473_v16 = vrot.slane %v3391_v28, 4  ;;  %v10121_v18 = vld [vmem:[#allocation12 + $0x230] sm:$0xf0]  ;;  %v9292_v28 = vld [vmem:[#allocation12 + $0x2e8] sm:$0xf] }
 0x4ad   :  { %v3425_v45 = vsel %vm2011_vm9, %v3409_v41, %v3394_v46  ;;  %v3410_v61 = vsel %vm2011_vm9, %v3408_v0, %v3409_v41  ;;  %v3557_v14 = vadd.f32 %v12645_v53, %v3537_v29  ;;  %v8992_v29 = vld [vmem:[#allocation12 + $0x90] sm:$0xf]  ;;  %v10070_v41 = vld [vmem:[#allocation12 + $0x98] sm:$0xf0] }
 0x4ae   :  { %v3426_v58 = vsel %vm2028_vm7, %v3425_v45, 0.0  ;;  %v3490_v51 = vsel %vm3474_vm6, %v3473_v16, %v3458_v2  ;;  %v3475_v55 = vsel %vm3474_vm6, %v3472_v38, %v3473_v16  ;;  %v3560_v2 = vmax.f32 %v3544_v6, 0.0  ;;  %v10145_v16 = vld [vmem:[#allocation12 + $0x2f0] sm:$0xf0]  ;;  %v9088_v45 = vld [vmem:[#allocation12 + $0x150] sm:$0xf] }
 0x4af   :  { %v3442_v30 = vadd.f32 %v3426_v58, %v12619_v13  ;;  %v3507_v46 = vsel %vm14506_vm15, %v3490_v51, 0.0  ;;  %v3573_v20 = vmax.f32 %v3557_v14, 0.0  ;;  %v9293_v58 = vor.u32 %v10145_v16, %v9292_v28  ;;  %v10067_v6 = vld [vmem:[#allocation12 + $0x80] sm:$0xf0]  ;;  %v10136_v16 = vld [vmem:[#allocation12 + $0x2a8] sm:$0xf0] }
 0x4b0   :  { %v3293_v47 = vpop.f32.mrf.mxu3 }
 0x4b1   :  { %v3523_v1 = vadd.f32 %v3507_v46, %v3442_v30  ;;  %v3457_v0 = vadd.f32 %v3410_v61, %v3293_v47  ;;  %v10094_v61 = vld [vmem:[#allocation12 + $0x158] sm:$0xf0]  ;;  %v8980_v46 = vld [vmem:[#allocation12 + $0x78] sm:$0xf]  ;;  %5073 = vmatpush.bf16.msrb.mxu0 %v9293_v58  ;;  %v9052_v58 = vld [vmem:[#allocation12 + $0x108] sm:$0xf] }
 0x4b2   :  { %v9089_v51 = vor.u32 %v10094_v61, %v9088_v45  ;;  %v10118_v30 = vld [vmem:[#allocation12 + $0x218] sm:$0xf0] }
 0x4b3   :  { %v3543_v57 = vadd.f32 %v12645_v53, %v3523_v1  ;;  %v3538_v26 = vadd.f32 %v3475_v55, %v3457_v0  ;;  %v9184_v55 = vld [vmem:[#allocation12 + $0x210] sm:$0xf]  ;;  %v8981_v0 = vor.u32 %v10067_v6, %v8980_v46  ;;  %v10109_v46 = vld [vmem:[#allocation12 + $0x1d0] sm:$0xf0] }
 0x4b4   :  { %v9185_v47 = vor.u32 %v10118_v30, %v9184_v55  ;;  %v9280_v1 = vld [vmem:[#allocation12 + $0x2d0] sm:$0xf]  ;;  %v9148_v55 = vld [vmem:[#allocation12 + $0x1c8] sm:$0xf] }
 0x4b5   :  { %v3559_v52 = vmax.f32 %v3543_v57, 0.0  ;;  %v3558_v38 = vadd.f32 %v12645_v53, %v3538_v26  ;;  %v10073_v53 = vld [vmem:[#allocation12 + $0xb0] sm:$0xf0]  ;;  %v9076_v57 = vld [vmem:[#allocation12 + $0x138] sm:$0xf] }
 0x4b6   :  { %v9005_v3 = vor.u32 %v10073_v53, %v9004_v11  ;;  %v10091_v26 = vld [vmem:[#allocation12 + $0x140] sm:$0xf0]  ;;  %v9268_v11 = vld [vmem:[#allocation12 + $0x2b8] sm:$0xf]  ;;  %v8944_v6 = vld [vmem:[#allocation12 + $0x30] sm:$0xf] }
 0x4b7   :  { %v3575_v13 = vpack.c.bf16 %v3560_v2, %v3559_v52  ;;  %v3574_v10 = vmax.f32 %v3558_v38, 0.0  ;;  %v9172_v2 = vld [vmem:[#allocation12 + $0x1f8] sm:$0xf]  ;;  %v9077_v52 = vor.u32 %v10091_v26, %v9076_v57  ;;  %v10115_v38 = vld [vmem:[#allocation12 + $0x200] sm:$0xf0] }
 0x4b8   :  { %4926 = vmatpush.bf16.msra.mxu1 %v9005_v3  ;;  %v10139_v53 = vld [vmem:[#allocation12 + $0x2c0] sm:$0xf0]  ;;  %v9064_v3 = vld [vmem:[#allocation12 + $0x120] sm:$0xf]  ;;  %v9040_v57 = vld [vmem:[#allocation12 + $0xf0] sm:$0xf] }
 0x4b9   :  { %3751 = vmatmul.bf16.vlgmr.msra.gmra.mxu2 %v3575_v13  ;;  %3800 = vmatmul.bf16.vlgmr.msra.gmra.mxu3 %v3575_v13  ;;  %v12780_v59 = vpack.c.bf16 %v3574_v10, %v3573_v20  ;;  %v8968_v20 = vld [vmem:[#allocation12 + $0x60] sm:$0xf]  ;;  %v9173_v10 = vor.u32 %v10115_v38, %v9172_v2  ;;  %v10082_v26 = vld [vmem:[#allocation12 + $0xf8] sm:$0xf0]  ;;  %v9136_v38 = vld [vmem:[#allocation12 + $0x1b0] sm:$0xf] }
 0x4ba   :  { %3849 = vmatmul.bf16.vlgmr.msra.gmra.mxu0 %v3575_v13  ;;  %v10064_v13 = vld [vmem:[#allocation12 + $0x68] sm:$0xf0] }
 0x4c9   :  { %3756 = vmatmul.bf16.gmra.mxu2 %v12658_v32  ;;  %3805 = vmatmul.bf16.gmra.mxu3 %v12658_v32 }
 0x4ca   :  { %3854 = vmatmul.bf16.gmra.mxu0 %v12658_v32  ;;  %v9101_v32 = vor.u32 %v10097_v23, %v9100_v17  ;;  %v8969_v17 = vor.u32 %v10064_v13, %v8968_v20  ;;  %v10088_v23 = vld [vmem:[#allocation12 + $0x128] sm:$0xf0]  ;;  %v10106_v20 = vld [vmem:[#allocation12 + $0x1b8] sm:$0xf0]  ;;  %v8932_v13 = vld [vmem:[#allocation12 + $0x18] sm:$0xf] }
 0x4cc   :  { %4975 = vmatpush.bf16.msrb.mxu2 %v9101_v32  ;;  %v10112_v32 = vld [vmem:[#allocation12 + $0x1e8] sm:$0xf0] }
 0x4d0   :  { %4976 = vmatpush.bf16.msrb.mxu2 %v9089_v51  ;;  %v10085_v51 = vld [vmem:[#allocation12 + $0x110] sm:$0xf0] }
 0x4d1   :  { %v9053_v30 = vor.u32 %v10085_v51, %v9052_v58  ;;  %v9016_v58 = vld [vmem:[#allocation12 + $0xc0] sm:$0xf]  ;;  %v10076_v51 = vld [vmem:[#allocation12 + $0xc8] sm:$0xf0] }
 0x4d4   :  { %4977 = vmatpush.bf16.msrb.mxu2 %v9077_v52  ;;  %v9041_v52 = vor.u32 %v10082_v26, %v9040_v57  ;;  %v8808_v26 = vld [vmem:[%s14607_s4 + $0x20] sm:$0xf] }
 0x4d9   :  { %3761 = vmatmul.bf16.gmra.mxu2 %v12675_v49  ;;  %3810 = vmatmul.bf16.gmra.mxu3 %v12675_v49 }
 0x4da   :  { %3859 = vmatmul.bf16.gmra.mxu0 %v12675_v49  ;;  %v9197_v49 = vor.u32 %v10121_v18, %v9196_v9  ;;  %v9160_v9 = vld [vmem:[#allocation12 + $0x1e0] sm:$0xf]  ;;  %v9269_v18 = vor.u32 %v10139_v53, %v9268_v11  ;;  %v10055_v11 = vld [vmem:[#allocation12 + $0x20] sm:$0xf0]  ;;  %v10130_v53 = vld [vmem:[#allocation12 + $0x278] sm:$0xf0] }
 0x4db   :  { %v9161_v28 = vor.u32 %v10112_v32, %v9160_v9  ;;  %v9124_v9 = vld [vmem:[#allocation12 + $0x198] sm:$0xf] }
 0x4dc   :  { %5024 = vmatpush.bf16.msrb.mxu3 %v9197_v49  ;;  %v9065_v49 = vor.u32 %v10088_v23, %v9064_v3  ;;  %v8933_v3 = vor.u32 %v10055_v11, %v8932_v13  ;;  %v10079_v23 = vld [vmem:[#allocation12 + $0xe0] sm:$0xf0]  ;;  %v10022_v13 = vld [vmem:[%s14607_s4 + $0x14] sm:$0xf0] }
 0x4de   :  { %4978 = vmatpush.bf16.msrb.mxu2 %v9065_v49  ;;  %v10103_v49 = vld [vmem:[#allocation12 + $0x1a0] sm:$0xf0] }
 0x4e0   :  { %5025 = vmatpush.bf16.msrb.mxu3 %v9185_v47  ;;  %v9149_v47 = vor.u32 %v10109_v46, %v9148_v55  ;;  %v9112_v55 = vld [vmem:[#allocation12 + $0x180] sm:$0xf]  ;;  %v10100_v46 = vld [vmem:[#allocation12 + $0x188] sm:$0xf0] }
 0x4e2   :  { %4979 = vmatpush.bf16.msrb.mxu2 %v9053_v30  ;;  %v9017_v30 = vor.u32 %v10076_v51, %v9016_v58  ;;  %v10024_v58 = vld [vmem:[%s14607_s4 + $0x2c] sm:$0xf]  ;;  %v8818_v51 = vld [vmem:[%s14607_s4 + $0x38] sm:$0xf0] }
 0x4e4   :  { %5026 = vmatpush.bf16.msrb.mxu3 %v9173_v10  ;;  %v9137_v10 = vor.u32 %v10106_v20, %v9136_v38  ;;  %v8794_v38 = vld [vmem:[%s14607_s4 + $0x10] sm:$0xf0]  ;;  %v8800_v20 = vld [vmem:[%s14607_s4 + $0x8] sm:$0xf] }
 0x4e6   :  { %4980 = vmatpush.bf16.msrb.mxu2 %v9041_v52 }
 0x4e8   :  { %5027 = vmatpush.bf16.msrb.mxu3 %v9161_v28  ;;  %v9125_v28 = vor.u32 %v10103_v49, %v9124_v9 }
 0x4e9   :  { %3766 = vmatmul.bf16.gmra.mxu2 %v12692_v7  ;;  %3815 = vmatmul.bf16.gmra.mxu3 %v12692_v7 }
 0x4ea   :  { %3864 = vmatmul.bf16.gmra.mxu0 %v12692_v7  ;;  %v8993_v7 = vor.u32 %v10070_v41, %v8992_v29  ;;  %v8956_v29 = vld [vmem:[#allocation12 + $0x48] sm:$0xf]  ;;  %v10061_v41 = vld [vmem:[#allocation12 + $0x50] sm:$0xf0] }
 0x4eb   :  { %v8957_v45 = vor.u32 %v10061_v41, %v8956_v29  ;;  %v8920_v29 = vld [vmem:[#allocation12] sm:$0xf]  ;;  %v10052_v41 = vld [vmem:[#allocation12 + $0x8] sm:$0xf0] }
 0x4ec   :  { %4927 = vmatpush.bf16.msra.mxu1 %v8993_v7  ;;  %v9256_v7 = vld [vmem:[#allocation12 + $0x2a0] sm:$0xf]  ;;  %5028 = vmatpush.bf16.msrb.mxu3 %v9149_v47  ;;  %v8792_v47 = vld [vmem:[%s14607_s4] sm:$0xf] }
 0x4ed   :  { %v9257_v61 = vor.u32 %v10136_v16, %v9256_v7  ;;  %v9220_v7 = vld [vmem:[#allocation12 + $0x258] sm:$0xf]  ;;  %v10127_v16 = vld [vmem:[#allocation12 + $0x260] sm:$0xf0] }
 0x4f0   :  { %4928 = vmatpush.bf16.msra.mxu1 %v8981_v0  ;;  %5029 = vmatpush.bf16.msrb.mxu3 %v9137_v10  ;;  %v8802_v10 = vld [vmem:[%s14607_s4 + $0x18] sm:$0xf0] }
 0x4f4   :  { %4929 = vmatpush.bf16.msra.mxu1 %v8969_v17  ;;  %v9028_v17 = vld [vmem:[#allocation12 + $0xd8] sm:$0xf]  ;;  %5030 = vmatpush.bf16.msrb.mxu3 %v9125_v28  ;;  %v10023_v28 = vld [vmem:[%s14607_s4 + $0x24] sm:$0xf] }
 0x4f8   :  { %4930 = vmatpush.bf16.msra.mxu1 %v8957_v45  ;;  %v8921_v45 = vor.u32 %v10052_v41, %v8920_v29 }
 0x4f9   :  { %3771 = vmatmul.bf16.gmra.mxu2 %v12717_v35  ;;  %3820 = vmatmul.bf16.gmra.mxu3 %v12717_v35 }
 0x4fa   :  { %3869 = vmatmul.bf16.gmra.mxu0 %v12717_v35  ;;  %v10142_v35 = vld [vmem:[#allocation12 + $0x2d8] sm:$0xf0] }
 0x4fb   :  { %v9281_v14 = vor.u32 %v10142_v35, %v9280_v1  ;;  %v10058_v1 = vld [vmem:[#allocation12 + $0x38] sm:$0xf0]  ;;  %v9244_v35 = vld [vmem:[#allocation12 + $0x288] sm:$0xf] }
 0x4fc   :  { %v8945_v0 = vor.u32 %v10058_v1, %v8944_v6  ;;  %v10021_v6 = vld [vmem:[%s14607_s4 + $0xc] sm:$0xf0]  ;;  %v9113_v1 = vor.u32 %v10100_v46, %v9112_v55 }
 0x4fd   :  { %5074 = vmatpush.bf16.msrb.mxu0 %v9281_v14  ;;  %v10133_v14 = vld [vmem:[#allocation12 + $0x290] sm:$0xf0] }
 0x4fe   :  { %v9245_v2 = vor.u32 %v10133_v14, %v9244_v35  ;;  %4931 = vmatpush.bf16.msra.mxu1 %v8945_v0  ;;  %v12803_v35 = vor.u32 %v10021_v6, %v8792_v47  ;;  %v9208_v0 = vld [vmem:[#allocation12 + $0x240] sm:$0xf]  ;;  %v10124_v14 = vld [vmem:[#allocation12 + $0x248] sm:$0xf0]  ;;  %5031 = vmatpush.bf16.msrb.mxu3 %v9113_v1 }
 0x4ff   :  { %v9209_v57 = vor.u32 %v10124_v14, %v9208_v0  ;;  %v8840_v0 = vld [vmem:[%s14607_s4 + $0x60] sm:$0xf]  ;;  %v10033_v14 = vld [vmem:[%s14607_s4 + $0x6c] sm:$0xf0] }
 0x501   :  { %5075 = vmatpush.bf16.msrb.mxu0 %v9269_v18  ;;  %v9029_v18 = vor.u32 %v10079_v23, %v9028_v17 }
 0x502   :  { %4932 = vmatpush.bf16.msra.mxu1 %v8933_v3  ;;  %v10029_v3 = vld [vmem:[%s14607_s4 + $0x4c] sm:$0xf0] }
 0x503   :  { %4981 = vmatpush.bf16.msrb.mxu2 %v9029_v18 }
 0x505   :  { %5076 = vmatpush.bf16.msrb.mxu0 %v9257_v61  ;;  %v9221_v61 = vor.u32 %v10127_v16, %v9220_v7  ;;  %v8810_v16 = vld [vmem:[%s14607_s4 + $0x30] sm:$0xf0] }
 0x506   :  { %4933 = vmatpush.bf16.msra.mxu1 %v8921_v45  ;;  %v8816_v45 = vld [vmem:[%s14607_s4 + $0x28] sm:$0xf]  ;;  %v12887_v6 = vor.u32 %v10023_v28, %v8810_v16 }
 0x507   :  { %4982 = vmatpush.bf16.msrb.mxu2 %v9017_v30 }
 0x508   :  { %14608 = vst [vmem:[#allocation33_spill] sm:$0xff] %v12887_v6 }
 0x509   :  { %3776 = vmatmul.bf16.gmra.mxu2 %v12736_v4  ;;  %3825 = vmatmul.bf16.gmra.mxu3 %v12736_v4 }
 0x50a   :  { %3874 = vmatmul.bf16.gmra.mxu0 %v12736_v4  ;;  %v9232_v4 = vld [vmem:[#allocation12 + $0x270] sm:$0xf]  ;;  %4934 = vmatmul.bf16.vlgmr.msra.gmra.mxu1 %v12803_v35 }
 0x50b   :  { %5077 = vmatpush.bf16.msrb.mxu0 %v9245_v2  ;;  %v9233_v32 = vor.u32 %v10130_v53, %v9232_v4  ;;  %v10025_v2 = vld [vmem:[%s14607_s4 + $0x2c] sm:$0xf0]  ;;  %v12841_v4 = vor.u32 %v10022_v13, %v8800_v20  ;;  %v8824_v53 = vld [vmem:[%s14607_s4 + $0x40] sm:$0xf] }
 0x50c   :  { %v12815_v52 = vor.u32 %v10025_v2, %v8808_v26  ;;  %v12851_v23 = vor.u32 %v10029_v3, %v8824_v53  ;;  %v12899_v26 = vor.u32 %v10033_v14, %v8840_v0  ;;  %v10028_v0 = vld [vmem:[%s14607_s4 + $0x4c] sm:$0xf]  ;;  %v8834_v14 = vld [vmem:[%s14607_s4 + $0x58] sm:$0xf0] }
 0x50f   :  { %5078 = vmatpush.bf16.msrb.mxu0 %v9233_v32 }
 0x513   :  { %5079 = vmatpush.bf16.msrb.mxu0 %v9221_v61  ;;  %v10026_v61 = vld [vmem:[%s14607_s4 + $0x34] sm:$0xf0] }
 0x514   :  { %v12889_v1 = vor.u32 %v10026_v61, %v8816_v45  ;;  %v8826_v61 = vld [vmem:[%s14607_s4 + $0x50] sm:$0xf0] }
 0x516   :  { %14609 = vst [vmem:[#allocation37_spill] sm:$0xff] %v12889_v1 }
 0x517   :  { %5080 = vmatpush.bf16.msrb.mxu0 %v9209_v57  ;;  %v12897_v57 = vor.u32 %v10024_v58, %v8818_v51 }
 0x519   :  { %3781 = vmatmul.bf16.gmra.mxu2 %v12753_v5  ;;  %3830 = vmatmul.bf16.gmra.mxu3 %v12753_v5  ;;  %14610 = vst [vmem:[#allocation38_spill] sm:$0xff] %v12897_v57 }
 0x51a   :  { %3879 = vmatmul.bf16.gmra.mxu0 %v12753_v5  ;;  %4939 = vmatmul.bf16.gmra.mxu1 %v12815_v52  ;;  %v10019_v5 = vld [vmem:[%s14607_s4 + $0x4] sm:$0xf] }
 0x51b   :  { %v12839_v11 = vor.u32 %v10019_v5, %v8794_v38 }
 0x529   :  { %3786 = vmatmul.bf16.gmra.mxu2 %v12780_v59  ;;  %3835 = vmatmul.bf16.gmra.mxu3 %v12780_v59 }
 0x52a   :  { %3884 = vmatmul.bf16.gmra.mxu0 %v12780_v59  ;;  %v10020_v59 = vld [vmem:[%s14607_s4 + $0xc] sm:$0xf]  ;;  %4944 = vmatmul.bf16.gmra.mxu1 %v12851_v23 }
 0x52b   :  { %v12849_v17 = vor.u32 %v10020_v59, %v8802_v10 }
 0x537   :  { %v12853_v9 = vpop.f32.mrf.mxu0 }
 0x538   :  { %v14452_v29 = vrot.slane %v12853_v9, 4 }
 0x539   :  { %4983 = vmatmul.bf16.vlgmr.msrb.gmra.mxu2 %v12839_v11  ;;  %5032 = vmatmul.bf16.vlgmr.msrb.gmra.mxu3 %v12841_v4 }
 0x53a   :  { %5081 = vmatmul.bf16.vlgmr.msrb.gmra.mxu0 %v12849_v17  ;;  %4949 = vmatmul.bf16.gmra.mxu1 %v12899_v26 }
 0x53c   :  { %v12859_v32 = vpop.f32.mrf.mxu2  ;;  %v12861_v18 = vpop.f32.mrf.mxu3 }
 0x53d   :  { %v14451_v46 = vrot.slane %v12861_v18, 6 }
 0x53f   :  { %v3852_v49 = vpop.f32.mrf.mxu0 }
 0x540   :  { %v3955_v41 = vrot.slane %v3852_v49, 4 }
 0x542   :  { %v3984_v7 = vsel %vm3474_vm6, %v14452_v29, %v3955_v41 }
 0x544   :  { %v3754_v55 = vpop.f32.mrf.mxu2  ;;  %v3803_v30 = vpop.f32.mrf.mxu3 }
 0x545   :  { %v3891_v47 = vrot.slane %v3803_v30, 6  ;;  %v10030_v30 = vld [vmem:[%s14607_s4 + $0x54] sm:$0xf0] }
 0x547   :  { %v3920_v2 = vsel %vm2011_vm9, %v14451_v46, %v3891_v47  ;;  %v3855_v5 = vpop.f32.mrf.mxu0 }
 0x548   :  { %v3939_v38 = vadd.f32 %v3920_v2, %v3754_v55  ;;  %v3956_v20 = vrot.slane %v3855_v5, 4  ;;  %v8832_v55 = vld [vmem:[%s14607_s4 + $0x48] sm:$0xf] }
 0x549   :  { %4988 = vmatmul.bf16.gmra.mxu2 %v12887_v6  ;;  %5037 = vmatmul.bf16.gmra.mxu3 %v12889_v1 }
 0x54a   :  { %v12907_v13 = vadd.f32 %v3984_v7, %v3939_v38  ;;  %v3983_v59 = vsel %vm3474_vm6, %v3955_v41, %v3956_v20  ;;  %5086 = vmatmul.bf16.gmra.mxu0 %v12897_v57  ;;  %v10027_v41 = vld [vmem:[%s14607_s4 + $0x44] sm:$0xf] }
 0x54b   :  { %v3988_v58 = vsel %vm3493_vm5, %v3983_v59, 0.0  ;;  %v12939_v38 = vld [vmem:[#allocation10] ss:$0 sm:$0xff]  ;;  %v12941_v59 = vor.u32 %v10027_v41, %v8826_v61 }
 0x54c   :  { %v3757_v10 = vpop.f32.mrf.mxu2  ;;  %v3806_v53 = vpop.f32.mrf.mxu3 }
 0x54d   :  { %v3892_v3 = vrot.slane %v3806_v53, 6  ;;  %v8856_v53 = vld [vmem:[%s14607_s4 + $0x80] sm:$0xf] }
 0x54f   :  { %v3919_v49 = vsel %vm2011_vm9, %v3891_v47, %v3892_v3  ;;  %v3857_v28 = vpop.f32.mrf.mxu0 }
 0x550   :  { %v3924_v16 = vsel %vm2030_vm10, %v3919_v49, 0.0  ;;  %v3957_v45 = vrot.slane %v3857_v28, 4  ;;  %v10037_v49 = vld [vmem:[%s14607_s4 + $0x8c] sm:$0xf0]  ;;  %v12951_v28 = vor.u32 %v10028_v0, %v8834_v14 }
 0x551   :  { %v3940_v7 = vadd.f32 %v3924_v16, %v3757_v10  ;;  %v12943_v10 = vor.u32 %v10030_v30, %v8832_v55  ;;  %v12953_v16 = vor.u32 %v10037_v49, %v8856_v53 }
 0x552   :  { %v3982_v51 = vsel %vm3474_vm6, %v3956_v20, %v3957_v45  ;;  %14612 = vst [vmem:[#allocation40_spill] sm:$0xff] %v12951_v28 }
 0x553   :  { %v4004_v47 = vadd.f32 %v3988_v58, %v3940_v7  ;;  %14611 = vst [vmem:[#allocation36_spill] sm:$0xff] %v12943_v10  ;;  %4954 = vmatmul.bf16.gmra.mxu1 %v12953_v16 }
 0x554   :  { %v3759_v2 = vpop.f32.mrf.mxu2  ;;  %v3808_v5 = vpop.f32.mrf.mxu3  ;;  %14613 = vst [vmem:[#allocation39_spill] sm:$0xff] %v12953_v16 }
 0x555   :  { %v3893_v20 = vrot.slane %v3808_v5, 6  ;;  %v4024_v7 = vadd.f32 %v12939_v38, %v4004_v47 }
 0x557   :  { %v3918_v41 = vsel %vm2011_vm9, %v3892_v3, %v3893_v20  ;;  %v3860_v61 = vpop.f32.mrf.mxu0  ;;  %v4040_v0 = vmax.f32 %v4024_v7, 0.0 }
 0x558   :  { %v3941_v58 = vadd.f32 %v3918_v41, %v3759_v2  ;;  %v3958_v55 = vrot.slane %v3860_v61, 4 }
 0x559   :  { %4993 = vmatmul.bf16.gmra.mxu2 %v12941_v59  ;;  %5042 = vmatmul.bf16.gmra.mxu3 %v12943_v10  ;;  %v4056_v49 = vadd.f32 %v4040_v0, %v3065_v31  ;;  %v8848_v31 = vld [vmem:[%s14607_s4 + $0x68] sm:$0xf]  ;;  %v10034_v0 = vld [vmem:[%s14607_s4 + $0x74] sm:$0xf0] }
 0x55a   :  { %v4005_v30 = vadd.f32 %v3982_v51, %v3941_v58  ;;  %v3981_v5 = vsel %vm3474_vm6, %v3957_v45, %v3958_v55  ;;  %5091 = vmatmul.bf16.gmra.mxu0 %v12951_v28  ;;  %v14614_v58 = vmax.f32 %v12512_v62, 0.0  ;;  %v12999_v29 = vor.u32 %v10034_v0, %v8848_v31 }
 0x55c   :  { %v3762_v47 = vpop.f32.mrf.mxu2  ;;  %v3811_v14 = vpop.f32.mrf.mxu3  ;;  %v4025_v3 = vadd.f32 %v12939_v38, %v4005_v30  ;;  %v10031_v30 = vld [vmem:[%s14607_s4 + $0x64] sm:$0xf]  ;;  %14617 = vst [vmem:[#allocation42_spill] sm:$0xff] %v12999_v29 }
 0x55d   :  { %v3894_v53 = vrot.slane %v3811_v14, 6 }
 0x55e   :  { %v4041_v2 = vmax.f32 %v4025_v3, 0.0 }
 0x55f   :  { %v3917_v51 = vsel %vm2011_vm9, %v3893_v20, %v3894_v53  ;;  %v3862_v41 = vpop.f32.mrf.mxu0  ;;  %v3990_v20 = vsel %vm3495_vm4, %v3981_v5, 0.0 }
 0x560   :  { %v3926_v45 = vsel %vm2032_vm11, %v3917_v51, 0.0  ;;  %v3959_v61 = vrot.slane %v3862_v41, 4  ;;  %v4057_v7 = vadd.f32 %v4041_v2, %v14614_v58  ;;  %v10032_v2 = vld [vmem:[%s14607_s4 + $0x6c] sm:$0xf]  ;;  %v8850_v51 = vld [vmem:[%s14607_s4 + $0x78] sm:$0xf0]  ;;  %v12997_v58 = vor.u32 %v10031_v30, %v8842_v50 }
 0x561   :  { %v3942_v46 = vadd.f32 %v3926_v45, %v3762_v47  ;;  %v4072_v47 = vmax.f32 %v4056_v49, 0.0  ;;  %v10041_v49 = vld [vmem:[%s14607_s4 + $0xac] sm:$0xf0] }
 0x562   :  { %v3980_v62 = vsel %vm3474_vm6, %v3958_v55, %v3959_v61  ;;  %v4073_v14 = vmax.f32 %v4057_v7, 0.0  ;;  %14616 = vst [vmem:[#allocation43_spill] sm:$0xff] %v12997_v58  ;;  %v13007_v7 = vor.u32 %v10032_v2, %v8850_v51 }
 0x563   :  { %v4006_v3 = vadd.f32 %v3990_v20, %v3942_v46  ;;  %v8872_v46 = vld [vmem:[%s14607_s4 + $0xa0] sm:$0xf] }
 0x564   :  { %v3764_v41 = vpop.f32.mrf.mxu2  ;;  %v3813_v5 = vpop.f32.mrf.mxu3  ;;  %v12995_v45 = vpack.c.bf16 %v4073_v14, %v4072_v47  ;;  %14618 = vst [vmem:[#allocation45_spill] sm:$0xff] %v13007_v7  ;;  %v13009_v20 = vor.u32 %v10041_v49, %v8872_v46  ;;  %v14620_v49 = vmax.f32 %v12525_v12, 0.0  ;;  %v8858_v12 = vld [vmem:[%s14607_s4 + $0x90] sm:$0xf0] }
 0x565   :  { %v3895_v55 = vrot.slane %v3813_v5, 6  ;;  %v4026_v47 = vadd.f32 %v12939_v38, %v4006_v3 }
 0x566   :  { %14615 = vst [vmem:[#allocation41_spill] sm:$0xff] %v12995_v45  ;;  %4959 = vmatmul.bf16.gmra.mxu1 %v13009_v20  ;;  %v14621_v45 = vmax.f32 %v12528_v37, 0.0 }
 0x567   :  { %14619 = vst [vmem:[#allocation46_spill] sm:$0xff] %v13009_v20  ;;  %v3916_v30 = vsel %vm2011_vm9, %v3894_v53, %v3895_v55  ;;  %v3865_v50 = vpop.f32.mrf.mxu0  ;;  %v4042_v2 = vmax.f32 %v4026_v47, 0.0 }
 0x568   :  { %v3943_v31 = vadd.f32 %v3916_v30, %v3764_v41  ;;  %v3960_v0 = vrot.slane %v3865_v50, 4 }
 0x569   :  { %4998 = vmatmul.bf16.gmra.mxu2 %v12997_v58  ;;  %5047 = vmatmul.bf16.gmra.mxu3 %v12999_v29  ;;  %v4058_v30 = vadd.f32 %v4042_v2, %v14620_v49  ;;  %v8866_v49 = vld [vmem:[%s14607_s4 + $0x98] sm:$0xf0]  ;;  %v9090_v29 = vld [vmem:[#allocation12 + $0x15c] sm:$0xf0] }
 0x56a   :  { %v4007_v14 = vadd.f32 %v3980_v62, %v3943_v31  ;;  %v3979_v5 = vsel %vm3474_vm6, %v3959_v61, %v3960_v0  ;;  %5096 = vmatmul.bf16.gmra.mxu0 %v13007_v7  ;;  %v10093_v7 = vld [vmem:[#allocation12 + $0x154] sm:$0xf] }
 0x56b   :  { %v3992_v2 = vsel %vm3497_vm3, %v3979_v5, 0.0 }
 0x56c   :  { %v3767_v3 = vpop.f32.mrf.mxu2  ;;  %v3816_v51 = vpop.f32.mrf.mxu3  ;;  %v4027_v53 = vadd.f32 %v12939_v38, %v4007_v14  ;;  %v10035_v14 = vld [vmem:[%s14607_s4 + $0x84] sm:$0xf] }
 0x56d   :  { %v3896_v46 = vrot.slane %v3816_v51, 6 }
 0x56e   :  { %v4043_v41 = vmax.f32 %v4027_v53, 0.0 }
 0x56f   :  { %v3915_v62 = vsel %vm2011_vm9, %v3895_v55, %v3896_v46  ;;  %v3867_v50 = vpop.f32.mrf.mxu0  ;;  %v8864_v55 = vld [vmem:[%s14607_s4 + $0x88] sm:$0xf] }
 0x570   :  { %v3928_v61 = vsel %vm2034_vm12, %v3915_v62, 0.0  ;;  %v3961_v31 = vrot.slane %v3867_v50, 4  ;;  %v4059_v47 = vadd.f32 %v4043_v41, %v14621_v45  ;;  %v10038_v45 = vld [vmem:[%s14607_s4 + $0x94] sm:$0xf0]  ;;  %v10036_v41 = vld [vmem:[%s14607_s4 + $0x8c] sm:$0xf] }
 0x571   :  { %v3944_v33 = vadd.f32 %v3928_v61, %v3767_v3  ;;  %v4074_v3 = vmax.f32 %v4058_v30, 0.0  ;;  %v13053_v61 = vor.u32 %v10035_v14, %v8858_v12  ;;  %v13055_v36 = vor.u32 %v10038_v45, %v8864_v55  ;;  %v10045_v30 = vld [vmem:[%s14607_s4 + $0xcc] sm:$0xf0] }
 0x572   :  { %v3978_v37 = vsel %vm3474_vm6, %v3960_v0, %v3961_v31  ;;  %v4075_v51 = vmax.f32 %v4059_v47, 0.0  ;;  %v13063_v47 = vor.u32 %v10036_v41, %v8866_v49  ;;  %v9102_v41 = vld [vmem:[#allocation12 + $0x174] sm:$0xf0]  ;;  %v10120_v49 = vld [vmem:[#allocation12 + $0x22c] sm:$0xf] }
 0x573   :  { %v4008_v53 = vadd.f32 %v3992_v2, %v3944_v33  ;;  %14623 = vst [vmem:[#allocation44_spill] sm:$0xff] %v13053_v61  ;;  %v8888_v33 = vld [vmem:[%s14607_s4 + $0xc0] sm:$0xf] }
 0x574   :  { %v3769_v62 = vpop.f32.mrf.mxu2  ;;  %v3818_v5 = vpop.f32.mrf.mxu3  ;;  %v13051_v50 = vpack.c.bf16 %v4075_v51, %v4074_v3  ;;  %14624 = vst [vmem:[#allocation47_spill] sm:$0xff] %v13055_v36  ;;  %v13065_v2 = vor.u32 %v10045_v30, %v8888_v33  ;;  %v9006_v3 = vld [vmem:[#allocation12 + $0xb4] sm:$0xf0] }
 0x575   :  { %v3897_v0 = vrot.slane %v3818_v5, 6  ;;  %14625 = vst [vmem:[#allocation48_spill] sm:$0xff] %v13063_v47  ;;  %v9009_v55 = vor.u32 %v10072_v27, %v9006_v3  ;;  %v4028_v45 = vadd.f32 %v12939_v38, %v4008_v53  ;;  %v9198_v33 = vld [vmem:[#allocation12 + $0x234] sm:$0xf0]  ;;  %v10069_v53 = vld [vmem:[#allocation12 + $0x94] sm:$0xf] }
 0x576   :  { %14622 = vst [vmem:[#allocation34_spill] sm:$0xff] %v13051_v50  ;;  %v10096_v50 = vld [vmem:[#allocation12 + $0x16c] sm:$0xf]  ;;  %4964 = vmatmul.bf16.gmra.mxu1 %v13065_v2  ;;  %v8994_v3 = vld [vmem:[#allocation12 + $0x9c] sm:$0xf0] }
 0x577   :  { %14626 = vst [vmem:[#allocation32_spill] sm:$0xff] %v13065_v2  ;;  %v3914_v14 = vsel %vm2011_vm9, %v3896_v46, %v3897_v0  ;;  %v13069_v12 = vpop.f32.mrf.mxu0  ;;  %v9105_v27 = vor.u32 %v10096_v50, %v9102_v41  ;;  %5122 = vmatpush.bf16.msrb.mxu1 %v9009_v55  ;;  %v9093_v41 = vor.u32 %v10093_v7, %v9090_v29  ;;  %v10117_v55 = vld [vmem:[#allocation12 + $0x214] sm:$0xf]  ;;  %v10066_v2 = vld [vmem:[#allocation12 + $0x7c] sm:$0xf] }
 0x578   :  { %v3945_v51 = vadd.f32 %v3914_v14, %v3769_v62  ;;  %v14469_v5 = vrot.slane %v13069_v12, 4  ;;  %v9201_v62 = vor.u32 %v10120_v49, %v9198_v33  ;;  %v10144_v14 = vld [vmem:[#allocation12 + $0x2ec] sm:$0xf]  ;;  %v9186_v49 = vld [vmem:[#allocation12 + $0x21c] sm:$0xf0] }
 0x579   :  { %5003 = vmatmul.bf16.gmra.mxu2 %v13053_v61  ;;  %5052 = vmatmul.bf16.gmra.mxu3 %v13055_v36  ;;  %v4044_v36 = vmax.f32 %v4028_v45, 0.0  ;;  %v9189_v33 = vor.u32 %v10117_v55, %v9186_v49  ;;  %v8982_v45 = vld [vmem:[#allocation12 + $0x84] sm:$0xf0]  ;;  %v8874_v29 = vld [vmem:[%s14607_s4 + $0xb0] sm:$0xf0]  ;;  %v14628_v55 = vmax.f32 %v12544_v60, 0.0 }
 0x57a   :  { %v4009_v30 = vadd.f32 %v3978_v37, %v3945_v51  ;;  %v3977_v46 = vsel %vm3474_vm6, %v3961_v31, %v14469_v5  ;;  %5101 = vmatmul.bf16.gmra.mxu0 %v13063_v47  ;;  %5171 = vmatpush.bf16.msra.mxu2 %v9105_v27  ;;  %v8997_v37 = vor.u32 %v10069_v53, %v8994_v3  ;;  %v9294_v51 = vld [vmem:[#allocation12 + $0x2f4] sm:$0xf0]  ;;  %v10141_v47 = vld [vmem:[#allocation12 + $0x2d4] sm:$0xf]  ;;  %v8880_v49 = vld [vmem:[%s14607_s4 + $0xa8] sm:$0xf] }
 0x57b   :  { %5220 = vmatpush.bf16.msra.mxu3 %v9201_v62  ;;  %v9297_v50 = vor.u32 %v10144_v14, %v9294_v51  ;;  %v8985_v7 = vor.u32 %v10066_v2, %v8982_v45  ;;  %v9282_v62 = vld [vmem:[#allocation12 + $0x2dc] sm:$0xf0]  ;;  %v14627_v14 = vmax.f32 %v12541_v15, 0.0  ;;  %v10040_v45 = vld [vmem:[%s14607_s4 + $0xac] sm:$0xf] }
 0x57c   :  { %v3772_v61 = vpop.f32.mrf.mxu2  ;;  %v13081_v20 = vpop.f32.mrf.mxu3  ;;  %v4029_v31 = vadd.f32 %v12939_v38, %v4009_v30  ;;  %v10039_v30 = vld [vmem:[%s14607_s4 + $0xa4] sm:$0xf]  ;;  %5123 = vmatpush.bf16.msrb.mxu1 %v8997_v37  ;;  %v10042_v37 = vld [vmem:[%s14607_s4 + $0xb4] sm:$0xf0]  ;;  %v9285_v2 = vor.u32 %v10141_v47, %v9282_v62  ;;  %v14630_v47 = vrot.slane %v13069_v12, 4 }
 0x57d   :  { %v14474_v5 = vrot.slane %v13081_v20, 6  ;;  %5269 = vmatpush.bf16.msra.mxu0 %v9297_v50  ;;  %v4060_v51 = vadd.f32 %v4044_v36, %v14627_v14  ;;  %v10090_v50 = vld [vmem:[#allocation12 + $0x13c] sm:$0xf]  ;;  %v3994_v36 = vsel %vm14497_vm2, %v3977_v46, 0.0  ;;  %v13126_v28 = vor.u32 %v10039_v30, %v8874_v29 }
 0x57e   :  { %v4045_v3 = vmax.f32 %v4029_v31, 0.0  ;;  %5172 = vmatpush.bf16.msra.mxu2 %v9093_v41  ;;  %v9078_v31 = vld [vmem:[#allocation12 + $0x144] sm:$0xf0]  ;;  %v10114_v14 = vld [vmem:[#allocation12 + $0x1fc] sm:$0xf]  ;;  %vm14649_vm2 = vcmp.ge.s32.totalorder %v11983_v54, 4 }
 0x57f   :  { %v3913_v27 = vsel %vm2011_vm9, %v3897_v0, %v14474_v5  ;;  %v13089_v53 = vpop.f32.mrf.mxu0  ;;  %5221 = vmatpush.bf16.msra.mxu3 %v9189_v33  ;;  %v9174_v5 = vld [vmem:[#allocation12 + $0x204] sm:$0xf0]  ;;  %v8882_v33 = vld [vmem:[%s14607_s4 + $0xb8] sm:$0xf0]  ;;  %14631 = vst [vmem:[#allocation49_spill] sm:$0xff] %v13126_v28 }
 0x580   :  { %v3930_v0 = vsel %vm2036_vm13, %v3913_v27, 0.0  ;;  %v9081_v27 = vor.u32 %v10090_v50, %v9078_v31  ;;  %v4061_v58 = vadd.f32 %v4045_v3, %v14628_v55  ;;  %v14629_v41 = vrot.slane %v13089_v53, 4  ;;  %5124 = vmatpush.bf16.msrb.mxu1 %v8985_v7  ;;  %v9270_v3 = vld [vmem:[#allocation12 + $0x2c4] sm:$0xf0] }
 0x581   :  { %v3946_v15 = vadd.f32 %v3930_v0, %v3772_v61  ;;  %v9177_v46 = vor.u32 %v10114_v14, %v9174_v5  ;;  %v10063_v61 = vld [vmem:[#allocation12 + $0x64] sm:$0xf]  ;;  %v8970_v0 = vld [vmem:[#allocation12 + $0x6c] sm:$0xf0]  ;;  %5270 = vmatpush.bf16.msra.mxu0 %v9285_v2  ;;  %v4076_v55 = vmax.f32 %v4060_v51, 0.0  ;;  %v9273_v5 = vor.u32 %v10138_v39, %v9270_v3 }
 0x582   :  { %v3976_v62 = vsel %vm3474_vm6, %v14630_v47, %v14629_v41  ;;  %v8973_v60 = vor.u32 %v10063_v61, %v8970_v0  ;;  %v4077_v50 = vmax.f32 %v4061_v58, 0.0  ;;  %5173 = vmatpush.bf16.msra.mxu2 %v9081_v27  ;;  %v10087_v14 = vld [vmem:[#allocation12 + $0x124] sm:$0xf]  ;;  %v9066_v41 = vld [vmem:[#allocation12 + $0x12c] sm:$0xf0]  ;;  %v13129_v47 = vor.u32 %v10042_v37, %v8880_v49 }
 0x583   :  { %v4010_v16 = vadd.f32 %v3994_v36, %v3946_v15  ;;  %v10111_v36 = vld [vmem:[#allocation12 + $0x1e4] sm:$0xf]  ;;  %5222 = vmatpush.bf16.msra.mxu3 %v9177_v46  ;;  %v9069_v7 = vor.u32 %v10087_v14, %v9066_v41  ;;  %v9162_v2 = vld [vmem:[#allocation12 + $0x1ec] sm:$0xf0]  ;;  %v8904_v58 = vld [vmem:[%s14607_s4 + $0xe0] sm:$0xf]  ;;  %v13136_v30 = vor.u32 %v10040_v45, %v8882_v33 }
 0x584   :  { %v3774_v31 = vpop.f32.mrf.mxu2  ;;  %v13124_v12 = vpop.f32.mrf.mxu3  ;;  %14632 = vst [vmem:[#allocation50_spill] sm:$0xff] %v13129_v47  ;;  %v13134_v51 = vpack.c.bf16 %v4077_v50, %v4076_v55  ;;  %v9165_v29 = vor.u32 %v10111_v36, %v9162_v2  ;;  %v10049_v39 = vld [vmem:[%s14607_s4 + $0xec] sm:$0xf0]  ;;  %v8958_v61 = vld [vmem:[#allocation12 + $0x54] sm:$0xf0]  ;;  %v14635_v49 = vrot.slane %v13081_v20, 6  ;;  %5125 = vmatpush.bf16.msrb.mxu1 %v8973_v60 }
 0x585   :  { %v3899_v15 = vrot.slane %v13124_v12, 6  ;;  %14634 = vst [vmem:[#allocation51_spill] sm:$0xff] %v13136_v30  ;;  %v10060_v27 = vld [vmem:[#allocation12 + $0x4c] sm:$0xf]  ;;  %5271 = vmatpush.bf16.msra.mxu0 %v9273_v5  ;;  %v13147_v0 = vor.u32 %v10049_v39, %v8904_v58  ;;  %v10135_v45 = vld [vmem:[#allocation12 + $0x2a4] sm:$0xf]  ;;  %v13150_v3 = vadd.f32 %v12939_v38, %v4010_v16 }
 0x586   :  { %14633 = vst [vmem:[#allocation35_spill] sm:$0xff] %v13134_v51  ;;  %v9258_v33 = vld [vmem:[#allocation12 + $0x2ac] sm:$0xf0]  ;;  %5174 = vmatpush.bf16.msra.mxu2 %v9069_v7  ;;  %v8961_v12 = vor.u32 %v10060_v27, %v8958_v61  ;;  %v10084_v14 = vld [vmem:[#allocation12 + $0x10c] sm:$0xf]  ;;  %v14637_v41 = vrot.slane %v13089_v53, 4 }
 0x587   :  { %v3912_v37 = vsel %vm2011_vm9, %v14635_v49, %v3899_v15  ;;  %v13145_v46 = vpop.f32.mrf.mxu0  ;;  %14636 = vst [vmem:[#allocation52_spill] sm:$0xff] %v13147_v0  ;;  %v9261_v20 = vor.u32 %v10135_v45, %v9258_v33  ;;  %v9054_v60 = vld [vmem:[#allocation12 + $0x114] sm:$0xf0]  ;;  %5223 = vmatpush.bf16.msra.mxu3 %v9165_v29  ;;  %4969 = vmatmul.bf16.gmra.mxu1 %v13147_v0  ;;  %v10057_v58 = vld [vmem:[#allocation12 + $0x34] sm:$0xf]  ;;  %v4046_v39 = vmax.f32 %v13150_v3, 0.0 }
 0x588   :  { %v3947_v55 = vadd.f32 %v3912_v37, %v3774_v31  ;;  %v14483_v50 = vrot.slane %v13145_v46, 4  ;;  %v10108_v31 = vld [vmem:[#allocation12 + $0x1cc] sm:$0xf]  ;;  %v9150_v36 = vld [vmem:[#allocation12 + $0x1d4] sm:$0xf0]  ;;  %v9057_v2 = vor.u32 %v10084_v14, %v9054_v60  ;;  %5126 = vmatpush.bf16.msrb.mxu1 %v8961_v12 }
 0x589   :  { %5008 = vmatmul.bf16.gmra.mxu2 %v13126_v28  ;;  %5057 = vmatmul.bf16.gmra.mxu3 %v13129_v47  ;;  %v8946_v61 = vld [vmem:[#allocation12 + $0x3c] sm:$0xf0]  ;;  %v10132_v49 = vld [vmem:[#allocation12 + $0x28c] sm:$0xf]  ;;  %v9246_v29 = vld [vmem:[#allocation12 + $0x294] sm:$0xf0] }
 0x58a   :  { %v4011_v5 = vadd.f32 %v3976_v62, %v3947_v55  ;;  %v3975_v16 = vsel %vm3474_vm6, %v14637_v41, %v14483_v50  ;;  %5106 = vmatmul.bf16.gmra.mxu0 %v13136_v30  ;;  %v9153_v62 = vor.u32 %v10108_v31, %v9150_v36  ;;  %5175 = vmatpush.bf16.msra.mxu2 %v9057_v2  ;;  %v10081_v55 = vld [vmem:[#allocation12 + $0xf4] sm:$0xf]  ;;  %v9042_v41 = vld [vmem:[#allocation12 + $0xfc] sm:$0xf0]  ;;  %v10102_v51 = vld [vmem:[#allocation12 + $0x19c] sm:$0xf] }
 0x58b   :  { %v3996_v7 = vsel %vm14496_vm1, %v3975_v16, 0.0  ;;  %5272 = vmatpush.bf16.msra.mxu0 %v9261_v20  ;;  %v8949_v45 = vor.u32 %v10057_v58, %v8946_v61  ;;  %v9249_v33 = vor.u32 %v10132_v49, %v9246_v29  ;;  %v9045_v14 = vor.u32 %v10081_v55, %v9042_v41  ;;  %v10105_v60 = vld [vmem:[#allocation12 + $0x1b4] sm:$0xf]  ;;  %v9138_v3 = vld [vmem:[#allocation12 + $0x1bc] sm:$0xf0] }
 0x58c   :  { %v3777_v53 = vpop.f32.mrf.mxu2  ;;  %v13166_v27 = vpop.f32.mrf.mxu3  ;;  %v4031_v20 = vadd.f32 %v12939_v38, %v4011_v5  ;;  %5224 = vmatpush.bf16.msra.mxu3 %v9153_v62  ;;  %v10054_v16 = vld [vmem:[#allocation12 + $0x1c] sm:$0xf]  ;;  %v8890_v5 = vld [vmem:[%s14607_s4 + $0xd0] sm:$0xf0]  ;;  %v9141_v2 = vor.u32 %v10105_v60, %v9138_v3  ;;  %v8934_v62 = vld [vmem:[#allocation12 + $0x24] sm:$0xf0] }
 0x58d   :  { %v14482_v37 = vrot.slane %v13166_v27, 6  ;;  %v10043_v36 = vld [vmem:[%s14607_s4 + $0xc4] sm:$0xf]  ;;  %v10129_v58 = vld [vmem:[#allocation12 + $0x274] sm:$0xf]  ;;  %5127 = vmatpush.bf16.msrb.mxu1 %v8949_v45  ;;  %v8937_v41 = vor.u32 %v10054_v16, %v8934_v62  ;;  %v14639_v30 = vrot.slane %v13145_v46, 4 }
 0x58e   :  { %v9234_v61 = vld [vmem:[#allocation12 + $0x27c] sm:$0xf0]  ;;  %v10046_v55 = vld [vmem:[%s14607_s4 + $0xd4] sm:$0xf0]  ;;  %v10078_v60 = vld [vmem:[#allocation12 + $0xdc] sm:$0xf]  ;;  %5176 = vmatpush.bf16.msra.mxu2 %v9045_v14 }
 0x58f   :  { %v3911_v12 = vsel %vm2011_vm9, %v3899_v15, %v14482_v37  ;;  %v13174_v31 = vpop.f32.mrf.mxu0  ;;  %5273 = vmatpush.bf16.msra.mxu0 %v9249_v33  ;;  %v8896_v29 = vld [vmem:[%s14607_s4 + $0xc8] sm:$0xf]  ;;  %v9237_v33 = vor.u32 %v10129_v58, %v9234_v61  ;;  %v9030_v3 = vld [vmem:[#allocation12 + $0xe4] sm:$0xf0]  ;;  %v4047_v22 = vmax.f32 %v4031_v20, 0.0  ;;  %v14640_v46 = vmax.f32 %v12560_v48, 0.0 }
 0x590   :  { %v3932_v49 = vsel %vm2038_vm14, %v3911_v12, 0.0  ;;  %v3965_v15 = vrot.slane %v13174_v31, 4  ;;  %v9033_v50 = vor.u32 %v10078_v60, %v9030_v3  ;;  %v9126_v12 = vld [vmem:[#allocation12 + $0x1a4] sm:$0xf0]  ;;  %v14638_v31 = vmax.f32 %v12557_v21, 0.0  ;;  %5225 = vmatpush.bf16.msra.mxu3 %v9141_v2 }
 0x591   :  { %v3948_v37 = vadd.f32 %v3932_v49, %v3777_v53  ;;  %v9129_v45 = vor.u32 %v10102_v51, %v9126_v12  ;;  %v10051_v16 = vld [vmem:[#allocation12 + $0x4] sm:$0xf]  ;;  %v8922_v62 = vld [vmem:[#allocation12 + $0xc] sm:$0xf0]  ;;  %v10126_v58 = vld [vmem:[#allocation12 + $0x25c] sm:$0xf]  ;;  %v4063_v20 = vadd.f32 %v4047_v22, %v14640_v46  ;;  %v13205_v51 = vor.u32 %v10043_v36, %v8890_v5  ;;  %5128 = vmatpush.bf16.msrb.mxu1 %v8937_v41 }
 0x592   :  { %v4062_v0 = vadd.f32 %v4046_v39, %v14638_v31  ;;  %v3974_v47 = vsel %vm3474_vm6, %v14639_v30, %v3965_v15  ;;  %v10044_v53 = vld [vmem:[%s14607_s4 + $0xcc] sm:$0xf]  ;;  %v8898_v21 = vld [vmem:[%s14607_s4 + $0xd8] sm:$0xf0]  ;;  %v8925_v2 = vor.u32 %v10051_v16, %v8922_v62  ;;  %v9018_v49 = vld [vmem:[#allocation12 + $0xcc] sm:$0xf0]  ;;  %v13207_v12 = vor.u32 %v10046_v55, %v8896_v29  ;;  %5177 = vmatpush.bf16.msra.mxu2 %v9033_v50  ;;  %v13216_v29 = vpop.f32.mrf.mxu1 }
 0x593   :  { %v4012_v61 = vadd.f32 %v3996_v7, %v3948_v37  ;;  %5274 = vmatpush.bf16.msra.mxu0 %v9237_v33  ;;  %v9222_v39 = vld [vmem:[#allocation12 + $0x264] sm:$0xf0]  ;;  %14641 = vst [vmem:[#allocation61_spill] sm:$0xff] %v13205_v51  ;;  %v10075_v37 = vld [vmem:[#allocation12 + $0xc4] sm:$0xf]  ;;  %v4079_v28 = vmax.f32 %v4063_v20, 0.0  ;;  %v13209_v10 = vor.u32 %v10044_v53, %v8898_v21 }
 0x594   :  { %v3779_v30 = vpop.f32.mrf.mxu2  ;;  %v3828_v14 = vpop.f32.mrf.mxu3  ;;  %v9225_v7 = vor.u32 %v10126_v58, %v9222_v39  ;;  %v10099_v60 = vld [vmem:[#allocation12 + $0x184] sm:$0xf]  ;;  %14642 = vst [vmem:[#allocation62_spill] sm:$0xff] %v13207_v12  ;;  %v9114_v31 = vld [vmem:[#allocation12 + $0x18c] sm:$0xf0]  ;;  %v4078_v33 = vmax.f32 %v4062_v0, 0.0  ;;  %5226 = vmatpush.bf16.msra.mxu3 %v9129_v45  ;;  %v9021_v22 = vor.u32 %v10075_v37, %v9018_v49 }
 0x595   :  { %v3901_v3 = vrot.slane %v3828_v14, 6  ;;  %14643 = vst [vmem:[#allocation63_spill] sm:$0xff] %v13209_v10  ;;  %v10123_v48 = vld [vmem:[#allocation12 + $0x244] sm:$0xf]  ;;  %v9210_v36 = vld [vmem:[#allocation12 + $0x24c] sm:$0xf0]  ;;  %v4032_v5 = vadd.f32 %v12939_v38, %v4012_v61  ;;  %v9117_v50 = vor.u32 %v10099_v60, %v9114_v31  ;;  %5129 = vmatpush.bf16.msrb.mxu1 %v8925_v2 }
 0x596   :  { %v14644_v41 = vrot.slane %v13166_v27, 6  ;;  %v13218_v0 = vpack.c.bf16 %v4079_v28, %v4078_v33  ;;  %v9213_v45 = vor.u32 %v10123_v48, %v9210_v36  ;;  %5178 = vmatpush.bf16.msra.mxu2 %v9021_v22  ;;  %vm14647_vm1 = vcmp.ge.s32.totalorder %v11983_v54, 2  ;;  %v10047_v33 = vld [vmem:[%s14607_s4 + $0xe4] sm:$0xf]  ;;  %v10050_v48 = vld [vmem:[%s14607_s4 + $0xf4] sm:$0xf0] }
 0x597   :  { %v3880_v62 = vpop.f32.mrf.mxu0  ;;  %5275 = vmatpush.bf16.msra.mxu0 %v9225_v7  ;;  %v4048_v53 = vmax.f32 %v4032_v5, 0.0  ;;  %v14648_v49 = vmax.f32 %v12576_v25, 0.0  ;;  %v10092_v54 = vld [vmem:[#allocation12 + $0x148] sm:$0xf0] }
 0x598   :  { %v3910_v16 = vsel %vm2011_vm9, %v14644_v41, %v3901_v3  ;;  %14645 = vst [vmem:[#allocation64_spill] sm:$0xff] %v13218_v0  ;;  %v3966_v58 = vrot.slane %v3880_v62, 4  ;;  %5227 = vmatpush.bf16.msra.mxu3 %v9117_v50  ;;  %5130 = vmatmul.bf16.vlgmr.msrb.gmra.mxu1 %v12803_v35  ;;  %v8914_v62 = vld [vmem:[%s14607_s4 + $0xf8] sm:$0xf0] }
 0x599   :  { %v3949_v55 = vadd.f32 %v3910_v16, %v3779_v30  ;;  %5013 = vmatmul.bf16.gmra.mxu2 %v13205_v51  ;;  %5062 = vmatmul.bf16.gmra.mxu3 %v13207_v12  ;;  %v14646_v30 = vmax.f32 %v12573_v24, 0.0  ;;  %v8906_v24 = vld [vmem:[%s14607_s4 + $0xf0] sm:$0xf0]  ;;  %v10048_v16 = vld [vmem:[%s14607_s4 + $0xec] sm:$0xf] }
 0x59a   :  { %v3973_v27 = vsel %vm3474_vm6, %v3965_v15, %v3966_v58  ;;  %5111 = vmatmul.bf16.gmra.mxu0 %v13209_v10  ;;  %v13231_v2 = vpop.f32.mrf.mxu1 }
 0x59b   :  { %v4013_v61 = vadd.f32 %v3974_v47, %v3949_v55  ;;  %5276 = vmatpush.bf16.msra.mxu0 %v9213_v45  ;;  %v4064_v47 = vadd.f32 %v4048_v53, %v14646_v30  ;;  %v3998_v22 = vsel %vm14649_vm2, %v3973_v27, 0.0  ;;  %v13265_v53 = vor.u32 %v10048_v16, %v8914_v62 }
 0x59c   :  { %v3782_v28 = vpop.f32.mrf.mxu2  ;;  %v3831_v21 = vpop.f32.mrf.mxu3 }
 0x59d   :  { %v4033_v39 = vadd.f32 %v12939_v38, %v4013_v61  ;;  %v3902_v46 = vrot.slane %v3831_v21, 6  ;;  %v4080_v36 = vmax.f32 %v4064_v47, 0.0  ;;  %v13261_v61 = vor.u32 %v10047_v33, %v8906_v24  ;;  %14653 = vst [vmem:[#allocation68_spill] sm:$0xff] %v13265_v53 }
 0x59e   :  { %v14654_v24 = vmax.f32 %v12589_v63, 0.0 }
 0x59f   :  { %v4049_v20 = vmax.f32 %v4033_v39, 0.0  ;;  %v3909_v15 = vsel %vm2011_vm9, %v3901_v3, %v3902_v46  ;;  %v3882_v14 = vpop.f32.mrf.mxu0  ;;  %v8912_v3 = vld [vmem:[%s14607_s4 + $0xe8] sm:$0xf]  ;;  %14651 = vst [vmem:[#allocation66_spill] sm:$0xff] %v13261_v61 }
 0x5a0   :  { %v3934_v7 = vsel %vm14647_vm1, %v3909_v15, 0.0  ;;  %v3967_v37 = vrot.slane %v3882_v14, 4  ;;  %v13263_v27 = vor.u32 %v10050_v48, %v8912_v3  ;;  %vm14683_vm1 = vcmp.lt.s32.totalorder %v11840_v56, 1 }
 0x5a1   :  { %v4065_v60 = vadd.f32 %v4049_v20, %v14648_v49  ;;  %v3950_v31 = vadd.f32 %v3934_v7, %v3782_v28  ;;  %vm14684_vm2 = vmmov %vm14683_vm1 }
 0x5a2   :  { %v3972_v25 = vsel %vm3474_vm6, %v3966_v58, %v3967_v37  ;;  %14652 = vst [vmem:[#allocation67_spill] sm:$0xff] %v13263_v27  ;;  %v13270_v20 = vpop.f32.mrf.mxu1 }
 0x5a3   :  { %v4081_v5 = vmax.f32 %v4065_v60, 0.0  ;;  %v4014_v41 = vadd.f32 %v3998_v22, %v3950_v31 }
 0x5a4   :  { %v3784_v50 = vpop.f32.mrf.mxu2  ;;  %v3833_v55 = vpop.f32.mrf.mxu3 }
 0x5a5   :  { %v13259_v45 = vpack.c.bf16 %v4081_v5, %v4080_v36  ;;  %v3903_v58 = vrot.slane %v3833_v55, 6  ;;  %v4034_v28 = vadd.f32 %v12939_v38, %v4014_v41  ;;  %v14655_v5 = vmax.f32 %v12592_v43, 0.0 }
 0x5a7   :  { %14650 = vst [vmem:[#allocation65_spill] sm:$0xff] %v13259_v45  ;;  %v3908_v21 = vsel %vm2011_vm9, %v3902_v46, %v3903_v58  ;;  %v3885_v39 = vpop.f32.mrf.mxu0  ;;  %v4050_v7 = vmax.f32 %v4034_v28, 0.0  ;;  %v9096_v45 = vld [vmem:[#allocation12 + $0x158] sm:$0xf] }
 0x5a8   :  { %v3951_v30 = vadd.f32 %v3908_v21, %v3784_v50  ;;  %v3968_v47 = vrot.slane %v3885_v39, 4  ;;  %5135 = vmatmul.bf16.gmra.mxu1 %v12815_v52  ;;  %v14656_v50 = vrot.slane %v12853_v9, 4 }
 0x5a9   :  { %5018 = vmatmul.bf16.gmra.mxu2 %v13261_v61  ;;  %5067 = vmatmul.bf16.gmra.mxu3 %v13263_v27  ;;  %v4066_v3 = vadd.f32 %v4050_v7, %v14654_v24 }
 0x5aa   :  { %v4015_v15 = vadd.f32 %v3972_v25, %v3951_v30  ;;  %v3971_v14 = vsel %vm3474_vm6, %v3967_v37, %v3968_v47  ;;  %5116 = vmatmul.bf16.gmra.mxu0 %v13265_v53  ;;  %v13283_v48 = vpop.f32.mrf.mxu1 }
 0x5ab   :  { %v4000_v16 = vsel %vm3505_vm0, %v3971_v14, 0.0 }
 0x5ac   :  { %v3787_v49 = vpop.f32.mrf.mxu2  ;;  %v3836_v46 = vpop.f32.mrf.mxu3  ;;  %v4035_v60 = vadd.f32 %v12939_v38, %v4015_v15 }
 0x5ad   :  { %v3904_v31 = vrot.slane %v3836_v46, 6 }
 0x5ae   :  { %v4051_v33 = vmax.f32 %v4035_v60, 0.0  ;;  %v4023_v60 = vadd.f32 %v12939_v38, %v12907_v13 }
 0x5af   :  { %v3907_v22 = vsel %vm2011_vm9, %v3903_v58, %v3904_v31  ;;  %v3887_v25 = vpop.f32.mrf.mxu0  ;;  %v4082_v58 = vmax.f32 %v4066_v3, 0.0 }
 0x5b0   :  { %v3936_v37 = vsel %vm2042_vm8, %v3907_v22, 0.0  ;;  %v3969_v36 = vrot.slane %v3887_v25, 4  ;;  %v4067_v41 = vadd.f32 %v4051_v33, %v14655_v5  ;;  %v4039_v13 = vmax.f32 %v4023_v60, 0.0 }
 0x5b1   :  { %v3952_v62 = vadd.f32 %v3936_v37, %v3787_v49 }
 0x5b2   :  { %v3970_v63 = vsel %vm3474_vm6, %v3968_v47, %v3969_v36  ;;  %v3985_v55 = vsel %vm3474_vm6, %v3969_v36, %v14656_v50  ;;  %v4083_v28 = vmax.f32 %v4067_v41, 0.0  ;;  %v14658_v47 = vrot.slane %v12861_v18, 6  ;;  %v13306_v46 = vpop.f32.mrf.mxu1 }
 0x5b3   :  { %v4016_v21 = vadd.f32 %v4000_v16, %v3952_v62  ;;  %v14659_v62 = vmax.f32 %v12605_v44, 0.0 }
 0x5b4   :  { %v3789_v39 = vpop.f32.mrf.mxu2  ;;  %v3838_v30 = vpop.f32.mrf.mxu3  ;;  %v13297_v15 = vpack.c.bf16 %v4083_v28, %v4082_v58 }
 0x5b5   :  { %v3905_v43 = vrot.slane %v3838_v30, 6  ;;  %v4036_v7 = vadd.f32 %v12939_v38, %v4016_v21  ;;  %v14660_v21 = vmax.f32 %v12496_v19, 0.0  ;;  %v14661_v30 = vmax.f32 %v12607_v40, 0.0 }
 0x5b6   :  { %14657 = vst [vmem:[#allocation69_spill] sm:$0xff] %v13297_v15  ;;  %v10095_v15 = vld [vmem:[#allocation12 + $0x160] sm:$0xf0] }
 0x5b7   :  { %v3906_v14 = vsel %vm2011_vm9, %v3904_v31, %v3905_v43  ;;  %v3921_v9 = vsel %vm2011_vm9, %v3905_v43, %v14658_v47  ;;  %v5082_v49 = vpop.f32.mrf.mxu0  ;;  %v4052_v18 = vmax.f32 %v4036_v7, 0.0  ;;  %v3986_v31 = vsel %vm14506_vm15, %v3985_v55, 0.0 }
 0x5b8   :  { %v3922_v33 = vsel %vm2028_vm7, %v3921_v9, 0.0  ;;  %v3953_v24 = vadd.f32 %v3906_v14, %v3789_v39  ;;  %5140 = vmatmul.bf16.gmra.mxu1 %v12851_v23  ;;  %v4055_v39 = vadd.f32 %v4039_v13, %v14660_v21 }
 0x5b9   :  { %v3938_v3 = vadd.f32 %v3922_v33, %v12859_v32  ;;  %5179 = vmatmul.bf16.vlgmr.msra.gmra.mxu2 %v12839_v11  ;;  %5228 = vmatmul.bf16.vlgmr.msra.gmra.mxu3 %v12841_v4  ;;  %v4068_v50 = vadd.f32 %v4052_v18, %v14659_v62 }
 0x5ba   :  { %v4017_v22 = vadd.f32 %v3970_v63, %v3953_v24  ;;  %5277 = vmatmul.bf16.vlgmr.msra.gmra.mxu0 %v12849_v17  ;;  %v4947_v58 = vpop.f32.mrf.mxu1  ;;  %v4071_v44 = vmax.f32 %v4055_v39, 0.0 }
 0x5bb   :  { %v4002_v25 = vadd.f32 %v3986_v31, %v3938_v3 }
 0x5bc   :  { %v4037_v37 = vadd.f32 %v12939_v38, %v4017_v22  ;;  %v4984_v36 = vpop.f32.mrf.mxu2  ;;  %v5033_v5 = vpop.f32.mrf.mxu3 }
 0x5bd   :  { %v4985_v32 = vadd.f32 %v4984_v36, %v13216_v29  ;;  %v4022_v41 = vadd.f32 %v12939_v38, %v4002_v25  ;;  %v14663_v29 = vmax.f32 %v12493_v8, 0.0  ;;  %v4084_v38 = vmax.f32 %v4068_v50, 0.0 }
 0x5be   :  { %v4053_v16 = vmax.f32 %v4037_v37, 0.0 }
 0x5bf   :  { %v5034_v55 = vadd.f32 %v5033_v5, %v4985_v32  ;;  %v5084_v63 = vpop.f32.mrf.mxu0  ;;  %v4038_v28 = vmax.f32 %v4022_v41, 0.0 }
 0x5c0   :  { %v4069_v43 = vadd.f32 %v4053_v16, %v14661_v30 }
 0x5c1   :  { %v13328_v7 = vadd.f32 %v5082_v49, %v5034_v55  ;;  %v4054_v14 = vadd.f32 %v4038_v28, %v14663_v29  ;;  %v14668_v28 = vld [vmem:[#allocation39_spill] sm:$0xff] }
 0x5c2   :  { %v4085_v47 = vmax.f32 %v4069_v43, 0.0  ;;  %v4950_v31 = vpop.f32.mrf.mxu1 }
 0x5c3   :  { %14662 = vst [vmem:[#allocation70_spill] sm:$0xff] %v13328_v7  ;;  %v4070_v9 = vmax.f32 %v4054_v14, 0.0  ;;  %v10068_v7 = vld [vmem:[#allocation12 + $0x88] sm:$0xf0] }
 0x5c4   :  { %v4986_v60 = vpop.f32.mrf.mxu2  ;;  %v5035_v33 = vpop.f32.mrf.mxu3  ;;  %v13332_v24 = vpack.c.bf16 %v4085_v47, %v4084_v38 }
 0x5c5   :  { %v4987_v3 = vadd.f32 %v4986_v60, %v13231_v2  ;;  %v13335_v19 = vpack.c.bf16 %v4071_v44, %v4070_v9 }
 0x5c6   :  { %14664 = vst [vmem:[#allocation71_spill] sm:$0xff] %v13332_v24  ;;  %v9097_v24 = vor.u32 %v10095_v15, %v9096_v45  ;;  %v9085_v15 = vor.u32 %v10092_v54, %v9084_v42  ;;  %v10113_v42 = vld [vmem:[#allocation12 + $0x1f0] sm:$0xf0] }
 0x5c7   :  { %14665 = vst [vmem:[#allocation72_spill] sm:$0xff] %v13335_v19  ;;  %v5036_v18 = vadd.f32 %v5035_v33, %v4987_v3  ;;  %v5087_v40 = vpop.f32.mrf.mxu0  ;;  %v14676_v19 = vld [vmem:[#allocation32_spill] sm:$0xff] }
 0x5c8   :  { %5145 = vmatmul.bf16.gmra.mxu1 %v12899_v26 }
 0x5c9   :  { %v13337_v49 = vadd.f32 %v5084_v63, %v5036_v18  ;;  %5184 = vmatmul.bf16.gmra.mxu2 %v12887_v6  ;;  %5233 = vmatmul.bf16.gmra.mxu3 %v12889_v1  ;;  %v14666_v63 = vld [vmem:[#allocation36_spill] sm:$0xff]  ;;  %v14669_v18 = vld [vmem:[#allocation43_spill] sm:$0xff] }
 0x5ca   :  { %5282 = vmatmul.bf16.gmra.mxu0 %v12897_v57  ;;  %v4952_v37 = vpop.f32.mrf.mxu1 }
 0x5cc   :  { %v4989_v8 = vpop.f32.mrf.mxu2  ;;  %v5038_v22 = vpop.f32.mrf.mxu3 }
 0x5cd   :  { %v4990_v25 = vadd.f32 %v4989_v8, %v13270_v20  ;;  %v14667_v20 = vld [vmem:[#allocation40_spill] sm:$0xff]  ;;  %v14672_v8 = vld [vmem:[#allocation46_spill] sm:$0xff] }
 0x5cf   :  { %v5039_v2 = vadd.f32 %v5038_v22, %v4990_v25  ;;  %v5089_v13 = vpop.f32.mrf.mxu0 }
 0x5d1   :  { %v13344_v36 = vadd.f32 %v5087_v40, %v5039_v2  ;;  %v14670_v40 = vld [vmem:[#allocation42_spill] sm:$0xff] }
 0x5d2   :  { %v13347_v50 = vpop.f32.mrf.mxu1 }
 0x5d4   :  { %v4991_v5 = vpop.f32.mrf.mxu2  ;;  %v5040_v32 = vpop.f32.mrf.mxu3 }
 0x5d5   :  { %v4992_v41 = vadd.f32 %v4991_v5, %v13283_v48 }
 0x5d7   :  { %v5041_v16 = vadd.f32 %v5040_v32, %v4992_v41  ;;  %v5092_v62 = vpop.f32.mrf.mxu0 }
 0x5d8   :  { %5150 = vmatmul.bf16.gmra.mxu1 %v14668_v28 }
 0x5d9   :  { %v13349_v55 = vadd.f32 %v5089_v13, %v5041_v16  ;;  %5189 = vmatmul.bf16.gmra.mxu2 %v12941_v59  ;;  %5238 = vmatmul.bf16.gmra.mxu3 %v14666_v63 }
 0x5da   :  { %5287 = vmatmul.bf16.gmra.mxu0 %v14667_v20  ;;  %v13356_v29 = vpop.f32.mrf.mxu1 }
 0x5dc   :  { %v4994_v21 = vpop.f32.mrf.mxu2  ;;  %v5043_v39 = vpop.f32.mrf.mxu3 }
 0x5dd   :  { %v4995_v30 = vadd.f32 %v4994_v21, %v13306_v46  ;;  %v14671_v46 = vld [vmem:[#allocation45_spill] sm:$0xff] }
 0x5de   :  { %v9012_v21 = vld [vmem:[#allocation12 + $0xb0] sm:$0xf] }
 0x5df   :  { %v5044_v43 = vadd.f32 %v5043_v39, %v4995_v30  ;;  %v5094_v48 = vpop.f32.mrf.mxu0  ;;  %v10074_v39 = vld [vmem:[#allocation12 + $0xb8] sm:$0xf0] }
 0x5e1   :  { %v13358_v14 = vadd.f32 %v5092_v62, %v5044_v43 }
 0x5e3   :  { %v13360_v33 = vpop.f32.mrf.mxu1 }
 0x5e4   :  { %v4996_v38 = vpop.f32.mrf.mxu2  ;;  %v5045_v47 = vpop.f32.mrf.mxu3 }
 0x5e5   :  { %v4997_v9 = vadd.f32 %v4996_v38, %v4947_v58  ;;  %v9013_v38 = vor.u32 %v10074_v39, %v9012_v21  ;;  %v10146_v39 = vld [vmem:[#allocation12 + $0x2f8] sm:$0xf0] }
 0x5e7   :  { %v5046_v44 = vadd.f32 %v5045_v47, %v4997_v9  ;;  %v5097_v60 = vpop.f32.mrf.mxu0  ;;  %v9108_v47 = vld [vmem:[#allocation12 + $0x170] sm:$0xf]  ;;  %v10098_v9 = vld [vmem:[#allocation12 + $0x178] sm:$0xf0]  ;;  %5318 = vmatpush.bf16.msra.mxu1 %v9013_v38  ;;  %v10119_v38 = vld [vmem:[#allocation12 + $0x220] sm:$0xf0] }
 0x5e8   :  { %5155 = vmatmul.bf16.gmra.mxu1 %v14672_v8 }
 0x5e9   :  { %v13362_v3 = vadd.f32 %v5094_v48, %v5046_v44  ;;  %5194 = vmatmul.bf16.gmra.mxu2 %v14669_v18  ;;  %5243 = vmatmul.bf16.gmra.mxu3 %v14670_v40  ;;  %v9204_v44 = vld [vmem:[#allocation12 + $0x230] sm:$0xf] }
 0x5ea   :  { %5292 = vmatmul.bf16.gmra.mxu0 %v14671_v46 }
 0x5eb   :  { %v13368_v58 = vpop.f32.mrf.mxu1 }
 0x5ec   :  { %v4999_v22 = vpop.f32.mrf.mxu2  ;;  %v5048_v25 = vpop.f32.mrf.mxu3 }
 0x5ed   :  { %v5000_v2 = vadd.f32 %v4999_v22, %v4950_v31  ;;  %v14673_v22 = vld [vmem:[#allocation44_spill] sm:$0xff] }
 0x5ef   :  { %v5049_v13 = vadd.f32 %v5048_v25, %v5000_v2  ;;  %v5099_v5 = vpop.f32.mrf.mxu0  ;;  %v14674_v25 = vld [vmem:[#allocation47_spill] sm:$0xff] }
 0x5f0   :  { %v10122_v2 = vld [vmem:[#allocation12 + $0x238] sm:$0xf0] }
 0x5f1   :  { %v13370_v32 = vadd.f32 %v5097_v60, %v5049_v13  ;;  %v9109_v60 = vor.u32 %v10098_v9, %v9108_v47  ;;  %v14675_v13 = vld [vmem:[#allocation48_spill] sm:$0xff]  ;;  %v9192_v47 = vld [vmem:[#allocation12 + $0x218] sm:$0xf] }
 0x5f3   :  { %v13372_v48 = vpop.f32.mrf.mxu1  ;;  %5367 = vmatpush.bf16.msrb.mxu2 %v9109_v60 }
 0x5f4   :  { %v5001_v41 = vpop.f32.mrf.mxu2  ;;  %v5050_v16 = vpop.f32.mrf.mxu3 }
 0x5f5   :  { %v5002_v62 = vadd.f32 %v5001_v41, %v4952_v37  ;;  %v9205_v37 = vor.u32 %v10122_v2, %v9204_v44  ;;  %v9000_v41 = vld [vmem:[#allocation12 + $0x98] sm:$0xf]  ;;  %v9193_v44 = vor.u32 %v10119_v38, %v9192_v47  ;;  %v8988_v2 = vld [vmem:[#allocation12 + $0x80] sm:$0xf] }
 0x5f6   :  { %v9276_v47 = vld [vmem:[#allocation12 + $0x2c0] sm:$0xf] }
 0x5f7   :  { %v5051_v30 = vadd.f32 %v5050_v16, %v5002_v62  ;;  %v5102_v43 = vpop.f32.mrf.mxu0  ;;  %v10071_v16 = vld [vmem:[#allocation12 + $0xa0] sm:$0xf0]  ;;  %v9300_v62 = vld [vmem:[#allocation12 + $0x2f0] sm:$0xf]  ;;  %5416 = vmatpush.bf16.msrb.mxu3 %v9205_v37  ;;  %5368 = vmatpush.bf16.msrb.mxu2 %v9097_v24  ;;  %v8989_v37 = vor.u32 %v10068_v7, %v8988_v2  ;;  %v10140_v24 = vld [vmem:[#allocation12 + $0x2c8] sm:$0xf0] }
 0x5f8   :  { %5160 = vmatmul.bf16.gmra.mxu1 %v14676_v19  ;;  %v9001_v21 = vor.u32 %v10071_v16, %v9000_v41  ;;  %v9301_v0 = vor.u32 %v10146_v39, %v9300_v62  ;;  %v10143_v62 = vld [vmem:[#allocation12 + $0x2e0] sm:$0xf0]  ;;  %v10089_v2 = vld [vmem:[#allocation12 + $0x130] sm:$0xf0] }
 0x5f9   :  { %v13374_v31 = vadd.f32 %v5099_v5, %v5051_v30  ;;  %5199 = vmatmul.bf16.gmra.mxu2 %v14673_v22  ;;  %5248 = vmatmul.bf16.gmra.mxu3 %v14674_v25  ;;  %v9289_v39 = vor.u32 %v10143_v62, %v9288_v34  ;;  %v9277_v34 = vor.u32 %v10140_v24, %v9276_v47  ;;  %v9168_v62 = vld [vmem:[#allocation12 + $0x1e8] sm:$0xf]  ;;  %v9060_v24 = vld [vmem:[#allocation12 + $0x110] sm:$0xf] }
 0x5fa   :  { %5297 = vmatmul.bf16.gmra.mxu0 %v14675_v13  ;;  %5319 = vmatpush.bf16.msra.mxu1 %v9001_v21 }
 0x5fb   :  { %5465 = vmatpush.bf16.msrb.mxu0 %v9301_v0  ;;  %v13381_v16 = vpop.f32.mrf.mxu1  ;;  %5417 = vmatpush.bf16.msrb.mxu3 %v9193_v44  ;;  %v10116_v0 = vld [vmem:[#allocation12 + $0x208] sm:$0xf0]  ;;  %v9072_v44 = vld [vmem:[#allocation12 + $0x128] sm:$0xf] }
 0x5fc   :  { %v5004_v5 = vpop.f32.mrf.mxu2  ;;  %v5053_v30 = vpop.f32.mrf.mxu3  ;;  %5369 = vmatpush.bf16.msrb.mxu2 %v9085_v15  ;;  %v9073_v54 = vor.u32 %v10089_v2, %v9072_v44  ;;  %v10110_v2 = vld [vmem:[#allocation12 + $0x1d8] sm:$0xf0] }
 0x5fd   :  { %v5005_v9 = vadd.f32 %v5004_v5, %v13347_v50  ;;  %v9180_v50 = vld [vmem:[#allocation12 + $0x200] sm:$0xf]  ;;  %v8976_v5 = vld [vmem:[#allocation12 + $0x68] sm:$0xf] }
 0x5fe   :  { %5320 = vmatpush.bf16.msra.mxu1 %v8989_v37  ;;  %v9181_v21 = vor.u32 %v10116_v0, %v9180_v50  ;;  %v8964_v37 = vld [vmem:[#allocation12 + $0x50] sm:$0xf]  ;;  %v9264_v50 = vld [vmem:[#allocation12 + $0x2a8] sm:$0xf] }
 0x5ff   :  { %v5054_v60 = vadd.f32 %v5053_v30, %v5005_v9  ;;  %v5104_v41 = vpop.f32.mrf.mxu0  ;;  %5466 = vmatpush.bf16.msrb.mxu0 %v9289_v39  ;;  %v10065_v30 = vld [vmem:[#allocation12 + $0x70] sm:$0xf0]  ;;  %v10062_v39 = vld [vmem:[#allocation12 + $0x58] sm:$0xf0] }
 0x600   :  { %v8977_v9 = vor.u32 %v10065_v30, %v8976_v5  ;;  %5418 = vmatpush.bf16.msrb.mxu3 %v9181_v21  ;;  %5370 = vmatpush.bf16.msrb.mxu2 %v9073_v54  ;;  %v8965_v5 = vor.u32 %v10062_v39, %v8964_v37  ;;  %v10137_v30 = vld [vmem:[#allocation12 + $0x2b0] sm:$0xf0]  ;;  %v10059_v54 = vld [vmem:[#allocation12 + $0x40] sm:$0xf0]  ;;  %v10134_v39 = vld [vmem:[#allocation12 + $0x298] sm:$0xf0] }
 0x601   :  { %v13383_v45 = vadd.f32 %v5102_v43, %v5054_v60  ;;  %v9169_v60 = vor.u32 %v10113_v42, %v9168_v62  ;;  %v9265_v47 = vor.u32 %v10137_v30, %v9264_v50  ;;  %v9252_v42 = vld [vmem:[#allocation12 + $0x290] sm:$0xf]  ;;  %v9048_v30 = vld [vmem:[#allocation12 + $0xf8] sm:$0xf] }
 0x602   :  { %5321 = vmatpush.bf16.msra.mxu1 %v8977_v9  ;;  %v14679_v9 = vld [vmem:[#allocation49_spill] sm:$0xff] }
 0x603   :  { %14677 = vst [vmem:[#allocation36_spill] sm:$0xff] %v13383_v45  ;;  %5467 = vmatpush.bf16.msrb.mxu0 %v9277_v34  ;;  %v10086_v45 = vld [vmem:[#allocation12 + $0x118] sm:$0xf0]  ;;  %v14680_v34 = vld [vmem:[#allocation50_spill] sm:$0xff] }
 0x604   :  { %v5006_v7 = vpop.f32.mrf.mxu2  ;;  %v5055_v38 = vpop.f32.mrf.mxu3  ;;  %5419 = vmatpush.bf16.msrb.mxu3 %v9169_v60  ;;  %v9061_v44 = vor.u32 %v10086_v45, %v9060_v24  ;;  %v14682_v60 = vld [vmem:[#allocation52_spill] sm:$0xff]  ;;  %v9144_v24 = vld [vmem:[#allocation12 + $0x1b8] sm:$0xf] }
 0x605   :  { %v5007_v43 = vadd.f32 %v5006_v7, %v13356_v29  ;;  %v13386_v21 = vpop.f32.mrf.mxu1  ;;  %v9156_v29 = vld [vmem:[#allocation12 + $0x1d0] sm:$0xf]  ;;  %v10083_v45 = vld [vmem:[#allocation12 + $0x100] sm:$0xf0] }
 0x606   :  { %5322 = vmatpush.bf16.msra.mxu1 %v8965_v5  ;;  %v9157_v62 = vor.u32 %v10110_v2, %v9156_v29  ;;  %5371 = vmatpush.bf16.msrb.mxu2 %v9061_v44  ;;  %v9049_v5 = vor.u32 %v10083_v45, %v9048_v30  ;;  %v10107_v29 = vld [vmem:[#allocation12 + $0x1c0] sm:$0xf0]  ;;  %v10104_v30 = vld [vmem:[#allocation12 + $0x1a8] sm:$0xf0] }
 0x607   :  { %v5056_v15 = vadd.f32 %v5055_v38, %v5007_v43  ;;  %v5107_v0 = vpop.f32.mrf.mxu0  ;;  %v14681_v38 = vld [vmem:[#allocation51_spill] sm:$0xff]  ;;  %v8952_v43 = vld [vmem:[#allocation12 + $0x38] sm:$0xf]  ;;  %5468 = vmatpush.bf16.msrb.mxu0 %v9265_v47  ;;  %v9145_v2 = vor.u32 %v10107_v29, %v9144_v24  ;;  %v8928_v24 = vld [vmem:[#allocation12 + $0x8] sm:$0xf] }
 0x608   :  { %5165 = vmatmul.bf16.gmra.mxu1 %v14682_v60  ;;  %v8953_v37 = vor.u32 %v10059_v54, %v8952_v43  ;;  %5420 = vmatpush.bf16.msrb.mxu3 %v9157_v62  ;;  %v9240_v60 = vld [vmem:[#allocation12 + $0x278] sm:$0xf] }
 0x609   :  { %v13388_v7 = vadd.f32 %v5104_v41, %v5056_v15  ;;  %5204 = vmatmul.bf16.gmra.mxu2 %v14679_v9  ;;  %5253 = vmatmul.bf16.gmra.mxu3 %v14680_v34  ;;  %v9253_v15 = vor.u32 %v10134_v39, %v9252_v42  ;;  %v10056_v34 = vld [vmem:[#allocation12 + $0x28] sm:$0xf0]  ;;  %v10131_v9 = vld [vmem:[#allocation12 + $0x280] sm:$0xf0]  ;;  %v9036_v42 = vld [vmem:[#allocation12 + $0xe0] sm:$0xf] }
 0x60a   :  { %5302 = vmatmul.bf16.gmra.mxu0 %v14681_v38  ;;  %5323 = vmatpush.bf16.msra.mxu1 %v8953_v37  ;;  %v8940_v38 = vld [vmem:[#allocation12 + $0x20] sm:$0xf]  ;;  %v9241_v62 = vor.u32 %v10131_v9, %v9240_v60  ;;  %v10080_v39 = vld [vmem:[#allocation12 + $0xe8] sm:$0xf0]  ;;  %v9024_v60 = vld [vmem:[#allocation12 + $0xc8] sm:$0xf] }
 0x60b   :  { %14678 = vst [vmem:[#allocation39_spill] sm:$0xff] %v13388_v7  ;;  %5469 = vmatpush.bf16.msrb.mxu0 %v9253_v15  ;;  %v8941_v54 = vor.u32 %v10056_v34, %v8940_v38  ;;  %5372 = vmatpush.bf16.msrb.mxu2 %v9049_v5  ;;  %v9037_v37 = vor.u32 %v10080_v39, %v9036_v42  ;;  %v10128_v38 = vld [vmem:[#allocation12 + $0x268] sm:$0xf0]  ;;  %v10077_v5 = vld [vmem:[#allocation12 + $0xd0] sm:$0xf0] }
 0x60c   :  { %v5009_v41 = vpop.f32.mrf.mxu2  ;;  %v5058_v50 = vpop.f32.mrf.mxu3  ;;  %5421 = vmatpush.bf16.msrb.mxu3 %v9145_v2  ;;  %v9120_v2 = vld [vmem:[#allocation12 + $0x188] sm:$0xf]  ;;  %v10101_v42 = vld [vmem:[#allocation12 + $0x190] sm:$0xf0] }
 0x60d   :  { %v5010_v7 = vadd.f32 %v5009_v41, %v13360_v33  ;;  %v13395_v44 = vpop.f32.mrf.mxu1  ;;  %v9132_v33 = vld [vmem:[#allocation12 + $0x1a0] sm:$0xf]  ;;  %v9216_v39 = vld [vmem:[#allocation12 + $0x248] sm:$0xf] }
 0x60e   :  { %5324 = vmatpush.bf16.msra.mxu1 %v8941_v54  ;;  %v9133_v45 = vor.u32 %v10104_v30, %v9132_v33  ;;  %v9121_v54 = vor.u32 %v10101_v42, %v9120_v2  ;;  %v10125_v33 = vld [vmem:[#allocation12 + $0x250] sm:$0xf0] }
 0x60f   :  { %v5059_v47 = vadd.f32 %v5058_v50, %v5010_v7  ;;  %v5109_v43 = vpop.f32.mrf.mxu0  ;;  %v10053_v7 = vld [vmem:[#allocation12 + $0x10] sm:$0xf0]  ;;  %v9228_v50 = vld [vmem:[#allocation12 + $0x260] sm:$0xf]  ;;  %5470 = vmatpush.bf16.msrb.mxu0 %v9241_v62  ;;  %5373 = vmatpush.bf16.msrb.mxu2 %v9037_v37 }
 0x610   :  { %v8929_v34 = vor.u32 %v10053_v7, %v8928_v24  ;;  %5422 = vmatpush.bf16.msrb.mxu3 %v9133_v45  ;;  %v9229_v9 = vor.u32 %v10128_v38, %v9228_v50  ;;  %v9217_v24 = vor.u32 %v10125_v33, %v9216_v39 }
 0x611   :  { %v13397_v41 = vadd.f32 %v5107_v0, %v5059_v47  ;;  %v9025_v47 = vor.u32 %v10077_v5, %v9024_v60 }
 0x612   :  { %5325 = vmatpush.bf16.msra.mxu1 %v8929_v34 }
 0x613   :  { %5471 = vmatpush.bf16.msrb.mxu0 %v9229_v9  ;;  %5374 = vmatpush.bf16.msrb.mxu2 %v9025_v47 }
 0x614   :  { %v5011_v15 = vpop.f32.mrf.mxu2  ;;  %v5060_v29 = vpop.f32.mrf.mxu3  ;;  %5423 = vmatpush.bf16.msrb.mxu3 %v9121_v54 }
 0x615   :  { %v5012_v0 = vadd.f32 %v5011_v15, %v13368_v58  ;;  %v5131_v7 = vpop.f32.mrf.mxu1 }
 0x617   :  { %v5061_v30 = vadd.f32 %v5060_v29, %v5012_v0  ;;  %v5112_v62 = vpop.f32.mrf.mxu0  ;;  %5472 = vmatpush.bf16.msrb.mxu0 %v9217_v24 }
 0x618   :  { %5326 = vmatmul.bf16.vlgmr.msra.gmra.mxu1 %v12803_v35 }
 0x619   :  { %v13400_v37 = vadd.f32 %v5109_v43, %v5061_v30  ;;  %5209 = vmatmul.bf16.gmra.mxu2 %v13205_v51  ;;  %5258 = vmatmul.bf16.gmra.mxu3 %v13207_v12 }
 0x61a   :  { %5307 = vmatmul.bf16.gmra.mxu0 %v13209_v10 }
 0x61c   :  { %v5014_v58 = vpop.f32.mrf.mxu2  ;;  %v5063_v45 = vpop.f32.mrf.mxu3 }
 0x61d   :  { %v5015_v50 = vadd.f32 %v5014_v58, %v13372_v48  ;;  %v5133_v15 = vpop.f32.mrf.mxu1 }
 0x61f   :  { %v5064_v34 = vadd.f32 %v5063_v45, %v5015_v50  ;;  %v5114_v38 = vpop.f32.mrf.mxu0 }
 0x621   :  { %v13407_v29 = vadd.f32 %v5112_v62, %v5064_v34 }
 0x624   :  { %v5016_v43 = vpop.f32.mrf.mxu2  ;;  %v5065_v9 = vpop.f32.mrf.mxu3 }
 0x625   :  { %v5017_v60 = vadd.f32 %v5016_v43, %v13381_v16  ;;  %v5136_v0 = vpop.f32.mrf.mxu1 }
 0x627   :  { %v5066_v5 = vadd.f32 %v5065_v9, %v5017_v60  ;;  %v5117_v2 = vpop.f32.mrf.mxu0 }
 0x628   :  { %5331 = vmatmul.bf16.gmra.mxu1 %v12815_v52 }
 0x629   :  { %v13410_v47 = vadd.f32 %v5114_v38, %v5066_v5  ;;  %5214 = vmatmul.bf16.gmra.mxu2 %v13261_v61  ;;  %5263 = vmatmul.bf16.gmra.mxu3 %v13263_v27 }
 0x62a   :  { %5312 = vmatmul.bf16.gmra.mxu0 %v13265_v53 }
 0x62c   :  { %v5019_v48 = vpop.f32.mrf.mxu2  ;;  %v5068_v42 = vpop.f32.mrf.mxu3 }
 0x62d   :  { %v5020_v54 = vadd.f32 %v5019_v48, %v13386_v21  ;;  %v5138_v16 = vpop.f32.mrf.mxu1 }
 0x62f   :  { %v5069_v39 = vadd.f32 %v5068_v42, %v5020_v54  ;;  %v5119_v33 = vpop.f32.mrf.mxu0 }
 0x631   :  { %v13417_v30 = vadd.f32 %v5117_v2, %v5069_v39 }
 0x634   :  { %v5021_v62 = vpop.f32.mrf.mxu2  ;;  %v5070_v24 = vpop.f32.mrf.mxu3 }
 0x635   :  { %v5022_v58 = vadd.f32 %v5021_v62, %v13395_v44  ;;  %v5141_v34 = vpop.f32.mrf.mxu1 }
 0x637   :  { %v5071_v45 = vadd.f32 %v5070_v24, %v5022_v58  ;;  %v5278_v50 = vpop.f32.mrf.mxu0 }
 0x638   :  { %5336 = vmatmul.bf16.gmra.mxu1 %v12851_v23 }
 0x639   :  { %v13420_v38 = vadd.f32 %v5119_v33, %v5071_v45  ;;  %5375 = vmatmul.bf16.vlgmr.msrb.gmra.mxu2 %v12839_v11  ;;  %5424 = vmatmul.bf16.vlgmr.msrb.gmra.mxu3 %v12841_v4 }
 0x63a   :  { %5473 = vmatmul.bf16.vlgmr.msrb.gmra.mxu0 %v12849_v17 }
 0x63c   :  { %v5180_v21 = vpop.f32.mrf.mxu2  ;;  %v5229_v43 = vpop.f32.mrf.mxu3 }
 0x63d   :  { %v5181_v9 = vadd.f32 %v5180_v21, %v5131_v7  ;;  %v5143_v2 = vpop.f32.mrf.mxu1 }
 0x63f   :  { %v5230_v60 = vadd.f32 %v5229_v43, %v5181_v9  ;;  %v5280_v5 = vpop.f32.mrf.mxu0 }
 0x641   :  { %v13426_v44 = vadd.f32 %v5278_v50, %v5230_v60 }
 0x643   :  { %v14508_v7 = vrot.slane %v13426_v44, 7 }
 0x644   :  { %v5182_v48 = vpop.f32.mrf.mxu2  ;;  %v5231_v42 = vpop.f32.mrf.mxu3 }
 0x645   :  { %v5183_v54 = vadd.f32 %v5182_v48, %v5133_v15  ;;  %v5146_v62 = vpop.f32.mrf.mxu1 }
 0x647   :  { %v5232_v39 = vadd.f32 %v5231_v42, %v5183_v54  ;;  %v5283_v33 = vpop.f32.mrf.mxu0 }
 0x648   :  { %5341 = vmatmul.bf16.gmra.mxu1 %v12899_v26 }
 0x649   :  { %v5281_v24 = vadd.f32 %v5280_v5, %v5232_v39  ;;  %5380 = vmatmul.bf16.gmra.mxu2 %v12887_v6  ;;  %5429 = vmatmul.bf16.gmra.mxu3 %v12889_v1  ;;  %v14685_v1 = vld [vmem:[#allocation53_spill] sm:$0xff] }
 0x64a   :  { %5478 = vmatmul.bf16.gmra.mxu0 %v12897_v57  ;;  %vm14686_vm15 = vcmp.ge.s32.totalorder %v14685_v1, 1 }
 0x64b   :  { %v5515_v58 = vrot.slane %v5281_v24, 7 }
 0x64c   :  { %v5185_v45 = vpop.f32.mrf.mxu2  ;;  %v5234_v50 = vpop.f32.mrf.mxu3 }
 0x64d   :  { %v5544_v15 = vsel %vm14683_vm1, %v14508_v7, %v5515_v58  ;;  %v5186_v21 = vadd.f32 %v5185_v45, %v5136_v0  ;;  %v5148_v5 = vpop.f32.mrf.mxu1 }
 0x64e   :  { %v13438_v43 = vadd.f32 %v5544_v15, %v13337_v49 }
 0x64f   :  { %v5235_v9 = vadd.f32 %v5234_v50, %v5186_v21  ;;  %v5285_v60 = vpop.f32.mrf.mxu0 }
 0x651   :  { %v5284_v48 = vadd.f32 %v5283_v33, %v5235_v9 }
 0x653   :  { %v5516_v42 = vrot.slane %v5284_v48, 7 }
 0x654   :  { %v5187_v54 = vpop.f32.mrf.mxu2  ;;  %v5236_v39 = vpop.f32.mrf.mxu3 }
 0x655   :  { %v5543_v24 = vsel %vm14684_vm2, %v5515_v58, %v5516_v42  ;;  %v5188_v57 = vadd.f32 %v5187_v54, %v5138_v16  ;;  %v5151_v45 = vpop.f32.mrf.mxu1 }
 0x656   :  { %v5548_v6 = vsel %vm14686_vm15, %v5543_v24, 0.0  ;;  %vm14687_vm15 = vmmov %vm14683_vm1 }
 0x657   :  { %v13445_v7 = vadd.f32 %v5548_v6, %v13344_v36  ;;  %v5237_v0 = vadd.f32 %v5236_v39, %v5188_v57  ;;  %v5288_v49 = vpop.f32.mrf.mxu0 }
 0x658   :  { %5346 = vmatmul.bf16.gmra.mxu1 %v14668_v28 }
 0x659   :  { %v5286_v50 = vadd.f32 %v5285_v60, %v5237_v0  ;;  %5385 = vmatmul.bf16.gmra.mxu2 %v12941_v59  ;;  %5434 = vmatmul.bf16.gmra.mxu3 %v14666_v63 }
 0x65a   :  { %5483 = vmatmul.bf16.gmra.mxu0 %v14667_v20 }
 0x65b   :  { %v5517_v33 = vrot.slane %v5286_v50, 7  ;;  %v14688_v50 = vld [vmem:[#allocation54_spill] sm:$0xff] }
 0x65c   :  { %v5190_v16 = vpop.f32.mrf.mxu2  ;;  %v5239_v58 = vpop.f32.mrf.mxu3  ;;  %vm14689_vm2 = vcmp.ge.s32.totalorder %v14688_v50, 1 }
 0x65d   :  { %v5542_v15 = vsel %vm14687_vm15, %v5516_v42, %v5517_v33  ;;  %v5191_v6 = vadd.f32 %v5190_v16, %v5141_v34  ;;  %v5153_v9 = vpop.f32.mrf.mxu1  ;;  %vm14690_vm15 = vmmov %vm14683_vm1 }
 0x65e   :  { %v13454_v57 = vadd.f32 %v5542_v15, %v13349_v55 }
 0x65f   :  { %v5240_v36 = vadd.f32 %v5239_v58, %v5191_v6  ;;  %v5290_v21 = vpop.f32.mrf.mxu0 }
 0x661   :  { %v5289_v60 = vadd.f32 %v5288_v49, %v5240_v36 }
 0x663   :  { %v5518_v48 = vrot.slane %v5289_v60, 7 }
 0x664   :  { %v5192_v54 = vpop.f32.mrf.mxu2  ;;  %v5241_v39 = vpop.f32.mrf.mxu3 }
 0x665   :  { %v5541_v24 = vsel %vm14683_vm1, %v5517_v33, %v5518_v48  ;;  %v5193_v0 = vadd.f32 %v5192_v54, %v5143_v2  ;;  %v5156_v16 = vpop.f32.mrf.mxu1 }
 0x666   :  { %v5550_v20 = vsel %vm14689_vm2, %v5541_v24, 0.0 }
 0x667   :  { %v13461_v42 = vadd.f32 %v5550_v20, %v13358_v14  ;;  %v5242_v34 = vadd.f32 %v5241_v39, %v5193_v0  ;;  %v5293_v55 = vpop.f32.mrf.mxu0 }
 0x668   :  { %5351 = vmatmul.bf16.gmra.mxu1 %v14672_v8 }
 0x669   :  { %v5291_v58 = vadd.f32 %v5290_v21, %v5242_v34  ;;  %5390 = vmatmul.bf16.gmra.mxu2 %v14669_v18  ;;  %5439 = vmatmul.bf16.gmra.mxu3 %v14670_v40 }
 0x66a   :  { %5488 = vmatmul.bf16.gmra.mxu0 %v14671_v46 }
 0x66b   :  { %v5519_v49 = vrot.slane %v5291_v58, 7  ;;  %v14691_v58 = vld [vmem:[#allocation55_spill] sm:$0xff] }
 0x66c   :  { %v5195_v2 = vpop.f32.mrf.mxu2  ;;  %v5244_v33 = vpop.f32.mrf.mxu3  ;;  %vm14692_vm2 = vcmp.ge.s32.totalorder %v14691_v58, 1 }
 0x66d   :  { %v5540_v15 = vsel %vm14690_vm15, %v5518_v48, %v5519_v49  ;;  %v5196_v20 = vadd.f32 %v5195_v2, %v5146_v62  ;;  %v5158_v21 = vpop.f32.mrf.mxu1  ;;  %vm14693_vm15 = vmmov %vm14683_vm1 }
 0x66e   :  { %v13470_v14 = vadd.f32 %v5540_v15, %v13362_v3 }
 0x66f   :  { %v5245_v6 = vadd.f32 %v5244_v33, %v5196_v20  ;;  %v5295_v36 = vpop.f32.mrf.mxu0 }
 0x671   :  { %v5294_v60 = vadd.f32 %v5293_v55, %v5245_v6 }
 0x673   :  { %v5520_v54 = vrot.slane %v5294_v60, 7 }
 0x674   :  { %v5197_v39 = vpop.f32.mrf.mxu2  ;;  %v5246_v24 = vpop.f32.mrf.mxu3 }
 0x675   :  { %v5539_v0 = vsel %vm14683_vm1, %v5519_v49, %v5520_v54  ;;  %v5198_v34 = vadd.f32 %v5197_v39, %v5148_v5  ;;  %v5161_v2 = vpop.f32.mrf.mxu1 }
 0x676   :  { %v5552_v46 = vsel %vm14692_vm2, %v5539_v0, 0.0 }
 0x677   :  { %v13477_v48 = vadd.f32 %v5552_v46, %v13370_v32  ;;  %v5247_v62 = vadd.f32 %v5246_v24, %v5198_v34  ;;  %v5298_v3 = vpop.f32.mrf.mxu0 }
 0x678   :  { %5356 = vmatmul.bf16.gmra.mxu1 %v14676_v19 }
 0x679   :  { %v5296_v33 = vadd.f32 %v5295_v36, %v5247_v62  ;;  %5395 = vmatmul.bf16.gmra.mxu2 %v14673_v22  ;;  %5444 = vmatmul.bf16.gmra.mxu3 %v14674_v25  ;;  %v14696_v25 = vld [vmem:[#allocation36_spill] sm:$0xff] }
 0x67a   :  { %5493 = vmatmul.bf16.gmra.mxu0 %v14675_v13 }
 0x67b   :  { %v5521_v55 = vrot.slane %v5296_v33, 7  ;;  %v14694_v33 = vld [vmem:[#allocation56_spill] sm:$0xff] }
 0x67c   :  { %v5200_v5 = vpop.f32.mrf.mxu2  ;;  %v5249_v49 = vpop.f32.mrf.mxu3  ;;  %vm14695_vm2 = vcmp.ge.s32.totalorder %v14694_v33, 1 }
 0x67d   :  { %v5538_v15 = vsel %vm14693_vm15, %v5520_v54, %v5521_v55  ;;  %v5201_v46 = vadd.f32 %v5200_v5, %v5151_v45  ;;  %v5163_v36 = vpop.f32.mrf.mxu1  ;;  %vm14701_vm15 = vmmov %vm14683_vm1 }
 0x67e   :  { %v13486_v32 = vadd.f32 %v5538_v15, %v13374_v31  ;;  %v14698_v15 = vld [vmem:[#allocation50_spill] sm:$0xff] }
 0x67f   :  { %v5250_v20 = vadd.f32 %v5249_v49, %v5201_v46  ;;  %v5300_v6 = vpop.f32.mrf.mxu0  ;;  %v14697_v49 = vld [vmem:[#allocation49_spill] sm:$0xff]  ;;  %v14699_v46 = vld [vmem:[#allocation51_spill] sm:$0xff] }
 0x681   :  { %v5299_v60 = vadd.f32 %v5298_v3, %v5250_v20 }
 0x683   :  { %v5522_v39 = vrot.slane %v5299_v60, 7  ;;  %v14700_v60 = vld [vmem:[#allocation52_spill] sm:$0xff] }
 0x684   :  { %v5202_v24 = vpop.f32.mrf.mxu2  ;;  %v5251_v0 = vpop.f32.mrf.mxu3 }
 0x685   :  { %v5537_v34 = vsel %vm14683_vm1, %v5521_v55, %v5522_v39  ;;  %v5203_v62 = vadd.f32 %v5202_v24, %v5153_v9  ;;  %v5166_v3 = vpop.f32.mrf.mxu1 }
 0x686   :  { %v5554_v13 = vsel %vm14695_vm2, %v5537_v34, 0.0 }
 0x687   :  { %v13493_v54 = vadd.f32 %v5554_v13, %v14696_v25  ;;  %v5252_v45 = vadd.f32 %v5251_v0, %v5203_v62  ;;  %v5303_v31 = vpop.f32.mrf.mxu0  ;;  %v14702_v13 = vld [vmem:[#allocation39_spill] sm:$0xff] }
 0x688   :  { %5361 = vmatmul.bf16.gmra.mxu1 %v14700_v60  ;;  %v14703_v60 = vld [vmem:[#allocation57_spill] sm:$0xff] }
 0x689   :  { %v5301_v5 = vadd.f32 %v5300_v6, %v5252_v45  ;;  %5400 = vmatmul.bf16.gmra.mxu2 %v14697_v49  ;;  %5449 = vmatmul.bf16.gmra.mxu3 %v14698_v15  ;;  %vm14704_vm2 = vcmp.ge.s32.totalorder %v14703_v60, 1 }
 0x68a   :  { %5498 = vmatmul.bf16.gmra.mxu0 %v14699_v46 }
 0x68b   :  { %v5523_v20 = vrot.slane %v5301_v5, 7 }
 0x68c   :  { %v5205_v9 = vpop.f32.mrf.mxu2  ;;  %v5254_v55 = vpop.f32.mrf.mxu3 }
 0x68d   :  { %v5536_v24 = vsel %vm14701_vm15, %v5522_v39, %v5523_v20  ;;  %v5206_v25 = vadd.f32 %v5205_v9, %v5156_v16  ;;  %v5168_v15 = vpop.f32.mrf.mxu1  ;;  %vm14705_vm15 = vmmov %vm14683_vm1 }
 0x68e   :  { %v13502_v0 = vadd.f32 %v5536_v24, %v14702_v13 }
 0x68f   :  { %v5255_v6 = vadd.f32 %v5254_v55, %v5206_v25  ;;  %v5305_v34 = vpop.f32.mrf.mxu0 }
 0x691   :  { %v5304_v62 = vadd.f32 %v5303_v31, %v5255_v6 }
 0x693   :  { %v5524_v45 = vrot.slane %v5304_v62, 7 }
 0x694   :  { %v5207_v49 = vpop.f32.mrf.mxu2  ;;  %v5256_v22 = vpop.f32.mrf.mxu3 }
 0x695   :  { %v5535_v5 = vsel %vm14683_vm1, %v5523_v20, %v5524_v45  ;;  %v5208_v46 = vadd.f32 %v5207_v49, %v5158_v21  ;;  %v5327_v20 = vpop.f32.mrf.mxu1 }
 0x696   :  { %v5556_v19 = vsel %vm14704_vm2, %v5535_v5, 0.0 }
 0x697   :  { %v13509_v39 = vadd.f32 %v5556_v19, %v13397_v41  ;;  %v5257_v16 = vadd.f32 %v5256_v22, %v5208_v46  ;;  %v5308_v9 = vpop.f32.mrf.mxu0 }
 0x699   :  { %v5306_v24 = vadd.f32 %v5305_v34, %v5257_v16  ;;  %5405 = vmatmul.bf16.gmra.mxu2 %v13205_v51  ;;  %5454 = vmatmul.bf16.gmra.mxu3 %v13207_v12  ;;  %v14706_v16 = vld [vmem:[#allocation58_spill] sm:$0xff]  ;;  %v10167_v51 = vld [vmem:[#allocation15 + $0xa0] sm:$0xf0] }
 0x69a   :  { %5503 = vmatmul.bf16.gmra.mxu0 %v13209_v10  ;;  %vm14707_vm2 = vcmp.ge.s32.totalorder %v14706_v16, 1 }
 0x69b   :  { %v5525_v31 = vrot.slane %v5306_v24, 7 }
 0x69c   :  { %v5210_v55 = vpop.f32.mrf.mxu2  ;;  %v5259_v25 = vpop.f32.mrf.mxu3 }
 0x69d   :  { %v5534_v21 = vsel %vm14705_vm15, %v5524_v45, %v5525_v31  ;;  %v5211_v49 = vadd.f32 %v5210_v55, %v5161_v2  ;;  %vm14708_vm15 = vmmov %vm14683_vm1 }
 0x69e   :  { %v13517_v19 = vadd.f32 %v5534_v21, %v13400_v37  ;;  %v5329_v37 = vpop.f32.mrf.mxu1 }
 0x69f   :  { %v5260_v22 = vadd.f32 %v5259_v25, %v5211_v49  ;;  %v5310_v41 = vpop.f32.mrf.mxu0 }
 0x6a1   :  { %v5309_v46 = vadd.f32 %v5308_v9, %v5260_v22 }
 0x6a3   :  { %v5526_v13 = vrot.slane %v5309_v46, 7 }
 0x6a4   :  { %v5212_v6 = vpop.f32.mrf.mxu2  ;;  %v5261_v34 = vpop.f32.mrf.mxu3 }
 0x6a5   :  { %v5533_v62 = vsel %vm14683_vm1, %v5525_v31, %v5526_v13  ;;  %v5213_v5 = vadd.f32 %v5212_v6, %v5163_v36 }
 0x6a6   :  { %v5558_v24 = vsel %vm14707_vm2, %v5533_v62, 0.0 }
 0x6a7   :  { %v13524_v45 = vadd.f32 %v5558_v24, %v13407_v29  ;;  %v5262_v2 = vadd.f32 %v5261_v34, %v5213_v5  ;;  %v5313_v55 = vpop.f32.mrf.mxu0 }
 0x6a9   :  { %v5311_v21 = vadd.f32 %v5310_v41, %v5262_v2  ;;  %5410 = vmatmul.bf16.gmra.mxu2 %v13261_v61  ;;  %5459 = vmatmul.bf16.gmra.mxu3 %v13263_v27  ;;  %v5332_v41 = vpop.f32.mrf.mxu1 }
 0x6aa   :  { %5508 = vmatmul.bf16.gmra.mxu0 %v13265_v53 }
 0x6ab   :  { %v5527_v9 = vrot.slane %v5311_v21, 7  ;;  %v14709_v21 = vld [vmem:[#allocation59_spill] sm:$0xff] }
 0x6ac   :  { %v5215_v25 = vpop.f32.mrf.mxu2  ;;  %v5264_v31 = vpop.f32.mrf.mxu3  ;;  %vm14710_vm2 = vcmp.ge.s32.totalorder %v14709_v21, 1 }
 0x6ad   :  { %v5532_v36 = vsel %vm14708_vm15, %v5526_v13, %v5527_v9  ;;  %v5216_v49 = vadd.f32 %v5215_v25, %v5166_v3  ;;  %vm14711_vm15 = vmmov %vm14683_vm1 }
 0x6ae   :  { %v13532_v29 = vadd.f32 %v5532_v36, %v13410_v47 }
 0x6af   :  { %v5265_v22 = vadd.f32 %v5264_v31, %v5216_v49  ;;  %v5315_v46 = vpop.f32.mrf.mxu0 }
 0x6b1   :  { %v5314_v6 = vadd.f32 %v5313_v55, %v5265_v22  ;;  %v5334_v36 = vpop.f32.mrf.mxu1 }
 0x6b3   :  { %v5528_v34 = vrot.slane %v5314_v6, 7  ;;  %v14712_v6 = vrot.slane %v13426_v44, 7 }
 0x6b4   :  { %v5217_v62 = vpop.f32.mrf.mxu2  ;;  %v5266_v5 = vpop.f32.mrf.mxu3 }
 0x6b5   :  { %v5531_v24 = vsel %vm14683_vm1, %v5527_v9, %v5528_v34  ;;  %v5218_v2 = vadd.f32 %v5217_v62, %v5168_v15  ;;  %v14713_v62 = vld [vmem:[#allocation60_spill] sm:$0xff] }
 0x6b6   :  { %v5560_v53 = vsel %vm14710_vm2, %v5531_v24, 0.0  ;;  %vm14714_vm2 = vcmp.ge.s32.totalorder %v14713_v62, 1 }
 0x6b7   :  { %v13539_v13 = vadd.f32 %v5560_v53, %v13417_v30  ;;  %v5267_v3 = vadd.f32 %v5266_v5, %v5218_v2  ;;  %v5474_v47 = vpop.f32.mrf.mxu0 }
 0x6b9   :  { %v5316_v25 = vadd.f32 %v5315_v46, %v5267_v3  ;;  %v14715_v46 = vld [vmem:[#allocation70_spill] sm:$0xff]  ;;  %v5337_v27 = vpop.f32.mrf.mxu1 }
 0x6bb   :  { %v5529_v31 = vrot.slane %v5316_v25, 7 }
 0x6bc   :  { %v5376_v55 = vpop.f32.mrf.mxu2  ;;  %v5425_v49 = vpop.f32.mrf.mxu3 }
 0x6bd   :  { %v5530_v22 = vsel %vm14711_vm15, %v5528_v34, %v5529_v31  ;;  %v5545_v15 = vsel %vm14683_vm1, %v5529_v31, %v14712_v6  ;;  %v5377_v9 = vadd.f32 %v5376_v55, %v5327_v20  ;;  %vm14716_vm15 = vcmp.ge.s32.totalorder %v14706_v16, 2 }
 0x6be   :  { %v5546_v53 = vsel %vm14714_vm2, %v5545_v15, 0.0  ;;  %v13550_v30 = vadd.f32 %v5530_v22, %v13420_v38  ;;  %vm14727_vm2 = vmmov %vm14683_vm1 }
 0x6bf   :  { %v13553_v5 = vadd.f32 %v5546_v53, %v14715_v46  ;;  %v5426_v24 = vadd.f32 %v5425_v49, %v5377_v9  ;;  %v5476_v2 = vpop.f32.mrf.mxu0 }
 0x6c1   :  { %v13555_v3 = vadd.f32 %v5474_v47, %v5426_v24  ;;  %v5339_v53 = vpop.f32.mrf.mxu1 }
 0x6c3   :  { %v14518_v55 = vrot.slane %v13555_v3, 6 }
 0x6c4   :  { %v5378_v34 = vpop.f32.mrf.mxu2  ;;  %v5427_v25 = vpop.f32.mrf.mxu3 }
 0x6c5   :  { %v5379_v44 = vadd.f32 %v5378_v34, %v5329_v37 }
 0x6c7   :  { %v5428_v61 = vadd.f32 %v5427_v25, %v5379_v44  ;;  %v5479_v31 = vpop.f32.mrf.mxu0 }
 0x6c9   :  { %v5477_v20 = vadd.f32 %v5476_v2, %v5428_v61 }
 0x6cb   :  { %v5579_v6 = vrot.slane %v5477_v20, 6 }
 0x6cc   :  { %v5381_v15 = vpop.f32.mrf.mxu2  ;;  %v5430_v38 = vpop.f32.mrf.mxu3 }
 0x6cd   :  { %v5608_v49 = vsel %vm2011_vm9, %v14518_v55, %v5579_v6  ;;  %v5382_v22 = vadd.f32 %v5381_v15, %v5332_v41  ;;  %v5342_v15 = vpop.f32.mrf.mxu1 }
 0x6ce   :  { %v13563_v47 = vadd.f32 %v5608_v49, %v13438_v43  ;;  %v13570_v49 = vld [vmem:[#allocation13] ss:$0 sm:$0xff] }
 0x6cf   :  { %v5431_v9 = vadd.f32 %v5430_v38, %v5382_v22  ;;  %v5481_v37 = vpop.f32.mrf.mxu0 }
 0x6d1   :  { %v5480_v46 = vadd.f32 %v5479_v31, %v5431_v9 }
 0x6d3   :  { %v5580_v24 = vrot.slane %v5480_v46, 6 }
 0x6d4   :  { %v5383_v61 = vpop.f32.mrf.mxu2  ;;  %v5432_v2 = vpop.f32.mrf.mxu3 }
 0x6d5   :  { %v5607_v34 = vsel %vm2011_vm9, %v5579_v6, %v5580_v24  ;;  %v5384_v25 = vadd.f32 %v5383_v61, %v5334_v36 }
 0x6d6   :  { %v5612_v44 = vsel %vm2030_vm10, %v5607_v34, 0.0 }
 0x6d7   :  { %v5433_v20 = vadd.f32 %v5432_v2, %v5384_v25  ;;  %v5484_v55 = vpop.f32.mrf.mxu0  ;;  %v5628_v41 = vadd.f32 %v5612_v44, %v13445_v7 }
 0x6d9   :  { %v5482_v43 = vadd.f32 %v5481_v37, %v5433_v20  ;;  %v5648_v6 = vadd.f32 %v13570_v49, %v5628_v41  ;;  %v5344_v20 = vpop.f32.mrf.mxu1 }
 0x6db   :  { %v5581_v38 = vrot.slane %v5482_v43, 6  ;;  %v5664_v37 = vmax.f32 %v5648_v6, 0.0 }
 0x6dc   :  { %v5386_v31 = vpop.f32.mrf.mxu2  ;;  %v5435_v22 = vpop.f32.mrf.mxu3 }
 0x6dd   :  { %v5606_v9 = vsel %vm2011_vm9, %v5580_v24, %v5581_v38  ;;  %v5387_v46 = vadd.f32 %v5386_v31, %v5337_v27 }
 0x6de   :  { %v5629_v36 = vadd.f32 %v5606_v9, %v13454_v57 }
 0x6df   :  { %v5436_v61 = vadd.f32 %v5435_v22, %v5387_v46  ;;  %v5486_v2 = vpop.f32.mrf.mxu0 }
 0x6e0   :  { %v5649_v34 = vadd.f32 %v13570_v49, %v5629_v36 }
 0x6e1   :  { %v5485_v7 = vadd.f32 %v5484_v55, %v5436_v61 }
 0x6e2   :  { %v5665_v25 = vmax.f32 %v5649_v34, 0.0  ;;  %v5347_v34 = vpop.f32.mrf.mxu1 }
 0x6e3   :  { %v5582_v44 = vrot.slane %v5485_v7, 6 }
 0x6e4   :  { %v5388_v43 = vpop.f32.mrf.mxu2  ;;  %v5437_v10 = vpop.f32.mrf.mxu3  ;;  %v13577_v12 = vpack.c.bf16 %v5665_v25, %v5664_v37 }
 0x6e5   :  { %v5605_v27 = vsel %vm2011_vm9, %v5581_v38, %v5582_v44  ;;  %v5389_v24 = vadd.f32 %v5388_v43, %v5339_v53 }
 0x6e6   :  { %v5614_v57 = vsel %vm2032_vm11, %v5605_v27, 0.0 }
 0x6e7   :  { %v5438_v41 = vadd.f32 %v5437_v10, %v5389_v24  ;;  %v5489_v31 = vpop.f32.mrf.mxu0  ;;  %v5630_v22 = vadd.f32 %v5614_v57, %v13461_v42 }
 0x6e9   :  { %v5487_v55 = vadd.f32 %v5486_v2, %v5438_v41  ;;  %v5650_v53 = vadd.f32 %v13570_v49, %v5630_v22 }
 0x6eb   :  { %v5583_v9 = vrot.slane %v5487_v55, 6  ;;  %v5666_v43 = vmax.f32 %v5650_v53, 0.0  ;;  %v5349_v55 = vpop.f32.mrf.mxu1 }
 0x6ec   :  { %v5391_v46 = vpop.f32.mrf.mxu2  ;;  %v5440_v36 = vpop.f32.mrf.mxu3 }
 0x6ed   :  { %v5604_v6 = vsel %vm2011_vm9, %v5582_v44, %v5583_v9  ;;  %v5392_v61 = vadd.f32 %v5391_v46, %v5342_v15 }
 0x6ee   :  { %v5631_v7 = vadd.f32 %v5604_v6, %v13470_v14 }
 0x6ef   :  { %v5441_v38 = vadd.f32 %v5440_v36, %v5392_v61  ;;  %v5491_v37 = vpop.f32.mrf.mxu0 }
 0x6f0   :  { %v5651_v10 = vadd.f32 %v13570_v49, %v5631_v7 }
 0x6f1   :  { %v5490_v25 = vadd.f32 %v5489_v31, %v5441_v38 }
 0x6f2   :  { %v5667_v42 = vmax.f32 %v5651_v10, 0.0 }
 0x6f3   :  { %v5584_v2 = vrot.slane %v5490_v25, 6 }
 0x6f4   :  { %v5393_v27 = vpop.f32.mrf.mxu2  ;;  %v5442_v24 = vpop.f32.mrf.mxu3  ;;  %v13589_v57 = vpack.c.bf16 %v5667_v42, %v5666_v43 }
 0x6f5   :  { %v5603_v15 = vsel %vm2011_vm9, %v5583_v9, %v5584_v2  ;;  %v5394_v44 = vadd.f32 %v5393_v27, %v5344_v20  ;;  %v5352_v42 = vpop.f32.mrf.mxu1 }
 0x6f6   :  { %v5616_v14 = vsel %vm2034_vm12, %v5603_v15, 0.0 }
 0x6f7   :  { %v5443_v41 = vadd.f32 %v5442_v24, %v5394_v44  ;;  %v5494_v22 = vpop.f32.mrf.mxu0  ;;  %v5632_v46 = vadd.f32 %v5616_v14, %v13477_v48  ;;  %v9388_v14 = vld [vmem:[#allocation15 + $0xa8] sm:$0xf] }
 0x6f9   :  { %v5492_v31 = vadd.f32 %v5491_v37, %v5443_v41  ;;  %v5652_v20 = vadd.f32 %v13570_v49, %v5632_v46  ;;  %v10169_v41 = vld [vmem:[#allocation15 + $0xb0] sm:$0xf0] }
 0x6fb   :  { %v5585_v36 = vrot.slane %v5492_v31, 6  ;;  %v5668_v27 = vmax.f32 %v5652_v20, 0.0  ;;  %v10170_v20 = vld [vmem:[#allocation15 + $0xb8] sm:$0xf0] }
 0x6fc   :  { %v5396_v6 = vpop.f32.mrf.mxu2  ;;  %v5445_v61 = vpop.f32.mrf.mxu3 }
 0x6fd   :  { %v5602_v7 = vsel %vm2011_vm9, %v5584_v2, %v5585_v36  ;;  %v5397_v53 = vadd.f32 %v5396_v6, %v5347_v34  ;;  %v10168_v6 = vld [vmem:[#allocation15 + $0xac] sm:$0xf] }
 0x6fe   :  { %v5633_v38 = vadd.f32 %v5602_v7, %v13486_v32  ;;  %v9396_v7 = vld [vmem:[#allocation15 + $0xb0] sm:$0xf] }
 0x6ff   :  { %v5446_v9 = vadd.f32 %v5445_v61, %v5397_v53  ;;  %v5496_v10 = vpop.f32.mrf.mxu0  ;;  %v9390_v61 = vld [vmem:[#allocation15 + $0xb4] sm:$0xf0] }
 0x700   :  { %v5653_v25 = vadd.f32 %v13570_v49, %v5633_v38  ;;  %v9393_v38 = vor.u32 %v10168_v6, %v9390_v61  ;;  %v10163_v6 = vld [vmem:[#allocation15 + $0x80] sm:$0xf0]  ;;  %v10162_v61 = vld [vmem:[#allocation15 + $0x7c] sm:$0xf] }
 0x701   :  { %v5495_v43 = vadd.f32 %v5494_v22, %v5446_v9  ;;  %v9389_v22 = vor.u32 %v10169_v41, %v9388_v14 }
 0x702   :  { %v5669_v48 = vmax.f32 %v5653_v25, 0.0  ;;  %v9397_v25 = vor.u32 %v10170_v20, %v9396_v7  ;;  %5895 = vmatpush.bf16.msra.mxu2 %v9393_v38 }
 0x703   :  { %v5586_v37 = vrot.slane %v5495_v43, 6  ;;  %5846 = vmatpush.bf16.msrb.mxu1 %v9389_v22  ;;  %v10165_v43 = vld [vmem:[#allocation15 + $0x94] sm:$0xf]  ;;  %v9364_v22 = vld [vmem:[#allocation15 + $0x78] sm:$0xf] }
 0x704   :  { %v5398_v24 = vpop.f32.mrf.mxu2  ;;  %v5447_v15 = vpop.f32.mrf.mxu3  ;;  %v13601_v44 = vpack.c.bf16 %v5669_v48, %v5668_v27  ;;  %5944 = vmatpush.bf16.msra.mxu3 %v9397_v25  ;;  %v9366_v25 = vld [vmem:[#allocation15 + $0x84] sm:$0xf0] }
 0x705   :  { %v5601_v34 = vsel %vm2011_vm9, %v5585_v36, %v5586_v37  ;;  %v5399_v2 = vadd.f32 %v5398_v24, %v5349_v55  ;;  %v9376_v55 = vld [vmem:[#allocation15 + $0x90] sm:$0xf]  ;;  %v10166_v36 = vld [vmem:[#allocation15 + $0x98] sm:$0xf0]  ;;  %v5354_v48 = vpop.f32.mrf.mxu1 }
 0x706   :  { %v5618_v32 = vsel %vm2036_vm13, %v5601_v34, 0.0  ;;  %v9377_v24 = vor.u32 %v10166_v36, %v9376_v55  ;;  %v9384_v34 = vld [vmem:[#allocation15 + $0x98] sm:$0xf]  ;;  %v9372_v55 = vld [vmem:[#allocation15 + $0x80] sm:$0xf] }
 0x707   :  { %v5448_v46 = vadd.f32 %v5447_v15, %v5399_v2  ;;  %v5499_v31 = vpop.f32.mrf.mxu0  ;;  %v5634_v53 = vadd.f32 %v5618_v32, %v13493_v54  ;;  %v9378_v15 = vld [vmem:[#allocation15 + $0x9c] sm:$0xf0]  ;;  %v9385_v32 = vor.u32 %v10167_v51, %v9384_v34  ;;  %v10164_v36 = vld [vmem:[#allocation15 + $0x88] sm:$0xf0]  ;;  %v10159_v34 = vld [vmem:[#allocation15 + $0x64] sm:$0xf] }
 0x708   :  { %v9381_v41 = vor.u32 %v10165_v43, %v9378_v15  ;;  %5847 = vmatpush.bf16.msrb.mxu1 %v9377_v24  ;;  %v9369_v43 = vor.u32 %v10162_v61, %v9366_v25  ;;  %v9352_v24 = vld [vmem:[#allocation15 + $0x60] sm:$0xf]  ;;  %v10160_v15 = vld [vmem:[#allocation15 + $0x68] sm:$0xf0]  ;;  %v9340_v25 = vld [vmem:[#allocation15 + $0x48] sm:$0xf] }
 0x709   :  { %v5497_v9 = vadd.f32 %v5496_v10, %v5448_v46  ;;  %v5654_v46 = vadd.f32 %v13570_v49, %v5634_v53  ;;  %5945 = vmatpush.bf16.msra.mxu3 %v9385_v32 }
 0x70a   :  { %5896 = vmatpush.bf16.msra.mxu2 %v9381_v41  ;;  %v9360_v41 = vld [vmem:[#allocation15 + $0x68] sm:$0xf] }
 0x70b   :  { %v5587_v27 = vrot.slane %v5497_v9, 6  ;;  %v9365_v9 = vor.u32 %v10163_v6, %v9364_v22  ;;  %v5670_v53 = vmax.f32 %v5654_v46, 0.0  ;;  %v10161_v6 = vld [vmem:[#allocation15 + $0x70] sm:$0xf0] }
 0x70c   :  { %v5401_v2 = vpop.f32.mrf.mxu2  ;;  %v5450_v14 = vpop.f32.mrf.mxu3  ;;  %v9361_v46 = vor.u32 %v10161_v6, %v9360_v41  ;;  %v10153_v41 = vld [vmem:[#allocation15 + $0x34] sm:$0xf] }
 0x70d   :  { %v5600_v54 = vsel %vm2011_vm9, %v5586_v37, %v5587_v27  ;;  %v5402_v10 = vadd.f32 %v5401_v2, %v5352_v42  ;;  %v9373_v37 = vor.u32 %v10164_v36, %v9372_v55  ;;  %5848 = vmatpush.bf16.msrb.mxu1 %v9365_v9  ;;  %v5357_v9 = vpop.f32.mrf.mxu1  ;;  %v10157_v55 = vld [vmem:[#allocation15 + $0x50] sm:$0xf0] }
 0x70e   :  { %v5635_v7 = vadd.f32 %v5600_v54, %v13502_v0  ;;  %5897 = vmatpush.bf16.msra.mxu2 %v9369_v43  ;;  %v9353_v0 = vor.u32 %v10160_v15, %v9352_v24  ;;  %v9341_v43 = vor.u32 %v10157_v55, %v9340_v25  ;;  %v10158_v24 = vld [vmem:[#allocation15 + $0x58] sm:$0xf0]  ;;  %v9316_v55 = vld [vmem:[#allocation15 + $0x18] sm:$0xf] }
 0x70f   :  { %v5451_v38 = vadd.f32 %v5450_v14, %v5402_v10  ;;  %v5501_v20 = vpop.f32.mrf.mxu0  ;;  %5946 = vmatpush.bf16.msra.mxu3 %v9373_v37  ;;  %v9354_v14 = vld [vmem:[#allocation15 + $0x6c] sm:$0xf0]  ;;  %v10156_v37 = vld [vmem:[#allocation15 + $0x4c] sm:$0xf] }
 0x710   :  { %v5655_v42 = vadd.f32 %v13570_v49, %v5635_v7  ;;  %v9357_v22 = vor.u32 %v10159_v34, %v9354_v14  ;;  %v10154_v14 = vld [vmem:[#allocation15 + $0x38] sm:$0xf0] }
 0x711   :  { %v5500_v51 = vadd.f32 %v5499_v31, %v5451_v38  ;;  %5849 = vmatpush.bf16.msrb.mxu1 %v9353_v0  ;;  %v9328_v0 = vld [vmem:[#allocation15 + $0x30] sm:$0xf] }
 0x712   :  { %v5671_v54 = vmax.f32 %v5655_v42, 0.0  ;;  %5898 = vmatpush.bf16.msra.mxu2 %v9357_v22  ;;  %v9342_v42 = vld [vmem:[#allocation15 + $0x54] sm:$0xf0] }
 0x713   :  { %v5588_v2 = vrot.slane %v5500_v51, 6  ;;  %5947 = vmatpush.bf16.msra.mxu3 %v9361_v46  ;;  %v9348_v51 = vld [vmem:[#allocation15 + $0x50] sm:$0xf]  ;;  %v9336_v22 = vld [vmem:[#allocation15 + $0x38] sm:$0xf] }
 0x714   :  { %v5403_v10 = vpop.f32.mrf.mxu2  ;;  %v5452_v32 = vpop.f32.mrf.mxu3  ;;  %v13615_v7 = vpack.c.bf16 %v5671_v54, %v5670_v53  ;;  %v9349_v34 = vor.u32 %v10158_v24, %v9348_v51  ;;  %v10155_v46 = vld [vmem:[#allocation15 + $0x40] sm:$0xf0]  ;;  %v9324_v24 = vld [vmem:[#allocation15 + $0x20] sm:$0xf] }
 0x715   :  { %v5599_v61 = vsel %vm2011_vm9, %v5587_v27, %v5588_v2  ;;  %v5404_v31 = vadd.f32 %v5403_v10, %v5354_v48  ;;  %v9345_v48 = vor.u32 %v10156_v37, %v9342_v42  ;;  %5850 = vmatpush.bf16.msrb.mxu1 %v9341_v43  ;;  %v9329_v10 = vor.u32 %v10154_v14, %v9328_v0  ;;  %v10150_v43 = vld [vmem:[#allocation15 + $0x1c] sm:$0xf] }
 0x716   :  { %v5620_v38 = vsel %vm2038_vm14, %v5599_v61, 0.0 }
 0x717   :  { %v5453_v36 = vadd.f32 %v5452_v32, %v5404_v31  ;;  %v5636_v27 = vadd.f32 %v5620_v38, %v13509_v39  ;;  %v5504_v53 = vpop.f32.mrf.mxu0  ;;  %5899 = vmatpush.bf16.msra.mxu2 %v9345_v48  ;;  %5948 = vmatpush.bf16.msra.mxu3 %v9349_v34  ;;  %v9330_v32 = vld [vmem:[#allocation15 + $0x3c] sm:$0xf0]  ;;  %v9337_v38 = vor.u32 %v10155_v46, %v9336_v22  ;;  %v9318_v48 = vld [vmem:[#allocation15 + $0x24] sm:$0xf0]  ;;  %v5359_v34 = vpop.f32.mrf.mxu1 }
 0x718   :  { %v9333_v31 = vor.u32 %v10153_v41, %v9330_v32  ;;  %v9321_v0 = vor.u32 %v10150_v43, %v9318_v48  ;;  %v9304_v41 = vld [vmem:[#allocation15] sm:$0xf]  ;;  %v10147_v32 = vld [vmem:[#allocation15 + $0x4] sm:$0xf] }
 0x719   :  { %v5502_v15 = vadd.f32 %v5501_v20, %v5453_v36  ;;  %5851 = vmatpush.bf16.msrb.mxu1 %v9329_v10  ;;  %v5656_v25 = vadd.f32 %v13570_v49, %v5636_v27  ;;  %v10151_v36 = vld [vmem:[#allocation15 + $0x20] sm:$0xf0]  ;;  %v10148_v10 = vld [vmem:[#allocation15 + $0x8] sm:$0xf0] }
 0x71a   :  { %v9317_v51 = vor.u32 %v10151_v36, %v9316_v55  ;;  %v10149_v55 = vld [vmem:[#allocation15 + $0x10] sm:$0xf0] }
 0x71b   :  { %v5589_v54 = vrot.slane %v5502_v15, 6  ;;  %5900 = vmatpush.bf16.msra.mxu2 %v9333_v31  ;;  %5949 = vmatpush.bf16.msra.mxu3 %v9337_v38  ;;  %v10152_v15 = vld [vmem:[#allocation15 + $0x28] sm:$0xf0]  ;;  %v5672_v27 = vmax.f32 %v5656_v25, 0.0  ;;  %v9312_v31 = vld [vmem:[#allocation15 + $0x8] sm:$0xf] }
 0x71c   :  { %v5406_v6 = vpop.f32.mrf.mxu2  ;;  %v5455_v61 = vpop.f32.mrf.mxu3  ;;  %v9313_v25 = vor.u32 %v10149_v55, %v9312_v31 }
 0x71d   :  { %v5598_v39 = vsel %vm2011_vm9, %v5588_v2, %v5589_v54  ;;  %v5407_v20 = vadd.f32 %v5406_v6, %v5357_v9  ;;  %v9325_v2 = vor.u32 %v10152_v15, %v9324_v24  ;;  %5852 = vmatpush.bf16.msrb.mxu1 %v9317_v51  ;;  %v9305_v6 = vor.u32 %v10148_v10, %v9304_v41 }
 0x71e   :  { %v5637_v37 = vadd.f32 %v5598_v39, %v13517_v19 }
 0x71f   :  { %v5456_v42 = vadd.f32 %v5455_v61, %v5407_v20  ;;  %5901 = vmatpush.bf16.msra.mxu2 %v9321_v0  ;;  %v5506_v19 = vpop.f32.mrf.mxu0  ;;  %5950 = vmatpush.bf16.msra.mxu3 %v9325_v2  ;;  %v9306_v61 = vld [vmem:[#allocation15 + $0xc] sm:$0xf0]  ;;  %v5362_v24 = vpop.f32.mrf.mxu1 }
 0x720   :  { %v5657_v9 = vadd.f32 %v13570_v49, %v5637_v37  ;;  %v9309_v38 = vor.u32 %v10147_v32, %v9306_v61 }
 0x721   :  { %v5505_v14 = vadd.f32 %v5504_v53, %v5456_v42  ;;  %5853 = vmatpush.bf16.msrb.mxu1 %v9305_v6 }
 0x722   :  { %v5673_v46 = vmax.f32 %v5657_v9, 0.0 }
 0x723   :  { %v5590_v22 = vrot.slane %v5505_v14, 6  ;;  %5902 = vmatpush.bf16.msra.mxu2 %v9309_v38  ;;  %5951 = vmatpush.bf16.msra.mxu3 %v9313_v25 }
 0x724   :  { %v5408_v39 = vpop.f32.mrf.mxu2  ;;  %v5457_v20 = vpop.f32.mrf.mxu3  ;;  %v13627_v43 = vpack.c.bf16 %v5673_v46, %v5672_v27 }
 0x725   :  { %v5597_v53 = vsel %vm2011_vm9, %v5589_v54, %v5590_v22  ;;  %v5409_v36 = vadd.f32 %v5408_v39, %v5359_v34 }
 0x726   :  { %v5622_v37 = vsel %vm14716_vm15, %v5597_v53, 0.0  ;;  %vm14728_vm15 = vcmp.ge.s32.totalorder %v14685_v1, 1 }
 0x727   :  { %v5458_v42 = vadd.f32 %v5457_v20, %v5409_v36  ;;  %v5638_v51 = vadd.f32 %v5622_v37, %v13524_v45  ;;  %v5509_v9 = vpop.f32.mrf.mxu0  ;;  %v5364_v61 = vpop.f32.mrf.mxu1 }
 0x729   :  { %v5507_v48 = vadd.f32 %v5506_v19, %v5458_v42  ;;  %v5658_v27 = vadd.f32 %v13570_v49, %v5638_v51  ;;  %v14717_v42 = vrot.slane %v13555_v3, 6 }
 0x72b   :  { %v5591_v15 = vrot.slane %v5507_v48, 6  ;;  %v5674_v6 = vmax.f32 %v5658_v27, 0.0 }
 0x72c   :  { %v5411_v0 = vpop.f32.mrf.mxu2  ;;  %v5460_v2 = vpop.f32.mrf.mxu3 }
 0x72d   :  { %v5596_v54 = vsel %vm2011_vm9, %v5590_v22, %v5591_v15  ;;  %v5412_v34 = vadd.f32 %v5411_v0, %v5362_v24 }
 0x72e   :  { %v5639_v14 = vadd.f32 %v5596_v54, %v13532_v29 }
 0x72f   :  { %v5461_v41 = vadd.f32 %v5460_v2, %v5412_v34  ;;  %v5511_v53 = vpop.f32.mrf.mxu0 }
 0x730   :  { %v5659_v10 = vadd.f32 %v13570_v49, %v5639_v14 }
 0x731   :  { %v5510_v32 = vadd.f32 %v5509_v9, %v5461_v41 }
 0x732   :  { %v5675_v45 = vmax.f32 %v5659_v10, 0.0  ;;  %v10190_v10 = vld [vmem:[#allocation18 + $0x98] sm:$0xff] }
 0x733   :  { %v5592_v19 = vrot.slane %v5510_v32, 6  ;;  %v10177_v32 = vld [vmem:[#allocation18 + $0x30] sm:$0xff] }
 0x734   :  { %v5413_v31 = vpop.f32.mrf.mxu2  ;;  %v13637_v46 = vpack.c.bf16 %v5675_v45, %v5674_v6  ;;  %v5462_v20 = vpop.f32.mrf.mxu3  ;;  %v10188_v6 = vld [vmem:[#allocation18 + $0x88] sm:$0xff]  ;;  %v10186_v45 = vld [vmem:[#allocation18 + $0x78] sm:$0xff] }
 0x735   :  { %v5595_v22 = vsel %vm2011_vm9, %v5591_v15, %v5592_v19  ;;  %v5414_v39 = vadd.f32 %v5413_v31, %v5364_v61  ;;  %v10176_v61 = vld [vmem:[#allocation18 + $0x28] sm:$0xff]  ;;  %v9620_v31 = vld [vmem:[#allocation19 + $0xb0] sm:$0xf]  ;;  %6466 = vmatpush.bf16.msra.mxu1 %v10186_v45 }
 0x736   :  { %v5624_v29 = vsel %vm2042_vm8, %v5595_v22, 0.0  ;;  %v10226_v22 = vld [vmem:[#allocation19 + $0xb8] sm:$0xf0]  ;;  %v10208_v45 = vld [vmem:[#allocation19 + $0x28] sm:$0xf0] }
 0x737   :  { %v5463_v38 = vadd.f32 %v5462_v20, %v5414_v39  ;;  %v5640_v55 = vadd.f32 %v5624_v29, %v13539_v13  ;;  %v5647_v13 = vadd.f32 %v13570_v49, %v13563_v47  ;;  %v10192_v47 = vld [vmem:[#allocation18 + $0xa8] sm:$0xff]  ;;  %v10185_v39 = vld [vmem:[#allocation18 + $0x70] sm:$0xff]  ;;  %v9621_v20 = vor.u32 %v10226_v22, %v9620_v31 }
 0x738   :  { %v10201_v29 = vld [vmem:[#allocation18 + $0xf0] sm:$0xff]  ;;  %v9536_v31 = vld [vmem:[#allocation19 + $0x8] sm:$0xf] }
 0x739   :  { %v5512_v36 = vadd.f32 %v5511_v53, %v5463_v38  ;;  %v5660_v15 = vadd.f32 %v13570_v49, %v5640_v55  ;;  %v5663_v9 = vmax.f32 %v5647_v13, 0.0  ;;  %v10175_v38 = vld [vmem:[#allocation18 + $0x20] sm:$0xff]  ;;  %v9608_v55 = vld [vmem:[#allocation19 + $0x98] sm:$0xf]  ;;  %6467 = vmatpush.bf16.msra.mxu1 %v10185_v39  ;;  %v9584_v13 = vld [vmem:[#allocation19 + $0x68] sm:$0xf] }
 0x73a   :  { %v10223_v53 = vld [vmem:[#allocation19 + $0xa0] sm:$0xf0]  ;;  %v10205_v22 = vld [vmem:[#allocation19 + $0x10] sm:$0xf0] }
 0x73b   :  { %v5593_v25 = vrot.slane %v5512_v36, 6  ;;  %v5676_v3 = vmax.f32 %v5660_v15, 0.0  ;;  %v9609_v36 = vor.u32 %v10223_v53, %v9608_v55  ;;  %v10199_v15 = vld [vmem:[#allocation18 + $0xe0] sm:$0xff]  ;;  %v9537_v39 = vor.u32 %v10205_v22, %v9536_v31 }
 0x73d   :  { %v5594_v37 = vsel %vm2011_vm9, %v5592_v19, %v5593_v25  ;;  %v5609_v51 = vsel %vm2011_vm9, %v5593_v25, %v14717_v42  ;;  %v10202_v19 = vld [vmem:[#allocation18 + $0xf8] sm:$0xff]  ;;  %v10184_v25 = vld [vmem:[#allocation18 + $0x68] sm:$0xff] }
 0x73e   :  { %v5610_v48 = vsel %vm2028_vm7, %v5609_v51, 0.0  ;;  %v5641_v24 = vadd.f32 %v5594_v37, %v13550_v30  ;;  %v10194_v30 = vld [vmem:[#allocation18 + $0xb8] sm:$0xff]  ;;  %6564 = vmatpush.bf16.msrb.mxu3 %v10202_v19  ;;  %v9596_v37 = vld [vmem:[#allocation19 + $0x80] sm:$0xf]  ;;  %v10220_v42 = vld [vmem:[#allocation19 + $0x88] sm:$0xf0]  ;;  %6468 = vmatpush.bf16.msra.mxu1 %v10184_v25 }
 0x73f   :  { %v5626_v0 = vadd.f32 %v5610_v48, %v13553_v5  ;;  %6515 = vmatpush.bf16.msrb.mxu2 %v10194_v30  ;;  %v10193_v5 = vld [vmem:[#allocation18 + $0xb0] sm:$0xff]  ;;  %v10174_v51 = vld [vmem:[#allocation18 + $0x18] sm:$0xff]  ;;  %v9597_v48 = vor.u32 %v10220_v42, %v9596_v37  ;;  %v14722_v42 = vld [vmem:[#allocation33_spill] sm:$0xff] }
 0x740   :  { %v5661_v2 = vadd.f32 %v13570_v49, %v5641_v24  ;;  %v10183_v24 = vld [vmem:[#allocation18 + $0x60] sm:$0xff] }
 0x741   :  { %v5646_v54 = vadd.f32 %v13570_v49, %v5626_v0  ;;  %v10191_v49 = vld [vmem:[#allocation18 + $0xa0] sm:$0xff]  ;;  %v10217_v0 = vld [vmem:[#allocation19 + $0x70] sm:$0xf0] }
 0x742   :  { %v5677_v34 = vmax.f32 %v5661_v2, 0.0  ;;  %6565 = vmatpush.bf16.msrb.mxu3 %v10201_v29  ;;  %v10173_v2 = vld [vmem:[#allocation18 + $0x10] sm:$0xff]  ;;  %6469 = vmatpush.bf16.msra.mxu1 %v10183_v24 }
 0x743   :  { %v5662_v14 = vmax.f32 %v5646_v54, 0.0  ;;  %6516 = vmatpush.bf16.msrb.mxu2 %v10193_v5  ;;  %v9585_v54 = vor.u32 %v10217_v0, %v9584_v13  ;;  %v10181_v5 = vld [vmem:[#allocation18 + $0x50] sm:$0xff] }
 0x744   :  { %v13659_v27 = vpack.c.bf16 %v5677_v34, %v5676_v3  ;;  %v10182_v3 = vld [vmem:[#allocation18 + $0x58] sm:$0xff]  ;;  %v14724_v24 = vld [vmem:[#allocation38_spill] sm:$0xff] }
 0x745   :  { %v5678_v41 = vpack.c.bf16 %v5663_v9, %v5662_v14  ;;  %v10198_v34 = vld [vmem:[#allocation18 + $0xd8] sm:$0xff]  ;;  %v10172_v9 = vld [vmem:[#allocation18 + $0x8] sm:$0xff]  ;;  %v9572_v14 = vld [vmem:[#allocation19 + $0x50] sm:$0xf] }
 0x746   :  { %6470 = vmatpush.bf16.msra.mxu1 %v10182_v3  ;;  %v14726_v3 = vld [vmem:[#allocation34_spill] sm:$0xff] }
 0x747   :  { %5854 = vmatmul.bf16.vlgmr.msrb.gmra.mxu1 %v5678_v41  ;;  %5903 = vmatmul.bf16.vlgmr.msra.gmra.mxu2 %v5678_v41 }
 0x748   :  { %5952 = vmatmul.bf16.vlgmr.msra.gmra.mxu3 %v5678_v41  ;;  %6517 = vmatpush.bf16.msrb.mxu2 %v10192_v47  ;;  %v10214_v41 = vld [vmem:[#allocation19 + $0x58] sm:$0xf0]  ;;  %v10197_v47 = vld [vmem:[#allocation18 + $0xd0] sm:$0xff] }
 0x749   :  { %v9573_v30 = vor.u32 %v10214_v41, %v9572_v14 }
 0x74a   :  { %6471 = vmatpush.bf16.msra.mxu1 %v10181_v5 }
 0x74c   :  { %6518 = vmatpush.bf16.msrb.mxu2 %v10191_v49  ;;  %v10171_v49 = vld [vmem:[#allocation18] sm:$0xff] }
 0x750   :  { %6519 = vmatpush.bf16.msrb.mxu2 %v10190_v10  ;;  %v10211_v10 = vld [vmem:[#allocation19 + $0x40] sm:$0xf0] }
 0x757   :  { %5859 = vmatmul.bf16.gmra.mxu1 %v13577_v12  ;;  %5908 = vmatmul.bf16.gmra.mxu2 %v13577_v12 }
 0x758   :  { %5957 = vmatmul.bf16.gmra.mxu3 %v13577_v12  ;;  %v10178_v12 = vld [vmem:[#allocation18 + $0x38] sm:$0xff] }
 0x759   :  { %6417 = vmatpush.bf16.msra.mxu0 %v10178_v12  ;;  %v9560_v12 = vld [vmem:[#allocation19 + $0x38] sm:$0xf] }
 0x75d   :  { %6418 = vmatpush.bf16.msra.mxu0 %v10177_v32  ;;  %v9561_v32 = vor.u32 %v10211_v10, %v9560_v12 }
 0x761   :  { %6419 = vmatpush.bf16.msra.mxu0 %v10176_v61  ;;  %v10195_v61 = vld [vmem:[#allocation18 + $0xc0] sm:$0xff] }
 0x765   :  { %6420 = vmatpush.bf16.msra.mxu0 %v10175_v38 }
 0x767   :  { %5864 = vmatmul.bf16.gmra.mxu1 %v13589_v57  ;;  %5913 = vmatmul.bf16.gmra.mxu2 %v13589_v57 }
 0x768   :  { %5962 = vmatmul.bf16.gmra.mxu3 %v13589_v57  ;;  %v10189_v57 = vld [vmem:[#allocation18 + $0x90] sm:$0xff] }
 0x769   :  { %6520 = vmatpush.bf16.msrb.mxu2 %v10189_v57  ;;  %6421 = vmatpush.bf16.msra.mxu0 %v10174_v51  ;;  %v10180_v57 = vld [vmem:[#allocation18 + $0x48] sm:$0xff] }
 0x76a   :  { %6472 = vmatpush.bf16.msra.mxu1 %v10180_v57  ;;  %v14723_v51 = vld [vmem:[#allocation37_spill] sm:$0xff] }
 0x76d   :  { %6521 = vmatpush.bf16.msrb.mxu2 %v10188_v6  ;;  %6422 = vmatpush.bf16.msra.mxu0 %v10173_v2  ;;  %v10196_v6 = vld [vmem:[#allocation18 + $0xc8] sm:$0xff] }
 0x771   :  { %6423 = vmatpush.bf16.msra.mxu0 %v10172_v9 }
 0x775   :  { %6424 = vmatpush.bf16.msra.mxu0 %v10171_v49 }
 0x777   :  { %5869 = vmatmul.bf16.gmra.mxu1 %v13601_v44  ;;  %5918 = vmatmul.bf16.gmra.mxu2 %v13601_v44 }
 0x778   :  { %5967 = vmatmul.bf16.gmra.mxu3 %v13601_v44  ;;  %v10187_v44 = vld [vmem:[#allocation18 + $0x80] sm:$0xff]  ;;  %6425 = vmatmul.bf16.vlgmr.msra.gmra.mxu0 %v12803_v35 }
 0x779   :  { %6522 = vmatpush.bf16.msrb.mxu2 %v10187_v44  ;;  %v10179_v44 = vld [vmem:[#allocation18 + $0x40] sm:$0xff] }
 0x77a   :  { %6473 = vmatpush.bf16.msra.mxu1 %v10179_v44 }
 0x77d   :  { %6911 = vmatpush.bf16.msra.mxu2 %v9621_v20  ;;  %v14719_v20 = vld [vmem:[#allocation69_spill] sm:$0xff] }
 0x781   :  { %6912 = vmatpush.bf16.msra.mxu2 %v9609_v36  ;;  %v14721_v36 = vld [vmem:[#allocation64_spill] sm:$0xff] }
 0x785   :  { %6913 = vmatpush.bf16.msra.mxu2 %v9597_v48 }
 0x787   :  { %5874 = vmatmul.bf16.gmra.mxu1 %v13615_v7  ;;  %5923 = vmatmul.bf16.gmra.mxu2 %v13615_v7 }
 0x788   :  { %5972 = vmatmul.bf16.gmra.mxu3 %v13615_v7  ;;  %v10200_v7 = vld [vmem:[#allocation18 + $0xe8] sm:$0xff]  ;;  %6430 = vmatmul.bf16.gmra.mxu0 %v12815_v52 }
 0x789   :  { %6566 = vmatpush.bf16.msrb.mxu3 %v10200_v7  ;;  %6914 = vmatpush.bf16.msra.mxu2 %v9585_v54 }
 0x78d   :  { %6567 = vmatpush.bf16.msrb.mxu3 %v10199_v15  ;;  %6915 = vmatpush.bf16.msra.mxu2 %v9573_v30  ;;  %v14725_v15 = vld [vmem:[#allocation35_spill] sm:$0xff] }
 0x791   :  { %6568 = vmatpush.bf16.msrb.mxu3 %v10198_v34  ;;  %6916 = vmatpush.bf16.msra.mxu2 %v9561_v32 }
 0x795   :  { %6569 = vmatpush.bf16.msrb.mxu3 %v10197_v47  ;;  %v14729_v47 = vld [vmem:[#allocation41_spill] sm:$0xff] }
 0x797   :  { %5879 = vmatmul.bf16.gmra.mxu1 %v13627_v43  ;;  %5928 = vmatmul.bf16.gmra.mxu2 %v13627_v43 }
 0x798   :  { %5977 = vmatmul.bf16.gmra.mxu3 %v13627_v43  ;;  %v9548_v43 = vld [vmem:[#allocation19 + $0x20] sm:$0xf]  ;;  %6435 = vmatmul.bf16.gmra.mxu0 %v12851_v23 }
 0x799   :  { %v9549_v19 = vor.u32 %v10208_v45, %v9548_v43  ;;  %6570 = vmatpush.bf16.msrb.mxu3 %v10196_v6  ;;  %v14730_v6 = vld [vmem:[#allocation72_spill] sm:$0xff] }
 0x79b   :  { %6917 = vmatpush.bf16.msra.mxu2 %v9549_v19 }
 0x79d   :  { %6571 = vmatpush.bf16.msrb.mxu3 %v10195_v61 }
 0x79f   :  { %6918 = vmatpush.bf16.msra.mxu2 %v9537_v39 }
 0x7a7   :  { %5884 = vmatmul.bf16.gmra.mxu1 %v13637_v46  ;;  %5933 = vmatmul.bf16.gmra.mxu2 %v13637_v46 }
 0x7a8   :  { %5982 = vmatmul.bf16.gmra.mxu3 %v13637_v46  ;;  %v14718_v46 = vld [vmem:[#allocation71_spill] sm:$0xff]  ;;  %6440 = vmatmul.bf16.gmra.mxu0 %v12899_v26 }
 0x7b7   :  { %5889 = vmatmul.bf16.gmra.mxu1 %v13659_v27  ;;  %5938 = vmatmul.bf16.gmra.mxu2 %v13659_v27 }
 0x7b8   :  { %5987 = vmatmul.bf16.gmra.mxu3 %v13659_v27  ;;  %v14720_v27 = vld [vmem:[#allocation65_spill] sm:$0xff]  ;;  %6445 = vmatmul.bf16.gmra.mxu0 %v14668_v28  ;;  %v14731_v28 = vld [vmem:[#allocation40_spill] sm:$0xff] }
 0x7c4   :  { %v13685_v35 = vpop.f32.mrf.mxu1 }
 0x7c7   :  { %6474 = vmatmul.bf16.vlgmr.msra.gmra.mxu1 %v12839_v11  ;;  %6523 = vmatmul.bf16.vlgmr.msrb.gmra.mxu2 %v12841_v4 }
 0x7c8   :  { %6572 = vmatmul.bf16.vlgmr.msrb.gmra.mxu3 %v12849_v17  ;;  %7651 = vmatpush.bf16.msrb.mxu2 %v14718_v46 }
 0x7c9   :  { %6450 = vmatmul.bf16.gmra.mxu0 %v14672_v8 }
 0x7ca   :  { %v13691_v29 = vpop.f32.mrf.mxu2 }
 0x7cb   :  { %v13693_v52 = vpop.f32.mrf.mxu3  ;;  %v5993_v11 = vrot.slane %v13691_v29, 7 }
 0x7cc   :  { %7652 = vmatpush.bf16.msrb.mxu2 %v14719_v20  ;;  %v5857_v38 = vpop.f32.mrf.mxu1  ;;  %v6057_v17 = vrot.slane %v13693_v52, 6 }
 0x7d0   :  { %7653 = vmatpush.bf16.msrb.mxu2 %v14720_v27 }
 0x7d2   :  { %v5906_v23 = vpop.f32.mrf.mxu2 }
 0x7d3   :  { %v5994_v55 = vrot.slane %v5906_v23, 7  ;;  %v5955_v4 = vpop.f32.mrf.mxu3 }
 0x7d4   :  { %v6058_v53 = vrot.slane %v5955_v4, 6  ;;  %7654 = vmatpush.bf16.msrb.mxu2 %v14721_v36  ;;  %v5860_v25 = vpop.f32.mrf.mxu1 }
 0x7d5   :  { %v6023_v7 = vsel %vm14683_vm1, %v5993_v11, %v5994_v55 }
 0x7d6   :  { %v6042_v37 = vadd.f32 %v6023_v7, %v5857_v38  ;;  %v6087_v26 = vsel %vm2011_vm9, %v6057_v17, %v6058_v53 }
 0x7d7   :  { %6479 = vmatmul.bf16.gmra.mxu1 %v14722_v42  ;;  %6528 = vmatmul.bf16.gmra.mxu2 %v14723_v51 }
 0x7d8   :  { %v13711_v48 = vadd.f32 %v6087_v26, %v6042_v37  ;;  %6577 = vmatmul.bf16.gmra.mxu3 %v14724_v24  ;;  %7655 = vmatpush.bf16.msrb.mxu2 %v14725_v15  ;;  %v14734_v24 = vld [vmem:[#allocation45_spill] sm:$0xff] }
 0x7da   :  { %v5909_v13 = vpop.f32.mrf.mxu2 }
 0x7db   :  { %v5995_v0 = vrot.slane %v5909_v13, 7  ;;  %v5958_v2 = vpop.f32.mrf.mxu3 }
 0x7dc   :  { %v6059_v54 = vrot.slane %v5958_v2, 6  ;;  %7656 = vmatpush.bf16.msrb.mxu2 %v14726_v3  ;;  %v5862_v34 = vpop.f32.mrf.mxu1 }
 0x7dd   :  { %v6022_v9 = vsel %vm14727_vm2, %v5994_v55, %v5995_v0  ;;  %vm14732_vm2 = vmmov %vm14683_vm1 }
 0x7de   :  { %v6027_v14 = vsel %vm14728_vm15, %v6022_v9, 0.0  ;;  %v6086_v41 = vsel %vm2011_vm9, %v6058_v53, %v6059_v54  ;;  %vm14733_vm15 = vcmp.ge.s32.totalorder %v14688_v50, 1 }
 0x7df   :  { %v6043_v30 = vadd.f32 %v6027_v14, %v5860_v25  ;;  %v6091_v5 = vsel %vm2030_vm10, %v6086_v41, 0.0  ;;  %v14737_v41 = vld [vmem:[#allocation32_spill] sm:$0xff] }
 0x7e0   :  { %7657 = vmatpush.bf16.msrb.mxu2 %v14729_v47  ;;  %6455 = vmatmul.bf16.gmra.mxu0 %v14737_v41  ;;  %v9612_v41 = vld [vmem:[#allocation19 + $0xa8] sm:$0xf] }
 0x7e1   :  { %v13725_v49 = vadd.f32 %v6091_v5, %v6043_v30 }
 0x7e2   :  { %v5911_v12 = vpop.f32.mrf.mxu2 }
 0x7e3   :  { %v5996_v10 = vrot.slane %v5911_v12, 7  ;;  %v5960_v32 = vpop.f32.mrf.mxu3 }
 0x7e4   :  { %v6060_v57 = vrot.slane %v5960_v32, 6  ;;  %7658 = vmatpush.bf16.msrb.mxu2 %v14730_v6  ;;  %v5865_v43 = vpop.f32.mrf.mxu1  ;;  %v14738_v6 = vld [vmem:[#allocation44_spill] sm:$0xff] }
 0x7e5   :  { %v6021_v45 = vsel %vm14683_vm1, %v5995_v0, %v5996_v10 }
 0x7e6   :  { %v6044_v19 = vadd.f32 %v6021_v45, %v5862_v34  ;;  %v6085_v44 = vsel %vm2011_vm9, %v6059_v54, %v6060_v57 }
 0x7e7   :  { %6484 = vmatmul.bf16.gmra.mxu1 %v12941_v59  ;;  %6533 = vmatmul.bf16.gmra.mxu2 %v14666_v63 }
 0x7e8   :  { %v13735_v61 = vadd.f32 %v6085_v44, %v6044_v19  ;;  %6582 = vmatmul.bf16.gmra.mxu3 %v14731_v28  ;;  %v14740_v19 = vld [vmem:[#allocation48_spill] sm:$0xff] }
 0x7ea   :  { %v5914_v31 = vpop.f32.mrf.mxu2 }
 0x7eb   :  { %v5997_v22 = vrot.slane %v5914_v31, 7  ;;  %v5963_v39 = vpop.f32.mrf.mxu3 }
 0x7ec   :  { %v6061_v46 = vrot.slane %v5963_v39, 6  ;;  %v5867_v20 = vpop.f32.mrf.mxu1 }
 0x7ed   :  { %v6020_v38 = vsel %vm14732_vm2, %v5996_v10, %v5997_v22  ;;  %vm14735_vm2 = vmmov %vm14683_vm1 }
 0x7ee   :  { %v6029_v27 = vsel %vm14733_vm15, %v6020_v38, 0.0  ;;  %v6084_v59 = vsel %vm2011_vm9, %v6060_v57, %v6061_v46  ;;  %vm14736_vm15 = vcmp.ge.s32.totalorder %v14691_v58, 1 }
 0x7ef   :  { %v6045_v23 = vadd.f32 %v6029_v27, %v5865_v43  ;;  %v6093_v63 = vsel %vm2032_vm11, %v6084_v59, 0.0  ;;  %v14739_v43 = vld [vmem:[#allocation47_spill] sm:$0xff] }
 0x7f1   :  { %v13746_v55 = vadd.f32 %v6093_v63, %v6045_v23 }
 0x7f2   :  { %v5916_v4 = vpop.f32.mrf.mxu2 }
 0x7f3   :  { %v5998_v53 = vrot.slane %v5916_v4, 7  ;;  %v5965_v36 = vpop.f32.mrf.mxu3  ;;  %v14743_v4 = vld [vmem:[#allocation52_spill] sm:$0xff] }
 0x7f4   :  { %v6062_v25 = vrot.slane %v5965_v36, 6  ;;  %v5870_v7 = vpop.f32.mrf.mxu1  ;;  %6460 = vmatmul.bf16.gmra.mxu0 %v14743_v4 }
 0x7f5   :  { %v6019_v37 = vsel %vm14683_vm1, %v5997_v22, %v5998_v53  ;;  %v13810_v4 = vpop.f32.mrf.mxu0 }
 0x7f6   :  { %v6046_v26 = vadd.f32 %v6019_v37, %v5867_v20  ;;  %v6083_v42 = vsel %vm2011_vm9, %v6061_v46, %v6062_v25 }
 0x7f7   :  { %6489 = vmatmul.bf16.gmra.mxu1 %v14669_v18  ;;  %6538 = vmatmul.bf16.gmra.mxu2 %v14670_v40 }
 0x7f8   :  { %v13755_v51 = vadd.f32 %v6083_v42, %v6046_v26  ;;  %6587 = vmatmul.bf16.gmra.mxu3 %v14734_v24  ;;  %v14744_v24 = vld [vmem:[#allocation49_spill] sm:$0xff] }
 0x7fa   :  { %v5919_v8 = vpop.f32.mrf.mxu2 }
 0x7fb   :  { %v5999_v15 = vrot.slane %v5919_v8, 7  ;;  %v5968_v13 = vpop.f32.mrf.mxu3  ;;  %v14745_v8 = vld [vmem:[#allocation50_spill] sm:$0xff] }
 0x7fc   :  { %v6063_v0 = vrot.slane %v5968_v13, 6  ;;  %v5872_v2 = vpop.f32.mrf.mxu1  ;;  %v14746_v13 = vld [vmem:[#allocation51_spill] sm:$0xff] }
 0x7fd   :  { %v6018_v54 = vsel %vm14735_vm2, %v5998_v53, %v5999_v15  ;;  %vm14741_vm2 = vmmov %vm14683_vm1 }
 0x7fe   :  { %v6031_v3 = vsel %vm14736_vm15, %v6018_v54, 0.0  ;;  %v6082_v18 = vsel %vm2011_vm9, %v6062_v25, %v6063_v0  ;;  %vm14742_vm15 = vcmp.ge.s32.totalorder %v14694_v33, 1 }
 0x7ff   :  { %v6047_v34 = vadd.f32 %v6031_v3, %v5870_v7  ;;  %v6095_v40 = vsel %vm2034_vm12, %v6082_v18, 0.0 }
 0x801   :  { %v13766_v9 = vadd.f32 %v6095_v40, %v6047_v34 }
 0x802   :  { %v5921_v14 = vpop.f32.mrf.mxu2 }
 0x803   :  { %v6000_v30 = vrot.slane %v5921_v14, 7  ;;  %v5970_v5 = vpop.f32.mrf.mxu3 }
 0x804   :  { %v6064_v47 = vrot.slane %v5970_v5, 6  ;;  %v5875_v12 = vpop.f32.mrf.mxu1 }
 0x805   :  { %v6017_v10 = vsel %vm14683_vm1, %v5999_v15, %v6000_v30 }
 0x806   :  { %v6048_v32 = vadd.f32 %v6017_v10, %v5872_v2  ;;  %v6081_v57 = vsel %vm2011_vm9, %v6063_v0, %v6064_v47 }
 0x807   :  { %6494 = vmatmul.bf16.gmra.mxu1 %v14738_v6  ;;  %6543 = vmatmul.bf16.gmra.mxu2 %v14739_v43 }
 0x808   :  { %v13775_v45 = vadd.f32 %v6081_v57, %v6048_v32  ;;  %6592 = vmatmul.bf16.gmra.mxu3 %v14740_v19  ;;  %v9614_v32 = vld [vmem:[#allocation19 + $0xb4] sm:$0xf0]  ;;  %v9600_v19 = vld [vmem:[#allocation19 + $0x90] sm:$0xf] }
 0x80a   :  { %v5924_v44 = vpop.f32.mrf.mxu2 }
 0x80b   :  { %v6001_v28 = vrot.slane %v5924_v44, 7  ;;  %v5973_v31 = vpop.f32.mrf.mxu3  ;;  %v10222_v44 = vld [vmem:[#allocation19 + $0x98] sm:$0xf0] }
 0x80c   :  { %v6065_v22 = vrot.slane %v5973_v31, 6  ;;  %v5877_v39 = vpop.f32.mrf.mxu1 }
 0x80d   :  { %v6016_v46 = vsel %vm14741_vm2, %v6000_v30, %v6001_v28  ;;  %vm14747_vm2 = vmmov %vm14683_vm1  ;;  %v10225_v30 = vld [vmem:[#allocation19 + $0xb0] sm:$0xf0] }
 0x80e   :  { %v6033_v20 = vsel %vm14742_vm15, %v6016_v46, 0.0  ;;  %v6080_v38 = vsel %vm2011_vm9, %v6064_v47, %v6065_v22  ;;  %vm14748_vm15 = vcmp.ge.s32.totalorder %v14703_v60, 1  ;;  %v9613_v47 = vor.u32 %v10225_v30, %v9612_v41  ;;  %v9602_v46 = vld [vmem:[#allocation19 + $0x9c] sm:$0xf0]  ;;  %v9578_v41 = vld [vmem:[#allocation19 + $0x6c] sm:$0xf0] }
 0x80f   :  { %v6049_v27 = vadd.f32 %v6033_v20, %v5875_v12  ;;  %v6097_v59 = vsel %vm2036_vm13, %v6080_v38, 0.0  ;;  %v10224_v12 = vld [vmem:[#allocation19 + $0xac] sm:$0xf] }
 0x810   :  { %6813 = vmatpush.bf16.msrb.mxu0 %v9613_v47  ;;  %v9617_v57 = vor.u32 %v10224_v12, %v9614_v32 }
 0x811   :  { %v13786_v23 = vadd.f32 %v6097_v59, %v6049_v27 }
 0x812   :  { %v5926_v63 = vpop.f32.mrf.mxu2  ;;  %6862 = vmatpush.bf16.msrb.mxu1 %v9617_v57  ;;  %v9564_v57 = vld [vmem:[#allocation19 + $0x48] sm:$0xf] }
 0x813   :  { %v6002_v53 = vrot.slane %v5926_v63, 7  ;;  %v5975_v36 = vpop.f32.mrf.mxu3 }
 0x814   :  { %v6066_v25 = vrot.slane %v5975_v36, 6  ;;  %v5880_v7 = vpop.f32.mrf.mxu1  ;;  %v10219_v36 = vld [vmem:[#allocation19 + $0x80] sm:$0xf0] }
 0x815   :  { %v6015_v37 = vsel %vm14683_vm1, %v6001_v28, %v6002_v53  ;;  %v10221_v28 = vld [vmem:[#allocation19 + $0x94] sm:$0xf] }
 0x816   :  { %v6050_v26 = vadd.f32 %v6015_v37, %v5877_v39  ;;  %v6079_v42 = vsel %vm2011_vm9, %v6065_v22, %v6066_v25  ;;  %v9601_v39 = vor.u32 %v10222_v44, %v9600_v19  ;;  %v9605_v27 = vor.u32 %v10221_v28, %v9602_v46  ;;  %v14749_v37 = vld [vmem:[#allocation61_spill] sm:$0xff]  ;;  %v13827_v46 = vpop.f32.mrf.mxu0 }
 0x817   :  { %6499 = vmatmul.bf16.gmra.mxu1 %v14744_v24  ;;  %6548 = vmatmul.bf16.gmra.mxu2 %v14745_v8  ;;  %v9590_v24 = vld [vmem:[#allocation19 + $0x84] sm:$0xf0]  ;;  %v10212_v28 = vld [vmem:[#allocation19 + $0x4c] sm:$0xf] }
 0x818   :  { %v13795_v15 = vadd.f32 %v6079_v42, %v6050_v26  ;;  %6597 = vmatmul.bf16.gmra.mxu3 %v14746_v13  ;;  %6814 = vmatpush.bf16.msrb.mxu0 %v9601_v39  ;;  %v14750_v26 = vld [vmem:[#allocation62_spill] sm:$0xff]  ;;  %v14751_v13 = vld [vmem:[#allocation63_spill] sm:$0xff] }
 0x819   :  { %6863 = vmatpush.bf16.msrb.mxu1 %v9605_v27 }
 0x81a   :  { %v5929_v0 = vpop.f32.mrf.mxu2 }
 0x81b   :  { %v6003_v2 = vrot.slane %v5929_v0, 7  ;;  %v5978_v54 = vpop.f32.mrf.mxu3 }
 0x81c   :  { %v6067_v3 = vrot.slane %v5978_v54, 6  ;;  %v5882_v18 = vpop.f32.mrf.mxu1  ;;  %v9576_v54 = vld [vmem:[#allocation19 + $0x60] sm:$0xf] }
 0x81d   :  { %v6014_v34 = vsel %vm14747_vm2, %v6002_v53, %v6003_v2  ;;  %v9588_v53 = vld [vmem:[#allocation19 + $0x78] sm:$0xf]  ;;  %vm14752_vm2 = vmmov %vm14683_vm1 }
 0x81e   :  { %v6035_v40 = vsel %vm14748_vm15, %v6014_v34, 0.0  ;;  %v6078_v14 = vsel %vm2011_vm9, %v6066_v25, %v6067_v3  ;;  %v10218_v25 = vld [vmem:[#allocation19 + $0x7c] sm:$0xf]  ;;  %v9589_v42 = vor.u32 %v10219_v36, %v9588_v53  ;;  %v10215_v34 = vld [vmem:[#allocation19 + $0x64] sm:$0xf]  ;;  %vm14753_vm15 = vcmp.ge.s32.totalorder %v14706_v16, 1 }
 0x81f   :  { %v6051_v5 = vadd.f32 %v6035_v40, %v5880_v7  ;;  %v6099_v10 = vsel %vm2038_vm14, %v6078_v14, 0.0  ;;  %v9593_v0 = vor.u32 %v10218_v25, %v9590_v24  ;;  %v9581_v47 = vor.u32 %v10215_v34, %v9578_v41  ;;  %v10210_v53 = vld [vmem:[#allocation19 + $0x38] sm:$0xf0]  ;;  %v14755_v34 = vld [vmem:[#allocation66_spill] sm:$0xff]  ;;  %v9542_v41 = vld [vmem:[#allocation19 + $0x24] sm:$0xf0] }
 0x820   :  { %6815 = vmatpush.bf16.msrb.mxu0 %v9589_v42 }
 0x821   :  { %v13806_v6 = vadd.f32 %v6099_v10, %v6051_v5  ;;  %6864 = vmatpush.bf16.msrb.mxu1 %v9593_v0  ;;  %v9540_v0 = vld [vmem:[#allocation19 + $0x18] sm:$0xf] }
 0x822   :  { %v5931_v43 = vpop.f32.mrf.mxu2 }
 0x823   :  { %v6004_v31 = vrot.slane %v5931_v43, 7  ;;  %v5980_v22 = vpop.f32.mrf.mxu3  ;;  %v10213_v43 = vld [vmem:[#allocation19 + $0x50] sm:$0xf0] }
 0x824   :  { %v6068_v20 = vrot.slane %v5980_v22, 6  ;;  %v5885_v38 = vpop.f32.mrf.mxu1  ;;  %v9565_v44 = vor.u32 %v10213_v43, %v9564_v57  ;;  %v9566_v22 = vld [vmem:[#allocation19 + $0x54] sm:$0xf0]  ;;  %v10204_v57 = vld [vmem:[#allocation19 + $0x8] sm:$0xf0] }
 0x825   :  { %v6013_v59 = vsel %vm14683_vm1, %v6003_v2, %v6004_v31  ;;  %vm14754_vm1 = vcmp.ge.s32.totalorder %v14706_v16, 2  ;;  %6865 = vmatpush.bf16.msrb.mxu1 %v9581_v47  ;;  %v14757_v47 = vld [vmem:[#allocation68_spill] sm:$0xff] }
 0x826   :  { %v6052_v63 = vadd.f32 %v6013_v59, %v5882_v18  ;;  %v6077_v7 = vsel %vm2011_vm9, %v6067_v3, %v6068_v20  ;;  %v10216_v18 = vld [vmem:[#allocation19 + $0x68] sm:$0xf0]  ;;  %v10203_v43 = vld [vmem:[#allocation19 + $0x4] sm:$0xf] }
 0x827   :  { %6504 = vmatmul.bf16.gmra.mxu1 %v14749_v37  ;;  %6553 = vmatmul.bf16.gmra.mxu2 %v14750_v26  ;;  %v9577_v3 = vor.u32 %v10216_v18, %v9576_v54  ;;  %v10206_v54 = vld [vmem:[#allocation19 + $0x1c] sm:$0xf] }
 0x828   :  { %v13816_v8 = vadd.f32 %v6077_v7, %v6052_v63  ;;  %6602 = vmatmul.bf16.gmra.mxu3 %v14751_v13  ;;  %v9552_v63 = vld [vmem:[#allocation19 + $0x30] sm:$0xf]  ;;  %v9554_v7 = vld [vmem:[#allocation19 + $0x3c] sm:$0xf0] }
 0x829   :  { %6816 = vmatpush.bf16.msrb.mxu0 %v9577_v3 }
 0x82a   :  { %v5934_v2 = vpop.f32.mrf.mxu2 }
 0x82b   :  { %v6005_v40 = vrot.slane %v5934_v2, 7  ;;  %v5983_v14 = vpop.f32.mrf.mxu3  ;;  %v10207_v2 = vld [vmem:[#allocation19 + $0x20] sm:$0xf0] }
 0x82c   :  { %v6069_v30 = vrot.slane %v5983_v14, 6  ;;  %v5887_v5 = vpop.f32.mrf.mxu1  ;;  %v14756_v14 = vld [vmem:[#allocation67_spill] sm:$0xff]  ;;  %v9541_v3 = vor.u32 %v10207_v2, %v9540_v0 }
 0x82d   :  { %v6012_v12 = vsel %vm14752_vm2, %v6004_v31, %v6005_v40  ;;  %v9569_v31 = vor.u32 %v10212_v28, %v9566_v22  ;;  %6817 = vmatpush.bf16.msrb.mxu0 %v9565_v44  ;;  %v9530_v28 = vld [vmem:[#allocation19 + $0xc] sm:$0xf0] }
 0x82e   :  { %v6037_v10 = vsel %vm14753_vm15, %v6012_v12, 0.0  ;;  %v6076_v32 = vsel %vm2011_vm9, %v6068_v20, %v6069_v30  ;;  %v10209_v20 = vld [vmem:[#allocation19 + $0x34] sm:$0xf]  ;;  %v9545_v12 = vor.u32 %v10206_v54, %v9542_v41  ;;  %vm14758_vm15 = vmmov %vm14752_vm2 }
 0x82f   :  { %v6053_v19 = vadd.f32 %v6037_v10, %v5885_v38  ;;  %v6101_v39 = vsel %vm14754_vm1, %v6076_v32, 0.0  ;;  %v9553_v38 = vor.u32 %v10210_v53, %v9552_v63  ;;  %6866 = vmatpush.bf16.msrb.mxu1 %v9569_v31  ;;  %v9557_v42 = vor.u32 %v10209_v20, %v9554_v7  ;;  %v9528_v32 = vld [vmem:[#allocation19] sm:$0xf] }
 0x830   :  { %v9529_v44 = vor.u32 %v10204_v57, %v9528_v32  ;;  %v9533_v31 = vor.u32 %v10203_v43, %v9530_v28  ;;  %vm14759_vm1 = vcmp.ge.s32.totalorder %v14709_v21, 1 }
 0x831   :  { %v13829_v27 = vadd.f32 %v6101_v39, %v6053_v19  ;;  %6818 = vmatpush.bf16.msrb.mxu0 %v9553_v38  ;;  %v13851_v38 = vld [vmem:[%s14387_s17] ss:$0 sm:$0xff] }
 0x832   :  { %v5936_v59 = vpop.f32.mrf.mxu2 }
 0x833   :  { %v6006_v36 = vrot.slane %v5936_v59, 7  ;;  %v5985_v25 = vpop.f32.mrf.mxu3  ;;  %6867 = vmatpush.bf16.msrb.mxu1 %v9557_v42 }
 0x834   :  { %v6070_v37 = vrot.slane %v5985_v25, 6  ;;  %v5890_v26 = vpop.f32.mrf.mxu1 }
 0x835   :  { %v6011_v24 = vsel %vm14752_vm2, %v6005_v40, %v6006_v36  ;;  %6819 = vmatpush.bf16.msrb.mxu0 %v9541_v3 }
 0x836   :  { %v6054_v13 = vadd.f32 %v6011_v24, %v5887_v5  ;;  %v6075_v18 = vsel %vm2011_vm9, %v6069_v30, %v6070_v37  ;;  %v6431_v5 = vpop.f32.mrf.mxu0 }
 0x837   :  { %6509 = vmatmul.bf16.gmra.mxu1 %v14755_v34  ;;  %6558 = vmatmul.bf16.gmra.mxu2 %v14756_v14 }
 0x838   :  { %6607 = vmatmul.bf16.gmra.mxu3 %v14757_v47  ;;  %v13838_v10 = vadd.f32 %v6075_v18, %v6054_v13  ;;  %6868 = vmatpush.bf16.msrb.mxu1 %v9545_v12 }
 0x839   :  { %6820 = vmatpush.bf16.msrb.mxu0 %v9529_v44 }
 0x83a   :  { %v5939_v40 = vpop.f32.mrf.mxu2 }
 0x83b   :  { %v6007_v19 = vrot.slane %v5939_v40, 7  ;;  %v5988_v30 = vpop.f32.mrf.mxu3  ;;  %v13876_v40 = vld [vmem:[#allocation16] ss:$0 sm:$0xff] }
 0x83c   :  { %v6071_v22 = vrot.slane %v5988_v30, 6  ;;  %v5892_v39 = vpop.f32.mrf.mxu1  ;;  %6869 = vmatpush.bf16.msrb.mxu1 %v9533_v31  ;;  %v6126_v28 = vadd.f32 %v13876_v40, %v13711_v48 }
 0x83d   :  { %v6010_v59 = vsel %vm14758_vm15, %v6006_v36, %v6007_v19  ;;  %vm14760_vm15 = vmmov %vm14752_vm2 }
 0x83e   :  { %v6039_v63 = vsel %vm14759_vm1, %v6010_v59, 0.0  ;;  %v6074_v53 = vsel %vm2011_vm9, %v6070_v37, %v6071_v22  ;;  %v6433_v2 = vpop.f32.mrf.mxu0  ;;  %v6427_v37 = vadd.f32 %v13851_v38, %v13810_v4  ;;  %vm14761_vm1 = vcmp.ge.s32.totalorder %v14713_v62, 1 }
 0x83f   :  { %v6055_v20 = vadd.f32 %v6039_v63, %v5890_v26  ;;  %v6103_v25 = vsel %vm2042_vm8, %v6074_v53, 0.0  ;;  %v6432_v53 = vadd.f32 %v13851_v38, %v6431_v5  ;;  %v6434_v5 = vadd.f32 %v13851_v38, %v6433_v2 }
 0x841   :  { %v13853_v7 = vadd.f32 %v6103_v25, %v6055_v20  ;;  %v6142_v20 = vmax.f32 %v6126_v28, 0.0 }
 0x842   :  { %v5941_v36 = vpop.f32.mrf.mxu2 }
 0x843   :  { %v6008_v42 = vrot.slane %v5941_v36, 7  ;;  %v5990_v24 = vpop.f32.mrf.mxu3 }
 0x844   :  { %v6072_v13 = vrot.slane %v5990_v24, 6  ;;  %v6475_v0 = vpop.f32.mrf.mxu1 }
 0x845   :  { %v6009_v26 = vsel %vm14752_vm2, %v6007_v19, %v6008_v42  ;;  %v6024_v54 = vsel %vm14760_vm15, %v6008_v42, %v5993_v11  ;;  %v6476_v11 = vadd.f32 %v6475_v0, %v6427_v37  ;;  %vm14762_vm2 = vcmp.ge.s32.totalorder %v14694_v33, 4 }
 0x846   :  { %v6025_v18 = vsel %vm14761_vm1, %v6024_v54, 0.0  ;;  %v6056_v34 = vadd.f32 %v6009_v26, %v5892_v39  ;;  %v6073_v14 = vsel %vm2011_vm9, %v6071_v22, %v6072_v13  ;;  %v6088_v4 = vsel %vm2011_vm9, %v6072_v13, %v6057_v17  ;;  %v6436_v19 = vpop.f32.mrf.mxu0 }
 0x847   :  { %v6041_v3 = vadd.f32 %v6025_v18, %v13685_v35  ;;  %v6089_v29 = vsel %vm2028_vm7, %v6088_v4, 0.0  ;;  %v6429_v17 = vadd.f32 %v13851_v38, %v13827_v46  ;;  %v6127_v18 = vadd.f32 %v13876_v40, %v13725_v49 }
 0x848   :  { %v13874_v41 = vadd.f32 %v6073_v14, %v6056_v34  ;;  %v6128_v4 = vadd.f32 %v13876_v40, %v13735_v61  ;;  %vm14763_vm15 = vcmp.ge.s32.totalorder %v14703_v60, 4  ;;  %vm14764_vm1 = vcmp.ge.s32.totalorder %v14706_v16, 2 }
 0x849   :  { %v6105_v47 = vadd.f32 %v6089_v29, %v6041_v3 }
 0x84a   :  { %v6524_v12 = vpop.f32.mrf.mxu2 }
 0x84b   :  { %v6573_v32 = vpop.f32.mrf.mxu3  ;;  %v6525_v43 = vadd.f32 %v6524_v12, %v6476_v11  ;;  %v6125_v52 = vadd.f32 %v13876_v40, %v6105_v47  ;;  %v6143_v11 = vmax.f32 %v6127_v18, 0.0 }
 0x84c   :  { %v6477_v57 = vpop.f32.mrf.mxu1 }
 0x84d   :  { %v6141_v35 = vmax.f32 %v6125_v52, 0.0  ;;  %v6574_v30 = vadd.f32 %v6573_v32, %v6525_v43  ;;  %v6478_v44 = vadd.f32 %v6477_v57, %v6429_v17  ;;  %v6437_v43 = vadd.f32 %v13851_v38, %v6436_v19 }
 0x84e   :  { %v6438_v42 = vpop.f32.mrf.mxu0  ;;  %v6144_v52 = vmax.f32 %v6128_v4, 0.0 }
 0x84f   :  { %v13883_v63 = vadd.f32 %v6574_v30, %v6141_v35  ;;  %v6439_v19 = vadd.f32 %v13851_v38, %v6438_v42 }
 0x851   :  { %v14527_v46 = vmax.f32 %v13883_v63, 0.0 }
 0x852   :  { %v6526_v22 = vpop.f32.mrf.mxu2 }
 0x853   :  { %v6527_v39 = vadd.f32 %v6526_v22, %v6478_v44  ;;  %v6575_v31 = vpop.f32.mrf.mxu3 }
 0x854   :  { %v6480_v59 = vpop.f32.mrf.mxu1 }
 0x855   :  { %v6576_v25 = vadd.f32 %v6575_v31, %v6527_v39  ;;  %v6481_v13 = vadd.f32 %v6480_v59, %v6432_v53  ;;  %v6129_v59 = vadd.f32 %v13876_v40, %v13746_v55 }
 0x856   :  { %v6441_v29 = vpop.f32.mrf.mxu0 }
 0x857   :  { %v13886_v36 = vadd.f32 %v6576_v25, %v6142_v20  ;;  %v6130_v25 = vadd.f32 %v13876_v40, %v13755_v51 }
 0x859   :  { %v14529_v24 = vmax.f32 %v13886_v36, 0.0  ;;  %v6146_v18 = vmax.f32 %v6130_v25, 0.0 }
 0x85a   :  { %v6529_v0 = vpop.f32.mrf.mxu2 }
 0x85b   :  { %v6645_v48 = vpack.c.bf16 %v14529_v24, %v14527_v46  ;;  %v6578_v37 = vpop.f32.mrf.mxu3  ;;  %v6530_v54 = vadd.f32 %v6529_v0, %v6481_v13  ;;  %v6145_v0 = vmax.f32 %v6129_v59, 0.0  ;;  %v9716_v24 = vld [vmem:[#allocation21 + $0xb0] sm:$0xf] }
 0x85c   :  { %v6482_v26 = vpop.f32.mrf.mxu1 }
 0x85d   :  { %6821 = vmatmul.bf16.vlgmr.msrb.gmra.mxu0 %v6645_v48  ;;  %6870 = vmatmul.bf16.vlgmr.msrb.gmra.mxu1 %v6645_v48  ;;  %v6579_v34 = vadd.f32 %v6578_v37, %v6530_v54  ;;  %v6483_v14 = vadd.f32 %v6482_v26, %v6434_v5  ;;  %v6442_v5 = vadd.f32 %v13851_v38, %v6441_v29 }
 0x85e   :  { %6919 = vmatmul.bf16.vlgmr.msra.gmra.mxu2 %v6645_v48  ;;  %v6443_v39 = vpop.f32.mrf.mxu0 }
 0x85f   :  { %v13899_v57 = vadd.f32 %v6579_v34, %v6143_v11  ;;  %v6444_v29 = vadd.f32 %v13851_v38, %v6443_v39 }
 0x861   :  { %v6631_v49 = vmax.f32 %v13899_v57, 0.0 }
 0x862   :  { %v6531_v3 = vpop.f32.mrf.mxu2 }
 0x863   :  { %v6532_v47 = vadd.f32 %v6531_v3, %v6483_v14  ;;  %v6580_v12 = vpop.f32.mrf.mxu3 }
 0x864   :  { %v6485_v32 = vpop.f32.mrf.mxu1 }
 0x865   :  { %v6581_v2 = vadd.f32 %v6580_v12, %v6532_v47  ;;  %v6486_v30 = vadd.f32 %v6485_v32, %v6437_v43  ;;  %v6131_v43 = vadd.f32 %v13876_v40, %v13766_v9 }
 0x866   :  { %v6446_v42 = vpop.f32.mrf.mxu0 }
 0x867   :  { %v13902_v17 = vadd.f32 %v6581_v2, %v6144_v52 }
 0x869   :  { %v6632_v35 = vmax.f32 %v13902_v17, 0.0 }
 0x86a   :  { %v6534_v61 = vpop.f32.mrf.mxu2 }
 0x86b   :  { %v6583_v44 = vpop.f32.mrf.mxu3  ;;  %v6646_v28 = vpack.c.bf16 %v6632_v35, %v6631_v49  ;;  %v6535_v31 = vadd.f32 %v6534_v61, %v6486_v30  ;;  %v6132_v61 = vadd.f32 %v13876_v40, %v13775_v45 }
 0x86c   :  { %v6487_v22 = vpop.f32.mrf.mxu1 }
 0x86d   :  { %6826 = vmatmul.bf16.gmra.mxu0 %v6646_v28  ;;  %6875 = vmatmul.bf16.gmra.mxu1 %v6646_v28  ;;  %v6584_v53 = vadd.f32 %v6583_v44, %v6535_v31  ;;  %v6488_v20 = vadd.f32 %v6487_v22, %v6439_v19 }
 0x86e   :  { %6924 = vmatmul.bf16.gmra.mxu2 %v6646_v28  ;;  %v6448_v52 = vpop.f32.mrf.mxu0  ;;  %v6147_v28 = vmax.f32 %v6131_v43, 0.0 }
 0x86f   :  { %v13915_v54 = vadd.f32 %v6584_v53, %v6145_v0  ;;  %v6447_v53 = vadd.f32 %v13851_v38, %v6446_v42  ;;  %v6133_v42 = vadd.f32 %v13876_v40, %v13786_v23 }
 0x871   :  { %v6633_v55 = vmax.f32 %v13915_v54, 0.0 }
 0x872   :  { %v6536_v13 = vpop.f32.mrf.mxu2 }
 0x873   :  { %v6537_v48 = vadd.f32 %v6536_v13, %v6488_v20  ;;  %v6585_v37 = vpop.f32.mrf.mxu3  ;;  %v6148_v20 = vmax.f32 %v6132_v61, 0.0 }
 0x874   :  { %v6490_v26 = vpop.f32.mrf.mxu1 }
 0x875   :  { %v6586_v34 = vadd.f32 %v6585_v37, %v6537_v48  ;;  %v6491_v3 = vadd.f32 %v6490_v26, %v6442_v5 }
 0x876   :  { %v6451_v45 = vpop.f32.mrf.mxu0 }
 0x877   :  { %v13918_v14 = vadd.f32 %v6586_v34, %v6146_v18  ;;  %v6449_v34 = vadd.f32 %v13851_v38, %v6448_v52  ;;  %v6452_v61 = vadd.f32 %v13851_v38, %v6451_v45  ;;  %v6135_v45 = vadd.f32 %v13876_v40, %v13806_v6 }
 0x879   :  { %v14534_v4 = vmax.f32 %v13918_v14, 0.0 }
 0x87a   :  { %v6539_v51 = vpop.f32.mrf.mxu2 }
 0x87b   :  { %v6588_v11 = vpop.f32.mrf.mxu3  ;;  %v6647_v47 = vpack.c.bf16 %v14534_v4, %v6633_v55  ;;  %v6540_v32 = vadd.f32 %v6539_v51, %v6491_v3 }
 0x87c   :  { %v6492_v12 = vpop.f32.mrf.mxu1 }
 0x87d   :  { %6831 = vmatmul.bf16.gmra.mxu0 %v6647_v47  ;;  %6880 = vmatmul.bf16.gmra.mxu1 %v6647_v47  ;;  %v6589_v2 = vadd.f32 %v6588_v11, %v6540_v32  ;;  %v6493_v30 = vadd.f32 %v6492_v12, %v6444_v29  ;;  %v6134_v11 = vadd.f32 %v13876_v40, %v13795_v15  ;;  %v6149_v12 = vmax.f32 %v6133_v42, 0.0 }
 0x87e   :  { %6929 = vmatmul.bf16.gmra.mxu2 %v6647_v47 }
 0x87f   :  { %v13931_v59 = vadd.f32 %v6589_v2, %v6147_v28  ;;  %v6453_v2 = vpop.f32.mrf.mxu0 }
 0x881   :  { %v14533_v9 = vmax.f32 %v13931_v59, 0.0 }
 0x882   :  { %v6541_v44 = vpop.f32.mrf.mxu2 }
 0x883   :  { %v6542_v22 = vadd.f32 %v6541_v44, %v6493_v30  ;;  %v6590_v31 = vpop.f32.mrf.mxu3  ;;  %v6150_v44 = vmax.f32 %v6134_v11, 0.0 }
 0x884   :  { %v6495_v19 = vpop.f32.mrf.mxu1 }
 0x885   :  { %v6591_v39 = vadd.f32 %v6590_v31, %v6542_v22  ;;  %v6496_v0 = vadd.f32 %v6495_v19, %v6447_v53 }
 0x887   :  { %v13934_v25 = vadd.f32 %v6591_v39, %v6148_v20 }
 0x889   :  { %v14532_v13 = vmax.f32 %v13934_v25, 0.0 }
 0x88a   :  { %v6544_v48 = vpop.f32.mrf.mxu2 }
 0x88b   :  { %v6593_v37 = vpop.f32.mrf.mxu3  ;;  %v6648_v26 = vpack.c.bf16 %v14532_v13, %v14533_v9  ;;  %v6545_v18 = vadd.f32 %v6544_v48, %v6496_v0  ;;  %v6456_v0 = vpop.f32.mrf.mxu0  ;;  %v6454_v48 = vadd.f32 %v13851_v38, %v6453_v2  ;;  %v10245_v13 = vld [vmem:[#allocation21 + $0x94] sm:$0xf]  ;;  %v9698_v9 = vld [vmem:[#allocation21 + $0x9c] sm:$0xf0] }
 0x88c   :  { %v6497_v5 = vpop.f32.mrf.mxu1 }
 0x88d   :  { %6836 = vmatmul.bf16.gmra.mxu0 %v6648_v26  ;;  %6885 = vmatmul.bf16.gmra.mxu1 %v6648_v26  ;;  %v6594_v3 = vadd.f32 %v6593_v37, %v6545_v18  ;;  %v6498_v51 = vadd.f32 %v6497_v5, %v6449_v34  ;;  %v6136_v5 = vadd.f32 %v13876_v40, %v13816_v8  ;;  %v6151_v34 = vmax.f32 %v6135_v45, 0.0 }
 0x88e   :  { %6934 = vmatmul.bf16.gmra.mxu2 %v6648_v26 }
 0x88f   :  { %v13947_v30 = vadd.f32 %v6594_v3, %v6149_v12  ;;  %v6152_v12 = vmax.f32 %v6136_v5, 0.0 }
 0x891   :  { %v14531_v23 = vmax.f32 %v13947_v30, 0.0 }
 0x892   :  { %v6546_v47 = vpop.f32.mrf.mxu2 }
 0x893   :  { %v6547_v32 = vadd.f32 %v6546_v47, %v6498_v51  ;;  %v6595_v29 = vpop.f32.mrf.mxu3  ;;  %v6457_v47 = vadd.f32 %v13851_v38, %v6456_v0  ;;  %v6138_v0 = vadd.f32 %v13876_v40, %v13838_v10 }
 0x894   :  { %v6500_v43 = vpop.f32.mrf.mxu1 }
 0x895   :  { %v6596_v52 = vadd.f32 %v6595_v29, %v6547_v32  ;;  %v6501_v31 = vadd.f32 %v6500_v43, %v6452_v61  ;;  %v6458_v43 = vpop.f32.mrf.mxu0 }
 0x897   :  { %v13950_v28 = vadd.f32 %v6596_v52, %v6150_v44 }
 0x899   :  { %v14530_v22 = vmax.f32 %v13950_v28, 0.0 }
 0x89a   :  { %v6549_v15 = vpop.f32.mrf.mxu2 }
 0x89b   :  { %v6598_v19 = vpop.f32.mrf.mxu3  ;;  %v6649_v53 = vpack.c.bf16 %v14530_v22, %v14531_v23  ;;  %v6550_v39 = vadd.f32 %v6549_v15, %v6501_v31  ;;  %v10246_v23 = vld [vmem:[#allocation21 + $0x98] sm:$0xf0] }
 0x89c   :  { %v6502_v20 = vpop.f32.mrf.mxu1 }
 0x89d   :  { %6841 = vmatmul.bf16.gmra.mxu0 %v6649_v53  ;;  %6890 = vmatmul.bf16.gmra.mxu1 %v6649_v53  ;;  %v6599_v37 = vadd.f32 %v6598_v19, %v6550_v39  ;;  %v6503_v26 = vadd.f32 %v6502_v20, %v6454_v48  ;;  %v6459_v19 = vadd.f32 %v13851_v38, %v6458_v43  ;;  %v6461_v48 = vpop.f32.mrf.mxu0 }
 0x89e   :  { %6939 = vmatmul.bf16.gmra.mxu2 %v6649_v53  ;;  %v6137_v53 = vadd.f32 %v13876_v40, %v13829_v27 }
 0x89f   :  { %v13963_v11 = vadd.f32 %v6599_v37, %v6151_v34 }
 0x8a0   :  { %v6153_v37 = vmax.f32 %v6137_v53, 0.0 }
 0x8a1   :  { %v14522_v6 = vmax.f32 %v13963_v11, 0.0 }
 0x8a2   :  { %v6551_v18 = vpop.f32.mrf.mxu2 }
 0x8a3   :  { %v6552_v42 = vadd.f32 %v6551_v18, %v6503_v26  ;;  %v6600_v3 = vpop.f32.mrf.mxu3 }
 0x8a4   :  { %v6505_v51 = vpop.f32.mrf.mxu1 }
 0x8a5   :  { %v6601_v32 = vadd.f32 %v6600_v3, %v6552_v42  ;;  %v6506_v61 = vadd.f32 %v6505_v51, %v6457_v47  ;;  %v6462_v42 = vadd.f32 %v13851_v38, %v6461_v48  ;;  %v6154_v3 = vmax.f32 %v6138_v0, 0.0 }
 0x8a7   :  { %v13966_v29 = vadd.f32 %v6601_v32, %v6152_v12 }
 0x8a9   :  { %v14523_v2 = vmax.f32 %v13966_v29, 0.0 }
 0x8aa   :  { %v6554_v8 = vpop.f32.mrf.mxu2 }
 0x8ab   :  { %v6603_v44 = vpop.f32.mrf.mxu3  ;;  %v6650_v52 = vpack.c.bf16 %v14523_v2, %v14522_v6  ;;  %v6555_v15 = vadd.f32 %v6554_v8, %v6506_v61  ;;  %v6463_v8 = vpop.f32.mrf.mxu0 }
 0x8ac   :  { %v6507_v31 = vpop.f32.mrf.mxu1 }
 0x8ad   :  { %6846 = vmatmul.bf16.gmra.mxu0 %v6650_v52  ;;  %6895 = vmatmul.bf16.gmra.mxu1 %v6650_v52  ;;  %v6604_v20 = vadd.f32 %v6603_v44, %v6555_v15  ;;  %v6508_v39 = vadd.f32 %v6507_v31, %v6459_v19  ;;  %v6464_v31 = vadd.f32 %v13851_v38, %v6463_v8 }
 0x8ae   :  { %6944 = vmatmul.bf16.gmra.mxu2 %v6650_v52  ;;  %v6139_v15 = vadd.f32 %v13876_v40, %v13853_v7 }
 0x8af   :  { %v13979_v34 = vadd.f32 %v6604_v20, %v6153_v37  ;;  %v6140_v20 = vadd.f32 %v13876_v40, %v13874_v41 }
 0x8b0   :  { %v6155_v0 = vmax.f32 %v6139_v15, 0.0 }
 0x8b1   :  { %v14524_v27 = vmax.f32 %v13979_v34, 0.0 }
 0x8b2   :  { %v6556_v45 = vpop.f32.mrf.mxu2 }
 0x8b3   :  { %v6557_v26 = vadd.f32 %v6556_v45, %v6508_v39  ;;  %v6605_v5 = vpop.f32.mrf.mxu3 }
 0x8b4   :  { %v6510_v18 = vpop.f32.mrf.mxu1 }
 0x8b5   :  { %v6606_v51 = vadd.f32 %v6605_v5, %v6557_v26  ;;  %v6511_v32 = vadd.f32 %v6510_v18, %v6462_v42  ;;  %v6156_v26 = vmax.f32 %v6140_v20, 0.0 }
 0x8b7   :  { %v13982_v47 = vadd.f32 %v6606_v51, %v6154_v3 }
 0x8b9   :  { %v14525_v12 = vmax.f32 %v13982_v47, 0.0 }
 0x8ba   :  { %v6559_v10 = vpop.f32.mrf.mxu2 }
 0x8bb   :  { %v6608_v43 = vpop.f32.mrf.mxu3  ;;  %v6651_v61 = vpack.c.bf16 %v14525_v12, %v14524_v27  ;;  %v6560_v44 = vadd.f32 %v6559_v10, %v6511_v32 }
 0x8bc   :  { %v6512_v52 = vpop.f32.mrf.mxu1 }
 0x8bd   :  { %6851 = vmatmul.bf16.gmra.mxu0 %v6651_v61  ;;  %6900 = vmatmul.bf16.gmra.mxu1 %v6651_v61  ;;  %v6609_v19 = vadd.f32 %v6608_v43, %v6560_v44  ;;  %v6513_v53 = vadd.f32 %v6512_v52, %v6464_v31 }
 0x8be   :  { %6949 = vmatmul.bf16.gmra.mxu2 %v6651_v61 }
 0x8bf   :  { %v13995_v37 = vadd.f32 %v6609_v19, %v6155_v0 }
 0x8c1   :  { %v14528_v38 = vmax.f32 %v13995_v37, 0.0 }
 0x8c2   :  { %v6561_v39 = vpop.f32.mrf.mxu2 }
 0x8c3   :  { %v6562_v48 = vadd.f32 %v6561_v39, %v6513_v53  ;;  %v6610_v45 = vpop.f32.mrf.mxu3 }
 0x8c5   :  { %v6611_v5 = vadd.f32 %v6610_v45, %v6562_v48 }
 0x8c7   :  { %v13997_v18 = vadd.f32 %v6611_v5, %v6156_v26 }
 0x8c9   :  { %v14526_v42 = vmax.f32 %v13997_v18, 0.0 }
 0x8cb   :  { %v6652_v7 = vpack.c.bf16 %v14526_v42, %v14528_v38 }
 0x8cd   :  { %6856 = vmatmul.bf16.gmra.mxu0 %v6652_v7  ;;  %6905 = vmatmul.bf16.gmra.mxu1 %v6652_v7 }
 0x8ce   :  { %6954 = vmatmul.bf16.gmra.mxu2 %v6652_v7 }
 0x8da   :  { %v14005_v41 = vpop.f32.mrf.mxu0  ;;  %v14007_v40 = vpop.f32.mrf.mxu1 }
 0x8db   :  { %v6960_v43 = vrot.slane %v14007_v40, 6 }
 0x8e1   :  { %v14009_v3 = vpop.f32.mrf.mxu2 }
 0x8e2   :  { %v6824_v51 = vpop.f32.mrf.mxu0  ;;  %v6873_v32 = vpop.f32.mrf.mxu1  ;;  %v7024_v44 = vrot.slane %v14009_v3, 4 }
 0x8e3   :  { %v6961_v10 = vrot.slane %v6873_v32, 6 }
 0x8e5   :  { %v6990_v61 = vsel %vm2011_vm9, %v6960_v43, %v6961_v10 }
 0x8e6   :  { %v7009_v19 = vadd.f32 %v6990_v61, %v6824_v51 }
 0x8e9   :  { %v6922_v8 = vpop.f32.mrf.mxu2 }
 0x8ea   :  { %v7025_v52 = vrot.slane %v6922_v8, 4  ;;  %v6827_v31 = vpop.f32.mrf.mxu0  ;;  %v6876_v15 = vpop.f32.mrf.mxu1 }
 0x8eb   :  { %v6962_v53 = vrot.slane %v6876_v15, 6 }
 0x8ec   :  { %v7054_v20 = vsel %vm3474_vm6, %v7024_v44, %v7025_v52 }
 0x8ed   :  { %v14021_v39 = vadd.f32 %v7054_v20, %v7009_v19  ;;  %v6989_v0 = vsel %vm2011_vm9, %v6961_v10, %v6962_v53 }
 0x8ee   :  { %v6994_v48 = vsel %vm2030_vm10, %v6989_v0, 0.0 }
 0x8ef   :  { %v7010_v32 = vadd.f32 %v6994_v48, %v6827_v31 }
 0x8f1   :  { %v6925_v45 = vpop.f32.mrf.mxu2 }
 0x8f2   :  { %v7026_v26 = vrot.slane %v6925_v45, 4  ;;  %v6829_v5 = vpop.f32.mrf.mxu0  ;;  %v6878_v7 = vpop.f32.mrf.mxu1  ;;  %v14036_v45 = vld [vmem:[%s14389_s19] ss:$0 sm:$0xff] }
 0x8f3   :  { %v6963_v61 = vrot.slane %v6878_v7, 6 }
 0x8f4   :  { %v7053_v51 = vsel %vm3474_vm6, %v7025_v52, %v7026_v26 }
 0x8f5   :  { %v7058_v8 = vsel %vm3493_vm5, %v7053_v51, 0.0  ;;  %v6988_v19 = vsel %vm2011_vm9, %v6962_v53, %v6963_v61 }
 0x8f6   :  { %v7074_v15 = vadd.f32 %v7058_v8, %v7010_v32  ;;  %v7011_v31 = vadd.f32 %v6988_v19, %v6829_v5 }
 0x8f8   :  { %v7094_v32 = vadd.f32 %v14036_v45, %v7074_v15 }
 0x8f9   :  { %v6927_v10 = vpop.f32.mrf.mxu2 }
 0x8fa   :  { %v7027_v20 = vrot.slane %v6927_v10, 4  ;;  %v6832_v6 = vpop.f32.mrf.mxu0  ;;  %v6881_v0 = vpop.f32.mrf.mxu1  ;;  %v7110_v2 = vmax.f32 %v7094_v32, 0.0 }
 0x8fb   :  { %v6964_v48 = vrot.slane %v6881_v0, 6 }
 0x8fc   :  { %v7052_v52 = vsel %vm3474_vm6, %v7026_v26, %v7027_v20 }
 0x8fd   :  { %v7075_v7 = vadd.f32 %v7052_v52, %v7011_v31  ;;  %v6987_v53 = vsel %vm2011_vm9, %v6963_v61, %v6964_v48 }
 0x8fe   :  { %v6996_v8 = vsel %vm2032_vm11, %v6987_v53, 0.0 }
 0x8ff   :  { %v7095_v51 = vadd.f32 %v14036_v45, %v7075_v7  ;;  %v7012_v26 = vadd.f32 %v6996_v8, %v6832_v6 }
 0x901   :  { %v6930_v10 = vpop.f32.mrf.mxu2  ;;  %v7111_v27 = vmax.f32 %v7095_v51, 0.0 }
 0x902   :  { %v7028_v12 = vrot.slane %v6930_v10, 4  ;;  %v6834_v5 = vpop.f32.mrf.mxu0  ;;  %v6883_v19 = vpop.f32.mrf.mxu1 }
 0x903   :  { %v14046_v0 = vpack.c.bf16 %v7111_v27, %v7110_v2  ;;  %v6965_v31 = vrot.slane %v6883_v19, 6 }
 0x904   :  { %v7051_v15 = vsel %vm3474_vm6, %v7027_v20, %v7028_v12 }
 0x905   :  { %v7060_v61 = vsel %vm3495_vm4, %v7051_v15, 0.0  ;;  %v6986_v7 = vsel %vm2011_vm9, %v6964_v48, %v6965_v31 }
 0x906   :  { %v7076_v52 = vadd.f32 %v7060_v61, %v7012_v26  ;;  %v7013_v42 = vadd.f32 %v6986_v7, %v6834_v5 }
 0x908   :  { %v7096_v27 = vadd.f32 %v14036_v45, %v7076_v52 }
 0x909   :  { %v6932_v53 = vpop.f32.mrf.mxu2 }
 0x90a   :  { %v7029_v32 = vrot.slane %v6932_v53, 4  ;;  %v6837_v51 = vpop.f32.mrf.mxu0  ;;  %v6886_v10 = vpop.f32.mrf.mxu1  ;;  %v7112_v26 = vmax.f32 %v7096_v27, 0.0 }
 0x90b   :  { %v6966_v46 = vrot.slane %v6886_v10, 6 }
 0x90c   :  { %v7050_v6 = vsel %vm3474_vm6, %v7028_v12, %v7029_v32 }
 0x90d   :  { %v7077_v2 = vadd.f32 %v7050_v6, %v7013_v42  ;;  %v6985_v20 = vsel %vm2011_vm9, %v6965_v31, %v6966_v46 }
 0x90e   :  { %v6998_v48 = vsel %vm2034_vm12, %v6985_v20, 0.0 }
 0x90f   :  { %v7097_v8 = vadd.f32 %v14036_v45, %v7077_v2  ;;  %v7014_v12 = vadd.f32 %v6998_v48, %v6837_v51 }
 0x911   :  { %v6935_v19 = vpop.f32.mrf.mxu2  ;;  %v7113_v15 = vmax.f32 %v7097_v8, 0.0 }
 0x912   :  { %v7030_v61 = vrot.slane %v6935_v19, 4  ;;  %v6839_v5 = vpop.f32.mrf.mxu0  ;;  %v6888_v7 = vpop.f32.mrf.mxu1 }
 0x913   :  { %v14062_v53 = vpack.c.bf16 %v7113_v15, %v7112_v26  ;;  %v6967_v52 = vrot.slane %v6888_v7, 6 }
 0x914   :  { %v7049_v42 = vsel %vm3474_vm6, %v7029_v32, %v7030_v61 }
 0x915   :  { %v7062_v31 = vsel %vm3497_vm3, %v7049_v42, 0.0  ;;  %v6984_v6 = vsel %vm2011_vm9, %v6966_v46, %v6967_v52 }
 0x916   :  { %v7078_v10 = vadd.f32 %v7062_v31, %v7014_v12  ;;  %v7015_v19 = vadd.f32 %v6984_v6, %v6839_v5 }
 0x918   :  { %v7098_v32 = vadd.f32 %v14036_v45, %v7078_v10 }
 0x919   :  { %v6937_v2 = vpop.f32.mrf.mxu2 }
 0x91a   :  { %v7031_v27 = vrot.slane %v6937_v2, 4  ;;  %v6842_v20 = vpop.f32.mrf.mxu0  ;;  %v6891_v8 = vpop.f32.mrf.mxu1  ;;  %v7114_v12 = vmax.f32 %v7098_v32, 0.0  ;;  %v10249_v32 = vld [vmem:[#allocation21 + $0xb0] sm:$0xf0] }
 0x91b   :  { %v6968_v38 = vrot.slane %v6891_v8, 6 }
 0x91c   :  { %v7048_v51 = vsel %vm3474_vm6, %v7030_v61, %v7031_v27 }
 0x91d   :  { %v7079_v48 = vadd.f32 %v7048_v51, %v7015_v19  ;;  %v6983_v26 = vsel %vm2011_vm9, %v6967_v52, %v6968_v38 }
 0x91e   :  { %v7000_v46 = vsel %vm2036_vm13, %v6983_v26, 0.0  ;;  %v10248_v26 = vld [vmem:[#allocation21 + $0xac] sm:$0xf] }
 0x91f   :  { %v7099_v15 = vadd.f32 %v14036_v45, %v7079_v48  ;;  %v7016_v61 = vadd.f32 %v7000_v46, %v6842_v20  ;;  %v9708_v48 = vld [vmem:[#allocation21 + $0xa8] sm:$0xf] }
 0x921   :  { %v6940_v7 = vpop.f32.mrf.mxu2  ;;  %v7115_v42 = vmax.f32 %v7099_v15, 0.0  ;;  %v9709_v15 = vor.u32 %v10249_v32, %v9708_v48  ;;  %v9701_v32 = vor.u32 %v10245_v13, %v9698_v9 }
 0x922   :  { %v7032_v31 = vrot.slane %v6940_v7, 4  ;;  %v6844_v5 = vpop.f32.mrf.mxu0  ;;  %v6893_v6 = vpop.f32.mrf.mxu1  ;;  %v9710_v7 = vld [vmem:[#allocation21 + $0xb4] sm:$0xf0] }
 0x923   :  { %v6969_v2 = vrot.slane %v6893_v6, 6  ;;  %v14078_v8 = vpack.c.bf16 %v7115_v42, %v7114_v12  ;;  %v10250_v6 = vld [vmem:[#allocation21 + $0xb8] sm:$0xf0]  ;;  %v9713_v12 = vor.u32 %v10248_v26, %v9710_v7  ;;  %7292 = vmatpush.bf16.msra.mxu3 %v9709_v15  ;;  %v9704_v26 = vld [vmem:[#allocation21 + $0x98] sm:$0xf] }
 0x924   :  { %v7047_v10 = vsel %vm3474_vm6, %v7031_v27, %v7032_v31  ;;  %v9717_v42 = vor.u32 %v10250_v6, %v9716_v24  ;;  %v10247_v24 = vld [vmem:[#allocation21 + $0xa0] sm:$0xf0] }
 0x925   :  { %v7064_v52 = vsel %vm14762_vm2, %v7047_v10, 0.0  ;;  %v6982_v19 = vsel %vm2011_vm9, %v6968_v38, %v6969_v2  ;;  %7341 = vmatpush.bf16.msra.mxu0 %v9713_v12  ;;  %v9696_v10 = vld [vmem:[#allocation21 + $0x90] sm:$0xf]  ;;  %v9705_v6 = vor.u32 %v10247_v24, %v9704_v26  ;;  %v9672_v24 = vld [vmem:[#allocation21 + $0x60] sm:$0xf]  ;;  %vm14765_vm2 = vcmp.ge.s32.totalorder %v14706_v16, 4 }
 0x926   :  { %v7080_v51 = vadd.f32 %v7064_v52, %v7016_v61  ;;  %7390 = vmatpush.bf16.msra.mxu1 %v9717_v42  ;;  %v7017_v38 = vadd.f32 %v6982_v19, %v6844_v5  ;;  %v9697_v52 = vor.u32 %v10246_v23, %v9696_v10  ;;  %v9684_v5 = vld [vmem:[#allocation21 + $0x78] sm:$0xf]  ;;  %v10242_v19 = vld [vmem:[#allocation21 + $0x7c] sm:$0xf]  ;;  %v9686_v42 = vld [vmem:[#allocation21 + $0x84] sm:$0xf0] }
 0x927   :  { %v9689_v13 = vor.u32 %v10242_v19, %v9686_v42  ;;  %v9674_v19 = vld [vmem:[#allocation21 + $0x6c] sm:$0xf0] }
 0x928   :  { %7293 = vmatpush.bf16.msra.mxu3 %v9697_v52  ;;  %v7100_v12 = vadd.f32 %v14036_v45, %v7080_v51 }
 0x929   :  { %v6942_v20 = vpop.f32.mrf.mxu2  ;;  %7342 = vmatpush.bf16.msra.mxu0 %v9701_v32 }
 0x92a   :  { %v7033_v46 = vrot.slane %v6942_v20, 4  ;;  %v6847_v27 = vpop.f32.mrf.mxu0  ;;  %v6896_v22 = vpop.f32.mrf.mxu1  ;;  %7391 = vmatpush.bf16.msra.mxu1 %v9705_v6  ;;  %v9692_v20 = vld [vmem:[#allocation21 + $0x80] sm:$0xf]  ;;  %v7116_v52 = vmax.f32 %v7100_v12, 0.0  ;;  %v10240_v6 = vld [vmem:[#allocation21 + $0x68] sm:$0xf0] }
 0x92b   :  { %v6970_v61 = vrot.slane %v6896_v22, 6  ;;  %v10243_v22 = vld [vmem:[#allocation21 + $0x80] sm:$0xf0]  ;;  %v9680_v12 = vld [vmem:[#allocation21 + $0x68] sm:$0xf] }
 0x92c   :  { %v7046_v48 = vsel %vm3474_vm6, %v7032_v31, %v7033_v46  ;;  %v9685_v23 = vor.u32 %v10243_v22, %v9684_v5  ;;  %v10244_v31 = vld [vmem:[#allocation21 + $0x88] sm:$0xf0]  ;;  %v9673_v22 = vor.u32 %v10240_v6, %v9672_v24 }
 0x92d   :  { %v7081_v7 = vadd.f32 %v7046_v48, %v7017_v38  ;;  %v6981_v15 = vsel %vm2011_vm9, %v6969_v2, %v6970_v61  ;;  %v9693_v38 = vor.u32 %v10244_v31, %v9692_v20  ;;  %7343 = vmatpush.bf16.msra.mxu0 %v9689_v13  ;;  %v10241_v20 = vld [vmem:[#allocation21 + $0x70] sm:$0xf0] }
 0x92e   :  { %v7002_v10 = vsel %vm2038_vm14, %v6981_v15, 0.0  ;;  %7294 = vmatpush.bf16.msra.mxu3 %v9685_v23  ;;  %v9681_v31 = vor.u32 %v10241_v20, %v9680_v12  ;;  %v10233_v20 = vld [vmem:[#allocation21 + $0x34] sm:$0xf] }
 0x92f   :  { %v7101_v9 = vadd.f32 %v14036_v45, %v7081_v7  ;;  %7392 = vmatpush.bf16.msra.mxu1 %v9693_v38  ;;  %v10239_v7 = vld [vmem:[#allocation21 + $0x64] sm:$0xf]  ;;  %v7018_v4 = vadd.f32 %v7002_v10, %v6847_v27  ;;  %v9660_v38 = vld [vmem:[#allocation21 + $0x48] sm:$0xf]  ;;  %v9662_v10 = vld [vmem:[#allocation21 + $0x54] sm:$0xf0] }
 0x930   :  { %v9677_v23 = vor.u32 %v10239_v7, %v9674_v19 }
 0x931   :  { %v6945_v2 = vpop.f32.mrf.mxu2  ;;  %v7117_v51 = vmax.f32 %v7101_v9, 0.0 }
 0x932   :  { %v7034_v48 = vrot.slane %v6945_v2, 4  ;;  %v6849_v32 = vpop.f32.mrf.mxu0  ;;  %v6898_v26 = vpop.f32.mrf.mxu1  ;;  %7295 = vmatpush.bf16.msra.mxu3 %v9673_v22  ;;  %7344 = vmatpush.bf16.msra.mxu0 %v9677_v23  ;;  %v10234_v22 = vld [vmem:[#allocation21 + $0x38] sm:$0xf0] }
 0x933   :  { %v6971_v5 = vrot.slane %v6898_v26, 6  ;;  %v14094_v42 = vpack.c.bf16 %v7117_v51, %v7116_v52  ;;  %v10237_v52 = vld [vmem:[#allocation21 + $0x50] sm:$0xf0]  ;;  %v10236_v51 = vld [vmem:[#allocation21 + $0x4c] sm:$0xf]  ;;  %7393 = vmatpush.bf16.msra.mxu1 %v9681_v31 }
 0x934   :  { %v7045_v15 = vsel %vm3474_vm6, %v7033_v46, %v7034_v48  ;;  %v9661_v27 = vor.u32 %v10237_v52, %v9660_v38  ;;  %v9668_v46 = vld [vmem:[#allocation21 + $0x50] sm:$0xf]  ;;  %v10238_v26 = vld [vmem:[#allocation21 + $0x58] sm:$0xf0]  ;;  %v9665_v24 = vor.u32 %v10236_v51, %v9662_v10  ;;  %v9656_v51 = vld [vmem:[#allocation21 + $0x38] sm:$0xf] }
 0x935   :  { %v7066_v9 = vsel %vm14763_vm15, %v7045_v15, 0.0  ;;  %v6980_v13 = vsel %vm2011_vm9, %v6970_v61, %v6971_v5  ;;  %v9669_v6 = vor.u32 %v10238_v26, %v9668_v46  ;;  %v9648_v61 = vld [vmem:[#allocation21 + $0x30] sm:$0xf]  ;;  %v10235_v10 = vld [vmem:[#allocation21 + $0x40] sm:$0xf0]  ;;  %vm14766_vm15 = vcmp.ge.s32.totalorder %v14713_v62, 4 }
 0x936   :  { %v7082_v2 = vadd.f32 %v7066_v9, %v7018_v4  ;;  %7296 = vmatpush.bf16.msra.mxu3 %v9661_v27  ;;  %7345 = vmatpush.bf16.msra.mxu0 %v9665_v24  ;;  %v7019_v12 = vadd.f32 %v6980_v13, %v6849_v32  ;;  %v9649_v23 = vor.u32 %v10234_v22, %v9648_v61  ;;  %v9650_v9 = vld [vmem:[#allocation21 + $0x3c] sm:$0xf0]  ;;  %v9636_v13 = vld [vmem:[#allocation21 + $0x18] sm:$0xf]  ;;  %v10231_v24 = vld [vmem:[#allocation21 + $0x20] sm:$0xf0] }
 0x937   :  { %7394 = vmatpush.bf16.msra.mxu1 %v9669_v6  ;;  %v9653_v52 = vor.u32 %v10233_v20, %v9650_v9  ;;  %v9657_v26 = vor.u32 %v10235_v10, %v9656_v51  ;;  %v9637_v6 = vor.u32 %v10231_v24, %v9636_v13  ;;  %v10232_v20 = vld [vmem:[#allocation21 + $0x28] sm:$0xf0]  ;;  %v9624_v51 = vld [vmem:[#allocation21] sm:$0xf]  ;;  %v10227_v24 = vld [vmem:[#allocation21 + $0x4] sm:$0xf] }
 0x938   :  { %v7102_v32 = vadd.f32 %v14036_v45, %v7082_v2  ;;  %v10228_v10 = vld [vmem:[#allocation21 + $0x8] sm:$0xf0] }
 0x939   :  { %v6947_v7 = vpop.f32.mrf.mxu2  ;;  %v9625_v13 = vor.u32 %v10228_v10, %v9624_v51 }
 0x93a   :  { %v7035_v19 = vrot.slane %v6947_v7, 4  ;;  %v6901_v15 = vpop.f32.mrf.mxu1  ;;  %v6852_v38 = vpop.f32.mrf.mxu0  ;;  %7297 = vmatpush.bf16.msra.mxu3 %v9649_v23  ;;  %7346 = vmatpush.bf16.msra.mxu0 %v9653_v52  ;;  %v10230_v7 = vld [vmem:[#allocation21 + $0x1c] sm:$0xf]  ;;  %v7118_v9 = vmax.f32 %v7102_v32, 0.0  ;;  %v10229_v32 = vld [vmem:[#allocation21 + $0x10] sm:$0xf0] }
 0x93b   :  { %v6972_v4 = vrot.slane %v6901_v15, 6  ;;  %7395 = vmatpush.bf16.msra.mxu1 %v9657_v26  ;;  %v9638_v15 = vld [vmem:[#allocation21 + $0x24] sm:$0xf0] }
 0x93c   :  { %v7044_v31 = vsel %vm3474_vm6, %v7034_v48, %v7035_v19  ;;  %v9644_v48 = vld [vmem:[#allocation21 + $0x20] sm:$0xf]  ;;  %v9641_v22 = vor.u32 %v10230_v7, %v9638_v15 }
 0x93d   :  { %v7083_v46 = vadd.f32 %v7044_v31, %v7019_v12  ;;  %v6979_v27 = vsel %vm2011_vm9, %v6971_v5, %v6972_v4  ;;  %v9645_v23 = vor.u32 %v10232_v20, %v9644_v48  ;;  %v9632_v48 = vld [vmem:[#allocation21 + $0x8] sm:$0xf] }
 0x93e   :  { %v7004_v12 = vsel %vm14764_vm1, %v6979_v27, 0.0  ;;  %7298 = vmatpush.bf16.msra.mxu3 %v9637_v6  ;;  %7347 = vmatpush.bf16.msra.mxu0 %v9641_v22  ;;  %v9633_v20 = vor.u32 %v10229_v32, %v9632_v48 }
 0x93f   :  { %v7103_v61 = vadd.f32 %v14036_v45, %v7083_v46  ;;  %7396 = vmatpush.bf16.msra.mxu1 %v9645_v23  ;;  %v9626_v46 = vld [vmem:[#allocation21 + $0xc] sm:$0xf0]  ;;  %v7020_v15 = vadd.f32 %v7004_v12, %v6852_v38 }
 0x940   :  { %v9629_v6 = vor.u32 %v10227_v24, %v9626_v46 }
 0x941   :  { %v6950_v5 = vpop.f32.mrf.mxu2  ;;  %v7119_v2 = vmax.f32 %v7103_v61, 0.0 }
 0x942   :  { %v7036_v31 = vrot.slane %v6950_v5, 4  ;;  %v6903_v52 = vpop.f32.mrf.mxu1  ;;  %7299 = vmatpush.bf16.msra.mxu3 %v9625_v13  ;;  %v6854_v23 = vpop.f32.mrf.mxu0  ;;  %7348 = vmatpush.bf16.msra.mxu0 %v9629_v6 }
 0x943   :  { %v6973_v26 = vrot.slane %v6903_v52, 6  ;;  %v14110_v7 = vpack.c.bf16 %v7119_v2, %v7118_v9  ;;  %7397 = vmatpush.bf16.msra.mxu1 %v9633_v20 }
 0x944   :  { %v7043_v27 = vsel %vm3474_vm6, %v7035_v19, %v7036_v31 }
 0x945   :  { %v7068_v61 = vsel %vm14765_vm2, %v7043_v27, 0.0  ;;  %v6978_v22 = vsel %vm2011_vm9, %v6972_v4, %v6973_v26 }
 0x946   :  { %v7084_v5 = vadd.f32 %v7068_v61, %v7020_v15  ;;  %v7021_v2 = vadd.f32 %v6978_v22, %v6854_v23 }
 0x948   :  { %v7104_v4 = vadd.f32 %v14036_v45, %v7084_v5 }
 0x949   :  { %v6952_v9 = vpop.f32.mrf.mxu2 }
 0x94a   :  { %v7037_v38 = vrot.slane %v6952_v9, 4  ;;  %v6906_v12 = vpop.f32.mrf.mxu1  ;;  %v6857_v24 = vpop.f32.mrf.mxu0  ;;  %v7120_v27 = vmax.f32 %v7104_v4, 0.0 }
 0x94b   :  { %v6974_v19 = vrot.slane %v6906_v12, 6 }
 0x94c   :  { %v7042_v52 = vsel %vm3474_vm6, %v7036_v31, %v7037_v38 }
 0x94d   :  { %v7085_v51 = vadd.f32 %v7042_v52, %v7021_v2  ;;  %v6977_v10 = vsel %vm2011_vm9, %v6973_v26, %v6974_v19 }
 0x94e   :  { %v7006_v46 = vsel %vm2042_vm8, %v6977_v10, 0.0 }
 0x94f   :  { %v7105_v13 = vadd.f32 %v14036_v45, %v7085_v51  ;;  %v7022_v31 = vadd.f32 %v7006_v46, %v6857_v24  ;;  %v7093_v24 = vadd.f32 %v14036_v45, %v14021_v39 }
 0x951   :  { %v6955_v15 = vpop.f32.mrf.mxu2  ;;  %v7121_v6 = vmax.f32 %v7105_v13, 0.0  ;;  %v7109_v3 = vmax.f32 %v7093_v24, 0.0 }
 0x952   :  { %v7038_v48 = vrot.slane %v6955_v15, 4  ;;  %v6908_v32 = vpop.f32.mrf.mxu1  ;;  %v6859_v52 = vpop.f32.mrf.mxu0 }
 0x953   :  { %v6975_v61 = vrot.slane %v6908_v32, 6  ;;  %v7130_v22 = vpack.c.bf16 %v7121_v6, %v7120_v27 }
 0x954   :  { %v7041_v20 = vsel %vm3474_vm6, %v7037_v38, %v7038_v48 }
 0x955   :  { %v7070_v26 = vsel %vm3505_vm0, %v7041_v20, 0.0  ;;  %v6976_v5 = vsel %vm2011_vm9, %v6974_v19, %v6975_v61  ;;  %v6991_v9 = vsel %vm2011_vm9, %v6975_v61, %v6960_v43 }
 0x956   :  { %v7086_v23 = vadd.f32 %v7070_v26, %v7022_v31  ;;  %v6992_v12 = vsel %vm2028_vm7, %v6991_v9, 0.0  ;;  %v7023_v10 = vadd.f32 %v6976_v5, %v6859_v52 }
 0x957   :  { %v7008_v38 = vadd.f32 %v6992_v12, %v14005_v41 }
 0x958   :  { %v7106_v13 = vadd.f32 %v14036_v45, %v7086_v23 }
 0x959   :  { %v6957_v2 = vpop.f32.mrf.mxu2 }
 0x95a   :  { %v7039_v51 = vrot.slane %v6957_v2, 4  ;;  %v7122_v27 = vmax.f32 %v7106_v13, 0.0 }
 0x95c   :  { %v7040_v4 = vsel %vm3474_vm6, %v7038_v48, %v7039_v51  ;;  %v7055_v40 = vsel %vm3474_vm6, %v7039_v51, %v7024_v44 }
 0x95d   :  { %v7056_v43 = vsel %vm14766_vm15, %v7055_v40, 0.0  ;;  %v7087_v19 = vadd.f32 %v7040_v4, %v7023_v10 }
 0x95e   :  { %v7072_v46 = vadd.f32 %v7056_v43, %v7008_v38 }
 0x95f   :  { %v7107_v41 = vadd.f32 %v14036_v45, %v7087_v19 }
 0x960   :  { %v7092_v15 = vadd.f32 %v14036_v45, %v7072_v46 }
 0x961   :  { %v7123_v6 = vmax.f32 %v7107_v41, 0.0 }
 0x962   :  { %v7108_v48 = vmax.f32 %v7092_v15, 0.0  ;;  %v14196_v15 = vld [vmem:[%s14391_s21] ss:$0 sm:$0xff] }
 0x963   :  { %v7131_v32 = vpack.c.bf16 %v7123_v6, %v7122_v27 }
 0x964   :  { %v7124_v44 = vpack.c.bf16 %v7109_v3, %v7108_v48 }
 0x966   :  { %7300 = vmatmul.bf16.vlgmr.msra.gmra.mxu3 %v7124_v44  ;;  %7349 = vmatmul.bf16.vlgmr.msra.gmra.mxu0 %v7124_v44 }
 0x967   :  { %7398 = vmatmul.bf16.vlgmr.msra.gmra.mxu1 %v7124_v44 }
 0x976   :  { %7305 = vmatmul.bf16.gmra.mxu3 %v14046_v0  ;;  %7354 = vmatmul.bf16.gmra.mxu0 %v14046_v0 }
 0x977   :  { %7403 = vmatmul.bf16.gmra.mxu1 %v14046_v0 }
 0x986   :  { %7310 = vmatmul.bf16.gmra.mxu3 %v14062_v53  ;;  %7359 = vmatmul.bf16.gmra.mxu0 %v14062_v53 }
 0x987   :  { %7408 = vmatmul.bf16.gmra.mxu1 %v14062_v53 }
 0x996   :  { %7315 = vmatmul.bf16.gmra.mxu3 %v14078_v8  ;;  %7364 = vmatmul.bf16.gmra.mxu0 %v14078_v8 }
 0x997   :  { %7413 = vmatmul.bf16.gmra.mxu1 %v14078_v8 }
 0x9a6   :  { %7320 = vmatmul.bf16.gmra.mxu3 %v14094_v42  ;;  %7369 = vmatmul.bf16.gmra.mxu0 %v14094_v42 }
 0x9a7   :  { %7418 = vmatmul.bf16.gmra.mxu1 %v14094_v42 }
 0x9b6   :  { %7325 = vmatmul.bf16.gmra.mxu3 %v14110_v7  ;;  %7374 = vmatmul.bf16.gmra.mxu0 %v14110_v7 }
 0x9b7   :  { %7423 = vmatmul.bf16.gmra.mxu1 %v14110_v7 }
 0x9c6   :  { %7330 = vmatmul.bf16.gmra.mxu3 %v7130_v22  ;;  %7379 = vmatmul.bf16.gmra.mxu0 %v7130_v22 }
 0x9c7   :  { %7428 = vmatmul.bf16.gmra.mxu1 %v7130_v22 }
 0x9d6   :  { %7335 = vmatmul.bf16.gmra.mxu3 %v7131_v32  ;;  %7384 = vmatmul.bf16.gmra.mxu0 %v7131_v32 }
 0x9d7   :  { %7433 = vmatmul.bf16.gmra.mxu1 %v7131_v32 }
 0x9e3   :  { %v14167_v39 = vpop.f32.mrf.mxu0 }
 0x9e4   :  { %v14169_v45 = vpop.f32.mrf.mxu1  ;;  %v7439_v8 = vrot.slane %v14167_v39, 6 }
 0x9e5   :  { %v7503_v31 = vrot.slane %v14169_v45, 4 }
 0x9e9   :  { %v14171_v0 = vpop.f32.mrf.mxu3 }
 0x9eb   :  { %v7352_v53 = vpop.f32.mrf.mxu0 }
 0x9ec   :  { %v7440_v42 = vrot.slane %v7352_v53, 6  ;;  %v7401_v61 = vpop.f32.mrf.mxu1 }
 0x9ed   :  { %v7504_v7 = vrot.slane %v7401_v61, 4 }
 0x9ee   :  { %v7469_v22 = vsel %vm2011_vm9, %v7439_v8, %v7440_v42 }
 0x9ef   :  { %v7533_v20 = vsel %vm3474_vm6, %v7503_v31, %v7504_v7 }
 0x9f1   :  { %v7303_v26 = vpop.f32.mrf.mxu3 }
 0x9f2   :  { %v7488_v5 = vadd.f32 %v7469_v22, %v7303_v26 }
 0x9f3   :  { %v7355_v23 = vpop.f32.mrf.mxu0 }
 0x9f4   :  { %v14183_v9 = vadd.f32 %v7533_v20, %v7488_v5  ;;  %v7441_v12 = vrot.slane %v7355_v23, 6  ;;  %v7404_v2 = vpop.f32.mrf.mxu1 }
 0x9f5   :  { %v7505_v52 = vrot.slane %v7404_v2, 4 }
 0x9f6   :  { %v7468_v51 = vsel %vm2011_vm9, %v7440_v42, %v7441_v12 }
 0x9f7   :  { %v7532_v10 = vsel %vm3474_vm6, %v7504_v7, %v7505_v52  ;;  %v7473_v4 = vsel %vm2030_vm10, %v7468_v51, 0.0 }
 0x9f8   :  { %v7537_v43 = vsel %vm3493_vm5, %v7532_v10, 0.0  ;;  %vm14775_vm5 = vcmp.ge.s32.totalorder %v14703_v60, 4 }
 0x9f9   :  { %v7306_v38 = vpop.f32.mrf.mxu3 }
 0x9fa   :  { %v7489_v40 = vadd.f32 %v7473_v4, %v7306_v38 }
 0x9fb   :  { %v7357_v19 = vpop.f32.mrf.mxu0 }
 0x9fc   :  { %v7553_v13 = vadd.f32 %v7537_v43, %v7489_v40  ;;  %v7442_v24 = vrot.slane %v7357_v19, 6  ;;  %v7406_v46 = vpop.f32.mrf.mxu1 }
 0x9fd   :  { %v7506_v41 = vrot.slane %v7406_v46, 4 }
 0x9fe   :  { %v7467_v27 = vsel %vm2011_vm9, %v7441_v12, %v7442_v24  ;;  %v7573_v3 = vadd.f32 %v14196_v15, %v7553_v13 }
 0x9ff   :  { %v7531_v6 = vsel %vm3474_vm6, %v7505_v52, %v7506_v41 }
 0xa00   :  { %v7589_v44 = vmax.f32 %v7573_v3, 0.0 }
 0xa01   :  { %v7308_v1 = vpop.f32.mrf.mxu3 }
 0xa02   :  { %v7490_v48 = vadd.f32 %v7467_v27, %v7308_v1  ;;  %v7605_v23 = vadd.f32 %v7589_v44, %v6631_v49 }
 0xa03   :  { %v7360_v32 = vpop.f32.mrf.mxu0 }
 0xa04   :  { %v7554_v53 = vadd.f32 %v7531_v6, %v7490_v48  ;;  %v7443_v42 = vrot.slane %v7360_v32, 6  ;;  %v7409_v61 = vpop.f32.mrf.mxu1  ;;  %v7621_v19 = vmax.f32 %v7605_v23, 0.0 }
 0xa05   :  { %v7507_v7 = vrot.slane %v7409_v61, 4 }
 0xa06   :  { %v7574_v22 = vadd.f32 %v14196_v15, %v7554_v53  ;;  %v7466_v20 = vsel %vm2011_vm9, %v7442_v24, %v7443_v42 }
 0xa07   :  { %v7530_v26 = vsel %vm3474_vm6, %v7506_v41, %v7507_v7  ;;  %v7475_v2 = vsel %vm2032_vm11, %v7466_v20, 0.0 }
 0xa08   :  { %v7590_v5 = vmax.f32 %v7574_v22, 0.0  ;;  %v7539_v10 = vsel %vm3495_vm4, %v7530_v26, 0.0  ;;  %v14767_v26 = vmax.f32 %v13918_v14, 0.0  ;;  %vm14773_vm4 = vmmov %vm14764_vm1 }
 0xa09   :  { %v7311_v12 = vpop.f32.mrf.mxu3 }
 0xa0a   :  { %v7491_v52 = vadd.f32 %v7475_v2, %v7311_v12  ;;  %v7606_v51 = vadd.f32 %v7590_v5, %v6632_v35 }
 0xa0b   :  { %v7362_v38 = vpop.f32.mrf.mxu0 }
 0xa0c   :  { %v7555_v4 = vadd.f32 %v7539_v10, %v7491_v52  ;;  %v7444_v40 = vrot.slane %v7362_v38, 6  ;;  %v7411_v43 = vpop.f32.mrf.mxu1  ;;  %v7622_v13 = vmax.f32 %v7606_v51, 0.0 }
 0xa0d   :  { %v7508_v24 = vrot.slane %v7411_v43, 4 }
 0xa0e   :  { %v7465_v57 = vsel %vm2011_vm9, %v7443_v42, %v7444_v40  ;;  %v14218_v49 = vpack.c.bf16 %v7622_v13, %v7621_v19  ;;  %v7575_v17 = vadd.f32 %v14196_v15, %v7555_v4 }
 0xa0f   :  { %v7529_v46 = vsel %vm3474_vm6, %v7507_v7, %v7508_v24 }
 0xa10   :  { %v7591_v27 = vmax.f32 %v7575_v17, 0.0 }
 0xa11   :  { %v7313_v35 = vpop.f32.mrf.mxu3 }
 0xa12   :  { %v7492_v50 = vadd.f32 %v7465_v57, %v7313_v35  ;;  %v7607_v61 = vadd.f32 %v7591_v27, %v6633_v55 }
 0xa13   :  { %v7365_v41 = vpop.f32.mrf.mxu0 }
 0xa14   :  { %v7556_v6 = vadd.f32 %v7529_v46, %v7492_v50  ;;  %v7445_v3 = vrot.slane %v7365_v41, 6  ;;  %v7414_v1 = vpop.f32.mrf.mxu1  ;;  %v7623_v10 = vmax.f32 %v7607_v61, 0.0 }
 0xa15   :  { %v7509_v48 = vrot.slane %v7414_v1, 4 }
 0xa16   :  { %v7576_v32 = vadd.f32 %v14196_v15, %v7556_v6  ;;  %v7464_v44 = vsel %vm2011_vm9, %v7444_v40, %v7445_v3  ;;  %v14768_v6 = vmax.f32 %v13931_v59, 0.0 }
 0xa17   :  { %v7528_v53 = vsel %vm3474_vm6, %v7508_v24, %v7509_v48  ;;  %v7477_v22 = vsel %vm2034_vm12, %v7464_v44, 0.0  ;;  %v14769_v44 = vmax.f32 %v13934_v25, 0.0 }
 0xa18   :  { %v7592_v42 = vmax.f32 %v7576_v32, 0.0  ;;  %v7541_v23 = vsel %vm3497_vm3, %v7528_v53, 0.0  ;;  %vm14770_vm3 = vcmp.ge.s32.totalorder %v14694_v33, 4 }
 0xa19   :  { %v7316_v7 = vpop.f32.mrf.mxu3 }
 0xa1a   :  { %v7493_v20 = vadd.f32 %v7477_v22, %v7316_v7  ;;  %v7608_v5 = vadd.f32 %v7592_v42, %v14767_v26 }
 0xa1b   :  { %v7367_v12 = vpop.f32.mrf.mxu0 }
 0xa1c   :  { %v7557_v2 = vadd.f32 %v7541_v23, %v7493_v20  ;;  %v7446_v52 = vrot.slane %v7367_v12, 6  ;;  %v7416_v51 = vpop.f32.mrf.mxu1  ;;  %v7624_v38 = vmax.f32 %v7608_v5, 0.0 }
 0xa1d   :  { %v7510_v4 = vrot.slane %v7416_v51, 4 }
 0xa1e   :  { %v7463_v54 = vsel %vm2011_vm9, %v7445_v3, %v7446_v52  ;;  %v14238_v55 = vpack.c.bf16 %v7624_v38, %v7623_v10  ;;  %v7577_v14 = vadd.f32 %v14196_v15, %v7557_v2 }
 0xa1f   :  { %v7527_v40 = vsel %vm3474_vm6, %v7509_v48, %v7510_v4 }
 0xa20   :  { %v7593_v13 = vmax.f32 %v7577_v14, 0.0  ;;  %v14771_v14 = vmax.f32 %v13947_v30, 0.0 }
 0xa21   :  { %v7318_v43 = vpop.f32.mrf.mxu3 }
 0xa22   :  { %v7494_v58 = vadd.f32 %v7463_v54, %v7318_v43  ;;  %v7609_v3 = vadd.f32 %v7593_v13, %v14768_v6 }
 0xa23   :  { %v7370_v19 = vpop.f32.mrf.mxu0 }
 0xa24   :  { %v7558_v24 = vadd.f32 %v7527_v40, %v7494_v58  ;;  %v7447_v57 = vrot.slane %v7370_v19, 6  ;;  %v7419_v46 = vpop.f32.mrf.mxu1  ;;  %v7625_v20 = vmax.f32 %v7609_v3, 0.0  ;;  %v14772_v19 = vmax.f32 %v13950_v28, 0.0 }
 0xa25   :  { %v7511_v17 = vrot.slane %v7419_v46, 4 }
 0xa26   :  { %v7578_v35 = vadd.f32 %v14196_v15, %v7558_v24  ;;  %v7462_v50 = vsel %vm2011_vm9, %v7446_v52, %v7447_v57 }
 0xa27   :  { %v7526_v41 = vsel %vm3474_vm6, %v7510_v4, %v7511_v17  ;;  %v7479_v48 = vsel %vm2036_vm13, %v7462_v50, 0.0 }
 0xa28   :  { %v7594_v27 = vmax.f32 %v7578_v35, 0.0  ;;  %v7543_v42 = vsel %vm14770_vm3, %v7526_v41, 0.0 }
 0xa29   :  { %v7321_v1 = vpop.f32.mrf.mxu3 }
 0xa2a   :  { %v7495_v32 = vadd.f32 %v7479_v48, %v7321_v1  ;;  %v7610_v53 = vadd.f32 %v7594_v27, %v14769_v44 }
 0xa2b   :  { %v7372_v61 = vpop.f32.mrf.mxu0 }
 0xa2c   :  { %v7559_v7 = vadd.f32 %v7543_v42, %v7495_v32  ;;  %v14256_v22 = vpop.f32.mrf.mxu1  ;;  %v7626_v26 = vmax.f32 %v7610_v53, 0.0  ;;  %v7448_v5 = vrot.slane %v7372_v61, 6 }
 0xa2d   :  { %v7512_v23 = vrot.slane %v14256_v22, 4 }
 0xa2e   :  { %v14258_v59 = vpack.c.bf16 %v7626_v26, %v7625_v20  ;;  %v7579_v12 = vadd.f32 %v14196_v15, %v7559_v7  ;;  %v7461_v25 = vsel %vm2011_vm9, %v7447_v57, %v7448_v5 }
 0xa2f   :  { %v7525_v33 = vsel %vm3474_vm6, %v7511_v17, %v7512_v23 }
 0xa30   :  { %v7595_v10 = vmax.f32 %v7579_v12, 0.0 }
 0xa31   :  { %v7323_v2 = vpop.f32.mrf.mxu3 }
 0xa32   :  { %v7496_v52 = vadd.f32 %v7461_v25, %v7323_v2  ;;  %v7611_v43 = vadd.f32 %v7595_v10, %v14771_v14 }
 0xa33   :  { %v7375_v51 = vpop.f32.mrf.mxu0 }
 0xa34   :  { %v7560_v38 = vadd.f32 %v7525_v33, %v7496_v52  ;;  %v14266_v4 = vpop.f32.mrf.mxu1  ;;  %v7627_v46 = vmax.f32 %v7611_v43, 0.0  ;;  %v7449_v28 = vrot.slane %v7375_v51, 6 }
 0xa35   :  { %v7513_v2 = vrot.slane %v14266_v4, 4 }
 0xa36   :  { %v7580_v54 = vadd.f32 %v14196_v15, %v7560_v38  ;;  %v7460_v52 = vsel %vm2011_vm9, %v7448_v5, %v7449_v28 }
 0xa38   :  { %v7596_v40 = vmax.f32 %v7580_v54, 0.0 }
 0xa39   :  { %v7326_v58 = vpop.f32.mrf.mxu3 }
 0xa3a   :  { %v7612_v13 = vadd.f32 %v7596_v40, %v14772_v19 }
 0xa3b   :  { %v7377_v24 = vpop.f32.mrf.mxu0 }
 0xa3c   :  { %v7426_v57 = vpop.f32.mrf.mxu1  ;;  %v7628_v35 = vmax.f32 %v7612_v13, 0.0  ;;  %v7450_v61 = vrot.slane %v7377_v24, 6  ;;  %v7572_v13 = vadd.f32 %v14196_v15, %v14183_v9  ;;  %v7481_v24 = vsel %vm2038_vm14, %v7460_v52, 0.0 }
 0xa3d   :  { %v7514_v33 = vrot.slane %v7426_v57, 4  ;;  %v14777_v52 = vmax.f32 %v13886_v36, 0.0  ;;  %v14780_v36 = vmax.f32 %v13883_v63, 0.0 }
 0xa3e   :  { %v14273_v17 = vpack.c.bf16 %v7628_v35, %v7627_v46 }
 0xa41   :  { %v7328_v50 = vpop.f32.mrf.mxu3 }
 0xa43   :  { %v7380_v41 = vpop.f32.mrf.mxu0 }
 0xa44   :  { %v7429_v27 = vpop.f32.mrf.mxu1  ;;  %v7451_v32 = vrot.slane %v7380_v41, 6  ;;  %v7524_v41 = vsel %vm3474_vm6, %v7512_v23, %v7513_v2 }
 0xa45   :  { %v7515_v26 = vrot.slane %v7429_v27, 4  ;;  %v7459_v27 = vsel %vm2011_vm9, %v7449_v28, %v7450_v61  ;;  %v7545_v39 = vsel %vm14775_vm5, %v7524_v41, 0.0 }
 0xa46   :  { %v7458_v12 = vsel %vm2011_vm9, %v7450_v61, %v7451_v32 }
 0xa47   :  { %v7483_v54 = vsel %vm14773_vm4, %v7458_v12, 0.0  ;;  %v7522_v43 = vsel %vm3474_vm6, %v7514_v33, %v7515_v26  ;;  %v7645_v12 = vmul.u32 16, %v11840_v56  ;;  %v14779_v56 = vmax.f32 %v13995_v37, 0.0 }
 0xa48   :  { %v14784_v37 = vmax.f32 %v13982_v47, 0.0 }
 0xa49   :  { %v7331_v6 = vpop.f32.mrf.mxu3 }
 0xa4a   :  { %v7499_v4 = vadd.f32 %v7483_v54, %v7331_v6 }
 0xa4b   :  { %v7382_v3 = vpop.f32.mrf.mxu0 }
 0xa4c   :  { %v7431_v1 = vpop.f32.mrf.mxu1  ;;  %v7452_v44 = vrot.slane %v7382_v3, 6  ;;  %v7498_v3 = vadd.f32 %v7459_v27, %v7328_v50  ;;  %v7588_v50 = vmax.f32 %v7572_v13, 0.0 }
 0xa4d   :  { %v7516_v22 = vrot.slane %v7431_v1, 4 }
 0xa4e   :  { %v7457_v51 = vsel %vm2011_vm9, %v7451_v32, %v7452_v44  ;;  %v7497_v32 = vadd.f32 %v7481_v24, %v7326_v58 }
 0xa4f   :  { %v7521_v21 = vsel %vm3474_vm6, %v7515_v26, %v7516_v22 }
 0xa50   :  { %v7561_v26 = vadd.f32 %v7545_v39, %v7497_v32 }
 0xa51   :  { %v7333_v48 = vpop.f32.mrf.mxu3 }
 0xa52   :  { %v7500_v40 = vadd.f32 %v7457_v51, %v7333_v48 }
 0xa53   :  { %v7385_v30 = vpop.f32.mrf.mxu0 }
 0xa54   :  { %v7453_v53 = vrot.slane %v7385_v30, 6  ;;  %v7434_v42 = vpop.f32.mrf.mxu1  ;;  %v7564_v1 = vadd.f32 %v7521_v21, %v7500_v40 }
 0xa55   :  { %v7517_v7 = vrot.slane %v7434_v42, 4 }
 0xa56   :  { %v7456_v20 = vsel %vm2011_vm9, %v7452_v44, %v7453_v53 }
 0xa57   :  { %v7520_v25 = vsel %vm3474_vm6, %v7516_v22, %v7517_v7  ;;  %v7485_v38 = vsel %vm2042_vm8, %v7456_v20, 0.0  ;;  %vm14776_vm8 = vmmov %vm14766_vm15 }
 0xa58   :  { %v7549_v5 = vsel %vm3505_vm0, %v7520_v25, 0.0  ;;  %vm14774_vm0 = vmmov %vm14765_vm2 }
 0xa59   :  { %v7336_v10 = vpop.f32.mrf.mxu3  ;;  %v7547_v9 = vsel %vm14774_vm0, %v7522_v43, 0.0 }
 0xa5a   :  { %v7501_v14 = vadd.f32 %v7485_v38, %v7336_v10  ;;  %v7563_v30 = vadd.f32 %v7547_v9, %v7499_v4  ;;  %v7646_v10 = vadd.s32 15, %v7645_v12 }
 0xa5b   :  { %v7387_v19 = vpop.f32.mrf.mxu0 }
 0xa5c   :  { %v7565_v57 = vadd.f32 %v7549_v5, %v7501_v14  ;;  %v7454_v46 = vrot.slane %v7387_v19, 6  ;;  %v7436_v35 = vpop.f32.mrf.mxu1 }
 0xa5d   :  { %v7518_v6 = vrot.slane %v7436_v35, 4 }
 0xa5e   :  { %v7470_v48 = vsel %vm2011_vm9, %v7454_v46, %v7439_v8  ;;  %v7585_v16 = vadd.f32 %v14196_v15, %v7565_v57  ;;  %v7523_v8 = vsel %vm3474_vm6, %v7513_v2, %v7514_v33  ;;  %v7455_v45 = vsel %vm2011_vm9, %v7453_v53, %v7454_v46 }
 0xa5f   :  { %v7471_v23 = vsel %vm2028_vm7, %v7470_v48, 0.0  ;;  %v7534_v44 = vsel %vm3474_vm6, %v7518_v6, %v7503_v31  ;;  %v7562_v61 = vadd.f32 %v7523_v8, %v7498_v3  ;;  %v7584_v31 = vadd.f32 %v14196_v15, %v7564_v1 }
 0xa60   :  { %v7487_v42 = vadd.f32 %v7471_v23, %v14171_v0  ;;  %v7535_v58 = vsel %vm14776_vm8, %v7534_v44, 0.0  ;;  %v7583_v0 = vadd.f32 %v14196_v15, %v7563_v30  ;;  %v7519_v60 = vsel %vm3474_vm6, %v7517_v7, %v7518_v6  ;;  %v10266_v44 = vld [vmem:[#allocation22 + $0x78] sm:$0xff] }
 0xa61   :  { %v7338_v28 = vpop.f32.mrf.mxu3  ;;  %v7601_v2 = vmax.f32 %v7585_v16, 0.0  ;;  %v7604_v53 = vadd.f32 %v7588_v50, %v14777_v52  ;;  %v14778_v33 = vlaneseq  ;;  %v7582_v38 = vadd.f32 %v14196_v15, %v7562_v61  ;;  %7759 = vmatpush.bf16.msra.mxu2 %v10266_v44  ;;  %v10265_v16 = vld [vmem:[#allocation22 + $0x70] sm:$0xff]  ;;  %v10258_v61 = vld [vmem:[#allocation22 + $0x38] sm:$0xff] }
 0xa62   :  { %v7551_v22 = vadd.f32 %v7535_v58, %v7487_v42  ;;  %v7502_v20 = vadd.f32 %v7455_v45, %v7338_v28  ;;  %v7600_v54 = vmax.f32 %v7584_v31, 0.0  ;;  %v7581_v7 = vadd.f32 %v14196_v15, %v7561_v26  ;;  %v10263_v28 = vld [vmem:[#allocation22 + $0x60] sm:$0xff]  ;;  %v10260_v45 = vld [vmem:[#allocation22 + $0x48] sm:$0xff]  ;;  %v10257_v31 = vld [vmem:[#allocation22 + $0x30] sm:$0xff] }
 0xa63   :  { %v7644_v51 = vand.u32 127, %v14778_v33  ;;  %v7599_v4 = vmax.f32 %v7583_v0, 0.0  ;;  %v7617_v43 = vadd.f32 %v7601_v2, %v14779_v56  ;;  %v7620_v24 = vmax.f32 %v7604_v53, 0.0  ;;  %v10312_v33 = vld [vmem:[%s14393_s23] ss:$0 sm:$0xff] }
 0xa64   :  { %v7571_v62 = vadd.f32 %v14196_v15, %v7551_v22  ;;  %v7566_v25 = vadd.f32 %v7519_v60, %v7502_v20  ;;  %v10687_v57 = vmov 1.0|1.0   ;;  %v7598_v46 = vmax.f32 %v7582_v38, 0.0  ;;  %v10254_v22 = vld [vmem:[#allocation22 + $0x18] sm:$0xff]  ;;  %v10252_v20 = vld [vmem:[#allocation22 + $0x8] sm:$0xff]  ;;  %v10259_v60 = vld [vmem:[#allocation22 + $0x40] sm:$0xff] }
 0xa65   :  { %vm7647_vm7 = vcmp.eq.s32.totalorder %v7644_v51, %v7646_v10  ;;  %v7616_v41 = vadd.f32 %v7600_v54, %v14784_v37  ;;  %v7597_v21 = vmax.f32 %v7581_v7, 0.0  ;;  %v7633_v63 = vmax.f32 %v7617_v43, 0.0  ;;  %7760 = vmatpush.bf16.msra.mxu2 %v10265_v16 }
 0xa66   :  { %v7586_v40 = vadd.f32 %v14196_v15, %v7566_v25  ;;  %v7587_v14 = vmax.f32 %v7571_v62, 0.0  ;;  %vm14342_vm9 = vmpackc.low %vm7647_vm7, %vm7647_vm7  ;;  %v14783_v15 = vmax.f32 %v13997_v18, 0.0  ;;  %v14785_v3 = vmax.f32 %v13979_v34, 0.0  ;;  %v10264_v34 = vld [vmem:[#allocation22 + $0x68] sm:$0xff] }
 0xa67   :  { %9720 = vmatmul.msk.bf16.vlgmr.msrb.gmra.mxu2 %vm14342_vm9, %v10687_v57  ;;  %v7632_v32 = vmax.f32 %v7616_v41, 0.0  ;;  %v14786_v30 = vmax.f32 %v13966_v29, 0.0  ;;  %v14787_v50 = vmax.f32 %v13963_v11, 0.0  ;;  %v10262_v29 = vld [vmem:[#allocation22 + $0x58] sm:$0xff]  ;;  %v10261_v11 = vld [vmem:[#allocation22 + $0x50] sm:$0xff] }
 0xa68   :  { %v7602_v5 = vmax.f32 %v7586_v40, 0.0  ;;  %v7603_v19 = vadd.f32 %v7587_v14, %v14780_v36  ;;  %v7615_v9 = vadd.f32 %v7599_v4, %v14785_v3 }
 0xa69   :  { %v7614_v23 = vadd.f32 %v7598_v46, %v14786_v30  ;;  %v7613_v47 = vadd.f32 %v7597_v21, %v14787_v50  ;;  %7761 = vmatpush.bf16.msra.mxu2 %v10264_v34 }
 0xa6a   :  { %v7618_v35 = vadd.f32 %v7602_v5, %v14783_v15  ;;  %v7619_v27 = vmax.f32 %v7603_v19, 0.0  ;;  %v7631_v18 = vmax.f32 %v7615_v9, 0.0 }
 0xa6b   :  { %v7630_v39 = vmax.f32 %v7614_v23, 0.0  ;;  %v7629_v8 = vmax.f32 %v7613_v47, 0.0 }
 0xa6c   :  { %v7634_v6 = vmax.f32 %v7618_v35, 0.0  ;;  %v7635_v1 = vpack.c.bf16 %v7620_v24, %v7619_v27  ;;  %v7641_v42 = vpack.c.bf16 %v7632_v32, %v7631_v18 }
 0xa6d   :  { %v7640_v58 = vpack.c.bf16 %v7630_v39, %v7629_v8  ;;  %7762 = vmatpush.bf16.msra.mxu2 %v10263_v28 }
 0xa6e   :  { %v7642_v48 = vpack.c.bf16 %v7634_v6, %v7633_v63 }
 0xa70   :  { %7665 = vmatpush.bf16.msrb.mxu3 %v7642_v48 }
 0xa71   :  { %7763 = vmatpush.bf16.msra.mxu2 %v10262_v29 }
 0xa74   :  { %7666 = vmatpush.bf16.msrb.mxu3 %v7641_v42 }
 0xa75   :  { %7764 = vmatpush.bf16.msra.mxu2 %v10261_v11 }
 0xa78   :  { %7667 = vmatpush.bf16.msrb.mxu3 %v7640_v58 }
 0xa79   :  { %7765 = vmatpush.bf16.msra.mxu2 %v10260_v45 }
 0xa7c   :  { %7668 = vmatpush.bf16.msrb.mxu3 %v14273_v17  ;;  %v10256_v17 = vld [vmem:[#allocation22 + $0x28] sm:$0xff] }
 0xa7d   :  { %7766 = vmatpush.bf16.msra.mxu2 %v10259_v60 }
 0xa80   :  { %7669 = vmatpush.bf16.msrb.mxu3 %v14258_v59  ;;  %v10255_v59 = vld [vmem:[#allocation22 + $0x20] sm:$0xff] }
 0xa84   :  { %7670 = vmatpush.bf16.msrb.mxu3 %v14238_v55  ;;  %v10253_v55 = vld [vmem:[#allocation22 + $0x10] sm:$0xff] }
 0xa88   :  { %7671 = vmatpush.bf16.msrb.mxu3 %v14218_v49  ;;  %v10251_v49 = vld [vmem:[#allocation22] sm:$0xff] }
 0xa8c   :  { %7672 = vmatpush.bf16.msrb.mxu3 %v7635_v1 }
 0xa8f   :  { %9722 = vmatmul.msk.bf16.vlgmr.msrb.gmra.mxu3 %vm14342_vm9, %v10687_v57 }
 0xa90   :  { %7820 = vmatpush.bf16.msra.mxu3 %v10258_v61 }
 0xa94   :  { %7821 = vmatpush.bf16.msra.mxu3 %v10257_v31 }
 0xa98   :  { %7822 = vmatpush.bf16.msra.mxu3 %v10256_v17 }
 0xa9c   :  { %7823 = vmatpush.bf16.msra.mxu3 %v10255_v59 }
 0xaa0   :  { %7824 = vmatpush.bf16.msra.mxu3 %v10254_v22 }
 0xaa4   :  { %7825 = vmatpush.bf16.msra.mxu3 %v10253_v55 }
 0xaa8   :  { %7826 = vmatpush.bf16.msra.mxu3 %v10252_v20 }
 0xaac   :  { %7827 = vmatpush.bf16.msra.mxu3 %v10251_v49 }
 0xaea   :  { %v7660_v26 = vpop.f32.mrf.mxu2 }
 0xaeb   :  { %v7664_v0 = vpack.c.bf16 %v7660_v26, %v7660_v26 }
 0xaed   :  { %7828 = vmatmul.bf16.vlgmr.msra.gmra.mxu3 %v7664_v0 }
 0xaf2   :  { %v7662_v12 = vpop.f32.mrf.mxu2 }
 0xb12   :  { %v7674_v2 = vpop.f32.mrf.mxu3 }
 0xb13   :  { %v7678_v62 = vpack.c.bf16 %v7674_v2, %v7674_v2 }
 0xb15   :  { %7767 = vmatmul.bf16.vlgmr.msra.gmra.mxu2 %v7678_v62 }
 0xb1a   :  { %v7676_v25 = vpop.f32.mrf.mxu3 }
 0xb70   :  { %v7829_v52 = vpop.f32.mrf.mxu3 }
 0xb78   :  { %v7831_v53 = vpop.f32.mrf.mxu3 }
 0xb98   :  { %v7768_v51 = vpop.f32.mrf.mxu2 }
 0xb99   :  { %v7830_v10 = vadd.f32 %v7829_v52, %v7768_v51 }
 0xb9b   :  { %v7837_v38 = vadd.f32 %v10312_v33, %v7830_v10 }
 0xb9d   :  { %7838 = vmax.xlane.f32.xlu0 %v7837_v38 }
 0xba0   :  { %v7770_v54 = vpop.f32.mrf.mxu2 }
 0xc10   :  { %v7839_v40 = vpop.xlane.xlu0 %7838 }
 0xc11   :  { %v7840_v14 = vsub.f32 %v7837_v38, %v7839_v40 }
 0xc13   :  { %v7841_v7 = vmul.f32 1.442695, %v7840_v14 }
 0xc15   :  { %10313 = vpow2.f32 %v7841_v7 }
 0xc1b   :  { %v10314_v4 = vpop.eup %10313 }
 0xc1c   :  { %7843 = vadd.xlane.f32.xlu0 %v10314_v4 }
 0xc8f   :  { %v7844_v56 = vpop.xlane.xlu0 %7843 }
 0xc90   :  { %10315 = vlog2.f32 %v7844_v56 }
 0xc96   :  { %v10316_v43 = vpop.eup %10315 }
 0xc97   :  { %v7846_v5 = vmul.f32 0.6931472, %v10316_v43 }
 0xc99   :  { %v7847_v36 = vadd.f32 %v7846_v5, %v7839_v40 }
 0xc9b   :  { %v7848_v19 = vsub.f32 %v7837_v38, %v7847_v36 }
 0xc9d   :  { %7849 = vst [vmem:[%s14394_s24] sm:$0xff] %v7848_v19 }
 0xc9e   :  { %7854 = vsyncpa [#allocation3], 1 }
 0xc9f   :  { %7855 = vsyncpa [#allocation5], 1 }
 0xca0   :  { %7856 = vsyncpa [#allocation8], 1 }
 0xca1   :  { %7857 = vsyncpa [#allocation11], 1 }
 0xca2   :  { %7858 = vsyncpa [#allocation14], 1 }
 0xca3   :  { %7859 = vsyncpa [#allocation17], 1 }
 0xca4   :  { %7860 = vsyncpa [#allocation20], 1 }
 0xca5   :  { %7861 = vsyncpa [#allocation23], 1 }

</bundles_post_ra>
